<compile_context>
chip_gen: v7x
topology: tpu7x:2x2x1
jax: 0.10.0
libtpu: 0.0.40
codegen_flags: <defaults>
</compile_context>

<pallas_src>
import jax
import jax.numpy as jnp
from jax.experimental import pallas as pl
from jax.experimental.pallas import tpu as pltpu

BASEWIDTH = 64
CARDINALITY = 32
DEPTH = 4
BN_EPS = 1e-5
VMEM_LIMIT = 32 * 1024 * 1024       # fits the 64 MiB/TC budget of v7x with headroom


def _cparams(n_axes):
    return pltpu.CompilerParams(
        dimension_semantics=("parallel",) * n_axes,
        vmem_limit_bytes=VMEM_LIMIT)


def _pick_block_rows(m, bytes_per_row, budget=2 * 1024 * 1024):
    """Largest row block that divides m, is a multiple of 8, and fits the byte budget."""
    cap = max(8, budget // max(bytes_per_row, 1))
    if m <= cap:
        return m
    start = (min(m, cap) // 8) * 8
    for cand in range(start, 7, -8):
        if m % cand == 0:
            return cand
    return m


def _bn_scale_shift(s_part, q_part, gamma, beta, count):
    """Fold per-tile (sum, sum_sq) partials into fused per-channel BN (scale, shift)."""
    c = s_part.shape[-1]
    s = jnp.sum(s_part, axis=tuple(range(s_part.ndim - 1)))
    q = jnp.sum(q_part, axis=tuple(range(q_part.ndim - 1)))
    gamma = gamma.reshape(c)
    beta = beta.reshape(c)
    mean = s * (1.0 / count)
    var = jnp.maximum(q * (1.0 / count) - mean * mean, 0.0)   # biased var (training mode)
    inv = jax.lax.rsqrt(var + BN_EPS)
    scale = gamma * inv
    shift = beta - mean * scale
    return scale, shift


# ---------------------------------------------------------------------------
# stage 1: grouped 1x1 conv over flattened pixels (M = N*H*W) + BN1 partials
# ---------------------------------------------------------------------------
def _stage1(x2d, w1_bf, bm):
    M, Cin = x2d.shape
    CD = w1_bf.shape[1]
    G = M // bm

    def kernel(x_ref, w1_ref, t1_ref, s1_ref, q1_ref):
        t1 = jnp.dot(x_ref[...].astype(jnp.bfloat16), w1_ref[...],
                     preferred_element_type=jnp.float32)
        t1_ref[...] = t1.astype(jnp.bfloat16)          # bf16 inter-stage storage
        s1_ref[...] = jnp.sum(t1, axis=0, keepdims=True)
        q1_ref[...] = jnp.sum(t1 * t1, axis=0, keepdims=True)

    return pl.pallas_call(
        kernel,
        out_shape=(jax.ShapeDtypeStruct((M, CD), jnp.bfloat16),
                   jax.ShapeDtypeStruct((G, 1, CD), jnp.float32),
                   jax.ShapeDtypeStruct((G, 1, CD), jnp.float32)),
        grid=(G,),
        in_specs=[pl.BlockSpec((bm, Cin), lambda i: (i, 0)),
                  pl.BlockSpec((Cin, CD), lambda i: (0, 0))],
        out_specs=(pl.BlockSpec((bm, CD), lambda i: (i, 0)),
                   pl.BlockSpec((None, 1, CD), lambda i: (i, 0, 0)),
                   pl.BlockSpec((None, 1, CD), lambda i: (i, 0, 0))),
        compiler_params=_cparams(1),
    )(x2d, w1_bf)


# ---------------------------------------------------------------------------
# stage 2: BN1+ReLU -> grouped 3x3 conv (stride, pad=1) via im2col, single K=9*CD dot
# ---------------------------------------------------------------------------
def _stage2(t1_4d, s1, q1, g1, b1, w2_bf, stride, count1):
    N, H, W, CD = t1_4d.shape
    Ho = (H - 1) // stride + 1
    Wo = (W - 1) // stride + 1
    G1 = s1.shape[0]

    def kernel(t1_ref, s1_ref, q1_ref, g1_ref, b1_ref, w2_ref,
               t2_ref, s2_ref, q2_ref, pad_ref, col_ref):
        # in-kernel BN1 fold (rsqrt -> EUP), single FMA + ReLU in f32
        scale, shift = _bn_scale_shift(s1_ref[...], q1_ref[...],
                                       g1_ref[...], b1_ref[...], count1)
        x1 = jnp.maximum(t1_ref[...].astype(jnp.float32) * scale + shift, 0.0)

        # bf16 padded scratch: zero only the 1-pixel halo, cast interior once
        pad_ref[0:1] = jnp.zeros((1, W + 2, CD), jnp.bfloat16)
        pad_ref[H + 1:H + 2] = jnp.zeros((1, W + 2, CD), jnp.bfloat16)
        pad_ref[:, 0:1, :] = jnp.zeros((H + 2, 1, CD), jnp.bfloat16)
        pad_ref[:, W + 1:W + 2, :] = jnp.zeros((H + 2, 1, CD), jnp.bfloat16)
        pad_ref[1:H + 1, 1:W + 1, :] = x1.astype(jnp.bfloat16)
        padded = pad_ref[...]

        # im2col: nine taps concatenated along K -> one MXU contraction (K = 9*CD)
        # TODO(synk): for stride=2 deinterleave even/odd columns once instead of 9 strided slices.
        for dy in range(3):
            for dx in range(3):
                k = dy * 3 + dx
                win = padded[dy:dy + (Ho - 1) * stride + 1:stride,
                             dx:dx + (Wo - 1) * stride + 1:stride, :]
                col_ref[:, k * CD:(k + 1) * CD] = win.reshape(Ho * Wo, CD)

        t2 = jnp.dot(col_ref[...], w2_ref[...], preferred_element_type=jnp.float32)
        t2_ref[...] = t2.reshape(Ho, Wo, CD).astype(jnp.bfloat16)
        s2_ref[...] = jnp.sum(t2, axis=0, keepdims=True)
        q2_ref[...] = jnp.sum(t2 * t2, axis=0, keepdims=True)

    return pl.pallas_call(
        kernel,
        out_shape=(jax.ShapeDtypeStruct((N, Ho, Wo, CD), jnp.bfloat16),
                   jax.ShapeDtypeStruct((N, 1, CD), jnp.float32),
                   jax.ShapeDtypeStruct((N, 1, CD), jnp.float32)),
        grid=(N,),
        in_specs=[
            pl.BlockSpec((None, H, W, CD), lambda n: (n, 0, 0, 0)),
            pl.BlockSpec((G1, 1, CD), lambda n: (0, 0, 0)),
            pl.BlockSpec((G1, 1, CD), lambda n: (0, 0, 0)),
            pl.BlockSpec((1, CD), lambda n: (0, 0)),
            pl.BlockSpec((1, CD), lambda n: (0, 0)),
            pl.BlockSpec((9 * CD, CD), lambda n: (0, 0)),
        ],
        out_specs=(
            pl.BlockSpec((None, Ho, Wo, CD), lambda n: (n, 0, 0, 0)),
            pl.BlockSpec((None, 1, CD), lambda n: (n, 0, 0)),
            pl.BlockSpec((None, 1, CD), lambda n: (n, 0, 0)),
        ),
        scratch_shapes=[
            pltpu.VMEM((H + 2, W + 2, CD), jnp.bfloat16),
            pltpu.VMEM((Ho * Wo, 9 * CD), jnp.bfloat16),
        ],
        compiler_params=_cparams(1),
    )(t1_4d, s1, q1, g1, b1, w2_bf)


# ---------------------------------------------------------------------------
# stage 3: BN2+ReLU -> dense 1x1 conv (+ fused projection shortcut) + BN partials
# ---------------------------------------------------------------------------
def _stage3_proj(t2_2d, xs2d, s2, q2, g2, b2, w3_bf, ws_bf, bm, count2):
    M, CD = t2_2d.shape
    Cin = xs2d.shape[1]
    Cout4 = w3_bf.shape[1]
    G = M // bm
    G2 = s2.shape[0]

    def kernel(t2_ref, xs_ref, s2_ref, q2_ref, g2_ref, b2_ref, w3_ref, ws_ref,
               t3_ref, s3_ref, q3_ref, ts_ref, ss_ref, qs_ref):
        scale, shift = _bn_scale_shift(s2_ref[...], q2_ref[...],
                                       g2_ref[...], b2_ref[...], count2)
        x2 = jnp.maximum(t2_ref[...].astype(jnp.float32) * scale + shift, 0.0)
        t3 = jnp.dot(x2.astype(jnp.bfloat16), w3_ref[...],
                     preferred_element_type=jnp.float32)
        t3_ref[...] = t3.astype(jnp.bfloat16)
        s3_ref[...] = jnp.sum(t3, axis=0, keepdims=True)
        q3_ref[...] = jnp.sum(t3 * t3, axis=0, keepdims=True)
        ts = jnp.dot(xs_ref[...].astype(jnp.bfloat16), ws_ref[...],
                     preferred_element_type=jnp.float32)
        ts_ref[...] = ts.astype(jnp.bfloat16)
        ss_ref[...] = jnp.sum(ts, axis=0, keepdims=True)
        qs_ref[...] = jnp.sum(ts * ts, axis=0, keepdims=True)

    return pl.pallas_call(
        kernel,
        out_shape=(
            jax.ShapeDtypeStruct((M, Cout4), jnp.bfloat16),
            jax.ShapeDtypeStruct((G, 1, Cout4), jnp.float32),
            jax.ShapeDtypeStruct((G, 1, Cout4), jnp.float32),
            jax.ShapeDtypeStruct((M, Cout4), jnp.bfloat16),
            jax.ShapeDtypeStruct((G, 1, Cout4), jnp.float32),
            jax.ShapeDtypeStruct((G, 1, Cout4), jnp.float32),
        ),
        grid=(G,),
        in_specs=[
            pl.BlockSpec((bm, CD), lambda i: (i, 0)),
            pl.BlockSpec((bm, Cin), lambda i: (i, 0)),
            pl.BlockSpec((G2, 1, CD), lambda i: (0, 0, 0)),
            pl.BlockSpec((G2, 1, CD), lambda i: (0, 0, 0)),
            pl.BlockSpec((1, CD), lambda i: (0, 0)),
            pl.BlockSpec((1, CD), lambda i: (0, 0)),
            pl.BlockSpec((CD, Cout4), lambda i: (0, 0)),
            pl.BlockSpec((Cin, Cout4), lambda i: (0, 0)),
        ],
        out_specs=(
            pl.BlockSpec((bm, Cout4), lambda i: (i, 0)),
            pl.BlockSpec((None, 1, Cout4), lambda i: (i, 0, 0)),
            pl.BlockSpec((None, 1, Cout4), lambda i: (i, 0, 0)),
            pl.BlockSpec((bm, Cout4), lambda i: (i, 0)),
            pl.BlockSpec((None, 1, Cout4), lambda i: (i, 0, 0)),
            pl.BlockSpec((None, 1, Cout4), lambda i: (i, 0, 0)),
        ),
        compiler_params=_cparams(1),
    )(t2_2d, xs2d, s2, q2, g2, b2, w3_bf, ws_bf)


def _stage3_id(t2_2d, s2, q2, g2, b2, w3_bf, bm, count2):
    M, CD = t2_2d.shape
    Cout4 = w3_bf.shape[1]
    G = M // bm
    G2 = s2.shape[0]

    def kernel(t2_ref, s2_ref, q2_ref, g2_ref, b2_ref, w3_ref,
               t3_ref, s3_ref, q3_ref):
        scale, shift = _bn_scale_shift(s2_ref[...], q2_ref[...],
                                       g2_ref[...], b2_ref[...], count2)
        x2 = jnp.maximum(t2_ref[...].astype(jnp.float32) * scale + shift, 0.0)
        t3 = jnp.dot(x2.astype(jnp.bfloat16), w3_ref[...],
                     preferred_element_type=jnp.float32)
        t3_ref[...] = t3.astype(jnp.bfloat16)
        s3_ref[...] = jnp.sum(t3, axis=0, keepdims=True)
        q3_ref[...] = jnp.sum(t3 * t3, axis=0, keepdims=True)

    return pl.pallas_call(
        kernel,
        out_shape=(
            jax.ShapeDtypeStruct((M, Cout4), jnp.bfloat16),
            jax.ShapeDtypeStruct((G, 1, Cout4), jnp.float32),
            jax.ShapeDtypeStruct((G, 1, Cout4), jnp.float32),
        ),
        grid=(G,),
        in_specs=[
            pl.BlockSpec((bm, CD), lambda i: (i, 0)),
            pl.BlockSpec((G2, 1, CD), lambda i: (0, 0, 0)),
            pl.BlockSpec((G2, 1, CD), lambda i: (0, 0, 0)),
            pl.BlockSpec((1, CD), lambda i: (0, 0)),
            pl.BlockSpec((1, CD), lambda i: (0, 0)),
            pl.BlockSpec((CD, Cout4), lambda i: (0, 0)),
        ],
        out_specs=(
            pl.BlockSpec((bm, Cout4), lambda i: (i, 0)),
            pl.BlockSpec((None, 1, Cout4), lambda i: (i, 0, 0)),
            pl.BlockSpec((None, 1, Cout4), lambda i: (i, 0, 0)),
        ),
        compiler_params=_cparams(1),
    )(t2_2d, s2, q2, g2, b2, w3_bf)


# ---------------------------------------------------------------------------
# finalize: BN3 (+ shortcut BN or identity) + residual add + ReLU
# ---------------------------------------------------------------------------
def _finalize_proj(t3_2d, ts_2d, s3, q3, g3, b3, ss, qs, gs, bs, bm, count3):
    M, Cout4 = t3_2d.shape
    G = M // bm
    G3 = s3.shape[0]

    def kernel(t3_ref, ts_ref, s3_ref, q3_ref, g3_ref, b3_ref,
               ss_ref, qs_ref, gs_ref, bs_ref, out_ref):
        sc3, sh3 = _bn_scale_shift(s3_ref[...], q3_ref[...],
                                   g3_ref[...], b3_ref[...], count3)
        scs, shs = _bn_scale_shift(ss_ref[...], qs_ref[...],
                                   gs_ref[...], bs_ref[...], count3)
        y = t3_ref[...].astype(jnp.float32) * sc3 + sh3
        s = ts_ref[...].astype(jnp.float32) * scs + shs
        out_ref[...] = jnp.maximum(y + s, 0.0)

    vec = pl.BlockSpec((1, Cout4), lambda i: (0, 0))
    part = pl.BlockSpec((G3, 1, Cout4), lambda i: (0, 0, 0))
    blk = pl.BlockSpec((bm, Cout4), lambda i: (i, 0))
    return pl.pallas_call(
        kernel,
        out_shape=jax.ShapeDtypeStruct((M, Cout4), jnp.float32),
        grid=(G,),
        in_specs=[blk, blk, part, part, vec, vec, part, part, vec, vec],
        out_specs=blk,
        compiler_params=_cparams(1),
    )(t3_2d, ts_2d, s3, q3, g3, b3, ss, qs, gs, bs)


def _finalize_id(t3_2d, x2d, s3, q3, g3, b3, bm, count3):
    M, Cout4 = t3_2d.shape
    G = M // bm
    G3 = s3.shape[0]

    def kernel(t3_ref, x_ref, s3_ref, q3_ref, g3_ref, b3_ref, out_ref):
        sc3, sh3 = _bn_scale_shift(s3_ref[...], q3_ref[...],
                                   g3_ref[...], b3_ref[...], count3)
        y = t3_ref[...].astype(jnp.float32) * sc3 + sh3
        out_ref[...] = jnp.maximum(y + x_ref[...], 0.0)

    vec = pl.BlockSpec((1, Cout4), lambda i: (0, 0))
    part = pl.BlockSpec((G3, 1, Cout4), lambda i: (0, 0, 0))
    blk = pl.BlockSpec((bm, Cout4), lambda i: (i, 0))
    return pl.pallas_call(
        kernel,
        out_shape=jax.ShapeDtypeStruct((M, Cout4), jnp.float32),
        grid=(G,),
        in_specs=[blk, blk, part, part, vec, vec],
        out_specs=blk,
        compiler_params=_cparams(1),
    )(t3_2d, x2d, s3, q3, g3, b3)


# ---------------------------------------------------------------------------
# forward wrapper
# ---------------------------------------------------------------------------
def resnext_bottleneck_c(x_nchw, kernel_params, stride):
    (w1, g1, b1, w2, g2, b2, w3, g3, b3, ws, gs, bs) = kernel_params
    N, Cin, H, W = x_nchw.shape
    CD = w1.shape[1]
    Cout4 = w3.shape[1]
    Ho = (H - 1) // stride + 1
    Wo = (W - 1) // stride + 1
    use_proj = ws is not None

    # NCHW <-> NHWC only at the module boundary (true model edge).
    x = jnp.transpose(x_nchw, (0, 2, 3, 1)).astype(jnp.float32)
    x2d = x.reshape(N * H * W, Cin)

    # weights cast to bf16 once; matmuls accumulate in f32 on the MXU
    w1b = w1.astype(jnp.bfloat16)
    w2b = w2.astype(jnp.bfloat16)            # (9*CD, CD)
    w3b = w3.astype(jnp.bfloat16)
    wsb = ws.astype(jnp.bfloat16) if use_proj else None

    g1r, b1r = g1.reshape(1, CD), b1.reshape(1, CD)
    g2r, b2r = g2.reshape(1, CD), b2.reshape(1, CD)
    g3r, b3r = g3.reshape(1, Cout4), b3.reshape(1, Cout4)

    M1 = N * H * W
    M3 = N * Ho * Wo
    bm1 = _pick_block_rows(M1, max(Cin, CD) * 4)
    bm3 = _pick_block_rows(M3, max(CD, Cin, Cout4) * 4)

    # stage 1: grouped 1x1 conv on flattened pixels
    t1_2d, s1, q1 = _stage1(x2d, w1b, bm1)

    # stage 2: BN1+ReLU -> grouped 3x3 conv (im2col, single K=9*CD contraction)
    t2, s2, q2 = _stage2(t1_2d.reshape(N, H, W, CD), s1, q1, g1r, b1r, w2b,
                         stride, float(M1))
    t2_2d = t2.reshape(M3, CD)

    if use_proj:
        xs2d = x2d if stride == 1 else x[:, ::stride, ::stride, :].reshape(M3, Cin)
        t3_2d, s3, q3, ts_2d, ss, qs = _stage3_proj(
            t2_2d, xs2d, s2, q2, g2r, b2r, w3b, wsb, bm3, float(M3))
        out2d = _finalize_proj(t3_2d, ts_2d, s3, q3, g3r, b3r,
                               ss, qs, gs.reshape(1, Cout4), bs.reshape(1, Cout4),
                               bm3, float(M3))
    else:
        t3_2d, s3, q3 = _stage3_id(t2_2d, s2, q2, g2r, b2r, w3b, bm3, float(M3))
        out2d = _finalize_id(t3_2d, x2d, s3, q3, g3r, b3r, bm3, float(M3))

    out = out2d.reshape(N, Ho, Wo, Cout4)
    return jnp.transpose(out, (0, 3, 1, 2))                  # NHWC -> NCHW


# ---------------- parameter setup (glue) ----------------

def _grouped_1x1_to_matmul(w, groups):
    # w: [Cout, Cin//groups, 1, 1] (OIHW) -> block-diagonal [Cin, Cout]
    Cout, Cin_pg = w.shape[0], w.shape[1]
    out_pg = Cout // groups
    Cin = Cin_pg * groups
    M = jnp.zeros((Cin, Cout), jnp.float32)
    for g in range(groups):
        blk = w[g * out_pg:(g + 1) * out_pg, :, 0, 0]                 # [out_pg, Cin_pg]
        M = M.at[g * Cin_pg:(g + 1) * Cin_pg,
                 g * out_pg:(g + 1) * out_pg].set(blk.T)
    return M


def _grouped_3x3_to_matmul(w, groups):
    # w: [CD, D, 3, 3] (OIHW, grouped) -> per-tap block-diagonal, flattened to [9*CD, CD]
    CD, D = w.shape[0], w.shape[1]
    M = jnp.zeros((3, 3, CD, CD), jnp.float32)
    for g in range(groups):
        blk = w[g * D:(g + 1) * D]                                    # [D, D, 3, 3]
        M = M.at[:, :, g * D:(g + 1) * D, g * D:(g + 1) * D].set(
            jnp.transpose(blk, (2, 3, 1, 0)))                         # [3,3,Din,Dout]
    return M.reshape(9 * CD, CD)


def init_params(key, in_channels, out_channels, stride):
    C = CARDINALITY
    D = int(DEPTH * out_channels / BASEWIDTH)
    CD = C * D
    Cout4 = out_channels * 4
    use_proj = (stride != 1) or (in_channels != Cout4)
    ks = jax.random.split(key, 12)

    w1_t = 0.2 * jax.random.normal(ks[0], (CD, in_channels // C, 1, 1), jnp.float32)
    w2_t = 0.2 * jax.random.normal(ks[1], (CD, D, 3, 3), jnp.float32)
    w3_t = 0.2 * jax.random.normal(ks[2], (Cout4, CD, 1, 1), jnp.float32)
    g1 = 1.0 + 0.1 * jax.random.normal(ks[4], (CD,), jnp.float32)
    b1 = 0.1 * jax.random.normal(ks[5], (CD,), jnp.float32)
    g2 = 1.0 + 0.1 * jax.random.normal(ks[6], (CD,), jnp.float32)
    b2 = 0.1 * jax.random.normal(ks[7], (CD,), jnp.float32)
    g3 = 1.0 + 0.1 * jax.random.normal(ks[8], (Cout4,), jnp.float32)
    b3 = 0.1 * jax.random.normal(ks[9], (Cout4,), jnp.float32)
    if use_proj:
        ws_t = 0.2 * jax.random.normal(ks[3], (Cout4, in_channels, 1, 1), jnp.float32)
        gs = 1.0 + 0.1 * jax.random.normal(ks[10], (Cout4,), jnp.float32)
        bs = 0.1 * jax.random.normal(ks[11], (Cout4,), jnp.float32)
    else:
        ws_t, gs, bs = None, None, None

    torch_params = (w1_t, g1, b1, w2_t, g2, b2, w3_t, g3, b3, ws_t, gs, bs)
    kernel_params = (
        _grouped_1x1_to_matmul(w1_t, C), g1, b1,
        _grouped_3x3_to_matmul(w2_t, C), g2, b2,
        w3_t[:, :, 0, 0].T, g3, b3,
        (ws_t[:, :, 0, 0].T if use_proj else None), gs, bs,
    )
    return torch_params, kernel_params


# ---------------- pure-JAX reference (verification only) ----------------

def ref_forward(x, torch_params, stride):
    (w1, g1, b1, w2, g2, b2, w3, g3, b3, ws, gs, bs) = torch_params
    C = CARDINALITY

    def q(t):  # emulate the kernel's bf16 operands / bf16 inter-stage storage
        return t.astype(jnp.bfloat16).astype(jnp.float32)

    def bn(t, gamma, beta):
        # stats from the exact f32 conv output; the normalized value uses the
        # bf16-rounded tensor (matches the kernel's bf16 inter-stage storage)
        mean = t.mean(axis=(0, 2, 3), keepdims=True)
        var = ((t - mean) ** 2).mean(axis=(0, 2, 3), keepdims=True)
        scale = gamma[None, :, None, None] / jnp.sqrt(var + BN_EPS)
        shift = beta[None, :, None, None] - mean * scale
        return q(t) * scale + shift

    def conv(t, w, s, padding, groups):
        return jax.lax.conv_general_dilated(
            q(t), q(w), (s, s), padding, feature_group_count=groups,
            dimension_numbers=('NCHW', 'OIHW', 'NCHW'),
            precision=jax.lax.Precision.HIGHEST)

    t = jax.nn.relu(bn(conv(x, w1, 1, 'VALID', C), g1, b1))
    t = jax.nn.relu(bn(conv(t, w2, stride, [(1, 1), (1, 1)], C), g2, b2))
    t = bn(conv(t, w3, 1, 'VALID', 1), g3, b3)
    if ws is None:
        s = x
    else:
        s = bn(conv(x, ws, stride, 'VALID', 1), gs, bs)
    return jax.nn.relu(t + s)


if __name__ == "__main__":
    fwd = jax.jit(resnext_bottleneck_c, static_argnums=(2,))
    configs = [
        # (in_channels, out_channels, stride, N, H, W)
        (128, 64, 1, 2, 16, 16),   # projection shortcut (in != 4*out), stride 1
        (256, 64, 2, 2, 8, 8),     # projection shortcut via stride 2
        (256, 64, 1, 2, 8, 8),     # identity shortcut (in == 4*out, stride 1)
    ]
    key = jax.random.PRNGKey(0)
    for (in_ch, out_ch, stride, N, H, W) in configs:
        key, kx, kp = jax.random.split(key, 3)
        x = jax.random.normal(kx, (N, in_ch, H, W), jnp.float32)
        torch_params, kernel_params = init_params(kp, in_ch, out_ch, stride)
        out = jax.block_until_ready(fwd(x, kernel_params, stride))
        ref = ref_forward(x, torch_params, stride)
        assert out.shape == ref.shape, (out.shape, ref.shape)
        max_err = float(jnp.max(jnp.abs(out - ref)))
        assert max_err < 3e-2, (
            f"cfg={(in_ch, out_ch, stride, N, H, W)}: max abs err {max_err}")
    print("KERNEL_OK")
</pallas_src>

<mosaic_0001>
module attributes {stable_mosaic.version = 11 : i64} {
  func.func @kernel(%arg0: i32, %arg1: memref<512x128xf32, #tpu.memory_space<vmem>>, %arg2: memref<128x128xbf16, #tpu.memory_space<vmem>>, %arg3: memref<512x128xbf16, #tpu.memory_space<vmem>>, %arg4: memref<1x1x128xf32, #tpu.memory_space<vmem>>, %arg5: memref<1x1x128xf32, #tpu.memory_space<vmem>>) attributes {dimension_semantics = [#tpu.dimension_semantics<parallel>], iteration_bounds = array<i64: 1>, scalar_prefetch = 0 : i64, scratch_operands = 0 : i64, tpu.core_type = #tpu.core_type<tc>, window_params = [{transform_indices = @transform_0, window_bounds = array<i64: 512, 128>}, {pipeline_mode = #tpu.pipeline_mode<synchronous>, transform_indices = @transform_1, window_bounds = array<i64: 128, 128>}, {transform_indices = @transform_2, window_bounds = array<i64: 512, 128>}, {transform_indices = @transform_3, window_bounds = array<i64: 1, 1, 128>}, {transform_indices = @transform_4, window_bounds = array<i64: 1, 1, 128>}]} {
    %c0 = arith.constant 0 : index
    %c0_0 = arith.constant 0 : index
    %0 = vector.load %arg1[%c0, %c0_0] : memref<512x128xf32, #tpu.memory_space<vmem>>, vector<512x128xf32>
    %1 = arith.truncf %0 : vector<512x128xf32> to vector<512x128xbf16>
    %c0_1 = arith.constant 0 : index
    %c0_2 = arith.constant 0 : index
    %2 = vector.load %arg2[%c0_1, %c0_2] : memref<128x128xbf16, #tpu.memory_space<vmem>>, vector<128x128xbf16>
    %cst = arith.constant dense<0.000000e+00> : vector<512x128xf32>
    %3 = tpu.matmul %1, %2, %cst {dimension_numbers = #tpu.dot_dimension_numbers<[1], [0], [0], [1], [0, 0, 1, 1], [], []>} : vector<512x128xbf16>, vector<128x128xbf16>, vector<512x128xf32> -> vector<512x128xf32>
    %4 = arith.truncf %3 : vector<512x128xf32> to vector<512x128xbf16>
    %c0_3 = arith.constant 0 : index
    %c0_4 = arith.constant 0 : index
    %5 = vector.load %arg3[%c0_3, %c0_4] : memref<512x128xbf16, #tpu.memory_space<vmem>>, vector<512x128xbf16>
    tpu.vector_store %arg3[%c0_3, %c0_4], %4 {strides = array<i32>} : memref<512x128xbf16, #tpu.memory_space<vmem>>, vector<512x128xbf16>,
    %cst_5 = arith.constant dense<0.000000e+00> : vector<128xf32>
    %6 = vector.multi_reduction <add>, %3, %cst_5 [0] : vector<512x128xf32> to vector<128xf32>
    %7 = vector.shape_cast %6 : vector<128xf32> to vector<1x128xf32>
    %c0_6 = arith.constant 0 : index
    %c0_7 = arith.constant 0 : index
    %c0_8 = arith.constant 0 : index
    %8 = vector.load %arg4[%c0_6, %c0_7, %c0_8] : memref<1x1x128xf32, #tpu.memory_space<vmem>>, vector<1x1x128xf32>
    %9 = vector.shape_cast %8 : vector<1x1x128xf32> to vector<1x128xf32>
    %10 = vector.shape_cast %7 : vector<1x128xf32> to vector<1x1x128xf32>
    tpu.vector_store %arg4[%c0_6, %c0_7, %c0_8], %10 {strides = array<i32>} : memref<1x1x128xf32, #tpu.memory_space<vmem>>, vector<1x1x128xf32>,
    %11 = arith.mulf %3, %3 : vector<512x128xf32>
    %cst_9 = arith.constant dense<0.000000e+00> : vector<128xf32>
    %12 = vector.multi_reduction <add>, %11, %cst_9 [0] : vector<512x128xf32> to vector<128xf32>
    %13 = vector.shape_cast %12 : vector<128xf32> to vector<1x128xf32>
    %c0_10 = arith.constant 0 : index
    %c0_11 = arith.constant 0 : index
    %c0_12 = arith.constant 0 : index
    %14 = vector.load %arg5[%c0_10, %c0_11, %c0_12] : memref<1x1x128xf32, #tpu.memory_space<vmem>>, vector<1x1x128xf32>
    %15 = vector.shape_cast %14 : vector<1x1x128xf32> to vector<1x128xf32>
    %16 = vector.shape_cast %13 : vector<1x128xf32> to vector<1x1x128xf32>
    tpu.vector_store %arg5[%c0_10, %c0_11, %c0_12], %16 {strides = array<i32>} : memref<1x1x128xf32, #tpu.memory_space<vmem>>, vector<1x1x128xf32>,
    return
  }
  func.func @transform_0(%arg0: i32) -> (i32, i32) {
    %c0_i32 = arith.constant 0 : i32
    %c0_i32_0 = arith.constant 0 : i32
    return %arg0, %c0_i32 : i32, i32
  }
  func.func @transform_1(%arg0: i32) -> (i32, i32) {
    %c0_i32 = arith.constant 0 : i32
    %c0_i32_0 = arith.constant 0 : i32
    %c0_i32_1 = arith.constant 0 : i32
    return %c0_i32, %c0_i32_0 : i32, i32
  }
  func.func @transform_2(%arg0: i32) -> (i32, i32) {
    %c0_i32 = arith.constant 0 : i32
    %c0_i32_0 = arith.constant 0 : i32
    return %arg0, %c0_i32 : i32, i32
  }
  func.func @transform_3(%arg0: i32) -> (i32, i32, i32) {
    %c0_i32 = arith.constant 0 : i32
    %c0_i32_0 = arith.constant 0 : i32
    %c0_i32_1 = arith.constant 0 : i32
    return %arg0, %c0_i32, %c0_i32_0 : i32, i32, i32
  }
  func.func @transform_4(%arg0: i32) -> (i32, i32, i32) {
    %c0_i32 = arith.constant 0 : i32
    %c0_i32_0 = arith.constant 0 : i32
    %c0_i32_1 = arith.constant 0 : i32
    return %arg0, %c0_i32, %c0_i32_0 : i32, i32, i32
  }
}

module attributes {stable_mosaic.version = 11 : i64} {
  func.func @kernel(%arg0: i32, %arg1: memref<512x128xbf16, #tpu.memory_space<vmem>>, %arg2: memref<512x128xf32, #tpu.memory_space<vmem>>, %arg3: memref<2x1x128xf32, #tpu.memory_space<vmem>>, %arg4: memref<2x1x128xf32, #tpu.memory_space<vmem>>, %arg5: memref<1x128xf32, #tpu.memory_space<vmem>>, %arg6: memref<1x128xf32, #tpu.memory_space<vmem>>, %arg7: memref<128x256xbf16, #tpu.memory_space<vmem>>, %arg8: memref<128x256xbf16, #tpu.memory_space<vmem>>, %arg9: memref<512x256xbf16, #tpu.memory_space<vmem>>, %arg10: memref<1x1x256xf32, #tpu.memory_space<vmem>>, %arg11: memref<1x1x256xf32, #tpu.memory_space<vmem>>, %arg12: memref<512x256xbf16, #tpu.memory_space<vmem>>, %arg13: memref<1x1x256xf32, #tpu.memory_space<vmem>>, %arg14: memref<1x1x256xf32, #tpu.memory_space<vmem>>) attributes {dimension_semantics = [#tpu.dimension_semantics<parallel>], iteration_bounds = array<i64: 1>, scalar_prefetch = 0 : i64, scratch_operands = 0 : i64, tpu.core_type = #tpu.core_type<tc>, window_params = [{transform_indices = @transform_0, window_bounds = array<i64: 512, 128>}, {transform_indices = @transform_1, window_bounds = array<i64: 512, 128>}, {pipeline_mode = #tpu.pipeline_mode<synchronous>, transform_indices = @transform_2, window_bounds = array<i64: 2, 1, 128>}, {pipeline_mode = #tpu.pipeline_mode<synchronous>, transform_indices = @transform_3, window_bounds = array<i64: 2, 1, 128>}, {pipeline_mode = #tpu.pipeline_mode<synchronous>, transform_indices = @transform_4, window_bounds = array<i64: 1, 128>}, {pipeline_mode = #tpu.pipeline_mode<synchronous>, transform_indices = @transform_5, window_bounds = array<i64: 1, 128>}, {pipeline_mode = #tpu.pipeline_mode<synchronous>, transform_indices = @transform_6, window_bounds = array<i64: 128, 256>}, {pipeline_mode = #tpu.pipeline_mode<synchronous>, transform_indices = @transform_7, window_bounds = array<i64: 128, 256>}, {transform_indices = @transform_8, window_bounds = array<i64: 512, 256>}, {transform_indices = @transform_9, window_bounds = array<i64: 1, 1, 256>}, {transform_indices = @transform_10, window_bounds = array<i64: 1, 1, 256>}, {transform_indices = @transform_11, window_bounds = array<i64: 512, 256>}, {transform_indices = @transform_12, window_bounds = array<i64: 1, 1, 256>}, {transform_indices = @transform_13, window_bounds = array<i64: 1, 1, 256>}]} {
    %c0 = arith.constant 0 : index
    %c0_0 = arith.constant 0 : index
    %c0_1 = arith.constant 0 : index
    %0 = vector.load %arg3[%c0, %c0_0, %c0_1] : memref<2x1x128xf32, #tpu.memory_space<vmem>>, vector<2x1x128xf32>
    %c0_2 = arith.constant 0 : index
    %c0_3 = arith.constant 0 : index
    %c0_4 = arith.constant 0 : index
    %1 = vector.load %arg4[%c0_2, %c0_3, %c0_4] : memref<2x1x128xf32, #tpu.memory_space<vmem>>, vector<2x1x128xf32>
    %c0_5 = arith.constant 0 : index
    %c0_6 = arith.constant 0 : index
    %2 = vector.load %arg5[%c0_5, %c0_6] : memref<1x128xf32, #tpu.memory_space<vmem>>, vector<1x128xf32>
    %c0_7 = arith.constant 0 : index
    %c0_8 = arith.constant 0 : index
    %3 = vector.load %arg6[%c0_7, %c0_8] : memref<1x128xf32, #tpu.memory_space<vmem>>, vector<1x128xf32>
    %cst = arith.constant dense<0.000000e+00> : vector<128xf32>
    %4 = vector.multi_reduction <add>, %0, %cst [0, 1] : vector<2x1x128xf32> to vector<128xf32>
    %cst_9 = arith.constant dense<0.000000e+00> : vector<128xf32>
    %5 = vector.multi_reduction <add>, %1, %cst_9 [0, 1] : vector<2x1x128xf32> to vector<128xf32>
    %6 = vector.shape_cast %2 : vector<1x128xf32> to vector<128xf32>
    %7 = vector.shape_cast %3 : vector<1x128xf32> to vector<128xf32>
    %cst_10 = arith.constant 0.001953125 : f32
    %8 = vector.broadcast %cst_10 : f32 to vector<128xf32>
    %9 = arith.mulf %4, %8 : vector<128xf32>
    %cst_11 = arith.constant 0.001953125 : f32
    %10 = vector.broadcast %cst_11 : f32 to vector<128xf32>
    %11 = arith.mulf %5, %10 : vector<128xf32>
    %12 = arith.mulf %9, %9 : vector<128xf32>
    %13 = arith.subf %11, %12 : vector<128xf32>
    %cst_12 = arith.constant 0.000000e+00 : f32
    %14 = vector.broadcast %cst_12 : f32 to vector<128xf32>
    %15 = arith.maximumf %13, %14 : vector<128xf32>
    %cst_13 = arith.constant 9.99999974E-6 : f32
    %16 = vector.broadcast %cst_13 : f32 to vector<128xf32>
    %17 = arith.addf %15, %16 : vector<128xf32>
    %18 = math.rsqrt %17 : vector<128xf32>
    %19 = arith.mulf %6, %18 : vector<128xf32>
    %20 = arith.mulf %9, %19 : vector<128xf32>
    %21 = arith.subf %7, %20 : vector<128xf32>
    %c0_14 = arith.constant 0 : index
    %c0_15 = arith.constant 0 : index
    %22 = vector.load %arg1[%c0_14, %c0_15] : memref<512x128xbf16, #tpu.memory_space<vmem>>, vector<512x128xbf16>
    %23 = arith.extf %22 : vector<512x128xbf16> to vector<512x128xf32>
    %24 = vector.shape_cast %19 : vector<128xf32> to vector<1x128xf32>
    %25 = vector.broadcast %24 : vector<1x128xf32> to vector<512x128xf32>
    %26 = arith.mulf %23, %25 : vector<512x128xf32>
    %27 = vector.shape_cast %21 : vector<128xf32> to vector<1x128xf32>
    %28 = vector.broadcast %27 : vector<1x128xf32> to vector<512x128xf32>
    %29 = arith.addf %26, %28 : vector<512x128xf32>
    %cst_16 = arith.constant 0.000000e+00 : f32
    %30 = vector.broadcast %cst_16 : f32 to vector<512x128xf32>
    %31 = arith.maximumf %29, %30 : vector<512x128xf32>
    %32 = arith.truncf %31 : vector<512x128xf32> to vector<512x128xbf16>
    %c0_17 = arith.constant 0 : index
    %c0_18 = arith.constant 0 : index
    %33 = vector.load %arg7[%c0_17, %c0_18] : memref<128x256xbf16, #tpu.memory_space<vmem>>, vector<128x256xbf16>
    %cst_19 = arith.constant dense<0.000000e+00> : vector<512x256xf32>
    %34 = tpu.matmul %32, %33, %cst_19 {dimension_numbers = #tpu.dot_dimension_numbers<[1], [0], [0], [1], [0, 0, 1, 1], [], []>} : vector<512x128xbf16>, vector<128x256xbf16>, vector<512x256xf32> -> vector<512x256xf32>
    %35 = arith.truncf %34 : vector<512x256xf32> to vector<512x256xbf16>
    %c0_20 = arith.constant 0 : index
    %c0_21 = arith.constant 0 : index
    %36 = vector.load %arg9[%c0_20, %c0_21] : memref<512x256xbf16, #tpu.memory_space<vmem>>, vector<512x256xbf16>
    tpu.vector_store %arg9[%c0_20, %c0_21], %35 {strides = array<i32>} : memref<512x256xbf16, #tpu.memory_space<vmem>>, vector<512x256xbf16>,
    %cst_22 = arith.constant dense<0.000000e+00> : vector<256xf32>
    %37 = vector.multi_reduction <add>, %34, %cst_22 [0] : vector<512x256xf32> to vector<256xf32>
    %38 = vector.shape_cast %37 : vector<256xf32> to vector<1x256xf32>
    %c0_23 = arith.constant 0 : index
    %c0_24 = arith.constant 0 : index
    %c0_25 = arith.constant 0 : index
    %39 = vector.load %arg10[%c0_23, %c0_24, %c0_25] : memref<1x1x256xf32, #tpu.memory_space<vmem>>, vector<1x1x256xf32>
    %40 = vector.shape_cast %39 : vector<1x1x256xf32> to vector<1x256xf32>
    %41 = vector.shape_cast %38 : vector<1x256xf32> to vector<1x1x256xf32>
    tpu.vector_store %arg10[%c0_23, %c0_24, %c0_25], %41 {strides = array<i32>} : memref<1x1x256xf32, #tpu.memory_space<vmem>>, vector<1x1x256xf32>,
    %42 = arith.mulf %34, %34 : vector<512x256xf32>
    %cst_26 = arith.constant dense<0.000000e+00> : vector<256xf32>
    %43 = vector.multi_reduction <add>, %42, %cst_26 [0] : vector<512x256xf32> to vector<256xf32>
    %44 = vector.shape_cast %43 : vector<256xf32> to vector<1x256xf32>
    %c0_27 = arith.constant 0 : index
    %c0_28 = arith.constant 0 : index
    %c0_29 = arith.constant 0 : index
    %45 = vector.load %arg11[%c0_27, %c0_28, %c0_29] : memref<1x1x256xf32, #tpu.memory_space<vmem>>, vector<1x1x256xf32>
    %46 = vector.shape_cast %45 : vector<1x1x256xf32> to vector<1x256xf32>
    %47 = vector.shape_cast %44 : vector<1x256xf32> to vector<1x1x256xf32>
    tpu.vector_store %arg11[%c0_27, %c0_28, %c0_29], %47 {strides = array<i32>} : memref<1x1x256xf32, #tpu.memory_space<vmem>>, vector<1x1x256xf32>,
    %c0_30 = arith.constant 0 : index
    %c0_31 = arith.constant 0 : index
    %48 = vector.load %arg2[%c0_30, %c0_31] : memref<512x128xf32, #tpu.memory_space<vmem>>, vector<512x128xf32>
    %49 = arith.truncf %48 : vector<512x128xf32> to vector<512x128xbf16>
    %c0_32 = arith.constant 0 : index
    %c0_33 = arith.constant 0 : index
    %50 = vector.load %arg8[%c0_32, %c0_33] : memref<128x256xbf16, #tpu.memory_space<vmem>>, vector<128x256xbf16>
    %cst_34 = arith.constant dense<0.000000e+00> : vector<512x256xf32>
    %51 = tpu.matmul %49, %50, %cst_34 {dimension_numbers = #tpu.dot_dimension_numbers<[1], [0], [0], [1], [0, 0, 1, 1], [], []>} : vector<512x128xbf16>, vector<128x256xbf16>, vector<512x256xf32> -> vector<512x256xf32>
    %52 = arith.truncf %51 : vector<512x256xf32> to vector<512x256xbf16>
    %c0_35 = arith.constant 0 : index
    %c0_36 = arith.constant 0 : index
    %53 = vector.load %arg12[%c0_35, %c0_36] : memref<512x256xbf16, #tpu.memory_space<vmem>>, vector<512x256xbf16>
    tpu.vector_store %arg12[%c0_35, %c0_36], %52 {strides = array<i32>} : memref<512x256xbf16, #tpu.memory_space<vmem>>, vector<512x256xbf16>,
    %cst_37 = arith.constant dense<0.000000e+00> : vector<256xf32>
    %54 = vector.multi_reduction <add>, %51, %cst_37 [0] : vector<512x256xf32> to vector<256xf32>
    %55 = vector.shape_cast %54 : vector<256xf32> to vector<1x256xf32>
    %c0_38 = arith.constant 0 : index
    %c0_39 = arith.constant 0 : index
    %c0_40 = arith.constant 0 : index
    %56 = vector.load %arg13[%c0_38, %c0_39, %c0_40] : memref<1x1x256xf32, #tpu.memory_space<vmem>>, vector<1x1x256xf32>
    %57 = vector.shape_cast %56 : vector<1x1x256xf32> to vector<1x256xf32>
    %58 = vector.shape_cast %55 : vector<1x256xf32> to vector<1x1x256xf32>
    tpu.vector_store %arg13[%c0_38, %c0_39, %c0_40], %58 {strides = array<i32>} : memref<1x1x256xf32, #tpu.memory_space<vmem>>, vector<1x1x256xf32>,
    %59 = arith.mulf %51, %51 : vector<512x256xf32>
    %cst_41 = arith.constant dense<0.000000e+00> : vector<256xf32>
    %60 = vector.multi_reduction <add>, %59, %cst_41 [0] : vector<512x256xf32> to vector<256xf32>
    %61 = vector.shape_cast %60 : vector<256xf32> to vector<1x256xf32>
    %c0_42 = arith.constant 0 : index
    %c0_43 = arith.constant 0 : index
    %c0_44 = arith.constant 0 : index
    %62 = vector.load %arg14[%c0_42, %c0_43, %c0_44] : memref<1x1x256xf32, #tpu.memory_space<vmem>>, vector<1x1x256xf32>
    %63 = vector.shape_cast %62 : vector<1x1x256xf32> to vector<1x256xf32>
    %64 = vector.shape_cast %61 : vector<1x256xf32> to vector<1x1x256xf32>
    tpu.vector_store %arg14[%c0_42, %c0_43, %c0_44], %64 {strides = array<i32>} : memref<1x1x256xf32, #tpu.memory_space<vmem>>, vector<1x1x256xf32>,
    return
  }
  func.func @transform_0(%arg0: i32) -> (i32, i32) {
    %c0_i32 = arith.constant 0 : i32
    %c0_i32_0 = arith.constant 0 : i32
    return %arg0, %c0_i32 : i32, i32
  }
  func.func @transform_1(%arg0: i32) -> (i32, i32) {
    %c0_i32 = arith.constant 0 : i32
    %c0_i32_0 = arith.constant 0 : i32
    return %arg0, %c0_i32 : i32, i32
  }
  func.func @transform_2(%arg0: i32) -> (i32, i32, i32) {
    %c0_i32 = arith.constant 0 : i32
    %c0_i32_0 = arith.constant 0 : i32
    %c0_i32_1 = arith.constant 0 : i32
    %c0_i32_2 = arith.constant 0 : i32
    return %c0_i32, %c0_i32_0, %c0_i32_1 : i32, i32, i32
  }
  func.func @transform_3(%arg0: i32) -> (i32, i32, i32) {
    %c0_i32 = arith.constant 0 : i32
    %c0_i32_0 = arith.constant 0 : i32
    %c0_i32_1 = arith.constant 0 : i32
    %c0_i32_2 = arith.constant 0 : i32
    return %c0_i32, %c0_i32_0, %c0_i32_1 : i32, i32, i32
  }
  func.func @transform_4(%arg0: i32) -> (i32, i32) {
    %c0_i32 = arith.constant 0 : i32
    %c0_i32_0 = arith.constant 0 : i32
    %c0_i32_1 = arith.constant 0 : i32
    return %c0_i32, %c0_i32_0 : i32, i32
  }
  func.func @transform_5(%arg0: i32) -> (i32, i32) {
    %c0_i32 = arith.constant 0 : i32
    %c0_i32_0 = arith.constant 0 : i32
    %c0_i32_1 = arith.constant 0 : i32
    return %c0_i32, %c0_i32_0 : i32, i32
  }
  func.func @transform_6(%arg0: i32) -> (i32, i32) {
    %c0_i32 = arith.constant 0 : i32
    %c0_i32_0 = arith.constant 0 : i32
    %c0_i32_1 = arith.constant 0 : i32
    return %c0_i32, %c0_i32_0 : i32, i32
  }
  func.func @transform_7(%arg0: i32) -> (i32, i32) {
    %c0_i32 = arith.constant 0 : i32
    %c0_i32_0 = arith.constant 0 : i32
    %c0_i32_1 = arith.constant 0 : i32
    return %c0_i32, %c0_i32_0 : i32, i32
  }
  func.func @transform_8(%arg0: i32) -> (i32, i32) {
    %c0_i32 = arith.constant 0 : i32
    %c0_i32_0 = arith.constant 0 : i32
    return %arg0, %c0_i32 : i32, i32
  }
  func.func @transform_9(%arg0: i32) -> (i32, i32, i32) {
    %c0_i32 = arith.constant 0 : i32
    %c0_i32_0 = arith.constant 0 : i32
    %c0_i32_1 = arith.constant 0 : i32
    return %arg0, %c0_i32, %c0_i32_0 : i32, i32, i32
  }
  func.func @transform_10(%arg0: i32) -> (i32, i32, i32) {
    %c0_i32 = arith.constant 0 : i32
    %c0_i32_0 = arith.constant 0 : i32
    %c0_i32_1 = arith.constant 0 : i32
    return %arg0, %c0_i32, %c0_i32_0 : i32, i32, i32
  }
  func.func @transform_11(%arg0: i32) -> (i32, i32) {
    %c0_i32 = arith.constant 0 : i32
    %c0_i32_0 = arith.constant 0 : i32
    return %arg0, %c0_i32 : i32, i32
  }
  func.func @transform_12(%arg0: i32) -> (i32, i32, i32) {
    %c0_i32 = arith.constant 0 : i32
    %c0_i32_0 = arith.constant 0 : i32
    %c0_i32_1 = arith.constant 0 : i32
    return %arg0, %c0_i32, %c0_i32_0 : i32, i32, i32
  }
  func.func @transform_13(%arg0: i32) -> (i32, i32, i32) {
    %c0_i32 = arith.constant 0 : i32
    %c0_i32_0 = arith.constant 0 : i32
    %c0_i32_1 = arith.constant 0 : i32
    return %arg0, %c0_i32, %c0_i32_0 : i32, i32, i32
  }
}

module attributes {stable_mosaic.version = 11 : i64} {
  func.func @kernel(%arg0: i32, %arg1: memref<1x16x16x128xbf16, #tpu.memory_space<vmem>>, %arg2: memref<1x1x128xf32, #tpu.memory_space<vmem>>, %arg3: memref<1x1x128xf32, #tpu.memory_space<vmem>>, %arg4: memref<1x128xf32, #tpu.memory_space<vmem>>, %arg5: memref<1x128xf32, #tpu.memory_space<vmem>>, %arg6: memref<1152x128xbf16, #tpu.memory_space<vmem>>, %arg7: memref<1x16x16x128xbf16, #tpu.memory_space<vmem>>, %arg8: memref<1x1x128xf32, #tpu.memory_space<vmem>>, %arg9: memref<1x1x128xf32, #tpu.memory_space<vmem>>, %arg10: memref<18x18x128xbf16, #tpu.memory_space<vmem>>, %arg11: memref<256x1152xbf16, #tpu.memory_space<vmem>>) attributes {dimension_semantics = [#tpu.dimension_semantics<parallel>], iteration_bounds = array<i64: 2>, scalar_prefetch = 0 : i64, scratch_operands = 2 : i64, tpu.core_type = #tpu.core_type<tc>, window_params = [{transform_indices = @transform_0, window_bounds = array<i64: 1, 16, 16, 128>}, {pipeline_mode = #tpu.pipeline_mode<synchronous>, transform_indices = @transform_1, window_bounds = array<i64: 1, 1, 128>}, {pipeline_mode = #tpu.pipeline_mode<synchronous>, transform_indices = @transform_2, window_bounds = array<i64: 1, 1, 128>}, {pipeline_mode = #tpu.pipeline_mode<synchronous>, transform_indices = @transform_3, window_bounds = array<i64: 1, 128>}, {pipeline_mode = #tpu.pipeline_mode<synchronous>, transform_indices = @transform_4, window_bounds = array<i64: 1, 128>}, {pipeline_mode = #tpu.pipeline_mode<synchronous>, transform_indices = @transform_5, window_bounds = array<i64: 1152, 128>}, {transform_indices = @transform_6, window_bounds = array<i64: 1, 16, 16, 128>}, {transform_indices = @transform_7, window_bounds = array<i64: 1, 1, 128>}, {transform_indices = @transform_8, window_bounds = array<i64: 1, 1, 128>}]} {
    %c0 = arith.constant 0 : index
    %c0_0 = arith.constant 0 : index
    %c0_1 = arith.constant 0 : index
    %0 = vector.load %arg2[%c0, %c0_0, %c0_1] : memref<1x1x128xf32, #tpu.memory_space<vmem>>, vector<1x1x128xf32>
    %c0_2 = arith.constant 0 : index
    %c0_3 = arith.constant 0 : index
    %c0_4 = arith.constant 0 : index
    %1 = vector.load %arg3[%c0_2, %c0_3, %c0_4] : memref<1x1x128xf32, #tpu.memory_space<vmem>>, vector<1x1x128xf32>
    %c0_5 = arith.constant 0 : index
    %c0_6 = arith.constant 0 : index
    %2 = vector.load %arg4[%c0_5, %c0_6] : memref<1x128xf32, #tpu.memory_space<vmem>>, vector<1x128xf32>
    %c0_7 = arith.constant 0 : index
    %c0_8 = arith.constant 0 : index
    %3 = vector.load %arg5[%c0_7, %c0_8] : memref<1x128xf32, #tpu.memory_space<vmem>>, vector<1x128xf32>
    %cst = arith.constant dense<0.000000e+00> : vector<128xf32>
    %4 = vector.multi_reduction <add>, %0, %cst [0, 1] : vector<1x1x128xf32> to vector<128xf32>
    %cst_9 = arith.constant dense<0.000000e+00> : vector<128xf32>
    %5 = vector.multi_reduction <add>, %1, %cst_9 [0, 1] : vector<1x1x128xf32> to vector<128xf32>
    %6 = vector.shape_cast %2 : vector<1x128xf32> to vector<128xf32>
    %7 = vector.shape_cast %3 : vector<1x128xf32> to vector<128xf32>
    %cst_10 = arith.constant 0.001953125 : f32
    %8 = vector.broadcast %cst_10 : f32 to vector<128xf32>
    %9 = arith.mulf %4, %8 : vector<128xf32>
    %cst_11 = arith.constant 0.001953125 : f32
    %10 = vector.broadcast %cst_11 : f32 to vector<128xf32>
    %11 = arith.mulf %5, %10 : vector<128xf32>
    %12 = arith.mulf %9, %9 : vector<128xf32>
    %13 = arith.subf %11, %12 : vector<128xf32>
    %cst_12 = arith.constant 0.000000e+00 : f32
    %14 = vector.broadcast %cst_12 : f32 to vector<128xf32>
    %15 = arith.maximumf %13, %14 : vector<128xf32>
    %cst_13 = arith.constant 9.99999974E-6 : f32
    %16 = vector.broadcast %cst_13 : f32 to vector<128xf32>
    %17 = arith.addf %15, %16 : vector<128xf32>
    %18 = math.rsqrt %17 : vector<128xf32>
    %19 = arith.mulf %6, %18 : vector<128xf32>
    %20 = arith.mulf %9, %19 : vector<128xf32>
    %21 = arith.subf %7, %20 : vector<128xf32>
    %c0_14 = arith.constant 0 : index
    %c0_15 = arith.constant 0 : index
    %c0_16 = arith.constant 0 : index
    %c0_17 = arith.constant 0 : index
    %22 = vector.load %arg1[%c0_14, %c0_15, %c0_16, %c0_17] : memref<1x16x16x128xbf16, #tpu.memory_space<vmem>>, vector<1x16x16x128xbf16>
    %23 = vector.shape_cast %22 : vector<1x16x16x128xbf16> to vector<16x16x128xbf16>
    %24 = arith.extf %23 : vector<16x16x128xbf16> to vector<16x16x128xf32>
    %25 = vector.shape_cast %19 : vector<128xf32> to vector<1x1x128xf32>
    %26 = vector.broadcast %25 : vector<1x1x128xf32> to vector<16x16x128xf32>
    %27 = arith.mulf %24, %26 : vector<16x16x128xf32>
    %28 = vector.shape_cast %21 : vector<128xf32> to vector<1x1x128xf32>
    %29 = vector.broadcast %28 : vector<1x1x128xf32> to vector<16x16x128xf32>
    %30 = arith.addf %27, %29 : vector<16x16x128xf32>
    %cst_18 = arith.constant 0.000000e+00 : f32
    %31 = vector.broadcast %cst_18 : f32 to vector<16x16x128xf32>
    %32 = arith.maximumf %30, %31 : vector<16x16x128xf32>
    %cst_19 = arith.constant 0.000000e+00 : bf16
    %33 = vector.broadcast %cst_19 : bf16 to vector<1x18x128xbf16>
    %c0_20 = arith.constant 0 : index
    %c0_21 = arith.constant 0 : index
    %c0_22 = arith.constant 0 : index
    %34 = vector.load %arg10[%c0_20, %c0_21, %c0_22] : memref<18x18x128xbf16, #tpu.memory_space<vmem>>, vector<1x18x128xbf16>
    tpu.vector_store %arg10[%c0_20, %c0_21, %c0_22], %33 {strides = array<i32>} : memref<18x18x128xbf16, #tpu.memory_space<vmem>>, vector<1x18x128xbf16>,
    %cst_23 = arith.constant 0.000000e+00 : bf16
    %35 = vector.broadcast %cst_23 : bf16 to vector<1x18x128xbf16>
    %c17 = arith.constant 17 : index
    %c0_24 = arith.constant 0 : index
    %c0_25 = arith.constant 0 : index
    %36 = vector.load %arg10[%c17, %c0_24, %c0_25] : memref<18x18x128xbf16, #tpu.memory_space<vmem>>, vector<1x18x128xbf16>
    tpu.vector_store %arg10[%c17, %c0_24, %c0_25], %35 {strides = array<i32>} : memref<18x18x128xbf16, #tpu.memory_space<vmem>>, vector<1x18x128xbf16>,
    %cst_26 = arith.constant 0.000000e+00 : bf16
    %37 = vector.broadcast %cst_26 : bf16 to vector<18x1x128xbf16>
    %c0_27 = arith.constant 0 : index
    %c0_28 = arith.constant 0 : index
    %c0_29 = arith.constant 0 : index
    %38 = vector.load %arg10[%c0_27, %c0_28, %c0_29] : memref<18x18x128xbf16, #tpu.memory_space<vmem>>, vector<18x1x128xbf16>
    tpu.vector_store %arg10[%c0_27, %c0_28, %c0_29], %37 {strides = array<i32>} : memref<18x18x128xbf16, #tpu.memory_space<vmem>>, vector<18x1x128xbf16>,
    %cst_30 = arith.constant 0.000000e+00 : bf16
    %39 = vector.broadcast %cst_30 : bf16 to vector<18x1x128xbf16>
    %c0_31 = arith.constant 0 : index
    %c17_32 = arith.constant 17 : index
    %c0_33 = arith.constant 0 : index
    %40 = vector.load %arg10[%c0_31, %c17_32, %c0_33] : memref<18x18x128xbf16, #tpu.memory_space<vmem>>, vector<18x1x128xbf16>
    tpu.vector_store %arg10[%c0_31, %c17_32, %c0_33], %39 {strides = array<i32>} : memref<18x18x128xbf16, #tpu.memory_space<vmem>>, vector<18x1x128xbf16>,
    %41 = arith.truncf %32 : vector<16x16x128xf32> to vector<16x16x128xbf16>
    %c1 = arith.constant 1 : index
    %c1_34 = arith.constant 1 : index
    %c0_35 = arith.constant 0 : index
    %42 = vector.load %arg10[%c1, %c1_34, %c0_35] : memref<18x18x128xbf16, #tpu.memory_space<vmem>>, vector<16x16x128xbf16>
    tpu.vector_store %arg10[%c1, %c1_34, %c0_35], %41 {strides = array<i32>} : memref<18x18x128xbf16, #tpu.memory_space<vmem>>, vector<16x16x128xbf16>,
    %c0_36 = arith.constant 0 : index
    %c0_37 = arith.constant 0 : index
    %c0_38 = arith.constant 0 : index
    %43 = vector.load %arg10[%c0_36, %c0_37, %c0_38] : memref<18x18x128xbf16, #tpu.memory_space<vmem>>, vector<18x18x128xbf16>
    %44 = vector.extract_strided_slice %43 {offsets = [0, 0, 0], sizes = [16, 16, 128], strides = [1, 1, 1]} : vector<18x18x128xbf16> to vector<16x16x128xbf16>
    %45 = vector.shape_cast %44 : vector<16x16x128xbf16> to vector<256x128xbf16>
    %c0_39 = arith.constant 0 : index
    %c0_40 = arith.constant 0 : index
    %46 = vector.load %arg11[%c0_39, %c0_40] : memref<256x1152xbf16, #tpu.memory_space<vmem>>, vector<256x128xbf16>
    tpu.vector_store %arg11[%c0_39, %c0_40], %45 {strides = array<i32>} : memref<256x1152xbf16, #tpu.memory_space<vmem>>, vector<256x128xbf16>,
    %47 = vector.extract_strided_slice %43 {offsets = [0, 1, 0], sizes = [16, 16, 128], strides = [1, 1, 1]} : vector<18x18x128xbf16> to vector<16x16x128xbf16>
    %48 = vector.shape_cast %47 : vector<16x16x128xbf16> to vector<256x128xbf16>
    %c0_41 = arith.constant 0 : index
    %c128 = arith.constant 128 : index
    %49 = vector.load %arg11[%c0_41, %c128] : memref<256x1152xbf16, #tpu.memory_space<vmem>>, vector<256x128xbf16>
    tpu.vector_store %arg11[%c0_41, %c128], %48 {strides = array<i32>} : memref<256x1152xbf16, #tpu.memory_space<vmem>>, vector<256x128xbf16>,
    %50 = vector.extract_strided_slice %43 {offsets = [0, 2, 0], sizes = [16, 16, 128], strides = [1, 1, 1]} : vector<18x18x128xbf16> to vector<16x16x128xbf16>
    %51 = vector.shape_cast %50 : vector<16x16x128xbf16> to vector<256x128xbf16>
    %c0_42 = arith.constant 0 : index
    %c256 = arith.constant 256 : index
    %52 = vector.load %arg11[%c0_42, %c256] : memref<256x1152xbf16, #tpu.memory_space<vmem>>, vector<256x128xbf16>
    tpu.vector_store %arg11[%c0_42, %c256], %51 {strides = array<i32>} : memref<256x1152xbf16, #tpu.memory_space<vmem>>, vector<256x128xbf16>,
    %53 = vector.extract_strided_slice %43 {offsets = [1, 0, 0], sizes = [16, 16, 128], strides = [1, 1, 1]} : vector<18x18x128xbf16> to vector<16x16x128xbf16>
    %54 = vector.shape_cast %53 : vector<16x16x128xbf16> to vector<256x128xbf16>
    %c0_43 = arith.constant 0 : index
    %c384 = arith.constant 384 : index
    %55 = vector.load %arg11[%c0_43, %c384] : memref<256x1152xbf16, #tpu.memory_space<vmem>>, vector<256x128xbf16>
    tpu.vector_store %arg11[%c0_43, %c384], %54 {strides = array<i32>} : memref<256x1152xbf16, #tpu.memory_space<vmem>>, vector<256x128xbf16>,
    %56 = vector.extract_strided_slice %43 {offsets = [1, 1, 0], sizes = [16, 16, 128], strides = [1, 1, 1]} : vector<18x18x128xbf16> to vector<16x16x128xbf16>
    %57 = vector.shape_cast %56 : vector<16x16x128xbf16> to vector<256x128xbf16>
    %c0_44 = arith.constant 0 : index
    %c512 = arith.constant 512 : index
    %58 = vector.load %arg11[%c0_44, %c512] : memref<256x1152xbf16, #tpu.memory_space<vmem>>, vector<256x128xbf16>
    tpu.vector_store %arg11[%c0_44, %c512], %57 {strides = array<i32>} : memref<256x1152xbf16, #tpu.memory_space<vmem>>, vector<256x128xbf16>,
    %59 = vector.extract_strided_slice %43 {offsets = [1, 2, 0], sizes = [16, 16, 128], strides = [1, 1, 1]} : vector<18x18x128xbf16> to vector<16x16x128xbf16>
    %60 = vector.shape_cast %59 : vector<16x16x128xbf16> to vector<256x128xbf16>
    %c0_45 = arith.constant 0 : index
    %c640 = arith.constant 640 : index
    %61 = vector.load %arg11[%c0_45, %c640] : memref<256x1152xbf16, #tpu.memory_space<vmem>>, vector<256x128xbf16>
    tpu.vector_store %arg11[%c0_45, %c640], %60 {strides = array<i32>} : memref<256x1152xbf16, #tpu.memory_space<vmem>>, vector<256x128xbf16>,
    %62 = vector.extract_strided_slice %43 {offsets = [2, 0, 0], sizes = [16, 16, 128], strides = [1, 1, 1]} : vector<18x18x128xbf16> to vector<16x16x128xbf16>
    %63 = vector.shape_cast %62 : vector<16x16x128xbf16> to vector<256x128xbf16>
    %c0_46 = arith.constant 0 : index
    %c768 = arith.constant 768 : index
    %64 = vector.load %arg11[%c0_46, %c768] : memref<256x1152xbf16, #tpu.memory_space<vmem>>, vector<256x128xbf16>
    tpu.vector_store %arg11[%c0_46, %c768], %63 {strides = array<i32>} : memref<256x1152xbf16, #tpu.memory_space<vmem>>, vector<256x128xbf16>,
    %65 = vector.extract_strided_slice %43 {offsets = [2, 1, 0], sizes = [16, 16, 128], strides = [1, 1, 1]} : vector<18x18x128xbf16> to vector<16x16x128xbf16>
    %66 = vector.shape_cast %65 : vector<16x16x128xbf16> to vector<256x128xbf16>
    %c0_47 = arith.constant 0 : index
    %c896 = arith.constant 896 : index
    %67 = vector.load %arg11[%c0_47, %c896] : memref<256x1152xbf16, #tpu.memory_space<vmem>>, vector<256x128xbf16>
    tpu.vector_store %arg11[%c0_47, %c896], %66 {strides = array<i32>} : memref<256x1152xbf16, #tpu.memory_space<vmem>>, vector<256x128xbf16>,
    %68 = vector.extract_strided_slice %43 {offsets = [2, 2, 0], sizes = [16, 16, 128], strides = [1, 1, 1]} : vector<18x18x128xbf16> to vector<16x16x128xbf16>
    %69 = vector.shape_cast %68 : vector<16x16x128xbf16> to vector<256x128xbf16>
    %c0_48 = arith.constant 0 : index
    %c1024 = arith.constant 1024 : index
    %70 = vector.load %arg11[%c0_48, %c1024] : memref<256x1152xbf16, #tpu.memory_space<vmem>>, vector<256x128xbf16>
    tpu.vector_store %arg11[%c0_48, %c1024], %69 {strides = array<i32>} : memref<256x1152xbf16, #tpu.memory_space<vmem>>, vector<256x128xbf16>,
    %c0_49 = arith.constant 0 : index
    %c0_50 = arith.constant 0 : index
    %71 = vector.load %arg11[%c0_49, %c0_50] : memref<256x1152xbf16, #tpu.memory_space<vmem>>, vector<256x1152xbf16>
    %c0_51 = arith.constant 0 : index
    %c0_52 = arith.constant 0 : index
    %72 = vector.load %arg6[%c0_51, %c0_52] : memref<1152x128xbf16, #tpu.memory_space<vmem>>, vector<1152x128xbf16>
    %cst_53 = arith.constant dense<0.000000e+00> : vector<256x128xf32>
    %73 = tpu.matmul %71, %72, %cst_53 {dimension_numbers = #tpu.dot_dimension_numbers<[1], [0], [0], [1], [0, 0, 1, 1], [], []>} : vector<256x1152xbf16>, vector<1152x128xbf16>, vector<256x128xf32> -> vector<256x128xf32>
    %74 = vector.shape_cast %73 : vector<256x128xf32> to vector<16x16x128xf32>
    %75 = arith.truncf %74 : vector<16x16x128xf32> to vector<16x16x128xbf16>
    %c0_54 = arith.constant 0 : index
    %c0_55 = arith.constant 0 : index
    %c0_56 = arith.constant 0 : index
    %c0_57 = arith.constant 0 : index
    %76 = vector.load %arg7[%c0_54, %c0_55, %c0_56, %c0_57] : memref<1x16x16x128xbf16, #tpu.memory_space<vmem>>, vector<1x16x16x128xbf16>
    %77 = vector.shape_cast %76 : vector<1x16x16x128xbf16> to vector<16x16x128xbf16>
    %78 = vector.shape_cast %75 : vector<16x16x128xbf16> to vector<1x16x16x128xbf16>
    tpu.vector_store %arg7[%c0_54, %c0_55, %c0_56, %c0_57], %78 {strides = array<i32>} : memref<1x16x16x128xbf16, #tpu.memory_space<vmem>>, vector<1x16x16x128xbf16>,
    %cst_58 = arith.constant dense<0.000000e+00> : vector<128xf32>
    %79 = vector.multi_reduction <add>, %73, %cst_58 [0] : vector<256x128xf32> to vector<128xf32>
    %80 = vector.shape_cast %79 : vector<128xf32> to vector<1x128xf32>
    %c0_59 = arith.constant 0 : index
    %c0_60 = arith.constant 0 : index
    %c0_61 = arith.constant 0 : index
    %81 = vector.load %arg8[%c0_59, %c0_60, %c0_61] : memref<1x1x128xf32, #tpu.memory_space<vmem>>, vector<1x1x128xf32>
    %82 = vector.shape_cast %81 : vector<1x1x128xf32> to vector<1x128xf32>
    %83 = vector.shape_cast %80 : vector<1x128xf32> to vector<1x1x128xf32>
    tpu.vector_store %arg8[%c0_59, %c0_60, %c0_61], %83 {strides = array<i32>} : memref<1x1x128xf32, #tpu.memory_space<vmem>>, vector<1x1x128xf32>,
    %84 = arith.mulf %73, %73 : vector<256x128xf32>
    %cst_62 = arith.constant dense<0.000000e+00> : vector<128xf32>
    %85 = vector.multi_reduction <add>, %84, %cst_62 [0] : vector<256x128xf32> to vector<128xf32>
    %86 = vector.shape_cast %85 : vector<128xf32> to vector<1x128xf32>
    %c0_63 = arith.constant 0 : index
    %c0_64 = arith.constant 0 : index
    %c0_65 = arith.constant 0 : index
    %87 = vector.load %arg9[%c0_63, %c0_64, %c0_65] : memref<1x1x128xf32, #tpu.memory_space<vmem>>, vector<1x1x128xf32>
    %88 = vector.shape_cast %87 : vector<1x1x128xf32> to vector<1x128xf32>
    %89 = vector.shape_cast %86 : vector<1x128xf32> to vector<1x1x128xf32>
    tpu.vector_store %arg9[%c0_63, %c0_64, %c0_65], %89 {strides = array<i32>} : memref<1x1x128xf32, #tpu.memory_space<vmem>>, vector<1x1x128xf32>,
    return
  }
  func.func @transform_0(%arg0: i32) -> (i32, i32, i32, i32) {
    %c0_i32 = arith.constant 0 : i32
    %c0_i32_0 = arith.constant 0 : i32
    %c0_i32_1 = arith.constant 0 : i32
    %c0_i32_2 = arith.constant 0 : i32
    return %arg0, %c0_i32, %c0_i32_0, %c0_i32_1 : i32, i32, i32, i32
  }
  func.func @transform_1(%arg0: i32) -> (i32, i32, i32) {
    %c0_i32 = arith.constant 0 : i32
    %c0_i32_0 = arith.constant 0 : i32
    %c0_i32_1 = arith.constant 0 : i32
    %c0_i32_2 = arith.constant 0 : i32
    return %c0_i32, %c0_i32_0, %c0_i32_1 : i32, i32, i32
  }
  func.func @transform_2(%arg0: i32) -> (i32, i32, i32) {
    %c0_i32 = arith.constant 0 : i32
    %c0_i32_0 = arith.constant 0 : i32
    %c0_i32_1 = arith.constant 0 : i32
    %c0_i32_2 = arith.constant 0 : i32
    return %c0_i32, %c0_i32_0, %c0_i32_1 : i32, i32, i32
  }
  func.func @transform_3(%arg0: i32) -> (i32, i32) {
    %c0_i32 = arith.constant 0 : i32
    %c0_i32_0 = arith.constant 0 : i32
    %c0_i32_1 = arith.constant 0 : i32
    return %c0_i32, %c0_i32_0 : i32, i32
  }
  func.func @transform_4(%arg0: i32) -> (i32, i32) {
    %c0_i32 = arith.constant 0 : i32
    %c0_i32_0 = arith.constant 0 : i32
    %c0_i32_1 = arith.constant 0 : i32
    return %c0_i32, %c0_i32_0 : i32, i32
  }
  func.func @transform_5(%arg0: i32) -> (i32, i32) {
    %c0_i32 = arith.constant 0 : i32
    %c0_i32_0 = arith.constant 0 : i32
    %c0_i32_1 = arith.constant 0 : i32
    return %c0_i32, %c0_i32_0 : i32, i32
  }
  func.func @transform_6(%arg0: i32) -> (i32, i32, i32, i32) {
    %c0_i32 = arith.constant 0 : i32
    %c0_i32_0 = arith.constant 0 : i32
    %c0_i32_1 = arith.constant 0 : i32
    %c0_i32_2 = arith.constant 0 : i32
    return %arg0, %c0_i32, %c0_i32_0, %c0_i32_1 : i32, i32, i32, i32
  }
  func.func @transform_7(%arg0: i32) -> (i32, i32, i32) {
    %c0_i32 = arith.constant 0 : i32
    %c0_i32_0 = arith.constant 0 : i32
    %c0_i32_1 = arith.constant 0 : i32
    return %arg0, %c0_i32, %c0_i32_0 : i32, i32, i32
  }
  func.func @transform_8(%arg0: i32) -> (i32, i32, i32) {
    %c0_i32 = arith.constant 0 : i32
    %c0_i32_0 = arith.constant 0 : i32
    %c0_i32_1 = arith.constant 0 : i32
    return %arg0, %c0_i32, %c0_i32_0 : i32, i32, i32
  }
}

module attributes {stable_mosaic.version = 11 : i64} {
  func.func @kernel(%arg0: i32, %arg1: memref<512x256xbf16, #tpu.memory_space<vmem>>, %arg2: memref<512x256xbf16, #tpu.memory_space<vmem>>, %arg3: memref<1x1x256xf32, #tpu.memory_space<vmem>>, %arg4: memref<1x1x256xf32, #tpu.memory_space<vmem>>, %arg5: memref<1x256xf32, #tpu.memory_space<vmem>>, %arg6: memref<1x256xf32, #tpu.memory_space<vmem>>, %arg7: memref<1x1x256xf32, #tpu.memory_space<vmem>>, %arg8: memref<1x1x256xf32, #tpu.memory_space<vmem>>, %arg9: memref<1x256xf32, #tpu.memory_space<vmem>>, %arg10: memref<1x256xf32, #tpu.memory_space<vmem>>, %arg11: memref<512x256xf32, #tpu.memory_space<vmem>>) attributes {dimension_semantics = [#tpu.dimension_semantics<parallel>], iteration_bounds = array<i64: 1>, scalar_prefetch = 0 : i64, scratch_operands = 0 : i64, tpu.core_type = #tpu.core_type<tc>, window_params = [{transform_indices = @transform_0, window_bounds = array<i64: 512, 256>}, {transform_indices = @transform_1, window_bounds = array<i64: 512, 256>}, {pipeline_mode = #tpu.pipeline_mode<synchronous>, transform_indices = @transform_2, window_bounds = array<i64: 1, 1, 256>}, {pipeline_mode = #tpu.pipeline_mode<synchronous>, transform_indices = @transform_3, window_bounds = array<i64: 1, 1, 256>}, {pipeline_mode = #tpu.pipeline_mode<synchronous>, transform_indices = @transform_4, window_bounds = array<i64: 1, 256>}, {pipeline_mode = #tpu.pipeline_mode<synchronous>, transform_indices = @transform_5, window_bounds = array<i64: 1, 256>}, {pipeline_mode = #tpu.pipeline_mode<synchronous>, transform_indices = @transform_6, window_bounds = array<i64: 1, 1, 256>}, {pipeline_mode = #tpu.pipeline_mode<synchronous>, transform_indices = @transform_7, window_bounds = array<i64: 1, 1, 256>}, {pipeline_mode = #tpu.pipeline_mode<synchronous>, transform_indices = @transform_8, window_bounds = array<i64: 1, 256>}, {pipeline_mode = #tpu.pipeline_mode<synchronous>, transform_indices = @transform_9, window_bounds = array<i64: 1, 256>}, {transform_indices = @transform_10, window_bounds = array<i64: 512, 256>}]} {
    %c0 = arith.constant 0 : index
    %c0_0 = arith.constant 0 : index
    %c0_1 = arith.constant 0 : index
    %0 = vector.load %arg3[%c0, %c0_0, %c0_1] : memref<1x1x256xf32, #tpu.memory_space<vmem>>, vector<1x1x256xf32>
    %c0_2 = arith.constant 0 : index
    %c0_3 = arith.constant 0 : index
    %c0_4 = arith.constant 0 : index
    %1 = vector.load %arg4[%c0_2, %c0_3, %c0_4] : memref<1x1x256xf32, #tpu.memory_space<vmem>>, vector<1x1x256xf32>
    %c0_5 = arith.constant 0 : index
    %c0_6 = arith.constant 0 : index
    %2 = vector.load %arg5[%c0_5, %c0_6] : memref<1x256xf32, #tpu.memory_space<vmem>>, vector<1x256xf32>
    %c0_7 = arith.constant 0 : index
    %c0_8 = arith.constant 0 : index
    %3 = vector.load %arg6[%c0_7, %c0_8] : memref<1x256xf32, #tpu.memory_space<vmem>>, vector<1x256xf32>
    %cst = arith.constant dense<0.000000e+00> : vector<256xf32>
    %4 = vector.multi_reduction <add>, %0, %cst [0, 1] : vector<1x1x256xf32> to vector<256xf32>
    %cst_9 = arith.constant dense<0.000000e+00> : vector<256xf32>
    %5 = vector.multi_reduction <add>, %1, %cst_9 [0, 1] : vector<1x1x256xf32> to vector<256xf32>
    %6 = vector.shape_cast %2 : vector<1x256xf32> to vector<256xf32>
    %7 = vector.shape_cast %3 : vector<1x256xf32> to vector<256xf32>
    %cst_10 = arith.constant 0.001953125 : f32
    %8 = vector.broadcast %cst_10 : f32 to vector<256xf32>
    %9 = arith.mulf %4, %8 : vector<256xf32>
    %cst_11 = arith.constant 0.001953125 : f32
    %10 = vector.broadcast %cst_11 : f32 to vector<256xf32>
    %11 = arith.mulf %5, %10 : vector<256xf32>
    %12 = arith.mulf %9, %9 : vector<256xf32>
    %13 = arith.subf %11, %12 : vector<256xf32>
    %cst_12 = arith.constant 0.000000e+00 : f32
    %14 = vector.broadcast %cst_12 : f32 to vector<256xf32>
    %15 = arith.maximumf %13, %14 : vector<256xf32>
    %cst_13 = arith.constant 9.99999974E-6 : f32
    %16 = vector.broadcast %cst_13 : f32 to vector<256xf32>
    %17 = arith.addf %15, %16 : vector<256xf32>
    %18 = math.rsqrt %17 : vector<256xf32>
    %19 = arith.mulf %6, %18 : vector<256xf32>
    %20 = arith.mulf %9, %19 : vector<256xf32>
    %21 = arith.subf %7, %20 : vector<256xf32>
    %c0_14 = arith.constant 0 : index
    %c0_15 = arith.constant 0 : index
    %c0_16 = arith.constant 0 : index
    %22 = vector.load %arg7[%c0_14, %c0_15, %c0_16] : memref<1x1x256xf32, #tpu.memory_space<vmem>>, vector<1x1x256xf32>
    %c0_17 = arith.constant 0 : index
    %c0_18 = arith.constant 0 : index
    %c0_19 = arith.constant 0 : index
    %23 = vector.load %arg8[%c0_17, %c0_18, %c0_19] : memref<1x1x256xf32, #tpu.memory_space<vmem>>, vector<1x1x256xf32>
    %c0_20 = arith.constant 0 : index
    %c0_21 = arith.constant 0 : index
    %24 = vector.load %arg9[%c0_20, %c0_21] : memref<1x256xf32, #tpu.memory_space<vmem>>, vector<1x256xf32>
    %c0_22 = arith.constant 0 : index
    %c0_23 = arith.constant 0 : index
    %25 = vector.load %arg10[%c0_22, %c0_23] : memref<1x256xf32, #tpu.memory_space<vmem>>, vector<1x256xf32>
    %cst_24 = arith.constant dense<0.000000e+00> : vector<256xf32>
    %26 = vector.multi_reduction <add>, %22, %cst_24 [0, 1] : vector<1x1x256xf32> to vector<256xf32>
    %cst_25 = arith.constant dense<0.000000e+00> : vector<256xf32>
    %27 = vector.multi_reduction <add>, %23, %cst_25 [0, 1] : vector<1x1x256xf32> to vector<256xf32>
    %28 = vector.shape_cast %24 : vector<1x256xf32> to vector<256xf32>
    %29 = vector.shape_cast %25 : vector<1x256xf32> to vector<256xf32>
    %cst_26 = arith.constant 0.001953125 : f32
    %30 = vector.broadcast %cst_26 : f32 to vector<256xf32>
    %31 = arith.mulf %26, %30 : vector<256xf32>
    %cst_27 = arith.constant 0.001953125 : f32
    %32 = vector.broadcast %cst_27 : f32 to vector<256xf32>
    %33 = arith.mulf %27, %32 : vector<256xf32>
    %34 = arith.mulf %31, %31 : vector<256xf32>
    %35 = arith.subf %33, %34 : vector<256xf32>
    %cst_28 = arith.constant 0.000000e+00 : f32
    %36 = vector.broadcast %cst_28 : f32 to vector<256xf32>
    %37 = arith.maximumf %35, %36 : vector<256xf32>
    %cst_29 = arith.constant 9.99999974E-6 : f32
    %38 = vector.broadcast %cst_29 : f32 to vector<256xf32>
    %39 = arith.addf %37, %38 : vector<256xf32>
    %40 = math.rsqrt %39 : vector<256xf32>
    %41 = arith.mulf %28, %40 : vector<256xf32>
    %42 = arith.mulf %31, %41 : vector<256xf32>
    %43 = arith.subf %29, %42 : vector<256xf32>
    %c0_30 = arith.constant 0 : index
    %c0_31 = arith.constant 0 : index
    %44 = vector.load %arg1[%c0_30, %c0_31] : memref<512x256xbf16, #tpu.memory_space<vmem>>, vector<512x256xbf16>
    %45 = arith.extf %44 : vector<512x256xbf16> to vector<512x256xf32>
    %46 = vector.shape_cast %19 : vector<256xf32> to vector<1x256xf32>
    %47 = vector.broadcast %46 : vector<1x256xf32> to vector<512x256xf32>
    %48 = arith.mulf %45, %47 : vector<512x256xf32>
    %49 = vector.shape_cast %21 : vector<256xf32> to vector<1x256xf32>
    %50 = vector.broadcast %49 : vector<1x256xf32> to vector<512x256xf32>
    %51 = arith.addf %48, %50 : vector<512x256xf32>
    %c0_32 = arith.constant 0 : index
    %c0_33 = arith.constant 0 : index
    %52 = vector.load %arg2[%c0_32, %c0_33] : memref<512x256xbf16, #tpu.memory_space<vmem>>, vector<512x256xbf16>
    %53 = arith.extf %52 : vector<512x256xbf16> to vector<512x256xf32>
    %54 = vector.shape_cast %41 : vector<256xf32> to vector<1x256xf32>
    %55 = vector.broadcast %54 : vector<1x256xf32> to vector<512x256xf32>
    %56 = arith.mulf %53, %55 : vector<512x256xf32>
    %57 = vector.shape_cast %43 : vector<256xf32> to vector<1x256xf32>
    %58 = vector.broadcast %57 : vector<1x256xf32> to vector<512x256xf32>
    %59 = arith.addf %56, %58 : vector<512x256xf32>
    %60 = arith.addf %51, %59 : vector<512x256xf32>
    %cst_34 = arith.constant 0.000000e+00 : f32
    %61 = vector.broadcast %cst_34 : f32 to vector<512x256xf32>
    %62 = arith.maximumf %60, %61 : vector<512x256xf32>
    %c0_35 = arith.constant 0 : index
    %c0_36 = arith.constant 0 : index
    %63 = vector.load %arg11[%c0_35, %c0_36] : memref<512x256xf32, #tpu.memory_space<vmem>>, vector<512x256xf32>
    tpu.vector_store %arg11[%c0_35, %c0_36], %62 {strides = array<i32>} : memref<512x256xf32, #tpu.memory_space<vmem>>, vector<512x256xf32>,
    return
  }
  func.func @transform_0(%arg0: i32) -> (i32, i32) {
    %c0_i32 = arith.constant 0 : i32
    %c0_i32_0 = arith.constant 0 : i32
    return %arg0, %c0_i32 : i32, i32
  }
  func.func @transform_1(%arg0: i32) -> (i32, i32) {
    %c0_i32 = arith.constant 0 : i32
    %c0_i32_0 = arith.constant 0 : i32
    return %arg0, %c0_i32 : i32, i32
  }
  func.func @transform_2(%arg0: i32) -> (i32, i32, i32) {
    %c0_i32 = arith.constant 0 : i32
    %c0_i32_0 = arith.constant 0 : i32
    %c0_i32_1 = arith.constant 0 : i32
    %c0_i32_2 = arith.constant 0 : i32
    return %c0_i32, %c0_i32_0, %c0_i32_1 : i32, i32, i32
  }
  func.func @transform_3(%arg0: i32) -> (i32, i32, i32) {
    %c0_i32 = arith.constant 0 : i32
    %c0_i32_0 = arith.constant 0 : i32
    %c0_i32_1 = arith.constant 0 : i32
    %c0_i32_2 = arith.constant 0 : i32
    return %c0_i32, %c0_i32_0, %c0_i32_1 : i32, i32, i32
  }
  func.func @transform_4(%arg0: i32) -> (i32, i32) {
    %c0_i32 = arith.constant 0 : i32
    %c0_i32_0 = arith.constant 0 : i32
    %c0_i32_1 = arith.constant 0 : i32
    return %c0_i32, %c0_i32_0 : i32, i32
  }
  func.func @transform_5(%arg0: i32) -> (i32, i32) {
    %c0_i32 = arith.constant 0 : i32
    %c0_i32_0 = arith.constant 0 : i32
    %c0_i32_1 = arith.constant 0 : i32
    return %c0_i32, %c0_i32_0 : i32, i32
  }
  func.func @transform_6(%arg0: i32) -> (i32, i32, i32) {
    %c0_i32 = arith.constant 0 : i32
    %c0_i32_0 = arith.constant 0 : i32
    %c0_i32_1 = arith.constant 0 : i32
    %c0_i32_2 = arith.constant 0 : i32
    return %c0_i32, %c0_i32_0, %c0_i32_1 : i32, i32, i32
  }
  func.func @transform_7(%arg0: i32) -> (i32, i32, i32) {
    %c0_i32 = arith.constant 0 : i32
    %c0_i32_0 = arith.constant 0 : i32
    %c0_i32_1 = arith.constant 0 : i32
    %c0_i32_2 = arith.constant 0 : i32
    return %c0_i32, %c0_i32_0, %c0_i32_1 : i32, i32, i32
  }
  func.func @transform_8(%arg0: i32) -> (i32, i32) {
    %c0_i32 = arith.constant 0 : i32
    %c0_i32_0 = arith.constant 0 : i32
    %c0_i32_1 = arith.constant 0 : i32
    return %c0_i32, %c0_i32_0 : i32, i32
  }
  func.func @transform_9(%arg0: i32) -> (i32, i32) {
    %c0_i32 = arith.constant 0 : i32
    %c0_i32_0 = arith.constant 0 : i32
    %c0_i32_1 = arith.constant 0 : i32
    return %c0_i32, %c0_i32_0 : i32, i32
  }
  func.func @transform_10(%arg0: i32) -> (i32, i32) {
    %c0_i32 = arith.constant 0 : i32
    %c0_i32_0 = arith.constant 0 : i32
    return %arg0, %c0_i32 : i32, i32
  }
}

</mosaic_0001>

<bundles_post_ra>
// kernel: resnext_bottleneck_c.4
= control target key start
LH: loop header
LB: loop body
LE: loop exit
PB: predicated region body
PF: predicated region fallthrough
CT: control target
= control target key end

     0   :  { %s2006_s1 = inlined_call_operand.vmem [shape: bf16[128,128], index: 1, kind: input, shape index: {}]   ;;  %s2007_s0 = inlined_call_operand.vmem [shape: f32[512,128], index: 0, kind: input, shape index: {}]   ;;  %s2008_s2 = inlined_call_operand.vmem [shape: bf16[512,128], index: 2, kind: output, shape index: {0}]   ;;  %s2009_s3 = inlined_call_operand.vmem [shape: f32[1,1,128], index: 3, kind: output, shape index: {1}]   ;;  %s2010_s4 = inlined_call_operand.vmem [shape: f32[1,1,128], index: 4, kind: output, shape index: {2}]  }
   0x1   :  { %v1463_v0 = vld [vmem:[%s2006_s1] sm:$0xff]   ;;  %v1464_v1 = vld [vmem:[%s2006_s1 + $0x8] sm:$0xff]   ;;  %v1465_v2 = vld [vmem:[%s2006_s1 + $0x10] sm:$0xff]  }
   0x2   :  { %1367 = vmatprep.subr.bf16.mxu0 %v1463_v0  ;;  %1447 = vmatprep.subr.bf16.mxu1 %v1463_v0  ;;  %v1466_v3 = vld [vmem:[%s2006_s1 + $0x18] sm:$0xff]   ;;  %v15_v4 = vld [vmem:[%s2007_s0] sm:$0xff]  ;;  %v16_v5 = vld [vmem:[%s2007_s0 + $0x8] sm:$0xff] }
   0x3   :  { %1368 = vmatpush3.bf16.msra.mxu0 %v1463_v0  ;;  %1455 = vmatpush3.bf16.msra.mxu1 %v1463_v0  ;;  %v79_v6 = vpack.c.bf16 %v16_v5, %v15_v4  ;;  %v1467_v7 = vld [vmem:[%s2006_s1 + $0x20] sm:$0xff]   ;;  %v1468_v8 = vld [vmem:[%s2006_s1 + $0x28] sm:$0xff]   ;;  %v1469_v11 = vld [vmem:[%s2006_s1 + $0x30] sm:$0xff]  }
   0x4   :  { %1369 = vmatprep.subr.bf16.mxu0 %v1464_v1  ;;  %1448 = vmatprep.subr.bf16.mxu1 %v1464_v1  ;;  %v47_v9 = vld [vmem:[%s2007_s0 + $0x100] sm:$0xff]  ;;  %v48_v10 = vld [vmem:[%s2007_s0 + $0x108] sm:$0xff]  ;;  %v1470_v13 = vld [vmem:[%s2006_s1 + $0x38] sm:$0xff]  }
   0x5   :  { %1383 = vmatprep.mubr.bf16.mxu0 %v79_v6  ;;  %v95_v12 = vpack.c.bf16 %v48_v10, %v47_v9  ;;  %v17_v14 = vld [vmem:[%s2007_s0 + $0x10] sm:$0xff]  ;;  %v18_v15 = vld [vmem:[%s2007_s0 + $0x18] sm:$0xff]  ;;  %v19_v16 = vld [vmem:[%s2007_s0 + $0x20] sm:$0xff] }
   0x6   :  { %v20_v17 = vld [vmem:[%s2007_s0 + $0x28] sm:$0xff]  ;;  %v49_v18 = vld [vmem:[%s2007_s0 + $0x110] sm:$0xff]  ;;  %v50_v19 = vld [vmem:[%s2007_s0 + $0x118] sm:$0xff]  ;;  %v80_v22 = vpack.c.bf16 %v18_v15, %v17_v14 }
   0x7   :  { %1370 = vmatpush3.bf16.msra.mxu0 %v1464_v1  ;;  %1456 = vmatpush3.bf16.msra.mxu1 %v1464_v1  ;;  %v51_v20 = vld [vmem:[%s2007_s0 + $0x120] sm:$0xff]  ;;  %v52_v21 = vld [vmem:[%s2007_s0 + $0x128] sm:$0xff]  ;;  %v81_v23 = vpack.c.bf16 %v20_v17, %v19_v16  ;;  %v96_v24 = vpack.c.bf16 %v50_v19, %v49_v18  ;;  %v21_v26 = vld [vmem:[%s2007_s0 + $0x30] sm:$0xff] }
   0x8   :  { %1371 = vmatprep.subr.bf16.mxu0 %v1465_v2  ;;  %1449 = vmatprep.subr.bf16.mxu1 %v1465_v2  ;;  %v97_v25 = vpack.c.bf16 %v52_v21, %v51_v20  ;;  %v22_v27 = vld [vmem:[%s2007_s0 + $0x38] sm:$0xff]  ;;  %v23_v28 = vld [vmem:[%s2007_s0 + $0x40] sm:$0xff]  ;;  %v24_v29 = vld [vmem:[%s2007_s0 + $0x48] sm:$0xff] }
   0x9   :  { %1415 = vmatprep.mubr.bf16.mxu1 %v95_v12  ;;  %v53_v30 = vld [vmem:[%s2007_s0 + $0x130] sm:$0xff]  ;;  %v54_v31 = vld [vmem:[%s2007_s0 + $0x138] sm:$0xff]  ;;  %v55_v32 = vld [vmem:[%s2007_s0 + $0x140] sm:$0xff]  ;;  %v82_v34 = vpack.c.bf16 %v22_v27, %v21_v26  ;;  %v83_v35 = vpack.c.bf16 %v24_v29, %v23_v28 }
   0xa   :  { %v56_v33 = vld [vmem:[%s2007_s0 + $0x148] sm:$0xff]  ;;  %v98_v36 = vpack.c.bf16 %v54_v31, %v53_v30  ;;  %v25_v38 = vld [vmem:[%s2007_s0 + $0x50] sm:$0xff]  ;;  %v26_v39 = vld [vmem:[%s2007_s0 + $0x58] sm:$0xff] }
   0xb   :  { %1372 = vmatpush3.bf16.msra.mxu0 %v1465_v2  ;;  %1457 = vmatpush3.bf16.msra.mxu1 %v1465_v2  ;;  %v99_v37 = vpack.c.bf16 %v56_v33, %v55_v32  ;;  %v27_v40 = vld [vmem:[%s2007_s0 + $0x60] sm:$0xff]  ;;  %v28_v41 = vld [vmem:[%s2007_s0 + $0x68] sm:$0xff]  ;;  %v57_v42 = vld [vmem:[%s2007_s0 + $0x150] sm:$0xff]  ;;  %v84_v46 = vpack.c.bf16 %v26_v39, %v25_v38 }
   0xc   :  { %1373 = vmatprep.subr.bf16.mxu0 %v1466_v3  ;;  %1450 = vmatprep.subr.bf16.mxu1 %v1466_v3  ;;  %v58_v43 = vld [vmem:[%s2007_s0 + $0x158] sm:$0xff]  ;;  %v59_v44 = vld [vmem:[%s2007_s0 + $0x160] sm:$0xff]  ;;  %v60_v45 = vld [vmem:[%s2007_s0 + $0x168] sm:$0xff]  ;;  %v85_v47 = vpack.c.bf16 %v28_v41, %v27_v40 }
   0xd   :  { %v100_v48 = vpack.c.bf16 %v58_v43, %v57_v42  ;;  %v101_v49 = vpack.c.bf16 %v60_v45, %v59_v44  ;;  %v29_v50 = vld [vmem:[%s2007_s0 + $0x70] sm:$0xff]  ;;  %v30_v51 = vld [vmem:[%s2007_s0 + $0x78] sm:$0xff]  ;;  %v31_v52 = vld [vmem:[%s2007_s0 + $0x80] sm:$0xff] }
   0xe   :  { %v32_v53 = vld [vmem:[%s2007_s0 + $0x88] sm:$0xff]  ;;  %v61_v54 = vld [vmem:[%s2007_s0 + $0x170] sm:$0xff]  ;;  %v62_v55 = vld [vmem:[%s2007_s0 + $0x178] sm:$0xff]  ;;  %v86_v58 = vpack.c.bf16 %v30_v51, %v29_v50 }
   0xf   :  { %1374 = vmatpush3.bf16.msra.mxu0 %v1466_v3  ;;  %1458 = vmatpush3.bf16.msra.mxu1 %v1466_v3  ;;  %v63_v56 = vld [vmem:[%s2007_s0 + $0x180] sm:$0xff]  ;;  %v64_v57 = vld [vmem:[%s2007_s0 + $0x188] sm:$0xff]  ;;  %v87_v59 = vpack.c.bf16 %v32_v53, %v31_v52  ;;  %v102_v60 = vpack.c.bf16 %v62_v55, %v61_v54  ;;  %v33_v62 = vld [vmem:[%s2007_s0 + $0x90] sm:$0xff] }
  0x10   :  { %1375 = vmatprep.subr.bf16.mxu0 %v1467_v7  ;;  %1451 = vmatprep.subr.bf16.mxu1 %v1467_v7  ;;  %v103_v61 = vpack.c.bf16 %v64_v57, %v63_v56  ;;  %v34_v63 = vld [vmem:[%s2007_s0 + $0x98] sm:$0xff]  ;;  %v35_v0 = vld [vmem:[%s2007_s0 + $0xa0] sm:$0xff]  ;;  %v36_v1 = vld [vmem:[%s2007_s0 + $0xa8] sm:$0xff] }
  0x11   :  { %v65_v2 = vld [vmem:[%s2007_s0 + $0x190] sm:$0xff]  ;;  %v66_v3 = vld [vmem:[%s2007_s0 + $0x198] sm:$0xff]  ;;  %v67_v4 = vld [vmem:[%s2007_s0 + $0x1a0] sm:$0xff]  ;;  %v88_v6 = vpack.c.bf16 %v34_v63, %v33_v62 }
  0x12   :  { %v68_v5 = vld [vmem:[%s2007_s0 + $0x1a8] sm:$0xff]  ;;  %v37_v10 = vld [vmem:[%s2007_s0 + $0xb0] sm:$0xff]  ;;  %v39_v12 = vld [vmem:[%s2007_s0 + $0xc0] sm:$0xff] }
  0x13   :  { %1376 = vmatpush3.bf16.msra.mxu0 %v1467_v7  ;;  %1459 = vmatpush3.bf16.msra.mxu1 %v1467_v7  ;;  %v89_v7 = vpack.c.bf16 %v36_v1, %v35_v0  ;;  %v105_v9 = vpack.c.bf16 %v68_v5, %v67_v4  ;;  %v69_v14 = vld [vmem:[%s2007_s0 + $0x1b0] sm:$0xff]  ;;  %v70_v15 = vld [vmem:[%s2007_s0 + $0x1b8] sm:$0xff]  ;;  %v71_v16 = vld [vmem:[%s2007_s0 + $0x1c0] sm:$0xff] }
  0x14   :  { %1377 = vmatprep.subr.bf16.mxu0 %v1468_v8  ;;  %1452 = vmatprep.subr.bf16.mxu1 %v1468_v8  ;;  %v72_v17 = vld [vmem:[%s2007_s0 + $0x1c8] sm:$0xff]  ;;  %v106_v20 = vpack.c.bf16 %v70_v15, %v69_v14  ;;  %v73_v26 = vld [vmem:[%s2007_s0 + $0x1d0] sm:$0xff]  ;;  %v74_v27 = vld [vmem:[%s2007_s0 + $0x1d8] sm:$0xff] }
  0x15   :  { %v107_v21 = vpack.c.bf16 %v72_v17, %v71_v16  ;;  %v75_v28 = vld [vmem:[%s2007_s0 + $0x1e0] sm:$0xff]  ;;  %v76_v29 = vld [vmem:[%s2007_s0 + $0x1e8] sm:$0xff]  ;;  %v108_v32 = vpack.c.bf16 %v74_v27, %v73_v26 }
  0x16   :  { %v109_v33 = vpack.c.bf16 %v76_v29, %v75_v28 }
  0x17   :  { %1378 = vmatpush3.bf16.msra.mxu0 %v1468_v8  ;;  %1460 = vmatpush3.bf16.msra.mxu1 %v1468_v8  ;;  %v104_v8 = vpack.c.bf16 %v66_v3, %v65_v2 }
  0x18   :  { %1379 = vmatprep.subr.bf16.mxu0 %v1469_v11  ;;  %1453 = vmatprep.subr.bf16.mxu1 %v1469_v11 }
  0x1b   :  { %1380 = vmatpush3.bf16.msra.mxu0 %v1469_v11  ;;  %1461 = vmatpush3.bf16.msra.mxu1 %v1469_v11  ;;  %v38_v11 = vld [vmem:[%s2007_s0 + $0xb8] sm:$0xff] }
  0x1c   :  { %1381 = vmatprep.subr.bf16.mxu0 %v1470_v13  ;;  %1454 = vmatprep.subr.bf16.mxu1 %v1470_v13  ;;  %v90_v18 = vpack.c.bf16 %v38_v11, %v37_v10 }
  0x1f   :  { %1382 = vmatpush3.bf16.msra.mxu0 %v1470_v13  ;;  %1462 = vmatpush3.bf16.msra.mxu1 %v1470_v13  ;;  %v40_v13 = vld [vmem:[%s2007_s0 + $0xc8] sm:$0xff] }
  0x20   :  { %v91_v19 = vpack.c.bf16 %v40_v13, %v39_v12 }
  0x22   :  { %1384 = vmatmul.mubr.bf16.vlgmr.msra.gmra.mrb[0].mxu0 %v80_v22  ;;  %1416 = vmatmul.mubr.bf16.vlgmr.msra.gmra.mrb[0].mxu1 %v96_v24  ;;  %v41_v22 = vld [vmem:[%s2007_s0 + $0xd0] sm:$0xff]  ;;  %v43_v24 = vld [vmem:[%s2007_s0 + $0xe0] sm:$0xff] }
  0x23   :  { %1387 = vmatprep.mubr.bf16.mxu0 %v81_v23  ;;  %1419 = vmatprep.mubr.bf16.mxu1 %v97_v25  ;;  %v42_v23 = vld [vmem:[%s2007_s0 + $0xd8] sm:$0xff]  ;;  %v44_v25 = vld [vmem:[%s2007_s0 + $0xe8] sm:$0xff] }
  0x24   :  { %v92_v30 = vpack.c.bf16 %v42_v23, %v41_v22  ;;  %v93_v31 = vpack.c.bf16 %v44_v25, %v43_v24 }
  0x2a   :  { %1388 = vmatmul.mubr.bf16.gmra.mrb[4].mxu0 %v82_v34  ;;  %1420 = vmatmul.mubr.bf16.gmra.mrb[4].mxu1 %v98_v36  ;;  %v45_v34 = vld [vmem:[%s2007_s0 + $0xf0] sm:$0xff] }
  0x2b   :  { %1391 = vmatprep.mubr.bf16.mxu0 %v83_v35  ;;  %1423 = vmatprep.mubr.bf16.mxu1 %v99_v37  ;;  %v46_v35 = vld [vmem:[%s2007_s0 + $0xf8] sm:$0xff]  ;;  %v77_v36 = vld [vmem:[%s2007_s0 + $0x1f0] sm:$0xff] }
  0x2c   :  { %v78_v37 = vld [vmem:[%s2007_s0 + $0x1f8] sm:$0xff]  ;;  %v94_v38 = vpack.c.bf16 %v46_v35, %v45_v34 }
  0x2d   :  { %v110_v39 = vpack.c.bf16 %v78_v37, %v77_v36 }
  0x32   :  { %1392 = vmatmul.mubr.bf16.gmra.mrb[8].mxu0 %v84_v46  ;;  %1424 = vmatmul.mubr.bf16.gmra.mrb[8].mxu1 %v100_v48 }
  0x33   :  { %1395 = vmatprep.mubr.bf16.mxu0 %v85_v47  ;;  %1427 = vmatprep.mubr.bf16.mxu1 %v101_v49 }
  0x3a   :  { %1396 = vmatmul.mubr.bf16.gmra.mrb[12].mxu0 %v86_v58  ;;  %1428 = vmatmul.mubr.bf16.gmra.mrb[12].mxu1 %v102_v60 }
  0x3b   :  { %1399 = vmatprep.mubr.bf16.mxu0 %v87_v59  ;;  %1431 = vmatprep.mubr.bf16.mxu1 %v103_v61 }
  0x42   :  { %1400 = vmatmul.mubr.bf16.gmra.mrb[16].mxu0 %v88_v6  ;;  %1432 = vmatmul.mubr.bf16.gmra.mrb[16].mxu1 %v104_v8 }
  0x43   :  { %1403 = vmatprep.mubr.bf16.mxu0 %v89_v7  ;;  %1435 = vmatprep.mubr.bf16.mxu1 %v105_v9 }
  0x4a   :  { %1404 = vmatmul.mubr.bf16.gmra.mrb[20].mxu0 %v90_v18  ;;  %1436 = vmatmul.mubr.bf16.gmra.mrb[20].mxu1 %v106_v20 }
  0x4b   :  { %1407 = vmatprep.mubr.bf16.mxu0 %v91_v19  ;;  %1439 = vmatprep.mubr.bf16.mxu1 %v107_v21 }
  0x52   :  { %1408 = vmatmul.mubr.bf16.gmra.mrb[24].mxu0 %v92_v30  ;;  %1440 = vmatmul.mubr.bf16.gmra.mrb[24].mxu1 %v108_v32 }
  0x53   :  { %1411 = vmatprep.mubr.bf16.mxu0 %v93_v31  ;;  %1443 = vmatprep.mubr.bf16.mxu1 %v109_v33 }
  0x5a   :  { %1412 = vmatmul.mubr.bf16.gmra.mrb[28].mxu0 %v94_v38  ;;  %1444 = vmatmul.mubr.bf16.gmra.mrb[28].mxu1 %v110_v39 }
  0xf5   :  { %v1385_v40 = vpop.f32.mrb[0].mxu0  ;;  %v1712_v42 = vpop.f32.mrb[0].mxu1 }
  0xf6   :  { %v209_v41 = vpop.f32.mrb[1].mxu0  ;;  %v1714_v44 = vpop.f32.mrb[1].mxu1  ;;  %v856_v55 = vmul.f32 %v1385_v40, %v1385_v40 }
  0xf7   :  { %v1386_v43 = vpop.f32.mrb[2].mxu0  ;;  %v854_v45 = vmul.f32 %v209_v41, %v209_v41  ;;  %v1716_v48 = vpop.f32.mrb[2].mxu1 }
  0xf8   :  { %v1144_v46 = vpack.c.bf16 %v1386_v43, %v1385_v40  ;;  %v212_v47 = vpop.f32.mrb[3].mxu0  ;;  %v1224_v52 = vpack.c.bf16 %v1716_v48, %v1712_v42  ;;  %v1720_v53 = vpop.f32.mrb[3].mxu1  ;;  %v857_v58 = vmul.f32 %v1386_v43, %v1386_v43 }
  0xf9   :  { %v1139_v49 = vpack.c.bf16 %v212_v47, %v209_v41  ;;  %v784_v50 = vadd.f32 %v212_v47, %v209_v41  ;;  %v855_v51 = vmul.f32 %v212_v47, %v212_v47  ;;  %v1219_v54 = vpack.c.bf16 %v1720_v53, %v1714_v44 }
  0xfa   :  { %1296 = vst [vmem:[%s2008_s2 + $0x8] sm:$0xff] %v1144_v46   ;;  %1312 = vst [vmem:[%s2008_s2 + $0x88] sm:$0xff] %v1224_v52  }
  0xfb   :  { %1140 = vst [vmem:[%s2008_s2] sm:$0xff] %v1139_v49   ;;  %v785_v56 = vadd.f32 %v1385_v40, %v784_v50  ;;  %v918_v57 = vadd.f32 %v855_v51, %v854_v45  ;;  %1311 = vst [vmem:[%s2008_s2 + $0x80] sm:$0xff] %v1219_v54  }
  0xfd   :  { %v919_v59 = vadd.f32 %v918_v57, %v856_v55  ;;  %v1389_v60 = vpop.f32.mrb[4].mxu0  ;;  %v786_v61 = vadd.f32 %v1386_v43, %v785_v56  ;;  %v1736_v63 = vpop.f32.mrb[4].mxu1 }
  0xfe   :  { %v225_v62 = vpop.f32.mrb[5].mxu0  ;;  %v1738_v4 = vpop.f32.mrb[5].mxu1  ;;  %v860_v15 = vmul.f32 %v1389_v60, %v1389_v60 }
  0xff   :  { %v787_v0 = vadd.f32 %v786_v61, %v225_v62  ;;  %v858_v1 = vmul.f32 %v225_v62, %v225_v62  ;;  %v920_v2 = vadd.f32 %v919_v59, %v857_v58  ;;  %v1390_v3 = vpop.f32.mrb[6].mxu0  ;;  %v1740_v7 = vpop.f32.mrb[6].mxu1 }
 0x100   :  { %v1154_v5 = vpack.c.bf16 %v1390_v3, %v1389_v60  ;;  %v228_v6 = vpop.f32.mrb[7].mxu0  ;;  %v1742_v12 = vpop.f32.mrb[7].mxu1  ;;  %v1234_v13 = vpack.c.bf16 %v1740_v7, %v1736_v63  ;;  %v861_v18 = vmul.f32 %v1390_v3, %v1390_v3 }
 0x101   :  { %v921_v8 = vadd.f32 %v920_v2, %v858_v1  ;;  %v1149_v9 = vpack.c.bf16 %v228_v6, %v225_v62  ;;  %v788_v10 = vadd.f32 %v787_v0, %v228_v6  ;;  %v859_v11 = vmul.f32 %v228_v6, %v228_v6 }
 0x102   :  { %1298 = vst [vmem:[%s2008_s2 + $0x18] sm:$0xff] %v1154_v5   ;;  %v1229_v14 = vpack.c.bf16 %v1742_v12, %v1738_v4  ;;  %1314 = vst [vmem:[%s2008_s2 + $0x98] sm:$0xff] %v1234_v13  }
 0x103   :  { %1297 = vst [vmem:[%s2008_s2 + $0x10] sm:$0xff] %v1149_v9   ;;  %v789_v16 = vadd.f32 %v1389_v60, %v788_v10  ;;  %v922_v17 = vadd.f32 %v921_v8, %v859_v11 }
 0x104   :  { %1313 = vst [vmem:[%s2008_s2 + $0x90] sm:$0xff] %v1229_v14  }
 0x105   :  { %v923_v19 = vadd.f32 %v922_v17, %v860_v15  ;;  %v1393_v20 = vpop.f32.mrb[8].mxu0  ;;  %v790_v21 = vadd.f32 %v1390_v3, %v789_v16  ;;  %v1760_v23 = vpop.f32.mrb[8].mxu1 }
 0x106   :  { %v241_v22 = vpop.f32.mrb[9].mxu0  ;;  %v1762_v28 = vpop.f32.mrb[9].mxu1  ;;  %v864_v39 = vmul.f32 %v1393_v20, %v1393_v20 }
 0x107   :  { %v791_v24 = vadd.f32 %v790_v21, %v241_v22  ;;  %v862_v25 = vmul.f32 %v241_v22, %v241_v22  ;;  %v924_v26 = vadd.f32 %v923_v19, %v861_v18  ;;  %v1394_v27 = vpop.f32.mrb[10].mxu0  ;;  %v1764_v31 = vpop.f32.mrb[10].mxu1 }
 0x108   :  { %v1164_v29 = vpack.c.bf16 %v1394_v27, %v1393_v20  ;;  %v244_v30 = vpop.f32.mrb[11].mxu0  ;;  %v1766_v36 = vpop.f32.mrb[11].mxu1  ;;  %v1244_v37 = vpack.c.bf16 %v1764_v31, %v1760_v23  ;;  %v865_v43 = vmul.f32 %v1394_v27, %v1394_v27 }
 0x109   :  { %v925_v32 = vadd.f32 %v924_v26, %v862_v25  ;;  %v1159_v33 = vpack.c.bf16 %v244_v30, %v241_v22  ;;  %v792_v34 = vadd.f32 %v791_v24, %v244_v30  ;;  %v863_v35 = vmul.f32 %v244_v30, %v244_v30 }
 0x10a   :  { %1300 = vst [vmem:[%s2008_s2 + $0x28] sm:$0xff] %v1164_v29   ;;  %v1239_v38 = vpack.c.bf16 %v1766_v36, %v1762_v28  ;;  %1316 = vst [vmem:[%s2008_s2 + $0xa8] sm:$0xff] %v1244_v37  }
 0x10b   :  { %1299 = vst [vmem:[%s2008_s2 + $0x20] sm:$0xff] %v1159_v33   ;;  %v793_v40 = vadd.f32 %v1393_v20, %v792_v34  ;;  %v926_v41 = vadd.f32 %v925_v32, %v863_v35 }
 0x10c   :  { %1315 = vst [vmem:[%s2008_s2 + $0xa0] sm:$0xff] %v1239_v38  }
 0x10d   :  { %v927_v45 = vadd.f32 %v926_v41, %v864_v39  ;;  %v1397_v46 = vpop.f32.mrb[12].mxu0  ;;  %v794_v47 = vadd.f32 %v1394_v27, %v793_v40  ;;  %v1784_v50 = vpop.f32.mrb[12].mxu1 }
 0x10e   :  { %v257_v49 = vpop.f32.mrb[13].mxu0  ;;  %v1786_v56 = vpop.f32.mrb[13].mxu1  ;;  %v868_v5 = vmul.f32 %v1397_v46, %v1397_v46 }
 0x10f   :  { %v795_v51 = vadd.f32 %v794_v47, %v257_v49  ;;  %v866_v52 = vmul.f32 %v257_v49, %v257_v49  ;;  %v928_v54 = vadd.f32 %v927_v45, %v865_v43  ;;  %v1398_v55 = vpop.f32.mrb[14].mxu0  ;;  %v1788_v59 = vpop.f32.mrb[14].mxu1 }
 0x110   :  { %v1174_v57 = vpack.c.bf16 %v1398_v55, %v1397_v46  ;;  %v260_v58 = vpop.f32.mrb[15].mxu0  ;;  %v1790_v1 = vpop.f32.mrb[15].mxu1  ;;  %v1254_v2 = vpack.c.bf16 %v1788_v59, %v1784_v50  ;;  %v869_v9 = vmul.f32 %v1398_v55, %v1398_v55 }
 0x111   :  { %v929_v60 = vadd.f32 %v928_v54, %v866_v52  ;;  %v1169_v61 = vpack.c.bf16 %v260_v58, %v257_v49  ;;  %v796_v62 = vadd.f32 %v795_v51, %v260_v58  ;;  %v867_v0 = vmul.f32 %v260_v58, %v260_v58 }
 0x112   :  { %1302 = vst [vmem:[%s2008_s2 + $0x38] sm:$0xff] %v1174_v57   ;;  %v1249_v3 = vpack.c.bf16 %v1790_v1, %v1786_v56  ;;  %1318 = vst [vmem:[%s2008_s2 + $0xb8] sm:$0xff] %v1254_v2  }
 0x113   :  { %1301 = vst [vmem:[%s2008_s2 + $0x30] sm:$0xff] %v1169_v61   ;;  %v797_v6 = vadd.f32 %v1397_v46, %v796_v62  ;;  %v930_v8 = vadd.f32 %v929_v60, %v867_v0 }
 0x114   :  { %1317 = vst [vmem:[%s2008_s2 + $0xb0] sm:$0xff] %v1249_v3  }
 0x115   :  { %v931_v10 = vadd.f32 %v930_v8, %v868_v5  ;;  %v1401_v11 = vpop.f32.mrb[16].mxu0  ;;  %v798_v13 = vadd.f32 %v1398_v55, %v797_v6  ;;  %v1808_v15 = vpop.f32.mrb[16].mxu1 }
 0x116   :  { %v273_v14 = vpop.f32.mrb[17].mxu0  ;;  %v1810_v20 = vpop.f32.mrb[17].mxu1  ;;  %v872_v34 = vmul.f32 %v1401_v11, %v1401_v11 }
 0x117   :  { %v799_v16 = vadd.f32 %v798_v13, %v273_v14  ;;  %v870_v17 = vmul.f32 %v273_v14, %v273_v14  ;;  %v932_v18 = vadd.f32 %v931_v10, %v869_v9  ;;  %v1402_v19 = vpop.f32.mrb[18].mxu0  ;;  %v1812_v24 = vpop.f32.mrb[18].mxu1 }
 0x118   :  { %v1184_v21 = vpack.c.bf16 %v1402_v19, %v1401_v11  ;;  %v276_v22 = vpop.f32.mrb[19].mxu0  ;;  %v1814_v30 = vpop.f32.mrb[19].mxu1  ;;  %v1264_v32 = vpack.c.bf16 %v1812_v24, %v1808_v15  ;;  %v873_v38 = vmul.f32 %v1402_v19, %v1402_v19 }
 0x119   :  { %v933_v25 = vadd.f32 %v932_v18, %v870_v17  ;;  %v1179_v26 = vpack.c.bf16 %v276_v22, %v273_v14  ;;  %v800_v27 = vadd.f32 %v799_v16, %v276_v22  ;;  %v871_v29 = vmul.f32 %v276_v22, %v276_v22 }
 0x11a   :  { %1304 = vst [vmem:[%s2008_s2 + $0x48] sm:$0xff] %v1184_v21   ;;  %v1259_v33 = vpack.c.bf16 %v1814_v30, %v1810_v20  ;;  %1320 = vst [vmem:[%s2008_s2 + $0xc8] sm:$0xff] %v1264_v32  }
 0x11b   :  { %1303 = vst [vmem:[%s2008_s2 + $0x40] sm:$0xff] %v1179_v26   ;;  %v801_v35 = vadd.f32 %v1401_v11, %v800_v27  ;;  %v934_v37 = vadd.f32 %v933_v25, %v871_v29 }
 0x11c   :  { %1319 = vst [vmem:[%s2008_s2 + $0xc0] sm:$0xff] %v1259_v33  }
 0x11d   :  { %v935_v39 = vadd.f32 %v934_v37, %v872_v34  ;;  %v1405_v40 = vpop.f32.mrb[20].mxu0  ;;  %v802_v41 = vadd.f32 %v1402_v19, %v801_v35  ;;  %v1832_v45 = vpop.f32.mrb[20].mxu1 }
 0x11e   :  { %v289_v43 = vpop.f32.mrb[21].mxu0  ;;  %v1834_v52 = vpop.f32.mrb[21].mxu1  ;;  %v876_v5 = vmul.f32 %v1405_v40, %v1405_v40 }
 0x11f   :  { %v803_v46 = vadd.f32 %v802_v41, %v289_v43  ;;  %v874_v47 = vmul.f32 %v289_v43, %v289_v43  ;;  %v936_v49 = vadd.f32 %v935_v39, %v873_v38  ;;  %v1406_v51 = vpop.f32.mrb[22].mxu0  ;;  %v1836_v57 = vpop.f32.mrb[22].mxu1 }
 0x120   :  { %v1194_v54 = vpack.c.bf16 %v1406_v51, %v1405_v40  ;;  %v292_v55 = vpop.f32.mrb[23].mxu0  ;;  %v1838_v0 = vpop.f32.mrb[23].mxu1  ;;  %v1274_v2 = vpack.c.bf16 %v1836_v57, %v1832_v45  ;;  %v877_v9 = vmul.f32 %v1406_v51, %v1406_v51 }
 0x121   :  { %v937_v58 = vadd.f32 %v936_v49, %v874_v47  ;;  %v1189_v60 = vpack.c.bf16 %v292_v55, %v289_v43  ;;  %v804_v61 = vadd.f32 %v803_v46, %v292_v55  ;;  %v875_v62 = vmul.f32 %v292_v55, %v292_v55 }
 0x122   :  { %1306 = vst [vmem:[%s2008_s2 + $0x58] sm:$0xff] %v1194_v54   ;;  %v1269_v3 = vpack.c.bf16 %v1838_v0, %v1834_v52  ;;  %1322 = vst [vmem:[%s2008_s2 + $0xd8] sm:$0xff] %v1274_v2  }
 0x123   :  { %1305 = vst [vmem:[%s2008_s2 + $0x50] sm:$0xff] %v1189_v60   ;;  %v805_v6 = vadd.f32 %v1405_v40, %v804_v61  ;;  %v938_v8 = vadd.f32 %v937_v58, %v875_v62 }
 0x124   :  { %1321 = vst [vmem:[%s2008_s2 + $0xd0] sm:$0xff] %v1269_v3  }
 0x125   :  { %v939_v10 = vadd.f32 %v938_v8, %v876_v5  ;;  %v1409_v11 = vpop.f32.mrb[24].mxu0  ;;  %v806_v13 = vadd.f32 %v1406_v51, %v805_v6  ;;  %v1856_v16 = vpop.f32.mrb[24].mxu1 }
 0x126   :  { %v305_v14 = vpop.f32.mrb[25].mxu0  ;;  %v1858_v22 = vpop.f32.mrb[25].mxu1  ;;  %v880_v39 = vmul.f32 %v1409_v11, %v1409_v11 }
 0x127   :  { %v807_v17 = vadd.f32 %v806_v13, %v305_v14  ;;  %v878_v18 = vmul.f32 %v305_v14, %v305_v14  ;;  %v940_v19 = vadd.f32 %v939_v10, %v877_v9  ;;  %v1410_v21 = vpop.f32.mrb[26].mxu0  ;;  %v1860_v27 = vpop.f32.mrb[26].mxu1 }
 0x128   :  { %v1204_v25 = vpack.c.bf16 %v1410_v21, %v1409_v11  ;;  %v308_v26 = vpop.f32.mrb[27].mxu0  ;;  %v1862_v35 = vpop.f32.mrb[27].mxu1  ;;  %v1284_v37 = vpack.c.bf16 %v1860_v27, %v1856_v16  ;;  %v881_v43 = vmul.f32 %v1410_v21, %v1410_v21 }
 0x129   :  { %v941_v29 = vadd.f32 %v940_v19, %v878_v18  ;;  %v1199_v32 = vpack.c.bf16 %v308_v26, %v305_v14  ;;  %v808_v33 = vadd.f32 %v807_v17, %v308_v26  ;;  %v879_v34 = vmul.f32 %v308_v26, %v308_v26 }
 0x12a   :  { %1308 = vst [vmem:[%s2008_s2 + $0x68] sm:$0xff] %v1204_v25   ;;  %v1279_v38 = vpack.c.bf16 %v1862_v35, %v1858_v22  ;;  %1324 = vst [vmem:[%s2008_s2 + $0xe8] sm:$0xff] %v1284_v37  }
 0x12b   :  { %1307 = vst [vmem:[%s2008_s2 + $0x60] sm:$0xff] %v1199_v32   ;;  %v809_v40 = vadd.f32 %v1409_v11, %v808_v33  ;;  %v942_v41 = vadd.f32 %v941_v29, %v879_v34  ;;  %v886_v29 = vmul.f32 %v1714_v44, %v1714_v44 }
 0x12c   :  { %1323 = vst [vmem:[%s2008_s2 + $0xe0] sm:$0xff] %v1279_v38   ;;  %v887_v38 = vmul.f32 %v1720_v53, %v1720_v53 }
 0x12d   :  { %v943_v46 = vadd.f32 %v942_v41, %v880_v39  ;;  %v1413_v47 = vpop.f32.mrb[28].mxu0  ;;  %v810_v49 = vadd.f32 %v1410_v21, %v809_v40  ;;  %v1880_v54 = vpop.f32.mrb[28].mxu1  ;;  %v888_v39 = vmul.f32 %v1712_v42, %v1712_v42 }
 0x12e   :  { %v321_v51 = vpop.f32.mrb[29].mxu0  ;;  %v1882_v62 = vpop.f32.mrb[29].mxu1  ;;  %v884_v17 = vmul.f32 %v1413_v47, %v1413_v47 }
 0x12f   :  { %v811_v55 = vadd.f32 %v810_v49, %v321_v51  ;;  %v882_v58 = vmul.f32 %v321_v51, %v321_v51  ;;  %v944_v60 = vadd.f32 %v943_v46, %v881_v43  ;;  %v1414_v61 = vpop.f32.mrb[30].mxu0  ;;  %v1884_v5 = vpop.f32.mrb[30].mxu1  ;;  %v889_v43 = vmul.f32 %v1716_v48, %v1716_v48 }
 0x130   :  { %v1214_v2 = vpack.c.bf16 %v1414_v61, %v1413_v47  ;;  %v324_v3 = vpop.f32.mrb[31].mxu0  ;;  %v1886_v11 = vpop.f32.mrb[31].mxu1  ;;  %v1294_v13 = vpack.c.bf16 %v1884_v5, %v1880_v54  ;;  %v885_v21 = vmul.f32 %v1414_v61, %v1414_v61 }
 0x131   :  { %v945_v6 = vadd.f32 %v944_v60, %v882_v58  ;;  %v1209_v8 = vpack.c.bf16 %v324_v3, %v321_v51  ;;  %v812_v9 = vadd.f32 %v811_v55, %v324_v3  ;;  %v883_v10 = vmul.f32 %v324_v3, %v324_v3 }
 0x132   :  { %1310 = vst [vmem:[%s2008_s2 + $0x78] sm:$0xff] %v1214_v2   ;;  %v1289_v14 = vpack.c.bf16 %v1886_v11, %v1882_v62  ;;  %1326 = vst [vmem:[%s2008_s2 + $0xf8] sm:$0xff] %v1294_v13   ;;  %v891_v58 = vmul.f32 %v1742_v12, %v1742_v12 }
 0x133   :  { %1309 = vst [vmem:[%s2008_s2 + $0x70] sm:$0xff] %v1209_v8   ;;  %v813_v18 = vadd.f32 %v1413_v47, %v812_v9  ;;  %v946_v19 = vadd.f32 %v945_v6, %v883_v10  ;;  %v895_v10 = vmul.f32 %v1766_v36, %v1766_v36 }
 0x134   :  { %1325 = vst [vmem:[%s2008_s2 + $0xf0] sm:$0xff] %v1289_v14  }
 0x135   :  { %v947_v25 = vadd.f32 %v946_v19, %v884_v17  ;;  %v814_v26 = vadd.f32 %v1414_v61, %v813_v18 }
 0x137   :  { %v815_v32 = vadd.f32 %v814_v26, %v1714_v44  ;;  %v948_v33 = vadd.f32 %v947_v25, %v885_v21  ;;  %v890_v44 = vmul.f32 %v1738_v4, %v1738_v4  ;;  %v899_v26 = vmul.f32 %v1790_v1, %v1790_v1 }
 0x139   :  { %v949_v34 = vadd.f32 %v948_v33, %v886_v29  ;;  %v816_v37 = vadd.f32 %v815_v32, %v1720_v53 }
 0x13b   :  { %v817_v40 = vadd.f32 %v1712_v42, %v816_v37  ;;  %v950_v41 = vadd.f32 %v949_v34, %v887_v38  ;;  %v892_v42 = vmul.f32 %v1736_v63, %v1736_v63 }
 0x13d   :  { %v951_v46 = vadd.f32 %v950_v41, %v888_v39  ;;  %v818_v47 = vadd.f32 %v1716_v48, %v817_v40  ;;  %v893_v48 = vmul.f32 %v1740_v7, %v1740_v7  ;;  %v903_v40 = vmul.f32 %v1814_v30, %v1814_v30 }
 0x13f   :  { %v819_v49 = vadd.f32 %v818_v47, %v1738_v4  ;;  %v952_v51 = vadd.f32 %v951_v46, %v889_v43  ;;  %v894_v4 = vmul.f32 %v1762_v28, %v1762_v28 }
 0x141   :  { %v953_v55 = vadd.f32 %v952_v51, %v890_v44  ;;  %v820_v53 = vadd.f32 %v819_v49, %v1742_v12 }
 0x143   :  { %v821_v60 = vadd.f32 %v1736_v63, %v820_v53  ;;  %v954_v61 = vadd.f32 %v953_v55, %v891_v58  ;;  %v896_v63 = vmul.f32 %v1760_v23, %v1760_v23  ;;  %v907_v55 = vmul.f32 %v1838_v0, %v1838_v0 }
 0x145   :  { %v955_v2 = vadd.f32 %v954_v61, %v892_v42  ;;  %v822_v3 = vadd.f32 %v1740_v7, %v821_v60  ;;  %v897_v7 = vmul.f32 %v1764_v31, %v1764_v31 }
 0x147   :  { %v823_v6 = vadd.f32 %v822_v3, %v1762_v28  ;;  %v956_v8 = vadd.f32 %v955_v2, %v893_v48  ;;  %v898_v28 = vmul.f32 %v1786_v56, %v1786_v56  ;;  %v911_v3 = vmul.f32 %v1862_v35, %v1862_v35 }
 0x149   :  { %v957_v9 = vadd.f32 %v956_v8, %v894_v4  ;;  %v824_v12 = vadd.f32 %v823_v6, %v1766_v36 }
 0x14b   :  { %v825_v13 = vadd.f32 %v1760_v23, %v824_v12  ;;  %v958_v14 = vadd.f32 %v957_v9, %v895_v10  ;;  %v900_v23 = vmul.f32 %v1784_v50, %v1784_v50 }
 0x14d   :  { %v959_v17 = vadd.f32 %v958_v14, %v896_v63  ;;  %v826_v18 = vadd.f32 %v1764_v31, %v825_v13  ;;  %v901_v31 = vmul.f32 %v1788_v59, %v1788_v59  ;;  %v915_v13 = vmul.f32 %v1886_v11, %v1886_v11 }
 0x14f   :  { %v827_v19 = vadd.f32 %v826_v18, %v1786_v56  ;;  %v960_v21 = vadd.f32 %v959_v17, %v897_v7  ;;  %v902_v56 = vmul.f32 %v1810_v20, %v1810_v20 }
 0x151   :  { %v961_v25 = vadd.f32 %v960_v21, %v898_v28  ;;  %v828_v36 = vadd.f32 %v827_v19, %v1790_v1 }
 0x153   :  { %v829_v29 = vadd.f32 %v1784_v50, %v828_v36  ;;  %v962_v32 = vadd.f32 %v961_v25, %v899_v26  ;;  %v904_v50 = vmul.f32 %v1808_v15, %v1808_v15 }
 0x155   :  { %v963_v33 = vadd.f32 %v962_v32, %v900_v23  ;;  %v830_v34 = vadd.f32 %v1788_v59, %v829_v29  ;;  %v905_v59 = vmul.f32 %v1812_v24, %v1812_v24 }
 0x157   :  { %v831_v37 = vadd.f32 %v830_v34, %v1810_v20  ;;  %v964_v38 = vadd.f32 %v963_v33, %v901_v31  ;;  %v906_v20 = vmul.f32 %v1834_v52, %v1834_v52 }
 0x159   :  { %v965_v39 = vadd.f32 %v964_v38, %v902_v56  ;;  %v832_v1 = vadd.f32 %v831_v37, %v1814_v30 }
 0x15b   :  { %v833_v41 = vadd.f32 %v1808_v15, %v832_v1  ;;  %v966_v43 = vadd.f32 %v965_v39, %v903_v40  ;;  %v908_v15 = vmul.f32 %v1832_v45, %v1832_v45 }
 0x15d   :  { %v967_v46 = vadd.f32 %v966_v43, %v904_v50  ;;  %v834_v47 = vadd.f32 %v1812_v24, %v833_v41  ;;  %v909_v24 = vmul.f32 %v1836_v57, %v1836_v57 }
 0x15f   :  { %v835_v44 = vadd.f32 %v834_v47, %v1834_v52  ;;  %v968_v49 = vadd.f32 %v967_v46, %v905_v59  ;;  %v910_v52 = vmul.f32 %v1858_v22, %v1858_v22 }
 0x161   :  { %v969_v51 = vadd.f32 %v968_v49, %v906_v20  ;;  %v836_v30 = vadd.f32 %v835_v44, %v1838_v0 }
 0x163   :  { %v837_v53 = vadd.f32 %v1832_v45, %v836_v30  ;;  %v970_v58 = vadd.f32 %v969_v51, %v907_v55  ;;  %v912_v45 = vmul.f32 %v1856_v16, %v1856_v16 }
 0x165   :  { %v971_v42 = vadd.f32 %v970_v58, %v908_v15  ;;  %v838_v60 = vadd.f32 %v1836_v57, %v837_v53  ;;  %v913_v57 = vmul.f32 %v1860_v27, %v1860_v27 }
 0x167   :  { %v839_v61 = vadd.f32 %v838_v60, %v1858_v22  ;;  %v972_v48 = vadd.f32 %v971_v42, %v909_v24  ;;  %v914_v22 = vmul.f32 %v1882_v62, %v1882_v62 }
 0x169   :  { %v973_v2 = vadd.f32 %v972_v48, %v910_v52  ;;  %v840_v0 = vadd.f32 %v839_v61, %v1862_v35 }
 0x16b   :  { %v841_v4 = vadd.f32 %v1856_v16, %v840_v0  ;;  %v974_v6 = vadd.f32 %v973_v2, %v911_v3  ;;  %v916_v16 = vmul.f32 %v1880_v54, %v1880_v54 }
 0x16d   :  { %v975_v8 = vadd.f32 %v974_v6, %v912_v45  ;;  %v842_v9 = vadd.f32 %v1860_v27, %v841_v4  ;;  %v917_v27 = vmul.f32 %v1884_v5, %v1884_v5 }
 0x16f   :  { %v843_v12 = vadd.f32 %v842_v9, %v1882_v62  ;;  %v976_v10 = vadd.f32 %v975_v8, %v913_v57 }
 0x171   :  { %v977_v63 = vadd.f32 %v976_v10, %v914_v22  ;;  %v844_v35 = vadd.f32 %v843_v12, %v1886_v11 }
 0x173   :  { %v845_v14 = vadd.f32 %v1880_v54, %v844_v35  ;;  %v978_v7 = vadd.f32 %v977_v63, %v915_v13 }
 0x175   :  { %v846_v17 = vadd.f32 %v1884_v5, %v845_v14  ;;  %v979_v18 = vadd.f32 %v978_v7, %v916_v16 }
 0x177   :  { %v847_v62 = vrot.slane %v846_v17, 4  ;;  %v980_v28 = vadd.f32 %v979_v18, %v917_v27 }
 0x179   :  { %v848_v19 = vadd.f32 %v847_v62, %v846_v17  ;;  %v981_v21 = vrot.slane %v980_v28, 4 }
 0x17b   :  { %v849_v25 = vrot.slane %v848_v19, 2  ;;  %v982_v36 = vadd.f32 %v981_v21, %v980_v28 }
 0x17d   :  { %v850_v26 = vadd.f32 %v849_v25, %v848_v19  ;;  %v983_v11 = vrot.slane %v982_v36, 2 }
 0x17f   :  { %v851_v23 = vrot.slane %v850_v26, 1  ;;  %v984_v29 = vadd.f32 %v983_v11, %v982_v36 }
 0x181   :  { %v852_v32 = vadd.f32 %v851_v23, %v850_v26  ;;  %v985_v31 = vrot.slane %v984_v29, 1 }
 0x183   :  { %853 = vst [vmem:[%s2009_s3] sm:$0x1] %v852_v32  ;;  %v986_v54 = vadd.f32 %v985_v31, %v984_v29 }
 0x185   :  { %987 = vst [vmem:[%s2010_s4] sm:$0x1] %v986_v54 }

// kernel: resnext_bottleneck_c.7
= control target key start
LH: loop header
LB: loop body
LE: loop exit
PB: predicated region body
PF: predicated region fallthrough
CT: control target
= control target key end

     0   :  { %v261_v2 = vlaneseq  ;;  %s2755_s0 = inlined_call_operand.vmem [shape: bf16[512,256], index: 0, kind: input, shape index: {}]   ;;  %s2756_s1 = inlined_call_operand.vmem [shape: bf16[512,256], index: 1, kind: input, shape index: {}]   ;;  %s2757_s2 = inlined_call_operand.vmem [shape: f32[1,1,256], index: 2, kind: input, shape index: {}]   ;;  %s2758_s3 = inlined_call_operand.vmem [shape: f32[1,1,256], index: 3, kind: input, shape index: {}]   ;;  %s2759_s4 = inlined_call_operand.vmem [shape: f32[1,256], index: 4, kind: input, shape index: {}]   ;;  %s2760_s5 = inlined_call_operand.vmem [shape: f32[1,256], index: 5, kind: input, shape index: {}]   ;;  %s2761_s6 = inlined_call_operand.vmem [shape: f32[1,1,256], index: 6, kind: input, shape index: {}]   ;;  %s2762_s7 = inlined_call_operand.vmem [shape: f32[1,1,256], index: 7, kind: input, shape index: {}]   ;;  %s2763_s8 = inlined_call_operand.vmem [shape: f32[1,256], index: 8, kind: input, shape index: {}]   ;;  %s2764_s9 = inlined_call_operand.vmem [shape: f32[1,256], index: 9, kind: input, shape index: {}]   ;;  %s2765_s10 = inlined_call_operand.hbm [shape: f32[512,256], index: 10, kind: output, shape index: {}]  }
   0x1   :  { %v36_v0 = vld [vmem:[%s2757_s2] sm:$0x3]  ;;  %v1528_v13 = vld [vmem:[%s2755_s0 + $0x8] sm:$0xff]  ;;  %v1542_v19 = vld [vmem:[%s2755_s0 + $0x10] sm:$0xff] }
   0x2   :  { %v37_v1 = vld [vmem:[%s2758_s3] sm:$0x3]  ;;  %v1503_v3 = vmul.f32 0.001953125, %v36_v0  ;;  %v262_v11 = vshrl.u32 %v261_v2, 7  ;;  %v1537_v18 = vld [vmem:[%s2756_s1 + $0x8] sm:$0xff]  ;;  %v1547_v20 = vld [vmem:[%s2756_s1 + $0x10] sm:$0xff]  ;;  %v134_v27 = vunpack.c.l.bf16 %v1528_v13  ;;  %v135_v29 = vunpack.c.h.bf16 %v1528_v13 }
   0x3   :  { %v43_v4 = vmul.f32 0.001953125, %v37_v1  ;;  %v52_v5 = vld [vmem:[%s2761_s6] sm:$0x3]  ;;  %v1558_v25 = vld [vmem:[%s2755_s0 + $0x18] sm:$0xff]  ;;  %v604_v28 = vunpack.c.l.bf16 %v1537_v18  ;;  %v605_v30 = vunpack.c.h.bf16 %v1537_v18  ;;  %v136_v33 = vunpack.c.l.bf16 %v1542_v19  ;;  %v1588_v41 = vld [vmem:[%s2755_s0 + $0x28] sm:$0xff] }
   0x4   :  { %v53_v6 = vld [vmem:[%s2762_s7] sm:$0x3]  ;;  %v44_v7 = vmul.f32 %v1503_v3, %v1503_v3  ;;  %v1513_v8 = vmul.f32 0.001953125, %v52_v5  ;;  %v1551_v23 = vsub.s32 0, %v262_v11  ;;  %v1553_v24 = vsub.s32 1, %v262_v11  ;;  %v1563_v26 = vld [vmem:[%s2756_s1 + $0x18] sm:$0xff] }
   0x5   :  { %v59_v9 = vmul.f32 0.001953125, %v53_v6  ;;  %v1518_v10 = vld [vmem:[%s2755_s0] sm:$0xff]  ;;  %v606_v34 = vunpack.c.l.bf16 %v1547_v20  ;;  %v137_v37 = vunpack.c.h.bf16 %v1542_v19  ;;  %v1593_v42 = vld [vmem:[%s2756_s1 + $0x28] sm:$0xff]  ;;  %v1600_v47 = vld [vmem:[%s2755_s0 + $0x30] sm:$0xff] }
   0x6   :  { %v1523_v12 = vld [vmem:[%s2756_s1] sm:$0xff]  ;;  %v132_v14 = vunpack.c.l.bf16 %v1518_v10  ;;  %v133_v16 = vunpack.c.h.bf16 %v1518_v10  ;;  %v45_v21 = vsub.f32 %v43_v4, %v44_v7  ;;  %v60_v22 = vmul.f32 %v1513_v8, %v1513_v8  ;;  %v1605_v48 = vld [vmem:[%s2756_s1 + $0x30] sm:$0xff]  ;;  %v1614_v53 = vld [vmem:[%s2755_s0 + $0x38] sm:$0xff] }
   0x7   :  { %v602_v15 = vunpack.c.l.bf16 %v1523_v12  ;;  %v603_v17 = vunpack.c.h.bf16 %v1523_v12  ;;  %v1574_v35 = vld [vmem:[%s2755_s0 + $0x20] sm:$0xff]  ;;  %v1621_v57 = vld [vmem:[%s2756_s1 + $0x38] sm:$0xff]  ;;  %v1640_v0 = vld [vmem:[%s2755_s0 + $0x48] sm:$0xff] }
   0x8   :  { %v46_v31 = vmax.f32 %v45_v21, 0.0  ;;  %v61_v32 = vsub.f32 %v59_v9, %v60_v22  ;;  %v1579_v36 = vld [vmem:[%s2756_s1 + $0x20] sm:$0xff]  ;;  %v1648_v5 = vld [vmem:[%s2756_s1 + $0x48] sm:$0xff]  ;;  %v1653_v6 = vld [vmem:[%s2755_s0 + $0x50] sm:$0xff] }
   0x9   :  { %v1626_v58 = vld [vmem:[%s2755_s0 + $0x40] sm:$0xff]  ;;  %v1662_v22 = vld [vmem:[%s2756_s1 + $0x50] sm:$0xff]  ;;  %v1676_v21 = vld [vmem:[%s2756_s1 + $0x58] sm:$0xff] }
   0xa   :  { %v47_v43 = vadd.f32 1e-05, %v46_v31  ;;  %v62_v44 = vmax.f32 %v61_v32, 0.0  ;;  %v1635_v63 = vld [vmem:[%s2756_s1 + $0x40] sm:$0xff]  ;;  %v1667_v31 = vld [vmem:[%s2755_s0 + $0x58] sm:$0xff]  ;;  %v1695_v7 = vld [vmem:[%s2755_s0 + $0x68] sm:$0xff] }
   0xb   :  { %v1681_v11 = vld [vmem:[%s2755_s0 + $0x60] sm:$0xff]  ;;  %v1709_v2 = vld [vmem:[%s2755_s0 + $0x70] sm:$0xff]  ;;  %v1723_v62 = vld [vmem:[%s2755_s0 + $0x78] sm:$0xff] }
   0xc   :  { %1411 = vrsqrt.f32 %v47_v43  ;;  %v63_v54 = vadd.f32 1e-05, %v62_v44  ;;  %v1704_v44 = vld [vmem:[%s2756_s1 + $0x68] sm:$0xff]  ;;  %v1718_v43 = vld [vmem:[%s2756_s1 + $0x70] sm:$0xff]  ;;  %v38_v1 = vld [vmem:[%s2759_s4] sm:$0x3] }
   0xd   :  { %v1735_v60 = vld [vmem:[%s2756_s1 + $0x78] sm:$0xff]  ;;  %v1744_v9 = vld [vmem:[%s2755_s0 + $0x80] sm:$0xff]  ;;  %v1764_v45 = vld [vmem:[%s2755_s0 + $0x88] sm:$0xff] }
   0xe   :  { %1413 = vrsqrt.f32 %v63_v54  ;;  %v1690_v54 = vld [vmem:[%s2756_s1 + $0x60] sm:$0xff]  ;;  %2773 = vst [vmem:[#allocation6_spill] sm:$0xff] %v1764_v45  ;;  %v1769_v55 = vld [vmem:[%s2756_s1 + $0x88] sm:$0xff] }
   0xf   :  { %v1749_v61 = vld [vmem:[%s2756_s1 + $0x80] sm:$0xff]  ;;  %2774 = vst [vmem:[#allocation7_spill] sm:$0xff] %v1769_v55 }
  0x10   :  { %2772 = vst [vmem:[#allocation5_spill] sm:$0xff] %v1749_v61  ;;  %v54_v59 = vld [vmem:[%s2763_s8] sm:$0x3] }
  0x11   :  { %v55_v38 = vld [vmem:[%s2764_s9] sm:$0x3] }
  0x16   :  { %v1412_v32 = vpop.eup %1411 }
  0x17   :  { %v49_v51 = vmul.f32 %v1412_v32, %v38_v1  ;;  %v39_v1 = vld [vmem:[%s2760_s5] sm:$0x3] }
  0x18   :  { %v1414_v52 = vpop.eup %1413 }
  0x19   :  { %v50_v4 = vmul.f32 %v49_v51, %v1503_v3  ;;  %v65_v56 = vmul.f32 %v1414_v52, %v54_v59  ;;  %v1780_v40 = vrot.slane %v49_v51, %v1551_v23  ;;  %v1783_v39 = vrot.slane %v49_v51, %v1553_v24 }
  0x1b   :  { %v51_v3 = vsub.f32 %v39_v1, %v50_v4  ;;  %v66_v52 = vmul.f32 %v65_v56, %v1513_v8  ;;  %v271_v51 = vmul.f32 %v1780_v40, %v132_v14  ;;  %v1797_v59 = vrot.slane %v65_v56, %v1551_v23 }
  0x1c   :  { %v272_v32 = vmul.f32 %v1783_v39, %v133_v16  ;;  %v1803_v49 = vrot.slane %v65_v56, %v1553_v24  ;;  %v273_v4 = vmul.f32 %v1780_v40, %v134_v27  ;;  %v274_v8 = vmul.f32 %v1783_v39, %v135_v29 }
  0x1d   :  { %v67_v1 = vsub.f32 %v55_v38, %v66_v52  ;;  %v1812_v14 = vrot.slane %v51_v3, %v1551_v23  ;;  %v741_v10 = vmul.f32 %v1797_v59, %v602_v15  ;;  %v1818_v16 = vrot.slane %v51_v3, %v1553_v24 }
  0x1e   :  { %15 = vsyncpa [#allocation3], 0  ;;  %v742_v27 = vmul.f32 %v1803_v49, %v603_v17  ;;  %v743_v13 = vmul.f32 %v1797_v59, %v604_v28  ;;  %v744_v29 = vmul.f32 %v1803_v49, %v605_v30  ;;  %v275_v15 = vmul.f32 %v1780_v40, %v136_v33 }
  0x1f   :  { %v410_v38 = vadd.f32 %v1812_v14, %v271_v51  ;;  %v1834_v56 = vrot.slane %v67_v1, %v1551_v23  ;;  %v411_v12 = vadd.f32 %v1818_v16, %v272_v32  ;;  %v1838_v17 = vrot.slane %v67_v1, %v1553_v24 }
  0x20   :  { %v412_v28 = vadd.f32 %v1812_v14, %v273_v4  ;;  %v413_v18 = vadd.f32 %v1818_v16, %v274_v8  ;;  %v414_v30 = vadd.f32 %v1812_v14, %v275_v15  ;;  %v745_v33 = vmul.f32 %v1797_v59, %v606_v34 }
  0x21   :  { %v880_v3 = vadd.f32 %v1834_v56, %v741_v10  ;;  %v881_v23 = vadd.f32 %v1838_v17, %v742_v27  ;;  %v882_v52 = vadd.f32 %v1834_v56, %v743_v13  ;;  %v883_v32 = vadd.f32 %v1838_v17, %v744_v29 }
  0x22   :  { %v884_v24 = vadd.f32 %v1834_v56, %v745_v33  ;;  %v276_v51 = vmul.f32 %v1783_v39, %v137_v37  ;;  %v2775_v4 = vunpack.c.h.bf16 %v1547_v20  ;;  %v2776_v34 = vunpack.c.l.bf16 %v1558_v25 }
  0x23   :  { %v1008_v10 = vadd.f32 %v880_v3, %v410_v38  ;;  %v1009_v27 = vadd.f32 %v881_v23, %v411_v12  ;;  %v1010_v15 = vadd.f32 %v882_v52, %v412_v28  ;;  %v1011_v13 = vadd.f32 %v883_v32, %v413_v18 }
  0x24   :  { %v746_v8 = vmul.f32 %v1803_v49, %v2775_v4  ;;  %v277_v1 = vmul.f32 %v1780_v40, %v2776_v34  ;;  %v1012_v50 = vadd.f32 %v884_v24, %v414_v30  ;;  %v415_v29 = vadd.f32 %v1818_v16, %v276_v51 }
  0x25   :  { %v1136_v37 = vmax.f32 %v1008_v10, 0.0  ;;  %v1137_v46 = vmax.f32 %v1009_v27, 0.0  ;;  %v1138_v20 = vmax.f32 %v1010_v15, 0.0  ;;  %v1139_v55 = vmax.f32 %v1011_v13, 0.0 }
  0x26   :  { %v885_v33 = vadd.f32 %v1838_v17, %v746_v8  ;;  %v416_v19 = vadd.f32 %v1812_v14, %v277_v1  ;;  %v1140_v4 = vmax.f32 %v1012_v50, 0.0  ;;  %v2777_v61 = vunpack.c.l.bf16 %v1563_v26 }
  0x27   :  { %v2778_v12 = vunpack.c.h.bf16 %v1558_v25  ;;  %1264 = vst [vmem:[#allocation2] sm:$0xff] %v1136_v37  ;;  %1265 = vst [vmem:[#allocation2 + $0x8] sm:$0xff] %v1137_v46  ;;  %v2779_v18 = vunpack.c.h.bf16 %v1563_v26  ;;  %v2780_v3 = vunpack.c.l.bf16 %v1574_v35  ;;  %v2781_v23 = vunpack.c.l.bf16 %v1579_v36 }
  0x28   :  { %v1013_v45 = vadd.f32 %v885_v33, %v415_v29  ;;  %v747_v38 = vmul.f32 %v1797_v59, %v2777_v61  ;;  %1266 = vst [vmem:[#allocation2 + $0x10] sm:$0xff] %v1138_v20  ;;  %1267 = vst [vmem:[#allocation2 + $0x18] sm:$0xff] %v1139_v55  ;;  %v2782_v25 = vunpack.c.h.bf16 %v1574_v35  ;;  %v2783_v32 = vunpack.c.h.bf16 %v1579_v36 }
  0x29   :  { %v278_v28 = vmul.f32 %v1783_v39, %v2778_v12  ;;  %v748_v30 = vmul.f32 %v1803_v49, %v2779_v18  ;;  %v279_v50 = vmul.f32 %v1780_v40, %v2780_v3  ;;  %v749_v61 = vmul.f32 %v1797_v59, %v2781_v23  ;;  %1268 = vst [vmem:[#allocation2 + $0x20] sm:$0xff] %v1140_v4 }
  0x2a   :  { %v280_v52 = vmul.f32 %v1783_v39, %v2782_v25  ;;  %v1141_v46 = vmax.f32 %v1013_v45, 0.0  ;;  %v886_v55 = vadd.f32 %v1834_v56, %v747_v38  ;;  %v750_v24 = vmul.f32 %v1803_v49, %v2783_v32 }
  0x2b   :  { %v417_v26 = vadd.f32 %v1818_v16, %v278_v28  ;;  %v887_v51 = vadd.f32 %v1838_v17, %v748_v30  ;;  %v418_v8 = vadd.f32 %v1812_v14, %v279_v50  ;;  %v888_v34 = vadd.f32 %v1834_v56, %v749_v61 }
  0x2c   :  { %v419_v35 = vadd.f32 %v1818_v16, %v280_v52  ;;  %1269 = vst [vmem:[#allocation2 + $0x28] sm:$0xff] %v1141_v46  ;;  %v1014_v1 = vadd.f32 %v886_v55, %v416_v19  ;;  %v889_v45 = vadd.f32 %v1838_v17, %v750_v24  ;;  %v2784_v10 = vunpack.c.l.bf16 %v1588_v41 }
  0x2d   :  { %v2785_v36 = vunpack.c.l.bf16 %v1593_v42  ;;  %v1015_v13 = vadd.f32 %v887_v51, %v417_v26  ;;  %v1016_v29 = vadd.f32 %v888_v34, %v418_v8  ;;  %v2786_v33 = vunpack.c.h.bf16 %v1588_v41 }
  0x2e   :  { %v281_v27 = vmul.f32 %v1780_v40, %v2784_v10  ;;  %v2787_v20 = vunpack.c.h.bf16 %v1593_v42  ;;  %v1142_v4 = vmax.f32 %v1014_v1, 0.0  ;;  %v1017_v38 = vadd.f32 %v889_v45, %v419_v35 }
  0x2f   :  { %v751_v15 = vmul.f32 %v1797_v59, %v2785_v36  ;;  %v282_v37 = vmul.f32 %v1783_v39, %v2786_v33  ;;  %v1143_v18 = vmax.f32 %v1015_v13, 0.0  ;;  %v1144_v30 = vmax.f32 %v1016_v29, 0.0 }
  0x30   :  { %v752_v19 = vmul.f32 %v1803_v49, %v2787_v20  ;;  %v420_v12 = vadd.f32 %v1812_v14, %v281_v27  ;;  %1270 = vst [vmem:[#allocation2 + $0x30] sm:$0xff] %v1142_v4  ;;  %v1145_v41 = vmax.f32 %v1017_v38, 0.0  ;;  %v2788_v61 = vunpack.c.l.bf16 %v1600_v47 }
  0x31   :  { %v890_v28 = vadd.f32 %v1834_v56, %v751_v15  ;;  %v421_v3 = vadd.f32 %v1818_v16, %v282_v37  ;;  %v2789_v25 = vunpack.c.l.bf16 %v1605_v48  ;;  %1271 = vst [vmem:[#allocation2 + $0x38] sm:$0xff] %v1143_v18  ;;  %1272 = vst [vmem:[#allocation2 + $0x40] sm:$0xff] %v1144_v30  ;;  %v2790_v55 = vunpack.c.h.bf16 %v1600_v47 }
  0x32   :  { %v891_v50 = vadd.f32 %v1838_v17, %v752_v19  ;;  %v283_v42 = vmul.f32 %v1780_v40, %v2788_v61  ;;  %v2791_v32 = vunpack.c.h.bf16 %v1605_v48  ;;  %v2792_v51 = vunpack.c.l.bf16 %v1614_v53  ;;  %1273 = vst [vmem:[#allocation2 + $0x48] sm:$0xff] %v1145_v41 }
  0x33   :  { %v1018_v23 = vadd.f32 %v890_v28, %v420_v12  ;;  %v753_v52 = vmul.f32 %v1797_v59, %v2789_v25  ;;  %v284_v26 = vmul.f32 %v1783_v39, %v2790_v55  ;;  %v2793_v45 = vunpack.c.l.bf16 %v1621_v57 }
  0x34   :  { %v1019_v46 = vadd.f32 %v891_v50, %v421_v3  ;;  %v754_v24 = vmul.f32 %v1803_v49, %v2791_v32  ;;  %v285_v8 = vmul.f32 %v1780_v40, %v2792_v51  ;;  %v422_v35 = vadd.f32 %v1812_v14, %v283_v42 }
  0x35   :  { %v1146_v34 = vmax.f32 %v1018_v23, 0.0  ;;  %v892_v1 = vadd.f32 %v1834_v56, %v753_v52  ;;  %v755_v47 = vmul.f32 %v1797_v59, %v2793_v45  ;;  %v423_v27 = vadd.f32 %v1818_v16, %v284_v26 }
  0x36   :  { %v1147_v10 = vmax.f32 %v1019_v46, 0.0  ;;  %v893_v48 = vadd.f32 %v1838_v17, %v754_v24  ;;  %v424_v36 = vadd.f32 %v1812_v14, %v285_v8  ;;  %v2794_v29 = vunpack.c.h.bf16 %v1614_v53 }
  0x37   :  { %1274 = vst [vmem:[#allocation2 + $0x50] sm:$0xff] %v1146_v34  ;;  %v1020_v15 = vadd.f32 %v892_v1, %v422_v35  ;;  %v894_v13 = vadd.f32 %v1834_v56, %v755_v47  ;;  %v2795_v37 = vunpack.c.h.bf16 %v1621_v57  ;;  %v2796_v4 = vunpack.c.l.bf16 %v1626_v58 }
  0x38   :  { %v286_v33 = vmul.f32 %v1783_v39, %v2794_v29  ;;  %1275 = vst [vmem:[#allocation2 + $0x58] sm:$0xff] %v1147_v10  ;;  %v1021_v19 = vadd.f32 %v893_v48, %v423_v27  ;;  %v2797_v12 = vunpack.c.l.bf16 %v1635_v63  ;;  %v2798_v18 = vunpack.c.h.bf16 %v1626_v58 }
  0x39   :  { %v756_v20 = vmul.f32 %v1803_v49, %v2795_v37  ;;  %v287_v38 = vmul.f32 %v1780_v40, %v2796_v4  ;;  %v1148_v30 = vmax.f32 %v1020_v15, 0.0  ;;  %v1022_v3 = vadd.f32 %v894_v13, %v424_v36 }
  0x3a   :  { %v757_v28 = vmul.f32 %v1797_v59, %v2797_v12  ;;  %v288_v53 = vmul.f32 %v1783_v39, %v2798_v18  ;;  %v425_v57 = vadd.f32 %v1818_v16, %v286_v33  ;;  %v1149_v41 = vmax.f32 %v1021_v19, 0.0 }
  0x3b   :  { %v895_v50 = vadd.f32 %v1838_v17, %v756_v20  ;;  %v426_v23 = vadd.f32 %v1812_v14, %v287_v38  ;;  %1276 = vst [vmem:[#allocation2 + $0x60] sm:$0xff] %v1148_v30  ;;  %v1150_v25 = vmax.f32 %v1022_v3, 0.0  ;;  %v2799_v58 = vunpack.c.h.bf16 %v1635_v63 }
  0x3c   :  { %v896_v61 = vadd.f32 %v1834_v56, %v757_v28  ;;  %v427_v42 = vadd.f32 %v1818_v16, %v288_v53  ;;  %v2800_v55 = vunpack.c.l.bf16 %v1640_v0  ;;  %1277 = vst [vmem:[#allocation2 + $0x68] sm:$0xff] %v1149_v41  ;;  %v2801_v24 = vunpack.c.l.bf16 %v1648_v5 }
  0x3d   :  { %v1023_v52 = vadd.f32 %v895_v50, %v425_v57  ;;  %v758_v46 = vmul.f32 %v1803_v49, %v2799_v58  ;;  %v2802_v8 = vunpack.c.h.bf16 %v1640_v0  ;;  %v2803_v35 = vunpack.c.h.bf16 %v1648_v5  ;;  %1278 = vst [vmem:[#allocation2 + $0x70] sm:$0xff] %v1150_v25 }
  0x3e   :  { %v289_v26 = vmul.f32 %v1780_v40, %v2800_v55  ;;  %v1024_v32 = vadd.f32 %v896_v61, %v426_v23  ;;  %v759_v51 = vmul.f32 %v1797_v59, %v2801_v24  ;;  %v2804_v10 = vunpack.c.l.bf16 %v1653_v6 }
  0x3f   :  { %v290_v34 = vmul.f32 %v1783_v39, %v2802_v8  ;;  %v760_v63 = vmul.f32 %v1803_v49, %v2803_v35  ;;  %v1151_v1 = vmax.f32 %v1023_v52, 0.0  ;;  %v897_v45 = vadd.f32 %v1838_v17, %v758_v46 }
  0x40   :  { %v428_v47 = vadd.f32 %v1812_v14, %v289_v26  ;;  %v291_v27 = vmul.f32 %v1780_v40, %v2804_v10  ;;  %v1152_v48 = vmax.f32 %v1024_v32, 0.0  ;;  %v898_v36 = vadd.f32 %v1834_v56, %v759_v51 }
  0x41   :  { %v429_v0 = vadd.f32 %v1818_v16, %v290_v34  ;;  %v899_v15 = vadd.f32 %v1838_v17, %v760_v63  ;;  %1279 = vst [vmem:[#allocation2 + $0x78] sm:$0xff] %v1151_v1  ;;  %v1025_v5 = vadd.f32 %v897_v45, %v427_v42  ;;  %v2805_v29 = vunpack.c.l.bf16 %v1662_v22 }
  0x42   :  { %v430_v13 = vadd.f32 %v1812_v14, %v291_v27  ;;  %v2806_v37 = vunpack.c.h.bf16 %v1653_v6  ;;  %1280 = vst [vmem:[#allocation2 + $0x80] sm:$0xff] %v1152_v48  ;;  %v1026_v19 = vadd.f32 %v898_v36, %v428_v47  ;;  %v2807_v38 = vunpack.c.h.bf16 %v1662_v22 }
  0x43   :  { %v761_v33 = vmul.f32 %v1797_v59, %v2805_v29  ;;  %v1027_v4 = vadd.f32 %v899_v15, %v429_v0  ;;  %v2808_v28 = vunpack.c.l.bf16 %v1667_v31  ;;  %v1153_v53 = vmax.f32 %v1025_v5, 0.0 }
  0x44   :  { %v292_v20 = vmul.f32 %v1783_v39, %v2806_v37  ;;  %v762_v12 = vmul.f32 %v1803_v49, %v2807_v38  ;;  %v2809_v6 = vunpack.c.l.bf16 %v1676_v21  ;;  %v1154_v50 = vmax.f32 %v1026_v19, 0.0 }
  0x45   :  { %v293_v18 = vmul.f32 %v1780_v40, %v2808_v28  ;;  %v900_v30 = vadd.f32 %v1834_v56, %v761_v33  ;;  %v1155_v41 = vmax.f32 %v1027_v4, 0.0  ;;  %1281 = vst [vmem:[#allocation2 + $0x88] sm:$0xff] %v1153_v53  ;;  %v2810_v25 = vunpack.c.h.bf16 %v1667_v31 }
  0x46   :  { %v431_v3 = vadd.f32 %v1818_v16, %v292_v20  ;;  %v763_v57 = vmul.f32 %v1797_v59, %v2809_v6  ;;  %v901_v23 = vadd.f32 %v1838_v17, %v762_v12  ;;  %v2811_v58 = vunpack.c.h.bf16 %v1676_v21  ;;  %1282 = vst [vmem:[#allocation2 + $0x90] sm:$0xff] %v1154_v50 }
  0x47   :  { %v432_v22 = vadd.f32 %v1812_v14, %v293_v18  ;;  %v1028_v61 = vadd.f32 %v900_v30, %v430_v13  ;;  %v294_v52 = vmul.f32 %v1783_v39, %v2810_v25  ;;  %1283 = vst [vmem:[#allocation2 + $0x98] sm:$0xff] %v1155_v41  ;;  %v2812_v26 = vunpack.c.l.bf16 %v1681_v11 }
  0x48   :  { %v902_v42 = vadd.f32 %v1834_v56, %v763_v57  ;;  %v764_v46 = vmul.f32 %v1803_v49, %v2811_v58  ;;  %v1029_v55 = vadd.f32 %v901_v23, %v431_v3  ;;  %v2813_v24 = vunpack.c.l.bf16 %v1690_v54 }
  0x49   :  { %v295_v32 = vmul.f32 %v1780_v40, %v2812_v26  ;;  %v2814_v8 = vunpack.c.h.bf16 %v1681_v11  ;;  %v1156_v34 = vmax.f32 %v1028_v61, 0.0  ;;  %v433_v21 = vadd.f32 %v1818_v16, %v294_v52 }
  0x4a   :  { %v765_v51 = vmul.f32 %v1797_v59, %v2813_v24  ;;  %v1030_v35 = vadd.f32 %v902_v42, %v432_v22  ;;  %v903_v63 = vadd.f32 %v1838_v17, %v764_v46  ;;  %v1157_v1 = vmax.f32 %v1029_v55, 0.0 }
  0x4b   :  { %v296_v31 = vmul.f32 %v1783_v39, %v2814_v8  ;;  %v434_v45 = vadd.f32 %v1812_v14, %v295_v32  ;;  %1284 = vst [vmem:[#allocation2 + $0xa0] sm:$0xff] %v1156_v34  ;;  %v2815_v11 = vunpack.c.h.bf16 %v1690_v54  ;;  %v2816_v0 = vunpack.c.l.bf16 %v1695_v7 }
  0x4c   :  { %v904_v47 = vadd.f32 %v1834_v56, %v765_v51  ;;  %v1158_v27 = vmax.f32 %v1030_v35, 0.0  ;;  %v1031_v48 = vadd.f32 %v903_v63, %v433_v21  ;;  %1285 = vst [vmem:[#allocation2 + $0xa8] sm:$0xff] %v1157_v1  ;;  %v2817_v13 = vunpack.c.l.bf16 %v1704_v44 }
  0x4d   :  { %v435_v10 = vadd.f32 %v1818_v16, %v296_v31  ;;  %v766_v36 = vmul.f32 %v1803_v49, %v2815_v11  ;;  %v297_v15 = vmul.f32 %v1780_v40, %v2816_v0  ;;  %v2818_v33 = vunpack.c.h.bf16 %v1695_v7 }
  0x4e   :  { %v1032_v5 = vadd.f32 %v904_v47, %v434_v45  ;;  %v767_v29 = vmul.f32 %v1797_v59, %v2817_v13  ;;  %v2819_v20 = vunpack.c.h.bf16 %v1704_v44  ;;  %1286 = vst [vmem:[#allocation2 + $0xb0] sm:$0xff] %v1158_v27  ;;  %v1159_v19 = vmax.f32 %v1031_v48, 0.0 }
  0x4f   :  { %v298_v37 = vmul.f32 %v1783_v39, %v2818_v33  ;;  %v905_v4 = vadd.f32 %v1838_v17, %v766_v36  ;;  %v436_v38 = vadd.f32 %v1812_v14, %v297_v15  ;;  %v2820_v12 = vunpack.c.l.bf16 %v1709_v2 }
  0x50   :  { %v768_v54 = vmul.f32 %v1803_v49, %v2819_v20  ;;  %v1160_v18 = vmax.f32 %v1032_v5, 0.0  ;;  %v906_v53 = vadd.f32 %v1834_v56, %v767_v29  ;;  %1287 = vst [vmem:[#allocation2 + $0xb8] sm:$0xff] %v1159_v19  ;;  %v2821_v6 = vunpack.c.l.bf16 %v1718_v43 }
  0x51   :  { %v299_v28 = vmul.f32 %v1780_v40, %v2820_v12  ;;  %v437_v7 = vadd.f32 %v1818_v16, %v298_v37  ;;  %v1033_v44 = vadd.f32 %v905_v4, %v435_v10  ;;  %v2822_v50 = vunpack.c.h.bf16 %v1709_v2  ;;  %v2829_v10 = vld [vmem:[#allocation5_spill] sm:$0xff]  ;;  %v86_v37 = vld [vmem:[%s2755_s0 + $0x90] sm:$0xff]  ;;  %v2833_v4 = vld [vmem:[#allocation6_spill] sm:$0xff] }
  0x52   :  { %v907_v30 = vadd.f32 %v1838_v17, %v768_v54  ;;  %v769_v57 = vmul.f32 %v1797_v59, %v2821_v6  ;;  %1288 = vst [vmem:[#allocation2 + $0xc0] sm:$0xff] %v1160_v18  ;;  %v1034_v23 = vadd.f32 %v906_v53, %v436_v38  ;;  %v2823_v61 = vunpack.c.h.bf16 %v1718_v43  ;;  %v2835_v18 = vld [vmem:[#allocation7_spill] sm:$0xff] }
  0x53   :  { %v438_v3 = vadd.f32 %v1812_v14, %v299_v28  ;;  %v300_v41 = vmul.f32 %v1783_v39, %v2822_v50  ;;  %v2824_v25 = vunpack.c.l.bf16 %v1723_v62  ;;  %v1161_v58 = vmax.f32 %v1033_v44, 0.0 }
  0x54   :  { %v1035_v22 = vadd.f32 %v907_v30, %v437_v7  ;;  %v770_v42 = vmul.f32 %v1803_v49, %v2823_v61  ;;  %v908_v46 = vadd.f32 %v1834_v56, %v769_v57  ;;  %v2825_v2 = vunpack.c.l.bf16 %v1735_v60  ;;  %v556_v57 = vld [vmem:[%s2756_s1 + $0x90] sm:$0xff]  ;;  %v87_v61 = vld [vmem:[%s2755_s0 + $0x98] sm:$0xff] }
  0x55   :  { %v301_v52 = vmul.f32 %v1780_v40, %v2824_v25  ;;  %v439_v55 = vadd.f32 %v1818_v16, %v300_v41  ;;  %v1162_v32 = vmax.f32 %v1034_v23, 0.0  ;;  %1289 = vst [vmem:[#allocation2 + $0xc8] sm:$0xff] %v1161_v58  ;;  %v2826_v34 = vunpack.c.h.bf16 %v1723_v62 }
  0x56   :  { %v771_v26 = vmul.f32 %v1797_v59, %v2825_v2  ;;  %v1163_v24 = vmax.f32 %v1035_v22, 0.0  ;;  %v909_v51 = vadd.f32 %v1838_v17, %v770_v42  ;;  %v1036_v8 = vadd.f32 %v908_v46, %v438_v3 }
  0x57   :  { %v440_v43 = vadd.f32 %v1812_v14, %v301_v52  ;;  %v302_v35 = vmul.f32 %v1783_v39, %v2826_v34  ;;  %v2827_v21 = vunpack.c.h.bf16 %v1735_v60  ;;  %1290 = vst [vmem:[#allocation2 + $0xd0] sm:$0xff] %v1162_v32  ;;  %v2828_v45 = vunpack.c.l.bf16 %v1744_v9 }
  0x58   :  { %v910_v31 = vadd.f32 %v1834_v56, %v771_v26  ;;  %1291 = vst [vmem:[#allocation2 + $0xd8] sm:$0xff] %v1163_v24  ;;  %v1037_v1 = vadd.f32 %v909_v51, %v439_v55  ;;  %v2830_v27 = vunpack.c.l.bf16 %v2829_v10  ;;  %v2831_v11 = vunpack.c.h.bf16 %v1744_v9 }
  0x59   :  { %v772_v63 = vmul.f32 %v1803_v49, %v2827_v21  ;;  %v303_v47 = vmul.f32 %v1780_v40, %v2828_v45  ;;  %v1164_v36 = vmax.f32 %v1036_v8, 0.0  ;;  %v441_v60 = vadd.f32 %v1818_v16, %v302_v35  ;;  %v557_v8 = vld [vmem:[%s2756_s1 + $0x98] sm:$0xff] }
  0x5a   :  { %v773_v48 = vmul.f32 %v1797_v59, %v2830_v27  ;;  %v304_v62 = vmul.f32 %v1783_v39, %v2831_v11  ;;  %v1038_v0 = vadd.f32 %v910_v31, %v440_v43  ;;  %v1165_v5 = vmax.f32 %v1037_v1, 0.0  ;;  %v558_v27 = vld [vmem:[%s2756_s1 + $0xa0] sm:$0xff] }
  0x5b   :  { %v911_v15 = vadd.f32 %v1838_v17, %v772_v63  ;;  %v442_v13 = vadd.f32 %v1812_v14, %v303_v47  ;;  %1292 = vst [vmem:[#allocation2 + $0xe0] sm:$0xff] %v1164_v36  ;;  %v2832_v54 = vunpack.c.h.bf16 %v2829_v10  ;;  %v2834_v38 = vunpack.c.l.bf16 %v2833_v4  ;;  %v88_v63 = vld [vmem:[%s2755_s0 + $0xa0] sm:$0xff] }
  0x5c   :  { %v912_v29 = vadd.f32 %v1834_v56, %v773_v48  ;;  %v443_v33 = vadd.f32 %v1818_v16, %v304_v62  ;;  %v1166_v9 = vmax.f32 %v1038_v0, 0.0  ;;  %1293 = vst [vmem:[#allocation2 + $0xe8] sm:$0xff] %v1165_v5  ;;  %v2836_v53 = vunpack.c.l.bf16 %v2835_v18 }
  0x5d   :  { %v1039_v20 = vadd.f32 %v911_v15, %v441_v60  ;;  %v774_v19 = vmul.f32 %v1803_v49, %v2832_v54  ;;  %v305_v12 = vmul.f32 %v1780_v40, %v2834_v38  ;;  %v2837_v30 = vunpack.c.h.bf16 %v2833_v4  ;;  %v89_v4 = vld [vmem:[%s2755_s0 + $0xa8] sm:$0xff] }
  0x5e   :  { %v1040_v28 = vadd.f32 %v912_v29, %v442_v13  ;;  %v775_v7 = vmul.f32 %v1797_v59, %v2836_v53  ;;  %v2838_v3 = vunpack.c.h.bf16 %v2835_v18  ;;  %1294 = vst [vmem:[#allocation2 + $0xf0] sm:$0xff] %v1166_v9  ;;  %v168_v22 = vunpack.c.l.bf16 %v86_v37  ;;  %v559_v53 = vld [vmem:[%s2756_s1 + $0xa8] sm:$0xff] }
  0x5f   :  { %v306_v44 = vmul.f32 %v1783_v39, %v2837_v30  ;;  %v1167_v50 = vmax.f32 %v1039_v20, 0.0  ;;  %v913_v41 = vadd.f32 %v1838_v17, %v774_v19  ;;  %v444_v23 = vadd.f32 %v1812_v14, %v305_v12 }
  0x60   :  { %v776_v6 = vmul.f32 %v1803_v49, %v2838_v3  ;;  %v1168_v42 = vmax.f32 %v1040_v28, 0.0  ;;  %v914_v25 = vadd.f32 %v1834_v56, %v775_v7  ;;  %v307_v55 = vmul.f32 %v1780_v40, %v168_v22 }
  0x61   :  { %v445_v52 = vadd.f32 %v1818_v16, %v306_v44  ;;  %1295 = vst [vmem:[#allocation2 + $0xf8] sm:$0xff] %v1167_v50  ;;  %v1041_v46 = vadd.f32 %v913_v41, %v443_v33  ;;  %v638_v2 = vunpack.c.l.bf16 %v556_v57  ;;  %v169_v26 = vunpack.c.h.bf16 %v86_v37 }
  0x62   :  { %v915_v58 = vadd.f32 %v1838_v17, %v776_v6  ;;  %1296 = vst [vmem:[#allocation2 + $0x100] sm:$0xff] %v1168_v42  ;;  %v1042_v32 = vadd.f32 %v914_v25, %v444_v23  ;;  %v639_v51 = vunpack.c.h.bf16 %v556_v57  ;;  %v170_v43 = vunpack.c.l.bf16 %v87_v61  ;;  %v90_v25 = vld [vmem:[%s2755_s0 + $0xb0] sm:$0xff] }
  0x63   :  { %v1169_v31 = vmax.f32 %v1041_v46, 0.0  ;;  %v446_v34 = vadd.f32 %v1812_v14, %v307_v55  ;;  %v777_v35 = vmul.f32 %v1797_v59, %v638_v2  ;;  %v308_v21 = vmul.f32 %v1783_v39, %v169_v26  ;;  %v560_v2 = vld [vmem:[%s2756_s1 + $0xb0] sm:$0xff] }
  0x64   :  { %v1043_v24 = vadd.f32 %v915_v58, %v445_v52  ;;  %v1170_v1 = vmax.f32 %v1042_v32, 0.0  ;;  %v778_v47 = vmul.f32 %v1803_v49, %v639_v51  ;;  %v309_v10 = vmul.f32 %v1780_v40, %v170_v43 }
  0x65   :  { %1297 = vst [vmem:[#allocation2 + $0x108] sm:$0xff] %v1169_v31  ;;  %v916_v48 = vadd.f32 %v1834_v56, %v777_v35  ;;  %v447_v11 = vadd.f32 %v1818_v16, %v308_v21  ;;  %v640_v62 = vunpack.c.l.bf16 %v557_v8  ;;  %v171_v36 = vunpack.c.h.bf16 %v87_v61  ;;  %v91_v35 = vld [vmem:[%s2755_s0 + $0xb8] sm:$0xff] }
  0x66   :  { %v1171_v45 = vmax.f32 %v1043_v24, 0.0  ;;  %1298 = vst [vmem:[#allocation2 + $0x110] sm:$0xff] %v1170_v1  ;;  %v917_v0 = vadd.f32 %v1838_v17, %v778_v47  ;;  %v448_v60 = vadd.f32 %v1812_v14, %v309_v10  ;;  %v641_v15 = vunpack.c.h.bf16 %v557_v8 }
  0x67   :  { %v172_v5 = vunpack.c.l.bf16 %v88_v63  ;;  %v1044_v13 = vadd.f32 %v916_v48, %v446_v34  ;;  %v779_v29 = vmul.f32 %v1797_v59, %v640_v62  ;;  %v310_v33 = vmul.f32 %v1783_v39, %v171_v36 }
  0x68   :  { %1299 = vst [vmem:[#allocation2 + $0x118] sm:$0xff] %v1171_v45  ;;  %v642_v37 = vunpack.c.l.bf16 %v558_v27  ;;  %v1045_v9 = vadd.f32 %v917_v0, %v447_v11  ;;  %v780_v20 = vmul.f32 %v1803_v49, %v641_v15  ;;  %v173_v19 = vunpack.c.h.bf16 %v88_v63 }
  0x69   :  { %v311_v54 = vmul.f32 %v1780_v40, %v172_v5  ;;  %v1172_v38 = vmax.f32 %v1044_v13, 0.0  ;;  %v918_v12 = vadd.f32 %v1834_v56, %v779_v29  ;;  %v449_v28 = vadd.f32 %v1818_v16, %v310_v33 }
  0x6a   :  { %v781_v18 = vmul.f32 %v1797_v59, %v642_v37  ;;  %v1173_v7 = vmax.f32 %v1045_v9, 0.0  ;;  %v919_v30 = vadd.f32 %v1838_v17, %v780_v20  ;;  %v312_v3 = vmul.f32 %v1783_v39, %v173_v19 }
  0x6b   :  { %v450_v44 = vadd.f32 %v1812_v14, %v311_v54  ;;  %1300 = vst [vmem:[#allocation2 + $0x120] sm:$0xff] %v1172_v38  ;;  %v1046_v6 = vadd.f32 %v918_v12, %v448_v60  ;;  %v643_v50 = vunpack.c.h.bf16 %v558_v27  ;;  %v174_v41 = vunpack.c.l.bf16 %v89_v4  ;;  %v561_v60 = vld [vmem:[%s2756_s1 + $0xb8] sm:$0xff]  ;;  %v92_v54 = vld [vmem:[%s2755_s0 + $0xc0] sm:$0xff] }
  0x6c   :  { %v920_v57 = vadd.f32 %v1834_v56, %v781_v18  ;;  %1301 = vst [vmem:[#allocation2 + $0x128] sm:$0xff] %v1173_v7  ;;  %v1047_v23 = vadd.f32 %v919_v30, %v449_v28  ;;  %v451_v22 = vadd.f32 %v1818_v16, %v312_v3  ;;  %v644_v61 = vunpack.c.l.bf16 %v559_v53  ;;  %v562_v28 = vld [vmem:[%s2756_s1 + $0xc0] sm:$0xff] }
  0x6d   :  { %v175_v42 = vunpack.c.h.bf16 %v89_v4  ;;  %v1174_v52 = vmax.f32 %v1046_v6, 0.0  ;;  %v782_v46 = vmul.f32 %v1803_v49, %v643_v50  ;;  %v313_v55 = vmul.f32 %v1780_v40, %v174_v41 }
  0x6e   :  { %v1048_v58 = vadd.f32 %v920_v57, %v450_v44  ;;  %v1175_v26 = vmax.f32 %v1047_v23, 0.0  ;;  %v783_v32 = vmul.f32 %v1797_v59, %v644_v61  ;;  %v645_v51 = vunpack.c.h.bf16 %v559_v53  ;;  %v93_v61 = vld [vmem:[%s2755_s0 + $0xc8] sm:$0xff] }
  0x6f   :  { %v314_v24 = vmul.f32 %v1783_v39, %v175_v42  ;;  %1302 = vst [vmem:[#allocation2 + $0x130] sm:$0xff] %v1174_v52  ;;  %v921_v8 = vadd.f32 %v1838_v17, %v782_v46  ;;  %v452_v31 = vadd.f32 %v1812_v14, %v313_v55  ;;  %v176_v34 = vunpack.c.l.bf16 %v90_v25  ;;  %v563_v42 = vld [vmem:[%s2756_s1 + $0xc8] sm:$0xff] }
  0x70   :  { %v1176_v43 = vmax.f32 %v1048_v58, 0.0  ;;  %1303 = vst [vmem:[#allocation2 + $0x138] sm:$0xff] %v1175_v26  ;;  %v922_v21 = vadd.f32 %v1834_v56, %v783_v32  ;;  %v784_v1 = vmul.f32 %v1803_v49, %v645_v51  ;;  %v646_v45 = vunpack.c.l.bf16 %v560_v2 }
  0x71   :  { %v453_v63 = vadd.f32 %v1818_v16, %v314_v24  ;;  %v1049_v47 = vadd.f32 %v921_v8, %v451_v22  ;;  %v315_v10 = vmul.f32 %v1780_v40, %v176_v34  ;;  %v177_v27 = vunpack.c.h.bf16 %v90_v25 }
  0x72   :  { %1304 = vst [vmem:[#allocation2 + $0x140] sm:$0xff] %v1176_v43  ;;  %v647_v48 = vunpack.c.h.bf16 %v560_v2  ;;  %v1050_v11 = vadd.f32 %v922_v21, %v452_v31  ;;  %v923_v62 = vadd.f32 %v1838_v17, %v784_v1  ;;  %v785_v36 = vmul.f32 %v1797_v59, %v646_v45 }
  0x73   :  { %v178_v0 = vunpack.c.l.bf16 %v91_v35  ;;  %v1177_v15 = vmax.f32 %v1049_v47, 0.0  ;;  %v454_v5 = vadd.f32 %v1812_v14, %v315_v10  ;;  %v316_v13 = vmul.f32 %v1783_v39, %v177_v27  ;;  %v564_v27 = vld [vmem:[%s2756_s1 + $0xd0] sm:$0xff] }
  0x74   :  { %v786_v29 = vmul.f32 %v1803_v49, %v647_v48  ;;  %v1178_v33 = vmax.f32 %v1050_v11, 0.0  ;;  %v1051_v37 = vadd.f32 %v923_v62, %v453_v63  ;;  %v924_v9 = vadd.f32 %v1834_v56, %v785_v36  ;;  %v94_v63 = vld [vmem:[%s2755_s0 + $0xd0] sm:$0xff] }
  0x75   :  { %v317_v20 = vmul.f32 %v1780_v40, %v178_v0  ;;  %1305 = vst [vmem:[#allocation2 + $0x148] sm:$0xff] %v1177_v15  ;;  %v455_v19 = vadd.f32 %v1818_v16, %v316_v13  ;;  %v648_v38 = vunpack.c.l.bf16 %v561_v60  ;;  %v179_v12 = vunpack.c.h.bf16 %v91_v35 }
  0x76   :  { %v925_v4 = vadd.f32 %v1838_v17, %v786_v29  ;;  %1306 = vst [vmem:[#allocation2 + $0x150] sm:$0xff] %v1178_v33  ;;  %v1179_v18 = vmax.f32 %v1051_v37, 0.0  ;;  %v1052_v53 = vadd.f32 %v924_v9, %v454_v5  ;;  %v649_v30 = vunpack.c.h.bf16 %v561_v60  ;;  %v95_v9 = vld [vmem:[%s2755_s0 + $0xd8] sm:$0xff] }
  0x77   :  { %v456_v7 = vadd.f32 %v1812_v14, %v317_v20  ;;  %v787_v3 = vmul.f32 %v1797_v59, %v648_v38  ;;  %v318_v6 = vmul.f32 %v1783_v39, %v179_v12  ;;  %v180_v57 = vunpack.c.l.bf16 %v92_v54  ;;  %v565_v38 = vld [vmem:[%s2756_s1 + $0xd8] sm:$0xff] }
  0x78   :  { %v1053_v44 = vadd.f32 %v925_v4, %v455_v19  ;;  %1307 = vst [vmem:[#allocation2 + $0x158] sm:$0xff] %v1179_v18  ;;  %v1180_v50 = vmax.f32 %v1052_v53, 0.0  ;;  %v788_v41 = vmul.f32 %v1803_v49, %v649_v30  ;;  %v650_v23 = vunpack.c.l.bf16 %v562_v28 }
  0x79   :  { %v181_v22 = vunpack.c.h.bf16 %v92_v54  ;;  %v926_v52 = vadd.f32 %v1834_v56, %v787_v3  ;;  %v457_v58 = vadd.f32 %v1818_v16, %v318_v6  ;;  %v319_v46 = vmul.f32 %v1780_v40, %v180_v57 }
  0x7a   :  { %v1181_v25 = vmax.f32 %v1053_v44, 0.0  ;;  %1308 = vst [vmem:[#allocation2 + $0x160] sm:$0xff] %v1180_v50  ;;  %v927_v55 = vadd.f32 %v1838_v17, %v788_v41  ;;  %v789_v2 = vmul.f32 %v1797_v59, %v650_v23  ;;  %v651_v32 = vunpack.c.h.bf16 %v562_v28  ;;  %v96_v23 = vld [vmem:[%s2755_s0 + $0xe0] sm:$0xff] }
  0x7b   :  { %v320_v26 = vmul.f32 %v1783_v39, %v181_v22  ;;  %v1054_v24 = vadd.f32 %v926_v52, %v456_v7  ;;  %v458_v51 = vadd.f32 %v1812_v14, %v319_v46  ;;  %v182_v43 = vunpack.c.l.bf16 %v93_v61  ;;  %v566_v52 = vld [vmem:[%s2756_s1 + $0xe0] sm:$0xff] }
  0x7c   :  { %1309 = vst [vmem:[#allocation2 + $0x168] sm:$0xff] %v1181_v25  ;;  %v652_v8 = vunpack.c.l.bf16 %v563_v42  ;;  %v1055_v31 = vadd.f32 %v927_v55, %v457_v58  ;;  %v928_v34 = vadd.f32 %v1834_v56, %v789_v2  ;;  %v790_v21 = vmul.f32 %v1803_v49, %v651_v32 }
  0x7d   :  { %v459_v35 = vadd.f32 %v1818_v16, %v320_v26  ;;  %v1182_v1 = vmax.f32 %v1054_v24, 0.0  ;;  %v321_v45 = vmul.f32 %v1780_v40, %v182_v43  ;;  %v183_v10 = vunpack.c.h.bf16 %v93_v61 }
  0x7e   :  { %v791_v47 = vmul.f32 %v1797_v59, %v652_v8  ;;  %v1183_v48 = vmax.f32 %v1055_v31, 0.0  ;;  %v1056_v11 = vadd.f32 %v928_v34, %v458_v51  ;;  %v929_v62 = vadd.f32 %v1838_v17, %v790_v21 }
  0x7f   :  { %v653_v36 = vunpack.c.h.bf16 %v563_v42  ;;  %1310 = vst [vmem:[#allocation2 + $0x170] sm:$0xff] %v1182_v1  ;;  %v460_v0 = vadd.f32 %v1812_v14, %v321_v45  ;;  %v322_v15 = vmul.f32 %v1783_v39, %v183_v10  ;;  %v184_v5 = vunpack.c.l.bf16 %v94_v63 }
  0x80   :  { %v930_v60 = vadd.f32 %v1834_v56, %v791_v47  ;;  %1311 = vst [vmem:[#allocation2 + $0x178] sm:$0xff] %v1183_v48  ;;  %v1184_v13 = vmax.f32 %v1056_v11, 0.0  ;;  %v1057_v29 = vadd.f32 %v929_v62, %v459_v35  ;;  %v654_v37 = vunpack.c.l.bf16 %v564_v27  ;;  %v97_v35 = vld [vmem:[%s2755_s0 + $0xe8] sm:$0xff] }
  0x81   :  { %v792_v33 = vmul.f32 %v1803_v49, %v653_v36  ;;  %v461_v54 = vadd.f32 %v1818_v16, %v322_v15  ;;  %v323_v19 = vmul.f32 %v1780_v40, %v184_v5  ;;  %v185_v4 = vunpack.c.h.bf16 %v94_v63  ;;  %v567_v47 = vld [vmem:[%s2756_s1 + $0xe8] sm:$0xff] }
  0x82   :  { %v1058_v20 = vadd.f32 %v930_v60, %v460_v0  ;;  %1312 = vst [vmem:[#allocation2 + $0x180] sm:$0xff] %v1184_v13  ;;  %v1185_v12 = vmax.f32 %v1057_v29, 0.0  ;;  %v793_v18 = vmul.f32 %v1797_v59, %v654_v37  ;;  %v655_v53 = vunpack.c.h.bf16 %v564_v27  ;;  %v568_v37 = vld [vmem:[%s2756_s1 + $0xf0] sm:$0xff] }
  0x83   :  { %v931_v28 = vadd.f32 %v1838_v17, %v792_v33  ;;  %v462_v30 = vadd.f32 %v1812_v14, %v323_v19  ;;  %v324_v44 = vmul.f32 %v1783_v39, %v185_v4  ;;  %v186_v3 = vunpack.c.l.bf16 %v95_v9  ;;  %v98_v33 = vld [vmem:[%s2755_s0 + $0xf0] sm:$0xff] }
  0x84   :  { %v1186_v7 = vmax.f32 %v1058_v20, 0.0  ;;  %1313 = vst [vmem:[#allocation2 + $0x188] sm:$0xff] %v1185_v12  ;;  %v932_v57 = vadd.f32 %v1834_v56, %v793_v18  ;;  %v794_v50 = vmul.f32 %v1803_v49, %v655_v53  ;;  %v656_v41 = vunpack.c.l.bf16 %v565_v38 }
  0x85   :  { %v1059_v6 = vadd.f32 %v931_v28, %v461_v54  ;;  %v463_v22 = vadd.f32 %v1818_v16, %v324_v44  ;;  %v325_v61 = vmul.f32 %v1780_v40, %v186_v3  ;;  %v187_v42 = vunpack.c.h.bf16 %v95_v9 }
  0x86   :  { %1314 = vst [vmem:[#allocation2 + $0x190] sm:$0xff] %v1186_v7  ;;  %v657_v25 = vunpack.c.h.bf16 %v565_v38  ;;  %v1060_v46 = vadd.f32 %v932_v57, %v462_v30  ;;  %v933_v55 = vadd.f32 %v1838_v17, %v794_v50  ;;  %v795_v2 = vmul.f32 %v1797_v59, %v656_v41  ;;  %v99_v50 = vld [vmem:[%s2755_s0 + $0xf8] sm:$0xff] }
  0x87   :  { %v1187_v58 = vmax.f32 %v1059_v6, 0.0  ;;  %v464_v26 = vadd.f32 %v1812_v14, %v325_v61  ;;  %v326_v32 = vmul.f32 %v1783_v39, %v187_v42  ;;  %v188_v51 = vunpack.c.l.bf16 %v96_v23  ;;  %v569_v42 = vld [vmem:[%s2756_s1 + $0xf8] sm:$0xff] }
  0x88   :  { %v796_v24 = vmul.f32 %v1803_v49, %v657_v25  ;;  %v1188_v43 = vmax.f32 %v1060_v46, 0.0  ;;  %v1061_v8 = vadd.f32 %v933_v55, %v463_v22  ;;  %v934_v31 = vadd.f32 %v1834_v56, %v795_v2 }
  0x89   :  { %1315 = vst [vmem:[#allocation2 + $0x198] sm:$0xff] %v1187_v58  ;;  %v658_v34 = vunpack.c.l.bf16 %v566_v52  ;;  %v465_v21 = vadd.f32 %v1818_v16, %v326_v32  ;;  %v327_v1 = vmul.f32 %v1780_v40, %v188_v51  ;;  %v189_v45 = vunpack.c.h.bf16 %v96_v23 }
  0x8a   :  { %v935_v63 = vadd.f32 %v1838_v17, %v796_v24  ;;  %1316 = vst [vmem:[#allocation2 + $0x1a0] sm:$0xff] %v1188_v43  ;;  %v1189_v10 = vmax.f32 %v1061_v8, 0.0  ;;  %v1062_v27 = vadd.f32 %v934_v31, %v464_v26  ;;  %v659_v11 = vunpack.c.h.bf16 %v566_v52  ;;  %v100_v31 = vld [vmem:[%s2755_s0 + $0x100] sm:$0xff] }
  0x8b   :  { %v797_v48 = vmul.f32 %v1797_v59, %v658_v34  ;;  %v466_v36 = vadd.f32 %v1812_v14, %v327_v1  ;;  %v328_v0 = vmul.f32 %v1783_v39, %v189_v45  ;;  %v190_v60 = vunpack.c.l.bf16 %v97_v35  ;;  %v570_v1 = vld [vmem:[%s2756_s1 + $0x100] sm:$0xff] }
  0x8c   :  { %v1063_v62 = vadd.f32 %v935_v63, %v465_v21  ;;  %1317 = vst [vmem:[#allocation2 + $0x1a8] sm:$0xff] %v1189_v10  ;;  %v1190_v15 = vmax.f32 %v1062_v27, 0.0  ;;  %v798_v13 = vmul.f32 %v1803_v49, %v659_v11  ;;  %v660_v29 = vunpack.c.l.bf16 %v567_v47 }
  0x8d   :  { %v936_v5 = vadd.f32 %v1834_v56, %v797_v48  ;;  %v467_v20 = vadd.f32 %v1818_v16, %v328_v0  ;;  %v329_v54 = vmul.f32 %v1780_v40, %v190_v60  ;;  %v191_v19 = vunpack.c.h.bf16 %v97_v35 }
  0x8e   :  { %v1191_v9 = vmax.f32 %v1063_v62, 0.0  ;;  %1318 = vst [vmem:[#allocation2 + $0x1b0] sm:$0xff] %v1190_v15  ;;  %v937_v38 = vadd.f32 %v1838_v17, %v798_v13  ;;  %v799_v12 = vmul.f32 %v1797_v59, %v660_v29  ;;  %v661_v28 = vunpack.c.h.bf16 %v567_v47  ;;  %v101_v13 = vld [vmem:[%s2755_s0 + $0x108] sm:$0xff] }
  0x8f   :  { %v1064_v4 = vadd.f32 %v936_v5, %v466_v36  ;;  %v468_v18 = vadd.f32 %v1812_v14, %v329_v54  ;;  %v330_v53 = vmul.f32 %v1783_v39, %v191_v19  ;;  %v192_v7 = vunpack.c.l.bf16 %v98_v33 }
  0x90   :  { %1319 = vst [vmem:[#allocation2 + $0x1b8] sm:$0xff] %v1191_v9  ;;  %v662_v30 = vunpack.c.l.bf16 %v568_v37  ;;  %v1065_v3 = vadd.f32 %v937_v38, %v467_v20  ;;  %v938_v6 = vadd.f32 %v1834_v56, %v799_v12  ;;  %v800_v57 = vmul.f32 %v1803_v49, %v661_v28  ;;  %v571_v20 = vld [vmem:[%s2756_s1 + $0x108] sm:$0xff] }
  0x91   :  { %v1192_v44 = vmax.f32 %v1064_v4, 0.0  ;;  %v469_v41 = vadd.f32 %v1818_v16, %v330_v53  ;;  %v331_v23 = vmul.f32 %v1780_v40, %v192_v7  ;;  %v193_v61 = vunpack.c.h.bf16 %v98_v33 }
  0x92   :  { %v801_v22 = vmul.f32 %v1797_v59, %v662_v30  ;;  %v1193_v25 = vmax.f32 %v1065_v3, 0.0  ;;  %v1066_v52 = vadd.f32 %v938_v6, %v468_v18  ;;  %v939_v58 = vadd.f32 %v1838_v17, %v800_v57  ;;  %v102_v6 = vld [vmem:[%s2755_s0 + $0x110] sm:$0xff] }
  0x93   :  { %1320 = vst [vmem:[#allocation2 + $0x1c0] sm:$0xff] %v1192_v44  ;;  %v663_v46 = vunpack.c.h.bf16 %v568_v37  ;;  %v470_v55 = vadd.f32 %v1812_v14, %v331_v23  ;;  %v332_v26 = vmul.f32 %v1783_v39, %v193_v61  ;;  %v194_v32 = vunpack.c.l.bf16 %v99_v50 }
  0x94   :  { %v940_v2 = vadd.f32 %v1834_v56, %v801_v22  ;;  %1321 = vst [vmem:[#allocation2 + $0x1c8] sm:$0xff] %v1193_v25  ;;  %v1194_v24 = vmax.f32 %v1066_v52, 0.0  ;;  %v1067_v51 = vadd.f32 %v939_v58, %v469_v41  ;;  %v664_v8 = vunpack.c.l.bf16 %v569_v42  ;;  %v572_v22 = vld [vmem:[%s2756_s1 + $0x110] sm:$0xff] }
  0x95   :  { %v802_v43 = vmul.f32 %v1803_v49, %v663_v46  ;;  %v471_v35 = vadd.f32 %v1818_v16, %v332_v26  ;;  %v333_v21 = vmul.f32 %v1780_v40, %v194_v32  ;;  %v195_v63 = vunpack.c.h.bf16 %v99_v50 }
  0x96   :  { %v1068_v34 = vadd.f32 %v940_v2, %v470_v55  ;;  %1322 = vst [vmem:[#allocation2 + $0x1d0] sm:$0xff] %v1194_v24  ;;  %v1195_v45 = vmax.f32 %v1067_v51, 0.0  ;;  %v803_v10 = vmul.f32 %v1797_v59, %v664_v8  ;;  %v665_v27 = vunpack.c.h.bf16 %v569_v42  ;;  %v573_v8 = vld [vmem:[%s2756_s1 + $0x118] sm:$0xff] }
  0x97   :  { %v941_v47 = vadd.f32 %v1838_v17, %v802_v43  ;;  %v472_v11 = vadd.f32 %v1812_v14, %v333_v21  ;;  %v334_v62 = vmul.f32 %v1783_v39, %v195_v63  ;;  %v196_v36 = vunpack.c.l.bf16 %v100_v31  ;;  %v103_v43 = vld [vmem:[%s2755_s0 + $0x118] sm:$0xff] }
  0x98   :  { %v1196_v48 = vmax.f32 %v1068_v34, 0.0  ;;  %1323 = vst [vmem:[#allocation2 + $0x1d8] sm:$0xff] %v1195_v45  ;;  %v942_v60 = vadd.f32 %v1834_v56, %v803_v10  ;;  %v804_v15 = vmul.f32 %v1803_v49, %v665_v27  ;;  %v666_v5 = vunpack.c.l.bf16 %v570_v1 }
  0x99   :  { %v1069_v0 = vadd.f32 %v941_v47, %v471_v35  ;;  %v473_v29 = vadd.f32 %v1818_v16, %v334_v62  ;;  %v335_v33 = vmul.f32 %v1780_v40, %v196_v36  ;;  %v197_v37 = vunpack.c.h.bf16 %v100_v31 }
  0x9a   :  { %1324 = vst [vmem:[#allocation2 + $0x1e0] sm:$0xff] %v1196_v48  ;;  %v667_v9 = vunpack.c.h.bf16 %v570_v1  ;;  %v1070_v19 = vadd.f32 %v942_v60, %v472_v11  ;;  %v943_v4 = vadd.f32 %v1838_v17, %v804_v15  ;;  %v805_v38 = vmul.f32 %v1797_v59, %v666_v5  ;;  %v104_v15 = vld [vmem:[%s2755_s0 + $0x120] sm:$0xff] }
  0x9b   :  { %v1197_v54 = vmax.f32 %v1069_v0, 0.0  ;;  %v474_v12 = vadd.f32 %v1812_v14, %v335_v33  ;;  %v336_v28 = vmul.f32 %v1783_v39, %v197_v37  ;;  %v198_v53 = vunpack.c.l.bf16 %v101_v13  ;;  %v574_v37 = vld [vmem:[%s2756_s1 + $0x120] sm:$0xff] }
  0x9c   :  { %v806_v18 = vmul.f32 %v1803_v49, %v667_v9  ;;  %v1198_v7 = vmax.f32 %v1070_v19, 0.0  ;;  %v1071_v30 = vadd.f32 %v943_v4, %v473_v29  ;;  %v944_v44 = vadd.f32 %v1834_v56, %v805_v38 }
  0x9d   :  { %1325 = vst [vmem:[#allocation2 + $0x1e8] sm:$0xff] %v1197_v54  ;;  %v668_v3 = vunpack.c.l.bf16 %v571_v20  ;;  %v475_v57 = vadd.f32 %v1818_v16, %v336_v28  ;;  %v337_v41 = vmul.f32 %v1780_v40, %v198_v53  ;;  %v199_v23 = vunpack.c.h.bf16 %v101_v13 }
  0x9e   :  { %v945_v50 = vadd.f32 %v1838_v17, %v806_v18  ;;  %1326 = vst [vmem:[#allocation2 + $0x1f0] sm:$0xff] %v1198_v7  ;;  %v1199_v61 = vmax.f32 %v1071_v30, 0.0  ;;  %v1072_v42 = vadd.f32 %v944_v44, %v474_v12  ;;  %v669_v52 = vunpack.c.h.bf16 %v571_v20  ;;  %v105_v44 = vld [vmem:[%s2755_s0 + $0x128] sm:$0xff] }
  0x9f   :  { %v807_v25 = vmul.f32 %v1797_v59, %v668_v3  ;;  %v476_v46 = vadd.f32 %v1812_v14, %v337_v41  ;;  %v338_v55 = vmul.f32 %v1783_v39, %v199_v23  ;;  %v200_v2 = vunpack.c.l.bf16 %v102_v6  ;;  %v575_v41 = vld [vmem:[%s2756_s1 + $0x128] sm:$0xff] }
  0xa0   :  { %v1073_v58 = vadd.f32 %v945_v50, %v475_v57  ;;  %1327 = vst [vmem:[#allocation2 + $0x1f8] sm:$0xff] %v1199_v61  ;;  %v1200_v26 = vmax.f32 %v1072_v42, 0.0  ;;  %v808_v24 = vmul.f32 %v1803_v49, %v669_v52  ;;  %v670_v51 = vunpack.c.l.bf16 %v572_v22 }
  0xa1   :  { %v946_v32 = vadd.f32 %v1834_v56, %v807_v25  ;;  %v477_v34 = vadd.f32 %v1818_v16, %v338_v55  ;;  %v339_v35 = vmul.f32 %v1780_v40, %v200_v2  ;;  %v201_v21 = vunpack.c.h.bf16 %v102_v6 }
  0xa2   :  { %v1201_v31 = vmax.f32 %v1073_v58, 0.0  ;;  %1328 = vst [vmem:[#allocation2 + $0x200] sm:$0xff] %v1200_v26  ;;  %v947_v1 = vadd.f32 %v1838_v17, %v808_v24  ;;  %v809_v45 = vmul.f32 %v1797_v59, %v670_v51  ;;  %v671_v47 = vunpack.c.h.bf16 %v572_v22  ;;  %v106_v24 = vld [vmem:[%s2755_s0 + $0x130] sm:$0xff] }
  0xa3   :  { %v1074_v63 = vadd.f32 %v946_v32, %v476_v46  ;;  %v478_v10 = vadd.f32 %v1812_v14, %v339_v35  ;;  %v340_v27 = vmul.f32 %v1783_v39, %v201_v21  ;;  %v202_v48 = vunpack.c.l.bf16 %v103_v43 }
  0xa4   :  { %1329 = vst [vmem:[#allocation2 + $0x208] sm:$0xff] %v1201_v31  ;;  %v672_v11 = vunpack.c.l.bf16 %v573_v8  ;;  %v1075_v36 = vadd.f32 %v947_v1, %v477_v34  ;;  %v948_v0 = vadd.f32 %v1834_v56, %v809_v45  ;;  %v810_v60 = vmul.f32 %v1803_v49, %v671_v47  ;;  %v576_v34 = vld [vmem:[%s2756_s1 + $0x130] sm:$0xff] }
  0xa5   :  { %v1202_v62 = vmax.f32 %v1074_v63, 0.0  ;;  %v479_v5 = vadd.f32 %v1818_v16, %v340_v27  ;;  %v341_v13 = vmul.f32 %v1780_v40, %v202_v48  ;;  %v203_v33 = vunpack.c.h.bf16 %v103_v43 }
  0xa6   :  { %v811_v29 = vmul.f32 %v1797_v59, %v672_v11  ;;  %v1203_v9 = vmax.f32 %v1075_v36, 0.0  ;;  %v1076_v20 = vadd.f32 %v948_v0, %v478_v10  ;;  %v949_v54 = vadd.f32 %v1838_v17, %v810_v60  ;;  %v107_v0 = vld [vmem:[%s2755_s0 + $0x138] sm:$0xff] }
  0xa7   :  { %1330 = vst [vmem:[#allocation2 + $0x210] sm:$0xff] %v1202_v62  ;;  %v673_v19 = vunpack.c.h.bf16 %v573_v8  ;;  %v480_v4 = vadd.f32 %v1812_v14, %v341_v13  ;;  %v342_v12 = vmul.f32 %v1783_v39, %v203_v33  ;;  %v204_v28 = vunpack.c.l.bf16 %v104_v15 }
  0xa8   :  { %v950_v38 = vadd.f32 %v1834_v56, %v811_v29  ;;  %1331 = vst [vmem:[#allocation2 + $0x218] sm:$0xff] %v1203_v9  ;;  %v1204_v18 = vmax.f32 %v1076_v20, 0.0  ;;  %v1077_v53 = vadd.f32 %v949_v54, %v479_v5  ;;  %v674_v30 = vunpack.c.l.bf16 %v574_v37  ;;  %v577_v29 = vld [vmem:[%s2756_s1 + $0x138] sm:$0xff] }
  0xa9   :  { %v812_v7 = vmul.f32 %v1803_v49, %v673_v19  ;;  %v481_v6 = vadd.f32 %v1818_v16, %v342_v12  ;;  %v343_v57 = vmul.f32 %v1780_v40, %v204_v28  ;;  %v205_v50 = vunpack.c.h.bf16 %v104_v15 }
  0xaa   :  { %v1078_v3 = vadd.f32 %v950_v38, %v480_v4  ;;  %1332 = vst [vmem:[#allocation2 + $0x220] sm:$0xff] %v1204_v18  ;;  %v1205_v23 = vmax.f32 %v1077_v53, 0.0  ;;  %v813_v61 = vmul.f32 %v1797_v59, %v674_v30  ;;  %v675_v42 = vunpack.c.h.bf16 %v574_v37  ;;  %v578_v30 = vld [vmem:[%s2756_s1 + $0x140] sm:$0xff] }
  0xab   :  { %v951_v22 = vadd.f32 %v1838_v17, %v812_v7  ;;  %v482_v52 = vadd.f32 %v1812_v14, %v343_v57  ;;  %v344_v58 = vmul.f32 %v1783_v39, %v205_v50  ;;  %v206_v46 = vunpack.c.l.bf16 %v105_v44  ;;  %v108_v7 = vld [vmem:[%s2755_s0 + $0x140] sm:$0xff] }
  0xac   :  { %v1206_v25 = vmax.f32 %v1078_v3, 0.0  ;;  %1333 = vst [vmem:[#allocation2 + $0x228] sm:$0xff] %v1205_v23  ;;  %v952_v2 = vadd.f32 %v1834_v56, %v813_v61  ;;  %v814_v26 = vmul.f32 %v1803_v49, %v675_v42  ;;  %v676_v32 = vunpack.c.l.bf16 %v575_v41 }
  0xad   :  { %v1079_v55 = vadd.f32 %v951_v22, %v481_v6  ;;  %v483_v51 = vadd.f32 %v1818_v16, %v344_v58  ;;  %v345_v43 = vmul.f32 %v1780_v40, %v206_v46  ;;  %v207_v8 = vunpack.c.h.bf16 %v105_v44 }
  0xae   :  { %1334 = vst [vmem:[#allocation2 + $0x230] sm:$0xff] %v1206_v25  ;;  %v677_v31 = vunpack.c.h.bf16 %v575_v41  ;;  %v1080_v21 = vadd.f32 %v952_v2, %v482_v52  ;;  %v953_v63 = vadd.f32 %v1838_v17, %v814_v26  ;;  %v815_v1 = vmul.f32 %v1797_v59, %v676_v32  ;;  %v109_v26 = vld [vmem:[%s2755_s0 + $0x148] sm:$0xff] }
  0xaf   :  { %v1207_v35 = vmax.f32 %v1079_v55, 0.0  ;;  %v484_v45 = vadd.f32 %v1812_v14, %v345_v43  ;;  %v346_v47 = vmul.f32 %v1783_v39, %v207_v8  ;;  %v208_v27 = vunpack.c.l.bf16 %v106_v24  ;;  %v579_v8 = vld [vmem:[%s2756_s1 + $0x148] sm:$0xff] }
  0xb0   :  { %v816_v10 = vmul.f32 %v1803_v49, %v677_v31  ;;  %v1208_v48 = vmax.f32 %v1080_v21, 0.0  ;;  %v1081_v11 = vadd.f32 %v953_v63, %v483_v51  ;;  %v954_v62 = vadd.f32 %v1834_v56, %v815_v1 }
  0xb1   :  { %1335 = vst [vmem:[#allocation2 + $0x238] sm:$0xff] %v1207_v35  ;;  %v678_v36 = vunpack.c.l.bf16 %v576_v34  ;;  %v485_v60 = vadd.f32 %v1818_v16, %v346_v47  ;;  %v347_v5 = vmul.f32 %v1780_v40, %v208_v27  ;;  %v209_v13 = vunpack.c.h.bf16 %v106_v24 }
  0xb2   :  { %v955_v15 = vadd.f32 %v1838_v17, %v816_v10  ;;  %1336 = vst [vmem:[#allocation2 + $0x240] sm:$0xff] %v1208_v48  ;;  %v1209_v33 = vmax.f32 %v1081_v11, 0.0  ;;  %v1082_v37 = vadd.f32 %v954_v62, %v484_v45  ;;  %v679_v20 = vunpack.c.h.bf16 %v576_v34  ;;  %v110_v62 = vld [vmem:[%s2755_s0 + $0x150] sm:$0xff] }
  0xb3   :  { %v817_v9 = vmul.f32 %v1797_v59, %v678_v36  ;;  %v486_v19 = vadd.f32 %v1812_v14, %v347_v5  ;;  %v348_v4 = vmul.f32 %v1783_v39, %v209_v13  ;;  %v210_v38 = vunpack.c.l.bf16 %v107_v0  ;;  %v580_v5 = vld [vmem:[%s2756_s1 + $0x150] sm:$0xff] }
  0xb4   :  { %v1083_v54 = vadd.f32 %v955_v15, %v485_v60  ;;  %1337 = vst [vmem:[#allocation2 + $0x248] sm:$0xff] %v1209_v33  ;;  %v1210_v12 = vmax.f32 %v1082_v37, 0.0  ;;  %v818_v18 = vmul.f32 %v1803_v49, %v679_v20  ;;  %v680_v53 = vunpack.c.l.bf16 %v577_v29 }
  0xb5   :  { %v956_v28 = vadd.f32 %v1834_v56, %v817_v9  ;;  %v487_v3 = vadd.f32 %v1818_v16, %v348_v4  ;;  %v349_v6 = vmul.f32 %v1780_v40, %v210_v38  ;;  %v211_v57 = vunpack.c.h.bf16 %v107_v0 }
  0xb6   :  { %v1211_v44 = vmax.f32 %v1083_v54, 0.0  ;;  %1338 = vst [vmem:[#allocation2 + $0x250] sm:$0xff] %v1210_v12  ;;  %v957_v41 = vadd.f32 %v1838_v17, %v818_v18  ;;  %v819_v23 = vmul.f32 %v1797_v59, %v680_v53  ;;  %v681_v22 = vunpack.c.h.bf16 %v577_v29  ;;  %v111_v18 = vld [vmem:[%s2755_s0 + $0x158] sm:$0xff] }
  0xb7   :  { %v1084_v50 = vadd.f32 %v956_v28, %v486_v19  ;;  %v488_v61 = vadd.f32 %v1812_v14, %v349_v6  ;;  %v350_v42 = vmul.f32 %v1783_v39, %v211_v57  ;;  %v212_v25 = vunpack.c.l.bf16 %v108_v7 }
  0xb8   :  { %1339 = vst [vmem:[#allocation2 + $0x258] sm:$0xff] %v1211_v44  ;;  %v682_v52 = vunpack.c.l.bf16 %v578_v30  ;;  %v1085_v46 = vadd.f32 %v957_v41, %v487_v3  ;;  %v958_v55 = vadd.f32 %v1834_v56, %v819_v23  ;;  %v820_v2 = vmul.f32 %v1803_v49, %v681_v22  ;;  %v581_v3 = vld [vmem:[%s2756_s1 + $0x158] sm:$0xff] }
  0xb9   :  { %v1212_v58 = vmax.f32 %v1084_v50, 0.0  ;;  %v489_v32 = vadd.f32 %v1818_v16, %v350_v42  ;;  %v351_v24 = vmul.f32 %v1780_v40, %v212_v25  ;;  %v213_v43 = vunpack.c.h.bf16 %v108_v7 }
  0xba   :  { %v821_v51 = vmul.f32 %v1797_v59, %v682_v52  ;;  %v1213_v31 = vmax.f32 %v1085_v46, 0.0  ;;  %v1086_v34 = vadd.f32 %v958_v55, %v488_v61  ;;  %v959_v35 = vadd.f32 %v1838_v17, %v820_v2  ;;  %v112_v55 = vld [vmem:[%s2755_s0 + $0x160] sm:$0xff] }
  0xbb   :  { %1340 = vst [vmem:[#allocation2 + $0x260] sm:$0xff] %v1212_v58  ;;  %v683_v21 = vunpack.c.h.bf16 %v578_v30  ;;  %v490_v63 = vadd.f32 %v1812_v14, %v351_v24  ;;  %v352_v45 = vmul.f32 %v1783_v39, %v213_v43  ;;  %v214_v47 = vunpack.c.l.bf16 %v109_v26 }
  0xbc   :  { %v960_v1 = vadd.f32 %v1834_v56, %v821_v51  ;;  %1341 = vst [vmem:[#allocation2 + $0x268] sm:$0xff] %v1213_v31  ;;  %v1214_v10 = vmax.f32 %v1086_v34, 0.0  ;;  %v1087_v27 = vadd.f32 %v959_v35, %v489_v32  ;;  %v684_v11 = vunpack.c.l.bf16 %v579_v8  ;;  %v582_v51 = vld [vmem:[%s2756_s1 + $0x160] sm:$0xff] }
  0xbd   :  { %v822_v48 = vmul.f32 %v1803_v49, %v683_v21  ;;  %v491_v0 = vadd.f32 %v1818_v16, %v352_v45  ;;  %v353_v60 = vmul.f32 %v1780_v40, %v214_v47  ;;  %v215_v15 = vunpack.c.h.bf16 %v109_v26 }
  0xbe   :  { %v1088_v36 = vadd.f32 %v960_v1, %v490_v63  ;;  %1342 = vst [vmem:[#allocation2 + $0x270] sm:$0xff] %v1214_v10  ;;  %v1215_v13 = vmax.f32 %v1087_v27, 0.0  ;;  %v823_v33 = vmul.f32 %v1797_v59, %v684_v11  ;;  %v685_v37 = vunpack.c.h.bf16 %v579_v8  ;;  %v583_v11 = vld [vmem:[%s2756_s1 + $0x168] sm:$0xff] }
  0xbf   :  { %v961_v29 = vadd.f32 %v1838_v17, %v822_v48  ;;  %v492_v20 = vadd.f32 %v1812_v14, %v353_v60  ;;  %v354_v54 = vmul.f32 %v1783_v39, %v215_v15  ;;  %v216_v19 = vunpack.c.l.bf16 %v110_v62  ;;  %v113_v48 = vld [vmem:[%s2755_s0 + $0x168] sm:$0xff] }
  0xc0   :  { %v1216_v9 = vmax.f32 %v1088_v36, 0.0  ;;  %1343 = vst [vmem:[#allocation2 + $0x278] sm:$0xff] %v1215_v13  ;;  %v962_v38 = vadd.f32 %v1834_v56, %v823_v33  ;;  %v824_v12 = vmul.f32 %v1803_v49, %v685_v37  ;;  %v686_v28 = vunpack.c.l.bf16 %v580_v5 }
  0xc1   :  { %v1089_v4 = vadd.f32 %v961_v29, %v491_v0  ;;  %v493_v53 = vadd.f32 %v1818_v16, %v354_v54  ;;  %v355_v7 = vmul.f32 %v1780_v40, %v216_v19  ;;  %v217_v30 = vunpack.c.h.bf16 %v110_v62 }
  0xc2   :  { %1344 = vst [vmem:[#allocation2 + $0x280] sm:$0xff] %v1216_v9  ;;  %v687_v44 = vunpack.c.h.bf16 %v580_v5  ;;  %v1090_v57 = vadd.f32 %v962_v38, %v492_v20  ;;  %v963_v50 = vadd.f32 %v1838_v17, %v824_v12  ;;  %v825_v41 = vmul.f32 %v1797_v59, %v686_v28  ;;  %v114_v12 = vld [vmem:[%s2755_s0 + $0x170] sm:$0xff] }
  0xc3   :  { %v1217_v6 = vmax.f32 %v1089_v4, 0.0  ;;  %v494_v23 = vadd.f32 %v1812_v14, %v355_v7  ;;  %v356_v22 = vmul.f32 %v1783_v39, %v217_v30  ;;  %v218_v42 = vunpack.c.l.bf16 %v111_v18  ;;  %v584_v30 = vld [vmem:[%s2756_s1 + $0x170] sm:$0xff] }
  0xc4   :  { %v826_v61 = vmul.f32 %v1803_v49, %v687_v44  ;;  %v1218_v25 = vmax.f32 %v1090_v57, 0.0  ;;  %v1091_v52 = vadd.f32 %v963_v50, %v493_v53  ;;  %v964_v58 = vadd.f32 %v1834_v56, %v825_v41 }
  0xc5   :  { %1345 = vst [vmem:[#allocation2 + $0x288] sm:$0xff] %v1217_v6  ;;  %v688_v46 = vunpack.c.l.bf16 %v581_v3  ;;  %v495_v2 = vadd.f32 %v1818_v16, %v356_v22  ;;  %v357_v32 = vmul.f32 %v1780_v40, %v218_v42  ;;  %v219_v24 = vunpack.c.h.bf16 %v111_v18 }
  0xc6   :  { %v965_v26 = vadd.f32 %v1838_v17, %v826_v61  ;;  %1346 = vst [vmem:[#allocation2 + $0x290] sm:$0xff] %v1218_v25  ;;  %v1219_v43 = vmax.f32 %v1091_v52, 0.0  ;;  %v1092_v8 = vadd.f32 %v964_v58, %v494_v23  ;;  %v689_v34 = vunpack.c.h.bf16 %v581_v3  ;;  %v115_v58 = vld [vmem:[%s2755_s0 + $0x178] sm:$0xff] }
  0xc7   :  { %v827_v31 = vmul.f32 %v1797_v59, %v688_v46  ;;  %v496_v21 = vadd.f32 %v1812_v14, %v357_v32  ;;  %v358_v63 = vmul.f32 %v1783_v39, %v219_v24  ;;  %v220_v1 = vunpack.c.l.bf16 %v112_v55  ;;  %v585_v32 = vld [vmem:[%s2756_s1 + $0x178] sm:$0xff] }
  0xc8   :  { %v1093_v35 = vadd.f32 %v965_v26, %v495_v2  ;;  %1347 = vst [vmem:[#allocation2 + $0x298] sm:$0xff] %v1219_v43  ;;  %v1220_v45 = vmax.f32 %v1092_v8, 0.0  ;;  %v828_v10 = vmul.f32 %v1803_v49, %v689_v34  ;;  %v690_v27 = vunpack.c.l.bf16 %v582_v51 }
  0xc9   :  { %v966_v47 = vadd.f32 %v1834_v56, %v827_v31  ;;  %v497_v36 = vadd.f32 %v1818_v16, %v358_v63  ;;  %v359_v0 = vmul.f32 %v1780_v40, %v220_v1  ;;  %v221_v60 = vunpack.c.h.bf16 %v112_v55 }
  0xca   :  { %v1221_v62 = vmax.f32 %v1093_v35, 0.0  ;;  %1348 = vst [vmem:[#allocation2 + $0x2a0] sm:$0xff] %v1220_v45  ;;  %v967_v5 = vadd.f32 %v1838_v17, %v828_v10  ;;  %v829_v13 = vmul.f32 %v1797_v59, %v690_v27  ;;  %v691_v29 = vunpack.c.h.bf16 %v582_v51  ;;  %v116_v10 = vld [vmem:[%s2755_s0 + $0x180] sm:$0xff] }
  0xcb   :  { %v1094_v15 = vadd.f32 %v966_v47, %v496_v21  ;;  %v498_v33 = vadd.f32 %v1812_v14, %v359_v0  ;;  %v360_v37 = vmul.f32 %v1783_v39, %v221_v60  ;;  %v222_v9 = vunpack.c.l.bf16 %v113_v48 }
  0xcc   :  { %1349 = vst [vmem:[#allocation2 + $0x2a8] sm:$0xff] %v1221_v62  ;;  %v692_v20 = vunpack.c.l.bf16 %v583_v11  ;;  %v1095_v19 = vadd.f32 %v967_v5, %v497_v36  ;;  %v968_v4 = vadd.f32 %v1834_v56, %v829_v13  ;;  %v830_v38 = vmul.f32 %v1803_v49, %v691_v29  ;;  %v586_v36 = vld [vmem:[%s2756_s1 + $0x180] sm:$0xff] }
  0xcd   :  { %v1222_v54 = vmax.f32 %v1094_v15, 0.0  ;;  %v499_v28 = vadd.f32 %v1818_v16, %v360_v37  ;;  %v361_v18 = vmul.f32 %v1780_v40, %v222_v9  ;;  %v223_v7 = vunpack.c.h.bf16 %v113_v48 }
  0xce   :  { %v831_v53 = vmul.f32 %v1797_v59, %v692_v20  ;;  %v1223_v44 = vmax.f32 %v1095_v19, 0.0  ;;  %v1096_v3 = vadd.f32 %v968_v4, %v498_v33  ;;  %v969_v6 = vadd.f32 %v1838_v17, %v830_v38  ;;  %v117_v4 = vld [vmem:[%s2755_s0 + $0x188] sm:$0xff] }
  0xcf   :  { %1350 = vst [vmem:[#allocation2 + $0x2b0] sm:$0xff] %v1222_v54  ;;  %v693_v57 = vunpack.c.h.bf16 %v583_v11  ;;  %v500_v50 = vadd.f32 %v1812_v14, %v361_v18  ;;  %v362_v23 = vmul.f32 %v1783_v39, %v223_v7  ;;  %v224_v22 = vunpack.c.l.bf16 %v114_v12 }
  0xd0   :  { %v970_v41 = vadd.f32 %v1834_v56, %v831_v53  ;;  %1351 = vst [vmem:[#allocation2 + $0x2b8] sm:$0xff] %v1223_v44  ;;  %v1224_v61 = vmax.f32 %v1096_v3, 0.0  ;;  %v1097_v42 = vadd.f32 %v969_v6, %v499_v28  ;;  %v694_v52 = vunpack.c.l.bf16 %v584_v30  ;;  %v587_v53 = vld [vmem:[%s2756_s1 + $0x188] sm:$0xff] }
  0xd1   :  { %v832_v25 = vmul.f32 %v1803_v49, %v693_v57  ;;  %v501_v55 = vadd.f32 %v1818_v16, %v362_v23  ;;  %v363_v2 = vmul.f32 %v1780_v40, %v224_v22  ;;  %v225_v26 = vunpack.c.h.bf16 %v114_v12 }
  0xd2   :  { %v1098_v46 = vadd.f32 %v970_v41, %v500_v50  ;;  %1352 = vst [vmem:[#allocation2 + $0x2c0] sm:$0xff] %v1224_v61  ;;  %v1225_v24 = vmax.f32 %v1097_v42, 0.0  ;;  %v833_v43 = vmul.f32 %v1797_v59, %v694_v52  ;;  %v695_v8 = vunpack.c.h.bf16 %v584_v30  ;;  %v588_v52 = vld [vmem:[%s2756_s1 + $0x190] sm:$0xff] }
  0xd3   :  { %v971_v51 = vadd.f32 %v1838_v17, %v832_v25  ;;  %v502_v34 = vadd.f32 %v1812_v14, %v363_v2  ;;  %v364_v35 = vmul.f32 %v1783_v39, %v225_v26  ;;  %v226_v21 = vunpack.c.l.bf16 %v115_v58  ;;  %v118_v25 = vld [vmem:[%s2755_s0 + $0x190] sm:$0xff] }
  0xd4   :  { %v1226_v31 = vmax.f32 %v1098_v46, 0.0  ;;  %1353 = vst [vmem:[#allocation2 + $0x2c8] sm:$0xff] %v1225_v24  ;;  %v972_v1 = vadd.f32 %v1834_v56, %v833_v43  ;;  %v834_v45 = vmul.f32 %v1803_v49, %v695_v8  ;;  %v696_v47 = vunpack.c.l.bf16 %v585_v32 }
  0xd5   :  { %v1099_v63 = vadd.f32 %v971_v51, %v501_v55  ;;  %v503_v27 = vadd.f32 %v1818_v16, %v364_v35  ;;  %v365_v48 = vmul.f32 %v1780_v40, %v226_v21  ;;  %v227_v11 = vunpack.c.h.bf16 %v115_v58 }
  0xd6   :  { %1354 = vst [vmem:[#allocation2 + $0x2d0] sm:$0xff] %v1226_v31  ;;  %v697_v62 = vunpack.c.h.bf16 %v585_v32  ;;  %v1100_v60 = vadd.f32 %v972_v1, %v502_v34  ;;  %v973_v15 = vadd.f32 %v1838_v17, %v834_v45  ;;  %v835_v5 = vmul.f32 %v1797_v59, %v696_v47  ;;  %v119_v45 = vld [vmem:[%s2755_s0 + $0x198] sm:$0xff] }
  0xd7   :  { %v1227_v0 = vmax.f32 %v1099_v63, 0.0  ;;  %v504_v13 = vadd.f32 %v1812_v14, %v365_v48  ;;  %v366_v29 = vmul.f32 %v1783_v39, %v227_v11  ;;  %v228_v37 = vunpack.c.l.bf16 %v116_v10  ;;  %v589_v11 = vld [vmem:[%s2756_s1 + $0x198] sm:$0xff] }
  0xd8   :  { %v836_v33 = vmul.f32 %v1803_v49, %v697_v62  ;;  %v1228_v9 = vmax.f32 %v1100_v60, 0.0  ;;  %v1101_v20 = vadd.f32 %v973_v15, %v503_v27  ;;  %v974_v54 = vadd.f32 %v1834_v56, %v835_v5 }
  0xd9   :  { %1355 = vst [vmem:[#allocation2 + $0x2d8] sm:$0xff] %v1227_v0  ;;  %v698_v19 = vunpack.c.l.bf16 %v586_v36  ;;  %v505_v38 = vadd.f32 %v1818_v16, %v366_v29  ;;  %v367_v28 = vmul.f32 %v1780_v40, %v228_v37  ;;  %v229_v18 = vunpack.c.h.bf16 %v116_v10 }
  0xda   :  { %v975_v12 = vadd.f32 %v1838_v17, %v836_v33  ;;  %1356 = vst [vmem:[#allocation2 + $0x2e0] sm:$0xff] %v1228_v9  ;;  %v1229_v7 = vmax.f32 %v1101_v20, 0.0  ;;  %v1102_v30 = vadd.f32 %v974_v54, %v504_v13  ;;  %v699_v3 = vunpack.c.h.bf16 %v586_v36  ;;  %v120_v54 = vld [vmem:[%s2755_s0 + $0x1a0] sm:$0xff] }
  0xdb   :  { %v837_v44 = vmul.f32 %v1797_v59, %v698_v19  ;;  %v506_v57 = vadd.f32 %v1812_v14, %v367_v28  ;;  %v368_v50 = vmul.f32 %v1783_v39, %v229_v18  ;;  %v230_v41 = vunpack.c.l.bf16 %v117_v4  ;;  %v590_v28 = vld [vmem:[%s2756_s1 + $0x1a0] sm:$0xff] }
  0xdc   :  { %v1103_v6 = vadd.f32 %v975_v12, %v505_v38  ;;  %1357 = vst [vmem:[#allocation2 + $0x2e8] sm:$0xff] %v1229_v7  ;;  %v1230_v23 = vmax.f32 %v1102_v30, 0.0  ;;  %v838_v61 = vmul.f32 %v1803_v49, %v699_v3  ;;  %v700_v42 = vunpack.c.l.bf16 %v587_v53 }
  0xdd   :  { %v976_v22 = vadd.f32 %v1834_v56, %v837_v44  ;;  %v507_v46 = vadd.f32 %v1818_v16, %v368_v50  ;;  %v369_v55 = vmul.f32 %v1780_v40, %v230_v41  ;;  %v231_v2 = vunpack.c.h.bf16 %v117_v4 }
  0xde   :  { %v1231_v58 = vmax.f32 %v1103_v6, 0.0  ;;  %1358 = vst [vmem:[#allocation2 + $0x2f0] sm:$0xff] %v1230_v23  ;;  %v977_v32 = vadd.f32 %v1838_v17, %v838_v61  ;;  %v839_v24 = vmul.f32 %v1797_v59, %v700_v42  ;;  %v701_v51 = vunpack.c.h.bf16 %v587_v53  ;;  %v121_v61 = vld [vmem:[%s2755_s0 + $0x1a8] sm:$0xff] }
  0xdf   :  { %v1104_v26 = vadd.f32 %v976_v22, %v506_v57  ;;  %v508_v43 = vadd.f32 %v1812_v14, %v369_v55  ;;  %v370_v8 = vmul.f32 %v1783_v39, %v231_v2  ;;  %v232_v31 = vunpack.c.l.bf16 %v118_v25 }
  0xe0   :  { %1359 = vst [vmem:[#allocation2 + $0x2f8] sm:$0xff] %v1231_v58  ;;  %v702_v34 = vunpack.c.l.bf16 %v588_v52  ;;  %v1105_v21 = vadd.f32 %v977_v32, %v507_v46  ;;  %v978_v63 = vadd.f32 %v1834_v56, %v839_v24  ;;  %v840_v1 = vmul.f32 %v1803_v49, %v701_v51  ;;  %v591_v46 = vld [vmem:[%s2756_s1 + $0x1a8] sm:$0xff] }
  0xe1   :  { %v1232_v35 = vmax.f32 %v1104_v26, 0.0  ;;  %v509_v47 = vadd.f32 %v1818_v16, %v370_v8  ;;  %v371_v10 = vmul.f32 %v1780_v40, %v232_v31  ;;  %v233_v48 = vunpack.c.h.bf16 %v118_v25 }
  0xe2   :  { %v841_v27 = vmul.f32 %v1797_v59, %v702_v34  ;;  %v1233_v62 = vmax.f32 %v1105_v21, 0.0  ;;  %v1106_v36 = vadd.f32 %v978_v63, %v508_v43  ;;  %v979_v0 = vadd.f32 %v1838_v17, %v840_v1  ;;  %v122_v63 = vld [vmem:[%s2755_s0 + $0x1b0] sm:$0xff] }
  0xe3   :  { %1360 = vst [vmem:[#allocation2 + $0x300] sm:$0xff] %v1232_v35  ;;  %v703_v60 = vunpack.c.h.bf16 %v588_v52  ;;  %v510_v15 = vadd.f32 %v1812_v14, %v371_v10  ;;  %v372_v13 = vmul.f32 %v1783_v39, %v233_v48  ;;  %v234_v29 = vunpack.c.l.bf16 %v119_v45 }
  0xe4   :  { %v980_v5 = vadd.f32 %v1834_v56, %v841_v27  ;;  %1361 = vst [vmem:[#allocation2 + $0x308] sm:$0xff] %v1233_v62  ;;  %v1234_v33 = vmax.f32 %v1106_v36, 0.0  ;;  %v1107_v37 = vadd.f32 %v979_v0, %v509_v47  ;;  %v704_v20 = vunpack.c.l.bf16 %v589_v11  ;;  %v592_v27 = vld [vmem:[%s2756_s1 + $0x1b0] sm:$0xff] }
  0xe5   :  { %v842_v9 = vmul.f32 %v1803_v49, %v703_v60  ;;  %v511_v4 = vadd.f32 %v1818_v16, %v372_v13  ;;  %v373_v38 = vmul.f32 %v1780_v40, %v234_v29  ;;  %v235_v12 = vunpack.c.h.bf16 %v119_v45 }
  0xe6   :  { %v1108_v19 = vadd.f32 %v980_v5, %v510_v15  ;;  %1362 = vst [vmem:[#allocation2 + $0x310] sm:$0xff] %v1234_v33  ;;  %v1235_v18 = vmax.f32 %v1107_v37, 0.0  ;;  %v843_v7 = vmul.f32 %v1797_v59, %v704_v20  ;;  %v705_v30 = vunpack.c.h.bf16 %v589_v11  ;;  %v593_v20 = vld [vmem:[%s2756_s1 + $0x1b8] sm:$0xff] }
  0xe7   :  { %v981_v53 = vadd.f32 %v1838_v17, %v842_v9  ;;  %v512_v3 = vadd.f32 %v1812_v14, %v373_v38  ;;  %v374_v6 = vmul.f32 %v1783_v39, %v235_v12  ;;  %v236_v57 = vunpack.c.l.bf16 %v120_v54  ;;  %v123_v9 = vld [vmem:[%s2755_s0 + $0x1b8] sm:$0xff] }
  0xe8   :  { %v1236_v44 = vmax.f32 %v1108_v19, 0.0  ;;  %1363 = vst [vmem:[#allocation2 + $0x318] sm:$0xff] %v1235_v18  ;;  %v982_v41 = vadd.f32 %v1834_v56, %v843_v7  ;;  %v844_v23 = vmul.f32 %v1803_v49, %v705_v30  ;;  %v706_v22 = vunpack.c.l.bf16 %v590_v28 }
  0xe9   :  { %v1109_v50 = vadd.f32 %v981_v53, %v511_v4  ;;  %v513_v42 = vadd.f32 %v1818_v16, %v374_v6  ;;  %v375_v25 = vmul.f32 %v1780_v40, %v236_v57  ;;  %v237_v52 = vunpack.c.h.bf16 %v120_v54 }
  0xea   :  { %1364 = vst [vmem:[#allocation2 + $0x320] sm:$0xff] %v1236_v44  ;;  %v707_v58 = vunpack.c.h.bf16 %v590_v28  ;;  %v1110_v2 = vadd.f32 %v982_v41, %v512_v3  ;;  %v983_v26 = vadd.f32 %v1838_v17, %v844_v23  ;;  %v845_v32 = vmul.f32 %v1797_v59, %v706_v22  ;;  %v124_v23 = vld [vmem:[%s2755_s0 + $0x1c0] sm:$0xff] }
  0xeb   :  { %v1237_v55 = vmax.f32 %v1109_v50, 0.0  ;;  %v514_v24 = vadd.f32 %v1812_v14, %v375_v25  ;;  %v376_v51 = vmul.f32 %v1783_v39, %v237_v52  ;;  %v238_v8 = vunpack.c.l.bf16 %v121_v61  ;;  %v594_v52 = vld [vmem:[%s2756_s1 + $0x1c0] sm:$0xff] }
  0xec   :  { %v846_v43 = vmul.f32 %v1803_v49, %v707_v58  ;;  %v1238_v31 = vmax.f32 %v1110_v2, 0.0  ;;  %v1111_v34 = vadd.f32 %v983_v26, %v513_v42  ;;  %v984_v35 = vadd.f32 %v1834_v56, %v845_v32 }
  0xed   :  { %1365 = vst [vmem:[#allocation2 + $0x328] sm:$0xff] %v1237_v55  ;;  %v708_v21 = vunpack.c.l.bf16 %v591_v46  ;;  %v515_v1 = vadd.f32 %v1818_v16, %v376_v51  ;;  %v377_v47 = vmul.f32 %v1780_v40, %v238_v8  ;;  %v239_v10 = vunpack.c.h.bf16 %v121_v61 }
  0xee   :  { %v985_v45 = vadd.f32 %v1838_v17, %v846_v43  ;;  %1366 = vst [vmem:[#allocation2 + $0x330] sm:$0xff] %v1238_v31  ;;  %v1239_v48 = vmax.f32 %v1111_v34, 0.0  ;;  %v1112_v11 = vadd.f32 %v984_v35, %v514_v24  ;;  %v709_v36 = vunpack.c.h.bf16 %v591_v46  ;;  %v125_v35 = vld [vmem:[%s2755_s0 + $0x1c8] sm:$0xff] }
  0xef   :  { %v847_v62 = vmul.f32 %v1797_v59, %v708_v21  ;;  %v516_v60 = vadd.f32 %v1812_v14, %v377_v47  ;;  %v378_v15 = vmul.f32 %v1783_v39, %v239_v10  ;;  %v240_v5 = vunpack.c.l.bf16 %v122_v63  ;;  %v595_v47 = vld [vmem:[%s2756_s1 + $0x1c8] sm:$0xff] }
  0xf0   :  { %v1113_v0 = vadd.f32 %v985_v45, %v515_v1  ;;  %1367 = vst [vmem:[#allocation2 + $0x338] sm:$0xff] %v1239_v48  ;;  %v1240_v13 = vmax.f32 %v1112_v11, 0.0  ;;  %v848_v33 = vmul.f32 %v1803_v49, %v709_v36  ;;  %v710_v37 = vunpack.c.l.bf16 %v592_v27 }
  0xf1   :  { %v986_v29 = vadd.f32 %v1834_v56, %v847_v62  ;;  %v517_v19 = vadd.f32 %v1818_v16, %v378_v15  ;;  %v379_v4 = vmul.f32 %v1780_v40, %v240_v5  ;;  %v241_v38 = vunpack.c.h.bf16 %v122_v63 }
  0xf2   :  { %v1241_v54 = vmax.f32 %v1113_v0, 0.0  ;;  %1368 = vst [vmem:[#allocation2 + $0x340] sm:$0xff] %v1240_v13  ;;  %v987_v28 = vadd.f32 %v1838_v17, %v848_v33  ;;  %v849_v18 = vmul.f32 %v1797_v59, %v710_v37  ;;  %v711_v53 = vunpack.c.h.bf16 %v592_v27  ;;  %v126_v33 = vld [vmem:[%s2755_s0 + $0x1d0] sm:$0xff] }
  0xf3   :  { %v1114_v12 = vadd.f32 %v986_v29, %v516_v60  ;;  %v518_v7 = vadd.f32 %v1812_v14, %v379_v4  ;;  %v380_v30 = vmul.f32 %v1783_v39, %v241_v38  ;;  %v242_v44 = vunpack.c.l.bf16 %v123_v9 }
  0xf4   :  { %1369 = vst [vmem:[#allocation2 + $0x348] sm:$0xff] %v1241_v54  ;;  %v712_v3 = vunpack.c.l.bf16 %v593_v20  ;;  %v1115_v57 = vadd.f32 %v987_v28, %v517_v19  ;;  %v988_v50 = vadd.f32 %v1834_v56, %v849_v18  ;;  %v850_v41 = vmul.f32 %v1803_v49, %v711_v53  ;;  %v596_v19 = vld [vmem:[%s2756_s1 + $0x1d0] sm:$0xff] }
  0xf5   :  { %v1242_v6 = vmax.f32 %v1114_v12, 0.0  ;;  %v519_v22 = vadd.f32 %v1818_v16, %v380_v30  ;;  %v381_v61 = vmul.f32 %v1780_v40, %v242_v44  ;;  %v243_v25 = vunpack.c.h.bf16 %v123_v9 }
  0xf6   :  { %v851_v42 = vmul.f32 %v1797_v59, %v712_v3  ;;  %v1243_v58 = vmax.f32 %v1115_v57, 0.0  ;;  %v1116_v46 = vadd.f32 %v988_v50, %v518_v7  ;;  %v989_v55 = vadd.f32 %v1838_v17, %v850_v41  ;;  %v127_v50 = vld [vmem:[%s2755_s0 + $0x1d8] sm:$0xff] }
  0xf7   :  { %1370 = vst [vmem:[#allocation2 + $0x350] sm:$0xff] %v1242_v6  ;;  %v713_v2 = vunpack.c.h.bf16 %v593_v20  ;;  %v520_v26 = vadd.f32 %v1812_v14, %v381_v61  ;;  %v382_v24 = vmul.f32 %v1783_v39, %v243_v25  ;;  %v244_v51 = vunpack.c.l.bf16 %v124_v23 }
  0xf8   :  { %v990_v32 = vadd.f32 %v1834_v56, %v851_v42  ;;  %1371 = vst [vmem:[#allocation2 + $0x358] sm:$0xff] %v1243_v58  ;;  %v1244_v43 = vmax.f32 %v1116_v46, 0.0  ;;  %v1117_v8 = vadd.f32 %v989_v55, %v519_v22  ;;  %v714_v34 = vunpack.c.l.bf16 %v594_v52  ;;  %v597_v42 = vld [vmem:[%s2756_s1 + $0x1d8] sm:$0xff] }
  0xf9   :  { %v852_v31 = vmul.f32 %v1803_v49, %v713_v2  ;;  %v521_v63 = vadd.f32 %v1818_v16, %v382_v24  ;;  %v383_v1 = vmul.f32 %v1780_v40, %v244_v51  ;;  %v245_v45 = vunpack.c.h.bf16 %v124_v23 }
  0xfa   :  { %v1118_v21 = vadd.f32 %v990_v32, %v520_v26  ;;  %1372 = vst [vmem:[#allocation2 + $0x360] sm:$0xff] %v1244_v43  ;;  %v1245_v10 = vmax.f32 %v1117_v8, 0.0  ;;  %v853_v48 = vmul.f32 %v1797_v59, %v714_v34  ;;  %v715_v11 = vunpack.c.h.bf16 %v594_v52  ;;  %v598_v34 = vld [vmem:[%s2756_s1 + $0x1e0] sm:$0xff] }
  0xfb   :  { %v991_v27 = vadd.f32 %v1838_v17, %v852_v31  ;;  %v522_v36 = vadd.f32 %v1812_v14, %v383_v1  ;;  %v384_v0 = vmul.f32 %v1783_v39, %v245_v45  ;;  %v246_v60 = vunpack.c.l.bf16 %v125_v35  ;;  %v128_v31 = vld [vmem:[%s2755_s0 + $0x1e0] sm:$0xff] }
  0xfc   :  { %v1246_v62 = vmax.f32 %v1118_v21, 0.0  ;;  %1373 = vst [vmem:[#allocation2 + $0x368] sm:$0xff] %v1245_v10  ;;  %v992_v5 = vadd.f32 %v1834_v56, %v853_v48  ;;  %v854_v13 = vmul.f32 %v1803_v49, %v715_v11  ;;  %v716_v29 = vunpack.c.l.bf16 %v595_v47 }
  0xfd   :  { %v1119_v15 = vadd.f32 %v991_v27, %v521_v63  ;;  %v523_v37 = vadd.f32 %v1818_v16, %v384_v0  ;;  %v385_v9 = vmul.f32 %v1780_v40, %v246_v60  ;;  %v247_v20 = vunpack.c.h.bf16 %v125_v35 }
  0xfe   :  { %1374 = vst [vmem:[#allocation2 + $0x370] sm:$0xff] %v1246_v62  ;;  %v717_v54 = vunpack.c.h.bf16 %v595_v47  ;;  %v1120_v38 = vadd.f32 %v992_v5, %v522_v36  ;;  %v993_v12 = vadd.f32 %v1838_v17, %v854_v13  ;;  %v855_v28 = vmul.f32 %v1797_v59, %v716_v29  ;;  %v129_v13 = vld [vmem:[%s2755_s0 + $0x1e8] sm:$0xff] }
  0xff   :  { %v1247_v4 = vmax.f32 %v1119_v15, 0.0  ;;  %v524_v18 = vadd.f32 %v1812_v14, %v385_v9  ;;  %v386_v53 = vmul.f32 %v1783_v39, %v247_v20  ;;  %v248_v30 = vunpack.c.l.bf16 %v126_v33  ;;  %v599_v20 = vld [vmem:[%s2756_s1 + $0x1e8] sm:$0xff] }
 0x100   :  { %v856_v7 = vmul.f32 %v1803_v49, %v717_v54  ;;  %v1248_v44 = vmax.f32 %v1120_v38, 0.0  ;;  %v1121_v3 = vadd.f32 %v993_v12, %v523_v37  ;;  %v994_v6 = vadd.f32 %v1834_v56, %v855_v28 }
 0x101   :  { %1375 = vst [vmem:[#allocation2 + $0x378] sm:$0xff] %v1247_v4  ;;  %v718_v57 = vunpack.c.l.bf16 %v596_v19  ;;  %v525_v41 = vadd.f32 %v1818_v16, %v386_v53  ;;  %v387_v22 = vmul.f32 %v1780_v40, %v248_v30  ;;  %v249_v61 = vunpack.c.h.bf16 %v126_v33 }
 0x102   :  { %v995_v23 = vadd.f32 %v1838_v17, %v856_v7  ;;  %1376 = vst [vmem:[#allocation2 + $0x380] sm:$0xff] %v1248_v44  ;;  %v1249_v25 = vmax.f32 %v1121_v3, 0.0  ;;  %v1122_v52 = vadd.f32 %v994_v6, %v524_v18  ;;  %v719_v46 = vunpack.c.h.bf16 %v596_v19  ;;  %v130_v6 = vld [vmem:[%s2755_s0 + $0x1f0] sm:$0xff] }
 0x103   :  { %v857_v58 = vmul.f32 %v1797_v59, %v718_v57  ;;  %v526_v2 = vadd.f32 %v1812_v14, %v387_v22  ;;  %v388_v26 = vmul.f32 %v1783_v39, %v249_v61  ;;  %v250_v32 = vunpack.c.l.bf16 %v127_v50  ;;  %v600_v22 = vld [vmem:[%s2756_s1 + $0x1f0] sm:$0xff] }
 0x104   :  { %v1123_v55 = vadd.f32 %v995_v23, %v525_v41  ;;  %1377 = vst [vmem:[#allocation2 + $0x388] sm:$0xff] %v1249_v25  ;;  %v1250_v24 = vmax.f32 %v1122_v52, 0.0  ;;  %v858_v43 = vmul.f32 %v1803_v49, %v719_v46  ;;  %v720_v8 = vunpack.c.l.bf16 %v597_v42 }
 0x105   :  { %v996_v51 = vadd.f32 %v1834_v56, %v857_v58  ;;  %v527_v21 = vadd.f32 %v1818_v16, %v388_v26  ;;  %v389_v63 = vmul.f32 %v1780_v40, %v250_v32  ;;  %v251_v1 = vunpack.c.h.bf16 %v127_v50 }
 0x106   :  { %v1251_v35 = vmax.f32 %v1123_v55, 0.0  ;;  %1378 = vst [vmem:[#allocation2 + $0x390] sm:$0xff] %v1250_v24  ;;  %v997_v47 = vadd.f32 %v1838_v17, %v858_v43  ;;  %v859_v10 = vmul.f32 %v1797_v59, %v720_v8  ;;  %v721_v27 = vunpack.c.h.bf16 %v597_v42  ;;  %v131_v43 = vld [vmem:[%s2755_s0 + $0x1f8] sm:$0xff]  ;;  %s1439_s0 = smov [#allocation2]  }
 0x107   :  { %v1124_v45 = vadd.f32 %v996_v51, %v526_v2  ;;  %v528_v48 = vadd.f32 %v1812_v14, %v389_v63  ;;  %v390_v11 = vmul.f32 %v1783_v39, %v251_v1  ;;  %v252_v62 = vunpack.c.l.bf16 %v128_v31 }
 0x108   :  { %1379 = vst [vmem:[#allocation2 + $0x398] sm:$0xff] %v1251_v35  ;;  %v722_v36 = vunpack.c.l.bf16 %v598_v34  ;;  %v1125_v60 = vadd.f32 %v997_v47, %v527_v21  ;;  %v998_v15 = vadd.f32 %v1834_v56, %v859_v10  ;;  %v860_v5 = vmul.f32 %v1803_v49, %v721_v27  ;;  %v601_v21 = vld [vmem:[%s2756_s1 + $0x1f8] sm:$0xff]  ;;  %s1397_s1 = sshll.u32 %s1439_s0, 4  ;;  %s1398_s1 = int_to_ptr.vmem [resolvable:$true] %s1397_s1 }
 0x109   :  { %v1252_v0 = vmax.f32 %v1124_v45, 0.0  ;;  %v529_v29 = vadd.f32 %v1818_v16, %v390_v11  ;;  %v391_v33 = vmul.f32 %v1780_v40, %v252_v62  ;;  %v253_v9 = vunpack.c.h.bf16 %v128_v31  ;;  %s1415_s16 = scalar_lea.vmem %s1398_s1, 16384  ;;  %p1420_p1 = scmp.lt.s32.totalorder %s1398_s1, %s1398_s1 }
 0x10a   :  { %v861_v37 = vmul.f32 %v1797_v59, %v722_v36  ;;  %v1253_v54 = vmax.f32 %v1125_v60, 0.0  ;;  %v1126_v19 = vadd.f32 %v998_v15, %v528_v48  ;;  %v999_v4 = vadd.f32 %v1838_v17, %v860_v5  ;;  %p1416_p0 = scmp.ne.s32.totalorder %s1398_s1, %s1415_s16  ;;  %p1421_p2 = scmp.lt.s32.totalorder %s1415_s16, %s1415_s16 }
 0x10b   :  { %1380 = vst [vmem:[#allocation2 + $0x3a0] sm:$0xff] %v1252_v0  ;;  %v723_v38 = vunpack.c.h.bf16 %v598_v34  ;;  %v530_v12 = vadd.f32 %v1812_v14, %v391_v33  ;;  %v392_v18 = vmul.f32 %v1783_v39, %v253_v9  ;;  %v254_v53 = vunpack.c.l.bf16 %v129_v13 }
 0x10c   :  { %v1000_v28 = vadd.f32 %v1834_v56, %v861_v37  ;;  %1381 = vst [vmem:[#allocation2 + $0x3a8] sm:$0xff] %v1253_v54  ;;  %v1254_v7 = vmax.f32 %v1126_v19, 0.0  ;;  %v1127_v30 = vadd.f32 %v999_v4, %v529_v29  ;;  %v724_v3 = vunpack.c.l.bf16 %v599_v20  ;;  %p1422_p3 = por %p1421_p2, %p1420_p1 }
 0x10d   :  { %v862_v44 = vmul.f32 %v1803_v49, %v723_v38  ;;  %v531_v50 = vadd.f32 %v1818_v16, %v392_v18  ;;  %v393_v41 = vmul.f32 %v1780_v40, %v254_v53  ;;  %v255_v23 = vunpack.c.h.bf16 %v129_v13 }
 0x10e   :  { %v1128_v57 = vadd.f32 %v1000_v28, %v530_v12  ;;  %1382 = vst [vmem:[#allocation2 + $0x3b0] sm:$0xff] %v1254_v7  ;;  %v1255_v61 = vmax.f32 %v1127_v30, 0.0  ;;  %v863_v25 = vmul.f32 %v1797_v59, %v724_v3  ;;  %v725_v52 = vunpack.c.h.bf16 %v599_v20  ;;  %p1423_p4 = pnand %p1422_p3, %p1416_p0 }
 0x10f   :  { %v1001_v42 = vadd.f32 %v1838_v17, %v862_v44  ;;  %v532_v46 = vadd.f32 %v1812_v14, %v393_v41  ;;  %v394_v55 = vmul.f32 %v1783_v39, %v255_v23  ;;  %v256_v2 = vunpack.c.l.bf16 %v130_v6 }
 0x110   :  { %v1256_v58 = vmax.f32 %v1128_v57, 0.0  ;;  %1383 = vst [vmem:[#allocation2 + $0x3b8] sm:$0xff] %v1255_v61  ;;  %v1002_v32 = vadd.f32 %v1834_v56, %v863_v25  ;;  %v864_v24 = vmul.f32 %v1803_v49, %v725_v52  ;;  %v726_v51 = vunpack.c.l.bf16 %v600_v22 }
 0x111   :  { %v1129_v26 = vadd.f32 %v1001_v42, %v531_v50  ;;  %v533_v8 = vadd.f32 %v1818_v16, %v394_v55  ;;  %v395_v31 = vmul.f32 %v1780_v40, %v256_v2  ;;  %v257_v34 = vunpack.c.h.bf16 %v130_v6 }
 0x112   :  { %1384 = vst [vmem:[#allocation2 + $0x3c0] sm:$0xff] %v1256_v58  ;;  %v727_v35 = vunpack.c.h.bf16 %v600_v22  ;;  %v1130_v1 = vadd.f32 %v1002_v32, %v532_v46  ;;  %v1003_v45 = vadd.f32 %v1838_v17, %v864_v24  ;;  %v865_v47 = vmul.f32 %v1797_v59, %v726_v51 }
 0x113   :  { %v1257_v63 = vmax.f32 %v1129_v26, 0.0  ;;  %v534_v10 = vadd.f32 %v1812_v14, %v395_v31  ;;  %v396_v27 = vmul.f32 %v1783_v39, %v257_v34  ;;  %v258_v11 = vunpack.c.l.bf16 %v131_v43 }
 0x114   :  { %v866_v48 = vmul.f32 %v1803_v49, %v727_v35  ;;  %v1258_v62 = vmax.f32 %v1130_v1, 0.0  ;;  %v1131_v36 = vadd.f32 %v1003_v45, %v533_v8  ;;  %v1004_v0 = vadd.f32 %v1834_v56, %v865_v47 }
 0x115   :  { %1385 = vst [vmem:[#allocation2 + $0x3c8] sm:$0xff] %v1257_v63  ;;  %v728_v60 = vunpack.c.l.bf16 %v601_v21  ;;  %v535_v15 = vadd.f32 %v1818_v16, %v396_v27  ;;  %v397_v13 = vmul.f32 %v1780_v40, %v258_v11  ;;  %v259_v29 = vunpack.c.h.bf16 %v131_v43 }
 0x116   :  { %v1005_v5 = vadd.f32 %v1838_v17, %v866_v48  ;;  %1386 = vst [vmem:[#allocation2 + $0x3d0] sm:$0xff] %v1258_v62  ;;  %v1259_v33 = vmax.f32 %v1131_v36, 0.0  ;;  %v1132_v37 = vadd.f32 %v1004_v0, %v534_v10  ;;  %v729_v20 = vunpack.c.h.bf16 %v601_v21 }
 0x117   :  { %v867_v9 = vmul.f32 %v1797_v59, %v728_v60  ;;  %v536_v19 = vadd.f32 %v1812_v14, %v397_v13  ;;  %v398_v4 = vmul.f32 %v1783_v39, %v259_v29 }
 0x118   :  { %v1133_v54 = vadd.f32 %v1005_v5, %v535_v15  ;;  %1387 = vst [vmem:[#allocation2 + $0x3d8] sm:$0xff] %v1259_v33  ;;  %v1260_v38 = vmax.f32 %v1132_v37, 0.0  ;;  %v868_v28 = vmul.f32 %v1803_v49, %v729_v20 }
 0x119   :  { %v1006_v12 = vadd.f32 %v1834_v56, %v867_v9  ;;  %v537_v40 = vadd.f32 %v1818_v16, %v398_v4 }
 0x11a   :  { %v1261_v18 = vmax.f32 %v1133_v54, 0.0  ;;  %1388 = vst [vmem:[#allocation2 + $0x3e0] sm:$0xff] %v1260_v38  ;;  %v1007_v7 = vadd.f32 %v1838_v17, %v868_v28 }
 0x11b   :  { %v1134_v53 = vadd.f32 %v1006_v12, %v536_v19 }
 0x11c   :  { %1389 = vst [vmem:[#allocation2 + $0x3e8] sm:$0xff] %v1261_v18  ;;  %v1135_v14 = vadd.f32 %v1007_v7, %v537_v40 }
 0x11d   :  { %v1262_v59 = vmax.f32 %v1134_v53, 0.0 }
 0x11e   :  { %v1263_v39 = vmax.f32 %v1135_v14, 0.0 }
 0x11f   :  { %1390 = vst [vmem:[#allocation2 + $0x3f0] sm:$0xff] %v1262_v59 }
 0x120   :  { %1391 = vst [vmem:[#allocation2 + $0x3f8] sm:$0xff] %v1263_v39 }
 0x121   :  { %1426 = shalt.err (!%p1423_p4)
}
 0x122   :  { %s1427_s19 = scalar_lea.hbm %s2765_s10, 16384 }
 0x123   :  { %p1428_p5 = scmp.ne.s32.totalorder %s2765_s10, %s1427_s19  ;;  %p1431_p6 = scmp.lt.u32.totalorder %s1427_s19, %s2765_s10 }
 0x125   :  { %p1433_p7 = pnand %p1431_p6, %p1428_p5 }
 0x127   :  { %1436 = shalt.err (!%p1433_p7)
}
 0x128   :  { %s1440_s21 = smov 256   ;;  %s1441_s22 = smov 16  }
 0x129   :  { %1403 = dma.vmem_to_hbm [thread:$0]  %s1398_s1, 16384, %s2765_s10, [#allocation3], %s1440_s21, %s1440_s21, %s1441_s22  }
 0x12a   :  { %1437 = dma.done.wait [#allocation3], 16384  }
 0x12b   :  { %1438 = vsyncadd [#allocation3], 4294950912 }
 0x12c   :  { %1407 = vsyncpa [#allocation3], 1 }

// kernel: resnext_bottleneck_c.6
= control target key start
LH: loop header
LB: loop body
LE: loop exit
PB: predicated region body
PF: predicated region fallthrough
CT: control target
= control target key end

     0   :  { %v3736_v1 = vmov 0   ;;  %vm42_vm0 = vcmask 1040384   ;;  %s4876_s7 = inlined_call_operand.vmem [shape: bf16[128,256], index: 7, kind: input, shape index: {}]   ;;  %s4877_s6 = inlined_call_operand.vmem [shape: bf16[128,256], index: 6, kind: input, shape index: {}]   ;;  %s4878_s2 = inlined_call_operand.vmem [shape: f32[2,1,128], index: 2, kind: input, shape index: {}]   ;;  %s4879_s3 = inlined_call_operand.vmem [shape: f32[2,1,128], index: 3, kind: input, shape index: {}]   ;;  %s4880_s1 = inlined_call_operand.vmem [shape: f32[512,128], index: 1, kind: input, shape index: {}]   ;;  %s4881_s0 = inlined_call_operand.vmem [shape: bf16[512,128], index: 0, kind: input, shape index: {}]   ;;  %s4882_s4 = inlined_call_operand.vmem [shape: f32[1,128], index: 4, kind: input, shape index: {}]   ;;  %s4883_s5 = inlined_call_operand.vmem [shape: f32[1,128], index: 5, kind: input, shape index: {}]   ;;  %s4884_s11 = inlined_call_operand.vmem [shape: bf16[512,256], index: 11, kind: output, shape index: {3}]   ;;  %s4885_s8 = inlined_call_operand.vmem [shape: bf16[512,256], index: 8, kind: output, shape index: {0}]   ;;  %s4886_s12 = inlined_call_operand.vmem [shape: f32[1,1,256], index: 12, kind: output, shape index: {4}]   ;;  %s4887_s13 = inlined_call_operand.vmem [shape: f32[1,1,256], index: 13, kind: output, shape index: {5}]   ;;  %s4888_s9 = inlined_call_operand.vmem [shape: f32[1,1,256], index: 9, kind: output, shape index: {1}]   ;;  %s4889_s10 = inlined_call_operand.vmem [shape: f32[1,1,256], index: 10, kind: output, shape index: {2}]  }
   0x1   :  { %v3686_v0 = vld [vmem:[%s4876_s7 + $0x4] ss:$8 sps:$4 sm:$0xff]   ;;  %2002 = vmatprep.mubr.bf16.mxu1 %v3736_v1  ;;  %563 = vmatprep.mubr.bf16.mxu0 %v3736_v1  ;;  %v3688_v2 = vld [vmem:[%s4876_s7] ss:$8 sps:$4 sm:$0xff]   ;;  %v3689_v3 = vld [vmem:[%s4876_s7 + $0x14] ss:$8 sps:$4 sm:$0xff]  }
   0x2   :  { %1970 = vmatprep.subr.bf16.mxu1 %v3686_v0  ;;  %v3691_v4 = vld [vmem:[%s4876_s7 + $0x10] ss:$8 sps:$4 sm:$0xff]   ;;  %v3692_v5 = vld [vmem:[%s4876_s7 + $0x24] ss:$8 sps:$4 sm:$0xff]   ;;  %v3694_v7 = vld [vmem:[%s4876_s7 + $0x20] ss:$8 sps:$4 sm:$0xff]  }
   0x3   :  { %1971 = vmatpush1.bf16.msra.mxu1 %v3688_v2  ;;  %v3698_v6 = vld [vmem:[%s4877_s6 + $0x4] ss:$8 sps:$4 sm:$0xff]   ;;  %v3695_v8 = vld [vmem:[%s4876_s7 + $0x34] ss:$8 sps:$4 sm:$0xff]   ;;  %v3702_v9 = vld [vmem:[%s4877_s6] ss:$8 sps:$4 sm:$0xff]  }
   0x4   :  { %1972 = vmatprep.subr.bf16.mxu1 %v3689_v3  ;;  %531 = vmatprep.subr.bf16.mxu0 %v3698_v6  ;;  %v3704_v10 = vld [vmem:[%s4877_s6 + $0x14] ss:$8 sps:$4 sm:$0xff]   ;;  %v3697_v11 = vld [vmem:[%s4876_s7 + $0x30] ss:$8 sps:$4 sm:$0xff]   ;;  %v3710_v13 = vld [vmem:[%s4877_s6 + $0x24] ss:$8 sps:$4 sm:$0xff]  }
   0x5   :  { %532 = vmatpush1.bf16.msra.mxu0 %v3702_v9  ;;  %v3708_v12 = vld [vmem:[%s4877_s6 + $0x10] ss:$8 sps:$4 sm:$0xff]   ;;  %v3700_v14 = vld [vmem:[%s4876_s7 + $0x44] ss:$8 sps:$4 sm:$0xff]   ;;  %v3714_v15 = vld [vmem:[%s4877_s6 + $0x20] ss:$8 sps:$4 sm:$0xff]  }
   0x6   :  { %533 = vmatprep.subr.bf16.mxu0 %v3704_v10  ;;  %v3716_v16 = vld [vmem:[%s4877_s6 + $0x34] ss:$8 sps:$4 sm:$0xff]   ;;  %v3703_v17 = vld [vmem:[%s4876_s7 + $0x40] ss:$8 sps:$4 sm:$0xff]   ;;  %v3720_v19 = vld [vmem:[%s4877_s6 + $0x30] ss:$8 sps:$4 sm:$0xff]  }
   0x7   :  { %1973 = vmatpush1.bf16.msra.mxu1 %v3691_v4  ;;  %v3706_v18 = vld [vmem:[%s4876_s7 + $0x54] ss:$8 sps:$4 sm:$0xff]   ;;  %v3722_v20 = vld [vmem:[%s4877_s6 + $0x44] ss:$8 sps:$4 sm:$0xff]   ;;  %v3709_v21 = vld [vmem:[%s4876_s7 + $0x50] ss:$8 sps:$4 sm:$0xff]  }
   0x8   :  { %1974 = vmatprep.subr.bf16.mxu1 %v3692_v5  ;;  %v3712_v22 = vld [vmem:[%s4876_s7 + $0x64] ss:$8 sps:$4 sm:$0xff]   ;;  %v3724_v23 = vld [vmem:[%s4877_s6 + $0x40] ss:$8 sps:$4 sm:$0xff]   ;;  %v3725_v25 = vld [vmem:[%s4877_s6 + $0x54] ss:$8 sps:$4 sm:$0xff]  }
   0x9   :  { %534 = vmatpush1.bf16.msra.mxu0 %v3708_v12  ;;  %v3715_v24 = vld [vmem:[%s4876_s7 + $0x60] ss:$8 sps:$4 sm:$0xff]   ;;  %v3718_v30 = vld [vmem:[%s4876_s7 + $0x74] ss:$8 sps:$4 sm:$0xff]   ;;  %v3727_v33 = vld [vmem:[%s4877_s6 + $0x50] ss:$8 sps:$4 sm:$0xff]  }
   0xa   :  { %535 = vmatprep.subr.bf16.mxu0 %v3710_v13  ;;  %v36_v26 = vld [vmem:[%s4878_s2] sm:$0x1]  ;;  %v37_v27 = vld [vmem:[%s4878_s2 + $0x1] sm:$0x1]  ;;  %v3728_v37 = vld [vmem:[%s4877_s6 + $0x64] ss:$8 sps:$4 sm:$0xff]  }
   0xb   :  { %1975 = vmatpush1.bf16.msra.mxu1 %v3694_v7  ;;  %v38_v28 = vld [vmem:[%s4879_s3] sm:$0x1]  ;;  %v39_v29 = vld [vmem:[%s4879_s3 + $0x1] sm:$0x1]  ;;  %v43_v31 = vsel %vm42_vm0, %v36_v26, 0.0  ;;  %v44_v32 = vsel %vm42_vm0, %v37_v27, 0.0  ;;  %v200_v7 = vlaneseq }
   0xc   :  { %1976 = vmatprep.subr.bf16.mxu1 %v3695_v8  ;;  %v45_v34 = vadd.f32 %v44_v32, %v43_v31  ;;  %v52_v35 = vsel %vm42_vm0, %v38_v28, 0.0  ;;  %v53_v36 = vsel %vm42_vm0, %v39_v29, 0.0  ;;  %v3721_v39 = vld [vmem:[%s4876_s7 + $0x70] ss:$8 sps:$4 sm:$0xff]   ;;  %v1778_v40 = vld [vmem:[%s4880_s1] sm:$0xff]  ;;  %v1779_v41 = vld [vmem:[%s4880_s1 + $0x8] sm:$0xff] }
   0xd   :  { %536 = vmatpush1.bf16.msra.mxu0 %v3714_v15  ;;  %v54_v38 = vadd.f32 %v53_v36, %v52_v35  ;;  %v3730_v44 = vld [vmem:[%s4877_s6 + $0x60] ss:$8 sps:$4 sm:$0xff]   ;;  %v1842_v46 = vpack.c.bf16 %v1779_v41, %v1778_v40  ;;  %v3731_v47 = vld [vmem:[%s4877_s6 + $0x74] ss:$8 sps:$4 sm:$0xff]   ;;  %v3733_v51 = vld [vmem:[%s4877_s6 + $0x70] ss:$8 sps:$4 sm:$0xff]  }
   0xe   :  { %537 = vmatprep.subr.bf16.mxu0 %v3716_v16  ;;  %v46_v42 = vrot.slane %v45_v34, 4  ;;  %v1780_v54 = vld [vmem:[%s4880_s1 + $0x10] sm:$0xff]  ;;  %v1781_v55 = vld [vmem:[%s4880_s1 + $0x18] sm:$0xff]  ;;  %v1782_v2 = vld [vmem:[%s4880_s1 + $0x20] sm:$0xff]  ;;  %v3950_v10 = vshrl.u32 %v200_v7, 7  ;;  %vm4826_vm1 = vcmp.lt.s32.totalorder %v200_v7, 256 }
   0xf   :  { %1977 = vmatpush1.bf16.msra.mxu1 %v3697_v11  ;;  %v55_v43 = vrot.slane %v54_v38, 4  ;;  %v1843_v59 = vpack.c.bf16 %v1781_v55, %v1780_v54  ;;  %v1783_v3 = vld [vmem:[%s4880_s1 + $0x28] sm:$0xff]  ;;  %v1784_v8 = vld [vmem:[%s4880_s1 + $0x30] sm:$0xff]  ;;  %v1785_v9 = vld [vmem:[%s4880_s1 + $0x38] sm:$0xff] }
  0x10   :  { %1978 = vmatprep.subr.bf16.mxu1 %v3700_v14  ;;  %v47_v45 = vadd.f32 %v46_v42, %v45_v34  ;;  %v1844_v5 = vpack.c.bf16 %v1783_v3, %v1782_v2  ;;  %v1845_v11 = vpack.c.bf16 %v1785_v9, %v1784_v8  ;;  %v40_v12 = vld [vmem:[%s4882_s4] sm:$0x1]  ;;  %v202_v14 = vsub.s32 0, %v3950_v10  ;;  %v3653_v15 = vld [vmem:[%s4881_s0 + $0x8] sm:$0xff]   ;;  %v3654_v34 = vld [vmem:[%s4881_s0 + $0x10] sm:$0xff]  }
  0x11   :  { %538 = vmatpush1.bf16.msra.mxu0 %v3720_v19  ;;  %v56_v48 = vadd.f32 %v55_v43, %v54_v38  ;;  %v3526_v13 = vld [vmem:[%s4881_s0] sm:$0xff]   ;;  %v3532_v26 = vunpack.c.h.bf16 %v3653_v15  ;;  %v1788_v35 = vld [vmem:[%s4880_s1 + $0x50] sm:$0xff]  ;;  %v1789_v36 = vld [vmem:[%s4880_s1 + $0x58] sm:$0xff]  ;;  %v3536_v40 = vunpack.c.h.bf16 %v3654_v34 }
  0x12   :  { %539 = vmatprep.subr.bf16.mxu0 %v3722_v20  ;;  %v48_v49 = vrot.slane %v47_v45, 2  ;;  %v3527_v20 = vunpack.c.l.bf16 %v3526_v13  ;;  %v1847_v41 = vpack.c.bf16 %v1789_v36, %v1788_v35  ;;  %v1792_v2 = vld [vmem:[%s4880_s1 + $0x70] sm:$0xff]  ;;  %v1793_v3 = vld [vmem:[%s4880_s1 + $0x78] sm:$0xff] }
  0x13   :  { %1979 = vmatpush1.bf16.msra.mxu1 %v3703_v17  ;;  %v57_v50 = vrot.slane %v56_v48, 2  ;;  %v1786_v17 = vld [vmem:[%s4880_s1 + $0x40] sm:$0xff] }
  0x14   :  { %1980 = vmatprep.subr.bf16.mxu1 %v3706_v18  ;;  %v49_v52 = vadd.f32 %v48_v49, %v47_v45  ;;  %v1787_v18 = vld [vmem:[%s4880_s1 + $0x48] sm:$0xff] }
  0x15   :  { %540 = vmatpush1.bf16.msra.mxu0 %v3724_v23  ;;  %v58_v53 = vadd.f32 %v57_v50, %v56_v48  ;;  %v3531_v23 = vunpack.c.l.bf16 %v3653_v15  ;;  %v1846_v27 = vpack.c.bf16 %v1787_v18, %v1786_v17  ;;  %v1794_v17 = vld [vmem:[%s4880_s1 + $0x80] sm:$0xff]  ;;  %v1795_v18 = vld [vmem:[%s4880_s1 + $0x88] sm:$0xff] }
  0x16   :  { %541 = vmatprep.subr.bf16.mxu0 %v3725_v25  ;;  %v50_v56 = vrot.slane %v49_v52, 1 }
  0x17   :  { %1981 = vmatpush1.bf16.msra.mxu1 %v3709_v21  ;;  %v59_v57 = vrot.slane %v58_v53, 1  ;;  %v3528_v21 = vunpack.c.h.bf16 %v3526_v13 }
  0x18   :  { %1982 = vmatprep.subr.bf16.mxu1 %v3712_v22  ;;  %v51_v58 = vadd.f32 %v50_v56, %v49_v52  ;;  %v41_v22 = vld [vmem:[%s4883_s5] sm:$0x1] }
  0x19   :  { %542 = vmatpush1.bf16.msra.mxu0 %v3727_v33  ;;  %v60_v60 = vadd.f32 %v59_v57, %v58_v53  ;;  %v1790_v52 = vld [vmem:[%s4880_s1 + $0x60] sm:$0xff]  ;;  %v1791_v53 = vld [vmem:[%s4880_s1 + $0x68] sm:$0xff] }
  0x1a   :  { %543 = vmatprep.subr.bf16.mxu0 %v3728_v37  ;;  %v61_v61 = vmul.f32 0.001953125, %v51_v58 }
  0x1b   :  { %1983 = vmatpush1.bf16.msra.mxu1 %v3715_v24  ;;  %v62_v62 = vmul.f32 0.001953125, %v60_v60 }
  0x1c   :  { %1984 = vmatprep.subr.bf16.mxu1 %v3718_v30  ;;  %v63_v63 = vmul.f32 %v61_v61, %v61_v61 }
  0x1d   :  { %544 = vmatpush1.bf16.msra.mxu0 %v3730_v44 }
  0x1e   :  { %545 = vmatprep.subr.bf16.mxu0 %v3731_v47  ;;  %v64_v0 = vsub.f32 %v62_v62, %v63_v63 }
  0x1f   :  { %1985 = vmatpush1.bf16.msra.mxu1 %v3721_v39  ;;  %v3535_v39 = vunpack.c.l.bf16 %v3654_v34 }
  0x20   :  { %v65_v4 = vmax.f32 %v64_v0, 0.0  ;;  %v3656_v0 = vld [vmem:[%s4881_s0 + $0x20] sm:$0xff]  }
  0x21   :  { %546 = vmatpush1.bf16.msra.mxu0 %v3733_v51  ;;  %v3655_v51 = vld [vmem:[%s4881_s0 + $0x18] sm:$0xff]  }
  0x22   :  { %2003 = vmatmul.mubr.bf16.vlgmr.msra.gmra.mrb[0].mxu1 %v1842_v46  ;;  %v66_v6 = vadd.f32 1e-05, %v65_v4  ;;  %v3539_v54 = vunpack.c.l.bf16 %v3655_v51  ;;  %v3540_v55 = vunpack.c.h.bf16 %v3655_v51  ;;  %v3543_v4 = vunpack.c.l.bf16 %v3656_v0 }
  0x23   :  { %2012 = vmatprep.mubr.bf16.mxu1 %v3736_v1 }
  0x24   :  { %3734 = vrsqrt.f32 %v66_v6 }
  0x2a   :  { %2013 = vmatmul.mubr.bf16.gmra.mrb[4].mxu1 %v1843_v59  ;;  %v1848_v59 = vpack.c.bf16 %v1791_v53, %v1790_v52 }
  0x2b   :  { %2022 = vmatprep.mubr.bf16.mxu1 %v3736_v1 }
  0x2e   :  { %v3735_v16 = vpop.eup %3734 }
  0x2f   :  { %v68_v19 = vmul.f32 %v3735_v16, %v40_v12  ;;  %v3657_v16 = vld [vmem:[%s4881_s0 + $0x28] sm:$0xff]  }
  0x31   :  { %v69_v24 = vmul.f32 %v68_v19, %v61_v61  ;;  %v3972_v25 = vrot.slane %v68_v19, %v202_v14  ;;  %v3547_v19 = vunpack.c.l.bf16 %v3657_v16 }
  0x32   :  { %2023 = vmatmul.mubr.bf16.gmra.mrb[8].mxu1 %v1844_v5  ;;  %v3544_v5 = vunpack.c.h.bf16 %v3656_v0 }
  0x33   :  { %2032 = vmatprep.mubr.bf16.mxu1 %v3736_v1  ;;  %v70_v28 = vsub.f32 %v41_v22, %v69_v24  ;;  %v205_v29 = vmul.f32 %v3527_v20, %v3972_v25  ;;  %v206_v30 = vmul.f32 %v3528_v21, %v3972_v25  ;;  %v207_v32 = vmul.f32 %v3531_v23, %v3972_v25 }
  0x34   :  { %v208_v33 = vmul.f32 %v3532_v26, %v3972_v25  ;;  %v209_v49 = vmul.f32 %v3535_v39, %v3972_v25  ;;  %v210_v50 = vmul.f32 %v3536_v40, %v3972_v25  ;;  %v211_v62 = vmul.f32 %v3539_v54, %v3972_v25 }
  0x35   :  { %v3976_v31 = vrot.slane %v70_v28, %v202_v14  ;;  %v212_v63 = vmul.f32 %v3540_v55, %v3972_v25  ;;  %v213_v14 = vmul.f32 %v3543_v4, %v3972_v25  ;;  %v214_v15 = vmul.f32 %v3544_v5, %v3972_v25 }
  0x36   :  { %v3548_v20 = vunpack.c.h.bf16 %v3657_v16  ;;  %v1850_v24 = vpack.c.bf16 %v1795_v18, %v1794_v17  ;;  %v215_v28 = vmul.f32 %v3547_v19, %v3972_v25 }
  0x37   :  { %v275_v37 = vadd.f32 %v3976_v31, %v205_v29  ;;  %v276_v38 = vadd.f32 %v3976_v31, %v206_v30  ;;  %v277_v44 = vadd.f32 %v3976_v31, %v207_v32  ;;  %v278_v45 = vadd.f32 %v3976_v31, %v208_v33  ;;  %v3658_v30 = vld [vmem:[%s4881_s0 + $0x30] sm:$0xff]   ;;  %v1797_v33 = vld [vmem:[%s4880_s1 + $0x98] sm:$0xff] }
  0x38   :  { %v279_v57 = vadd.f32 %v3976_v31, %v209_v49  ;;  %v280_v58 = vadd.f32 %v3976_v31, %v210_v50  ;;  %v281_v8 = vadd.f32 %v3976_v31, %v211_v62  ;;  %v282_v9 = vadd.f32 %v3976_v31, %v212_v63  ;;  %v1796_v32 = vld [vmem:[%s4880_s1 + $0x90] sm:$0xff] }
  0x39   :  { %v339_v42 = vmax.f32 %v275_v37, 0.0  ;;  %v340_v43 = vmax.f32 %v276_v38, 0.0  ;;  %v341_v47 = vmax.f32 %v277_v44, 0.0  ;;  %v342_v48 = vmax.f32 %v278_v45, 0.0  ;;  %v3659_v44 = vld [vmem:[%s4881_s0 + $0x38] sm:$0xff]   ;;  %v1798_v45 = vld [vmem:[%s4880_s1 + $0xa0] sm:$0xff] }
  0x3a   :  { %2033 = vmatmul.mubr.bf16.gmra.mrb[12].mxu1 %v1845_v11  ;;  %v343_v60 = vmax.f32 %v279_v57, 0.0  ;;  %v344_v61 = vmax.f32 %v280_v58, 0.0  ;;  %v1849_v11 = vpack.c.bf16 %v1793_v3, %v1792_v2  ;;  %v345_v12 = vmax.f32 %v281_v8, 0.0  ;;  %v3660_v57 = vld [vmem:[%s4881_s0 + $0x40] sm:$0xff]   ;;  %v1800_v58 = vld [vmem:[%s4880_s1 + $0xb0] sm:$0xff]  ;;  %v3661_v8 = vld [vmem:[%s4881_s0 + $0x48] sm:$0xff]  }
  0x3b   :  { %2042 = vmatprep.mubr.bf16.mxu1 %v3736_v1  ;;  %v403_v46 = vpack.c.bf16 %v340_v43, %v339_v42  ;;  %v404_v56 = vpack.c.bf16 %v342_v48, %v341_v47  ;;  %v346_v13 = vmax.f32 %v282_v9, 0.0  ;;  %v283_v22 = vadd.f32 %v3976_v31, %v213_v14  ;;  %v1802_v9 = vld [vmem:[%s4880_s1 + $0xc0] sm:$0xff] }
  0x3c   :  { %v405_v6 = vpack.c.bf16 %v344_v61, %v343_v60  ;;  %v284_v23 = vadd.f32 %v3976_v31, %v214_v15  ;;  %v216_v29 = vmul.f32 %v3548_v20, %v3972_v25  ;;  %v3551_v34 = vunpack.c.l.bf16 %v3658_v30 }
  0x3d   :  { %564 = vmatmul.mubr.bf16.vlgmr.msra.gmra.mrb[0].mxu0 %v403_v46  ;;  %v406_v21 = vpack.c.bf16 %v346_v13, %v345_v12  ;;  %v347_v26 = vmax.f32 %v283_v22, 0.0  ;;  %v3552_v35 = vunpack.c.h.bf16 %v3658_v30  ;;  %v285_v37 = vadd.f32 %v3976_v31, %v215_v28  ;;  %v1799_v46 = vld [vmem:[%s4880_s1 + $0xa8] sm:$0xff]  ;;  %v3662_v22 = vld [vmem:[%s4881_s0 + $0x50] sm:$0xff]  }
  0x3e   :  { %573 = vmatprep.mubr.bf16.mxu0 %v3736_v1  ;;  %v286_v38 = vadd.f32 %v3976_v31, %v216_v29  ;;  %v1851_v39 = vpack.c.bf16 %v1797_v33, %v1796_v32  ;;  %v217_v42 = vmul.f32 %v3551_v34, %v3972_v25  ;;  %v3555_v47 = vunpack.c.l.bf16 %v3659_v44 }
  0x3f   :  { %v349_v40 = vmax.f32 %v285_v37, 0.0  ;;  %v218_v43 = vmul.f32 %v3552_v35, %v3972_v25  ;;  %v3556_v48 = vunpack.c.h.bf16 %v3659_v44  ;;  %v1852_v52 = vpack.c.bf16 %v1799_v46, %v1798_v45  ;;  %v3663_v37 = vld [vmem:[%s4881_s0 + $0x58] sm:$0xff]  }
  0x40   :  { %v287_v50 = vadd.f32 %v3976_v31, %v217_v42  ;;  %v219_v55 = vmul.f32 %v3555_v47, %v3972_v25  ;;  %v3559_v60 = vunpack.c.l.bf16 %v3660_v57  ;;  %v3560_v61 = vunpack.c.h.bf16 %v3660_v57 }
  0x41   :  { %v288_v51 = vadd.f32 %v3976_v31, %v218_v43  ;;  %v3563_v12 = vunpack.c.l.bf16 %v3661_v8  ;;  %v3564_v13 = vunpack.c.h.bf16 %v3661_v8 }
  0x42   :  { %2043 = vmatmul.mubr.bf16.gmra.mrb[16].mxu1 %v1846_v27  ;;  %v348_v27 = vmax.f32 %v284_v23, 0.0  ;;  %v351_v53 = vmax.f32 %v287_v50, 0.0  ;;  %v289_v63 = vadd.f32 %v3976_v31, %v219_v55  ;;  %v221_v5 = vmul.f32 %v3559_v60, %v3972_v25  ;;  %v1804_v23 = vld [vmem:[%s4880_s1 + $0xd0] sm:$0xff]  ;;  %v3664_v50 = vld [vmem:[%s4881_s0 + $0x60] sm:$0xff]  }
  0x43   :  { %2052 = vmatprep.mubr.bf16.mxu1 %v3736_v1  ;;  %v352_v54 = vmax.f32 %v288_v51, 0.0  ;;  %v223_v20 = vmul.f32 %v3563_v12, %v3972_v25  ;;  %v1808_v51 = vld [vmem:[%s4880_s1 + $0xf0] sm:$0xff] }
  0x44   :  { %v407_v36 = vpack.c.bf16 %v348_v27, %v347_v26  ;;  %v353_v3 = vmax.f32 %v289_v63, 0.0  ;;  %v291_v15 = vadd.f32 %v3976_v31, %v221_v5  ;;  %v3567_v26 = vunpack.c.l.bf16 %v3662_v22  ;;  %v3665_v63 = vld [vmem:[%s4881_s0 + $0x68] sm:$0xff]  }
  0x45   :  { %574 = vmatmul.mubr.bf16.gmra.mrb[4].mxu0 %v404_v56  ;;  %v220_v56 = vmul.f32 %v3556_v48, %v3972_v25  ;;  %v409_v62 = vpack.c.bf16 %v352_v54, %v351_v53  ;;  %v3568_v27 = vunpack.c.h.bf16 %v3662_v22  ;;  %v293_v29 = vadd.f32 %v3976_v31, %v223_v20 }
  0x46   :  { %583 = vmatprep.mubr.bf16.mxu0 %v3736_v1  ;;  %v355_v18 = vmax.f32 %v291_v15, 0.0  ;;  %v225_v35 = vmul.f32 %v3567_v26, %v3972_v25  ;;  %v3575_v53 = vunpack.c.l.bf16 %v3664_v50  ;;  %v3576_v54 = vunpack.c.h.bf16 %v3664_v50  ;;  %v3666_v15 = vld [vmem:[%s4881_s0 + $0x70] sm:$0xff]  }
  0x47   :  { %v290_v0 = vadd.f32 %v3976_v31, %v220_v56  ;;  %v357_v33 = vmax.f32 %v293_v29, 0.0  ;;  %v3667_v29 = vld [vmem:[%s4881_s0 + $0x78] sm:$0xff]  }
  0x48   :  { %v295_v43 = vadd.f32 %v3976_v31, %v225_v35 }
  0x49   :  { %v354_v4 = vmax.f32 %v290_v0, 0.0  ;;  %v1810_v0 = vld [vmem:[%s4880_s1 + $0x100] sm:$0xff] }
  0x4a   :  { %2053 = vmatmul.mubr.bf16.gmra.mrb[20].mxu1 %v1847_v41  ;;  %v350_v41 = vmax.f32 %v286_v38, 0.0  ;;  %v1806_v38 = vld [vmem:[%s4880_s1 + $0xe0] sm:$0xff]  ;;  %v359_v46 = vmax.f32 %v295_v43, 0.0 }
  0x4b   :  { %2062 = vmatprep.mubr.bf16.mxu1 %v3736_v1  ;;  %v410_v14 = vpack.c.bf16 %v354_v4, %v353_v3  ;;  %v3579_v3 = vunpack.c.l.bf16 %v3665_v63  ;;  %v3580_v4 = vunpack.c.h.bf16 %v3665_v63  ;;  %v3668_v43 = vld [vmem:[%s4881_s0 + $0x80] sm:$0xff]  }
  0x4c   :  { %v408_v49 = vpack.c.bf16 %v350_v41, %v349_v40  ;;  %v3571_v40 = vunpack.c.l.bf16 %v3663_v37  ;;  %v3572_v41 = vunpack.c.h.bf16 %v3663_v37  ;;  %v3592_v50 = vunpack.c.h.bf16 %v3668_v43 }
  0x4d   :  { %584 = vmatmul.mubr.bf16.gmra.mrb[8].mxu0 %v405_v6  ;;  %v222_v6 = vmul.f32 %v3560_v61, %v3972_v25  ;;  %v229_v61 = vmul.f32 %v3575_v53, %v3972_v25 }
  0x4e   :  { %593 = vmatprep.mubr.bf16.mxu0 %v3736_v1  ;;  %v227_v48 = vmul.f32 %v3571_v40, %v3972_v25 }
  0x4f   :  { %v292_v16 = vadd.f32 %v3976_v31, %v222_v6  ;;  %v299_v6 = vadd.f32 %v3976_v31, %v229_v61 }
  0x50   :  { %v297_v56 = vadd.f32 %v3976_v31, %v227_v48 }
  0x51   :  { %v356_v19 = vmax.f32 %v292_v16, 0.0  ;;  %v1812_v16 = vld [vmem:[%s4880_s1 + $0x110] sm:$0xff] }
  0x52   :  { %2063 = vmatmul.mubr.bf16.gmra.mrb[24].mxu1 %v1848_v59  ;;  %v1801_v59 = vld [vmem:[%s4880_s1 + $0xb8] sm:$0xff] }
  0x53   :  { %2072 = vmatprep.mubr.bf16.mxu1 %v3736_v1  ;;  %v1853_v2 = vpack.c.bf16 %v1801_v59, %v1800_v58  ;;  %v411_v28 = vpack.c.bf16 %v356_v19, %v355_v18  ;;  %v361_v59 = vmax.f32 %v297_v56, 0.0  ;;  %v3583_v18 = vunpack.c.l.bf16 %v3666_v15  ;;  %v3669_v56 = vld [vmem:[%s4881_s0 + $0x88] sm:$0xff]  }
  0x54   :  { %v3584_v19 = vunpack.c.h.bf16 %v3666_v15 }
  0x55   :  { %594 = vmatmul.mubr.bf16.gmra.mrb[12].mxu0 %v406_v21  ;;  %v224_v21 = vmul.f32 %v3564_v13, %v3972_v25  ;;  %v231_v13 = vmul.f32 %v3579_v3, %v3972_v25 }
  0x56   :  { %603 = vmatprep.mubr.bf16.mxu0 %v3736_v1 }
  0x57   :  { %v294_v30 = vadd.f32 %v3976_v31, %v224_v21  ;;  %v301_v21 = vadd.f32 %v3976_v31, %v231_v13 }
  0x59   :  { %v358_v34 = vmax.f32 %v294_v30, 0.0  ;;  %v1814_v30 = vld [vmem:[%s4880_s1 + $0x120] sm:$0xff] }
  0x5a   :  { %2073 = vmatmul.mubr.bf16.gmra.mrb[28].mxu1 %v1849_v11  ;;  %v1803_v11 = vld [vmem:[%s4880_s1 + $0xc8] sm:$0xff] }
  0x5b   :  { %2082 = vmatprep.mubr.bf16.mxu1 %v3736_v1  ;;  %v1854_v17 = vpack.c.bf16 %v1803_v11, %v1802_v9  ;;  %v412_v42 = vpack.c.bf16 %v358_v34, %v357_v33  ;;  %v363_v11 = vmax.f32 %v299_v6, 0.0  ;;  %v3587_v33 = vunpack.c.l.bf16 %v3667_v29  ;;  %v3670_v6 = vld [vmem:[%s4881_s0 + $0x90] sm:$0xff]  }
  0x5c   :  { %v3588_v34 = vunpack.c.h.bf16 %v3667_v29 }
  0x5d   :  { %604 = vmatmul.mubr.bf16.gmra.mrb[16].mxu0 %v407_v36  ;;  %v226_v36 = vmul.f32 %v3568_v27, %v3972_v25  ;;  %v233_v27 = vmul.f32 %v3583_v18, %v3972_v25 }
  0x5e   :  { %613 = vmatprep.mubr.bf16.mxu0 %v3736_v1 }
  0x5f   :  { %v296_v44 = vadd.f32 %v3976_v31, %v226_v36  ;;  %v303_v36 = vadd.f32 %v3976_v31, %v233_v27 }
  0x61   :  { %v360_v47 = vmax.f32 %v296_v44, 0.0  ;;  %v367_v40 = vmax.f32 %v303_v36, 0.0  ;;  %v1816_v44 = vld [vmem:[%s4880_s1 + $0x130] sm:$0xff]  ;;  %v3672_v36 = vld [vmem:[%s4881_s0 + $0xa0] sm:$0xff]  }
  0x62   :  { %2083 = vmatmul.mubr.bf16.gmra.mrb[32].mxu1 %v1850_v24  ;;  %v1805_v24 = vld [vmem:[%s4880_s1 + $0xd8] sm:$0xff] }
  0x63   :  { %2092 = vmatprep.mubr.bf16.mxu1 %v3736_v1  ;;  %v1855_v32 = vpack.c.bf16 %v1805_v24, %v1804_v23  ;;  %v413_v55 = vpack.c.bf16 %v360_v47, %v359_v46  ;;  %v365_v24 = vmax.f32 %v301_v21, 0.0  ;;  %v3591_v47 = vunpack.c.l.bf16 %v3668_v43  ;;  %v3671_v21 = vld [vmem:[%s4881_s0 + $0x98] sm:$0xff]  }
  0x64   :  { %v3604_v29 = vunpack.c.h.bf16 %v3671_v21 }
  0x65   :  { %614 = vmatmul.mubr.bf16.gmra.mrb[20].mxu0 %v408_v49  ;;  %v228_v49 = vmul.f32 %v3572_v41, %v3972_v25 }
  0x66   :  { %623 = vmatprep.mubr.bf16.mxu0 %v3736_v1 }
  0x67   :  { %v298_v57 = vadd.f32 %v3976_v31, %v228_v49 }
  0x69   :  { %v362_v60 = vmax.f32 %v298_v57, 0.0  ;;  %v1818_v57 = vld [vmem:[%s4880_s1 + $0x140] sm:$0xff] }
  0x6a   :  { %2093 = vmatmul.mubr.bf16.gmra.mrb[36].mxu1 %v1851_v39  ;;  %v1807_v39 = vld [vmem:[%s4880_s1 + $0xe8] sm:$0xff] }
  0x6b   :  { %2102 = vmatprep.mubr.bf16.mxu1 %v3736_v1  ;;  %v1856_v45 = vpack.c.bf16 %v1807_v39, %v1806_v38  ;;  %v414_v5 = vpack.c.bf16 %v362_v60, %v361_v59  ;;  %v235_v39 = vmul.f32 %v3587_v33, %v3972_v25  ;;  %v3595_v59 = vunpack.c.l.bf16 %v3669_v56 }
  0x6c   :  { %v3596_v60 = vunpack.c.h.bf16 %v3669_v56 }
  0x6d   :  { %624 = vmatmul.mubr.bf16.gmra.mrb[24].mxu0 %v409_v62  ;;  %v230_v62 = vmul.f32 %v3576_v54, %v3972_v25  ;;  %v305_v46 = vadd.f32 %v3976_v31, %v235_v39  ;;  %v237_v54 = vmul.f32 %v3591_v47, %v3972_v25  ;;  %v3607_v39 = vunpack.c.l.bf16 %v3672_v36 }
  0x6e   :  { %633 = vmatprep.mubr.bf16.mxu0 %v3736_v1 }
  0x6f   :  { %v300_v8 = vadd.f32 %v3976_v31, %v230_v62  ;;  %v307_v62 = vadd.f32 %v3976_v31, %v237_v54  ;;  %v245_v47 = vmul.f32 %v3607_v39, %v3972_v25 }
  0x71   :  { %v364_v12 = vmax.f32 %v300_v8, 0.0  ;;  %v1820_v8 = vld [vmem:[%s4880_s1 + $0x150] sm:$0xff] }
  0x72   :  { %2103 = vmatmul.mubr.bf16.gmra.mrb[40].mxu1 %v1852_v52  ;;  %v1809_v52 = vld [vmem:[%s4880_s1 + $0xf8] sm:$0xff] }
  0x73   :  { %2112 = vmatprep.mubr.bf16.mxu1 %v3736_v1  ;;  %v1857_v58 = vpack.c.bf16 %v1809_v52, %v1808_v51  ;;  %v415_v20 = vpack.c.bf16 %v364_v12, %v363_v11  ;;  %v369_v52 = vmax.f32 %v305_v46, 0.0  ;;  %v3599_v11 = vunpack.c.l.bf16 %v3670_v6 }
  0x74   :  { %v3600_v12 = vunpack.c.h.bf16 %v3670_v6 }
  0x75   :  { %634 = vmatmul.mubr.bf16.gmra.mrb[28].mxu0 %v410_v14  ;;  %v232_v14 = vmul.f32 %v3580_v4, %v3972_v25  ;;  %v239_v4 = vmul.f32 %v3595_v59, %v3972_v25 }
  0x76   :  { %643 = vmatprep.mubr.bf16.mxu0 %v3736_v1 }
  0x77   :  { %v302_v22 = vadd.f32 %v3976_v31, %v232_v14  ;;  %v309_v14 = vadd.f32 %v3976_v31, %v239_v4 }
  0x79   :  { %v366_v26 = vmax.f32 %v302_v22, 0.0  ;;  %v373_v18 = vmax.f32 %v309_v14, 0.0  ;;  %v1822_v22 = vld [vmem:[%s4880_s1 + $0x160] sm:$0xff] }
  0x7a   :  { %2113 = vmatmul.mubr.bf16.gmra.mrb[44].mxu1 %v1853_v2  ;;  %v1811_v2 = vld [vmem:[%s4880_s1 + $0x108] sm:$0xff] }
  0x7b   :  { %2122 = vmatprep.mubr.bf16.mxu1 %v3736_v1  ;;  %v1858_v9 = vpack.c.bf16 %v1811_v2, %v1810_v0  ;;  %v416_v35 = vpack.c.bf16 %v366_v26, %v365_v24  ;;  %v371_v2 = vmax.f32 %v307_v62, 0.0  ;;  %v3603_v26 = vunpack.c.l.bf16 %v3671_v21  ;;  %v3674_v62 = vld [vmem:[%s4881_s0 + $0xb0] sm:$0xff]  }
  0x7c   :  { %v3616_v6 = vunpack.c.h.bf16 %v3674_v62 }
  0x7d   :  { %644 = vmatmul.mubr.bf16.gmra.mrb[32].mxu0 %v411_v28  ;;  %v234_v28 = vmul.f32 %v3584_v19, %v3972_v25 }
  0x7e   :  { %653 = vmatprep.mubr.bf16.mxu0 %v3736_v1  ;;  %v250_v14 = vmul.f32 %v3616_v6, %v3972_v25 }
  0x7f   :  { %v304_v37 = vadd.f32 %v3976_v31, %v234_v28 }
  0x81   :  { %v368_v41 = vmax.f32 %v304_v37, 0.0  ;;  %v1824_v37 = vld [vmem:[%s4880_s1 + $0x170] sm:$0xff] }
  0x82   :  { %2123 = vmatmul.mubr.bf16.gmra.mrb[48].mxu1 %v1854_v17  ;;  %v1813_v17 = vld [vmem:[%s4880_s1 + $0x118] sm:$0xff] }
  0x83   :  { %2132 = vmatprep.mubr.bf16.mxu1 %v3736_v1  ;;  %v1859_v23 = vpack.c.bf16 %v1813_v17, %v1812_v16  ;;  %v417_v48 = vpack.c.bf16 %v368_v41, %v367_v40  ;;  %v241_v17 = vmul.f32 %v3599_v11, %v3972_v25  ;;  %v3608_v40 = vunpack.c.h.bf16 %v3672_v36  ;;  %v1833_v36 = vld [vmem:[%s4880_s1 + $0x1b8] sm:$0xff] }
  0x85   :  { %654 = vmatmul.mubr.bf16.gmra.mrb[36].mxu0 %v412_v42  ;;  %v236_v42 = vmul.f32 %v3588_v34, %v3972_v25  ;;  %v311_v24 = vadd.f32 %v3976_v31, %v241_v17  ;;  %v243_v34 = vmul.f32 %v3603_v26, %v3972_v25  ;;  %v1830_v17 = vld [vmem:[%s4880_s1 + $0x1a0] sm:$0xff] }
  0x86   :  { %663 = vmatprep.mubr.bf16.mxu0 %v3736_v1 }
  0x87   :  { %v306_v49 = vadd.f32 %v3976_v31, %v236_v42  ;;  %v313_v42 = vadd.f32 %v3976_v31, %v243_v34 }
  0x89   :  { %v370_v53 = vmax.f32 %v306_v49, 0.0  ;;  %v3673_v49 = vld [vmem:[%s4881_s0 + $0xa8] sm:$0xff]  }
  0x8a   :  { %2133 = vmatmul.mubr.bf16.gmra.mrb[52].mxu1 %v1855_v32  ;;  %v1815_v32 = vld [vmem:[%s4880_s1 + $0x128] sm:$0xff] }
  0x8b   :  { %2142 = vmatprep.mubr.bf16.mxu1 %v3736_v1  ;;  %v1860_v38 = vpack.c.bf16 %v1815_v32, %v1814_v30  ;;  %v418_v61 = vpack.c.bf16 %v370_v53, %v369_v52  ;;  %v375_v32 = vmax.f32 %v311_v24, 0.0  ;;  %v3611_v52 = vunpack.c.l.bf16 %v3673_v49 }
  0x8c   :  { %v3612_v53 = vunpack.c.h.bf16 %v3673_v49 }
  0x8d   :  { %664 = vmatmul.mubr.bf16.gmra.mrb[40].mxu0 %v413_v55  ;;  %v238_v55 = vmul.f32 %v3592_v50, %v3972_v25  ;;  %v1826_v50 = vld [vmem:[%s4880_s1 + $0x180] sm:$0xff] }
  0x8e   :  { %673 = vmatprep.mubr.bf16.mxu0 %v3736_v1  ;;  %v248_v59 = vmul.f32 %v3612_v53, %v3972_v25 }
  0x8f   :  { %v308_v63 = vadd.f32 %v3976_v31, %v238_v55  ;;  %v315_v55 = vadd.f32 %v3976_v31, %v245_v47 }
  0x91   :  { %v372_v3 = vmax.f32 %v308_v63, 0.0  ;;  %v1828_v63 = vld [vmem:[%s4880_s1 + $0x190] sm:$0xff] }
  0x92   :  { %2143 = vmatmul.mubr.bf16.gmra.mrb[56].mxu1 %v1856_v45  ;;  %v1817_v45 = vld [vmem:[%s4880_s1 + $0x138] sm:$0xff] }
  0x93   :  { %2152 = vmatprep.mubr.bf16.mxu1 %v3736_v1  ;;  %v1861_v51 = vpack.c.bf16 %v1817_v45, %v1816_v44  ;;  %v419_v13 = vpack.c.bf16 %v372_v3, %v371_v2  ;;  %v377_v45 = vmax.f32 %v313_v42, 0.0  ;;  %v318_v3 = vadd.f32 %v3976_v31, %v248_v59 }
  0x95   :  { %674 = vmatmul.mubr.bf16.gmra.mrb[44].mxu0 %v414_v5  ;;  %v240_v5 = vmul.f32 %v3596_v60, %v3972_v25  ;;  %v379_v60 = vmax.f32 %v315_v55, 0.0 }
  0x96   :  { %683 = vmatprep.mubr.bf16.mxu0 %v3736_v1 }
  0x97   :  { %v310_v15 = vadd.f32 %v3976_v31, %v240_v5  ;;  %v3615_v5 = vunpack.c.l.bf16 %v3674_v62 }
  0x99   :  { %v374_v19 = vmax.f32 %v310_v15, 0.0 }
  0x9a   :  { %2153 = vmatmul.mubr.bf16.gmra.mrb[60].mxu1 %v1857_v58  ;;  %v1819_v58 = vld [vmem:[%s4880_s1 + $0x148] sm:$0xff] }
  0x9b   :  { %2162 = vmatprep.mubr.bf16.mxu1 %v3736_v1  ;;  %v1862_v0 = vpack.c.bf16 %v1819_v58, %v1818_v57  ;;  %v420_v27 = vpack.c.bf16 %v374_v19, %v373_v18  ;;  %v247_v58 = vmul.f32 %v3611_v52, %v3972_v25  ;;  %v1831_v18 = vld [vmem:[%s4880_s1 + $0x1a8] sm:$0xff] }
  0x9c   :  { %v1868_v24 = vpack.c.bf16 %v1831_v18, %v1830_v17 }
  0x9d   :  { %684 = vmatmul.mubr.bf16.gmra.mrb[48].mxu0 %v415_v20  ;;  %v242_v20 = vmul.f32 %v3600_v12, %v3972_v25  ;;  %v317_v2 = vadd.f32 %v3976_v31, %v247_v58  ;;  %v382_v12 = vmax.f32 %v318_v3, 0.0 }
  0x9e   :  { %693 = vmatprep.mubr.bf16.mxu0 %v3736_v1 }
  0x9f   :  { %v312_v28 = vadd.f32 %v3976_v31, %v242_v20  ;;  %v381_v11 = vmax.f32 %v317_v2, 0.0  ;;  %v3676_v20 = vld [vmem:[%s4881_s0 + $0xc0] sm:$0xff]  }
  0xa1   :  { %v376_v33 = vmax.f32 %v312_v28, 0.0  ;;  %v424_v19 = vpack.c.bf16 %v382_v12, %v381_v11  ;;  %v3624_v28 = vunpack.c.h.bf16 %v3676_v20 }
  0xa2   :  { %2163 = vmatmul.mubr.bf16.gmra.mrb[64].mxu1 %v1858_v9  ;;  %v1821_v9 = vld [vmem:[%s4880_s1 + $0x158] sm:$0xff] }
  0xa3   :  { %2172 = vmatprep.mubr.bf16.mxu1 %v3736_v1  ;;  %v1863_v16 = vpack.c.bf16 %v1821_v9, %v1820_v8  ;;  %v421_v41 = vpack.c.bf16 %v376_v33, %v375_v32  ;;  %v3675_v9 = vld [vmem:[%s4881_s0 + $0xb8] sm:$0xff]   ;;  %v3677_v33 = vld [vmem:[%s4881_s0 + $0xc8] sm:$0xff]  }
  0xa4   :  { %v3619_v15 = vunpack.c.l.bf16 %v3675_v9  ;;  %v3627_v39 = vunpack.c.l.bf16 %v3677_v33  ;;  %v3628_v47 = vunpack.c.h.bf16 %v3677_v33 }
  0xa5   :  { %694 = vmatmul.mubr.bf16.gmra.mrb[52].mxu0 %v416_v35  ;;  %v244_v35 = vmul.f32 %v3604_v29, %v3972_v25 }
  0xa6   :  { %703 = vmatprep.mubr.bf16.mxu0 %v3736_v1  ;;  %v256_v62 = vmul.f32 %v3628_v47, %v3972_v25 }
  0xa7   :  { %v314_v43 = vadd.f32 %v3976_v31, %v244_v35  ;;  %v1832_v35 = vld [vmem:[%s4880_s1 + $0x1b0] sm:$0xff] }
  0xa9   :  { %v378_v46 = vmax.f32 %v314_v43, 0.0  ;;  %v1869_v43 = vpack.c.bf16 %v1833_v36, %v1832_v35 }
  0xaa   :  { %2173 = vmatmul.mubr.bf16.gmra.mrb[68].mxu1 %v1859_v23  ;;  %v1823_v23 = vld [vmem:[%s4880_s1 + $0x168] sm:$0xff] }
  0xab   :  { %2182 = vmatprep.mubr.bf16.mxu1 %v3736_v1  ;;  %v1864_v30 = vpack.c.bf16 %v1823_v23, %v1822_v22  ;;  %v422_v54 = vpack.c.bf16 %v378_v46, %v377_v45  ;;  %v320_v22 = vadd.f32 %v3976_v31, %v250_v14  ;;  %v251_v23 = vmul.f32 %v3619_v15, %v3972_v25 }
  0xad   :  { %704 = vmatmul.mubr.bf16.gmra.mrb[56].mxu0 %v417_v48  ;;  %v246_v48 = vmul.f32 %v3608_v40, %v3972_v25  ;;  %v321_v32 = vadd.f32 %v3976_v31, %v251_v23 }
  0xae   :  { %713 = vmatprep.mubr.bf16.mxu0 %v3736_v1 }
  0xaf   :  { %v316_v56 = vadd.f32 %v3976_v31, %v246_v48  ;;  %v385_v42 = vmax.f32 %v321_v32, 0.0 }
  0xb2   :  { %2183 = vmatmul.mubr.bf16.gmra.mrb[72].mxu1 %v1860_v38  ;;  %v1825_v38 = vld [vmem:[%s4880_s1 + $0x178] sm:$0xff] }
  0xb3   :  { %2192 = vmatprep.mubr.bf16.mxu1 %v3736_v1  ;;  %v1865_v44 = vpack.c.bf16 %v1825_v38, %v1824_v37  ;;  %v254_v38 = vmul.f32 %v3624_v28, %v3972_v25 }
  0xb5   :  { %714 = vmatmul.mubr.bf16.gmra.mrb[60].mxu0 %v418_v61  ;;  %v380_v61 = vmax.f32 %v316_v56, 0.0  ;;  %v324_v52 = vadd.f32 %v3976_v31, %v254_v38  ;;  %v255_v56 = vmul.f32 %v3627_v39, %v3972_v25  ;;  %v1837_v38 = vld [vmem:[%s4880_s1 + $0x1d8] sm:$0xff] }
  0xb6   :  { %723 = vmatprep.mubr.bf16.mxu0 %v3736_v1 }
  0xb7   :  { %v423_v4 = vpack.c.bf16 %v380_v61, %v379_v60  ;;  %v388_v6 = vmax.f32 %v324_v52, 0.0 }
  0xba   :  { %2193 = vmatmul.mubr.bf16.gmra.mrb[76].mxu1 %v1861_v51  ;;  %v1827_v51 = vld [vmem:[%s4880_s1 + $0x188] sm:$0xff] }
  0xbb   :  { %2202 = vmatprep.mubr.bf16.mxu1 %v3736_v1  ;;  %v1866_v57 = vpack.c.bf16 %v1827_v51, %v1826_v50 }
  0xbd   :  { %724 = vmatmul.mubr.bf16.gmra.mrb[64].mxu0 %v419_v13  ;;  %v249_v13 = vmul.f32 %v3615_v5, %v3972_v25 }
  0xbe   :  { %733 = vmatprep.mubr.bf16.mxu0 %v3736_v1 }
  0xbf   :  { %v319_v21 = vadd.f32 %v3976_v31, %v249_v13 }
  0xc1   :  { %v383_v29 = vmax.f32 %v319_v21, 0.0 }
  0xc2   :  { %2203 = vmatmul.mubr.bf16.gmra.mrb[80].mxu1 %v1862_v0  ;;  %v1829_v0 = vld [vmem:[%s4880_s1 + $0x198] sm:$0xff] }
  0xc3   :  { %2212 = vmatprep.mubr.bf16.mxu1 %v3736_v1  ;;  %v1867_v8 = vpack.c.bf16 %v1829_v0, %v1828_v63  ;;  %v1834_v63 = vld [vmem:[%s4880_s1 + $0x1c0] sm:$0xff]  ;;  %v1835_v0 = vld [vmem:[%s4880_s1 + $0x1c8] sm:$0xff] }
  0xc4   :  { %v1870_v12 = vpack.c.bf16 %v1835_v0, %v1834_v63 }
  0xc5   :  { %734 = vmatmul.mubr.bf16.gmra.mrb[68].mxu0 %v420_v27  ;;  %v3623_v27 = vunpack.c.l.bf16 %v3676_v20 }
  0xc6   :  { %743 = vmatprep.mubr.bf16.mxu0 %v3736_v1 }
  0xc7   :  { %v253_v37 = vmul.f32 %v3623_v27, %v3972_v25  ;;  %v3679_v27 = vld [vmem:[%s4881_s0 + $0xd8] sm:$0xff]  }
  0xc8   :  { %v3635_v36 = vunpack.c.l.bf16 %v3679_v27  ;;  %v3636_v39 = vunpack.c.h.bf16 %v3679_v27 }
  0xc9   :  { %v323_v51 = vadd.f32 %v3976_v31, %v253_v37  ;;  %v1836_v37 = vld [vmem:[%s4880_s1 + $0x1d0] sm:$0xff] }
  0xca   :  { %2213 = vmatmul.mubr.bf16.gmra.mrb[84].mxu1 %v1863_v16  ;;  %v3620_v16 = vunpack.c.h.bf16 %v3675_v9 }
  0xcb   :  { %2222 = vmatprep.mubr.bf16.mxu1 %v3736_v1  ;;  %v387_v5 = vmax.f32 %v323_v51, 0.0 }
  0xcc   :  { %v252_v26 = vmul.f32 %v3620_v16, %v3972_v25  ;;  %v4354_v16 = vadd.f32 %v3976_v31, %v256_v62 }
  0xcd   :  { %744 = vmatmul.mubr.bf16.gmra.mrb[72].mxu0 %v421_v41 }
  0xce   :  { %753 = vmatprep.mubr.bf16.mxu0 %v3736_v1  ;;  %v322_v34 = vadd.f32 %v3976_v31, %v252_v26 }
  0xd0   :  { %v386_v46 = vmax.f32 %v322_v34, 0.0 }
  0xd2   :  { %2223 = vmatmul.mubr.bf16.gmra.mrb[88].mxu1 %v1864_v30  ;;  %v384_v30 = vmax.f32 %v320_v22, 0.0 }
  0xd3   :  { %2232 = vmatprep.mubr.bf16.mxu1 %v3736_v1 }
  0xd4   :  { %v425_v41 = vpack.c.bf16 %v384_v30, %v383_v29 }
  0xd5   :  { %754 = vmatmul.mubr.bf16.gmra.mrb[76].mxu0 %v422_v54 }
  0xd6   :  { %763 = vmatprep.mubr.bf16.mxu0 %v3736_v1 }
  0xda   :  { %2233 = vmatmul.mubr.bf16.gmra.mrb[92].mxu1 %v1865_v44 }
  0xdb   :  { %2242 = vmatprep.mubr.bf16.mxu1 %v3736_v1 }
  0xdd   :  { %764 = vmatmul.mubr.bf16.gmra.mrb[80].mxu0 %v423_v4  ;;  %v426_v4 = vpack.c.bf16 %v386_v46, %v385_v42  ;;  %v390_v42 = vmax.f32 %v4354_v16, 0.0  ;;  %v3681_v16 = vld [vmem:[%s4881_s0 + $0xe8] sm:$0xff]  }
  0xde   :  { %773 = vmatprep.mubr.bf16.mxu0 %v3736_v1 }
  0xe2   :  { %2243 = vmatmul.mubr.bf16.gmra.mrb[96].mxu1 %v1866_v57  ;;  %v3678_v57 = vld [vmem:[%s4881_s0 + $0xd0] sm:$0xff]  }
  0xe3   :  { %2252 = vmatprep.mubr.bf16.mxu1 %v3736_v1  ;;  %v3631_v3 = vunpack.c.l.bf16 %v3678_v57  ;;  %v3632_v11 = vunpack.c.h.bf16 %v3678_v57 }
  0xe5   :  { %774 = vmatmul.mubr.bf16.gmra.mrb[84].mxu0 %v424_v19  ;;  %v257_v21 = vmul.f32 %v3631_v3, %v3972_v25  ;;  %v258_v33 = vmul.f32 %v3632_v11, %v3972_v25 }
  0xe6   :  { %783 = vmatprep.mubr.bf16.mxu0 %v3736_v1 }
  0xea   :  { %2253 = vmatmul.mubr.bf16.gmra.mrb[100].mxu1 %v1867_v8  ;;  %v4351_v8 = vadd.f32 %v3976_v31, %v255_v56  ;;  %v260_v56 = vmul.f32 %v3636_v39, %v3972_v25  ;;  %v3644_v39 = vunpack.c.h.bf16 %v3681_v16 }
  0xeb   :  { %2262 = vmatprep.mubr.bf16.mxu1 %v3736_v1 }
  0xed   :  { %784 = vmatmul.mubr.bf16.gmra.mrb[88].mxu0 %v425_v41  ;;  %v389_v41 = vmax.f32 %v4351_v8, 0.0  ;;  %v1839_v8 = vld [vmem:[%s4880_s1 + $0x1e8] sm:$0xff] }
  0xee   :  { %793 = vmatprep.mubr.bf16.mxu0 %v3736_v1 }
  0xf2   :  { %2263 = vmatmul.mubr.bf16.gmra.mrb[104].mxu1 %v1868_v24 }
  0xf3   :  { %2272 = vmatprep.mubr.bf16.mxu1 %v3736_v1 }
  0xf5   :  { %v2004_v40 = vpop.f32.mrb[0].mxu1  ;;  %794 = vmatmul.mubr.bf16.gmra.mrb[92].mxu0 %v426_v4 }
  0xf6   :  { %v2928_v44 = vmul.f32 %v2004_v40, %v2004_v40  ;;  %v2006_v45 = vpop.f32.mrb[1].mxu1  ;;  %803 = vmatprep.mubr.bf16.mxu0 %v3736_v1 }
  0xf7   :  { %v3461_v48 = vpack.c.bf16 %v2006_v45, %v2004_v40  ;;  %v2929_v49 = vmul.f32 %v2006_v45, %v2006_v45  ;;  %v2008_v50 = vpop.f32.mrb[2].mxu1 }
  0xf8   :  { %v2771_v53 = vadd.f32 %v2008_v50, %v2004_v40  ;;  %v2930_v54 = vmul.f32 %v2008_v50, %v2008_v50  ;;  %v2010_v55 = vpop.f32.mrb[3].mxu1  ;;  %v427_v40 = vpack.c.bf16 %v388_v6, %v387_v5  ;;  %v1838_v6 = vld [vmem:[%s4880_s1 + $0x1e0] sm:$0xff] }
  0xf9   :  { %2707 = vst [vmem:[%s4884_s11] sm:$0xff] %v3461_v48  ;;  %v3462_v58 = vpack.c.bf16 %v2010_v55, %v2008_v50  ;;  %v2840_v59 = vadd.f32 %v2010_v55, %v2006_v45  ;;  %v2931_v60 = vmul.f32 %v2010_v55, %v2010_v55  ;;  %v4381_v45 = vadd.f32 %v3976_v31, %v258_v33  ;;  %v3680_v55 = vld [vmem:[%s4881_s0 + $0xe0] sm:$0xff]  }
  0xfa   :  { %2273 = vmatmul.mubr.bf16.gmra.mrb[108].mxu1 %v1869_v43  ;;  %v3056_v61 = vadd.f32 %v2930_v54, %v2928_v44  ;;  %v4378_v43 = vadd.f32 %v3976_v31, %v257_v21  ;;  %v1871_v48 = vpack.c.bf16 %v1837_v38, %v1836_v37  ;;  %v259_v50 = vmul.f32 %v3635_v36, %v3972_v25 }
  0xfb   :  { %2282 = vmatprep.mubr.bf16.mxu1 %v3736_v1  ;;  %2708 = vst [vmem:[%s4884_s11 + $0x8] sm:$0xff] %v3462_v58  ;;  %v3125_v2 = vadd.f32 %v2931_v60, %v2929_v49  ;;  %v3639_v3 = vunpack.c.l.bf16 %v3680_v55  ;;  %v3640_v5 = vunpack.c.h.bf16 %v3680_v55  ;;  %v1872_v21 = vpack.c.bf16 %v1839_v8, %v1838_v6 }
  0xfc   :  { %v391_v11 = vmax.f32 %v4378_v43, 0.0  ;;  %v3643_v33 = vunpack.c.l.bf16 %v3681_v16 }
  0xfd   :  { %v2014_v9 = vpop.f32.mrb[4].mxu1  ;;  %804 = vmatmul.mubr.bf16.gmra.mrb[96].mxu0 %v427_v40  ;;  %v262_v27 = vmul.f32 %v3640_v5, %v3972_v25 }
  0xfe   :  { %v2772_v13 = vadd.f32 %v2771_v53, %v2014_v9  ;;  %v2932_v14 = vmul.f32 %v2014_v9, %v2014_v9  ;;  %v2016_v15 = vpop.f32.mrb[5].mxu1  ;;  %813 = vmatprep.mubr.bf16.mxu0 %v3736_v1 }
  0xff   :  { %v3463_v17 = vpack.c.bf16 %v2016_v15, %v2014_v9  ;;  %v2841_v18 = vadd.f32 %v2840_v59, %v2016_v15  ;;  %v2933_v19 = vmul.f32 %v2016_v15, %v2016_v15  ;;  %v2018_v20 = vpop.f32.mrb[6].mxu1  ;;  %v428_v9 = vpack.c.bf16 %v390_v42, %v389_v41  ;;  %v1840_v41 = vld [vmem:[%s4880_s1 + $0x1f0] sm:$0xff]  ;;  %v1841_v42 = vld [vmem:[%s4880_s1 + $0x1f8] sm:$0xff] }
 0x100   :  { %v3057_v22 = vadd.f32 %v3056_v61, %v2932_v14  ;;  %v2773_v23 = vadd.f32 %v2772_v13, %v2018_v20  ;;  %v2934_v24 = vmul.f32 %v2018_v20, %v2018_v20  ;;  %v2020_v26 = vpop.f32.mrb[7].mxu1  ;;  %v4405_v13 = vadd.f32 %v3976_v31, %v259_v50 }
 0x101   :  { %2709 = vst [vmem:[%s4884_s11 + $0x10] sm:$0xff] %v3463_v17  ;;  %v3126_v28 = vadd.f32 %v3125_v2, %v2933_v19  ;;  %v3464_v29 = vpack.c.bf16 %v2020_v26, %v2018_v20  ;;  %v2842_v30 = vadd.f32 %v2841_v18, %v2020_v26  ;;  %v2935_v32 = vmul.f32 %v2020_v26, %v2020_v26 }
 0x102   :  { %2283 = vmatmul.mubr.bf16.gmra.mrb[112].mxu1 %v1870_v12  ;;  %v3058_v34 = vadd.f32 %v3057_v22, %v2934_v24  ;;  %v392_v12 = vmax.f32 %v4381_v45, 0.0  ;;  %v4408_v14 = vadd.f32 %v3976_v31, %v260_v56  ;;  %v261_v20 = vmul.f32 %v3639_v3, %v3972_v25  ;;  %v3682_v45 = vld [vmem:[%s4881_s0 + $0xf0] sm:$0xff]  }
 0x103   :  { %2710 = vst [vmem:[%s4884_s11 + $0x18] sm:$0xff] %v3464_v29  ;;  %v3127_v35 = vadd.f32 %v3126_v28, %v2935_v32  ;;  %2292 = vmatprep.mubr.bf16.mxu1 %v3736_v1  ;;  %v263_v50 = vmul.f32 %v3643_v33, %v3972_v25  ;;  %v1873_v55 = vpack.c.bf16 %v1841_v42, %v1840_v41 }
 0x104   :  { %v429_v43 = vpack.c.bf16 %v392_v12, %v391_v11 }
 0x105   :  { %v2024_v44 = vpop.f32.mrb[8].mxu1  ;;  %814 = vmatmul.mubr.bf16.gmra.mrb[100].mxu0 %v428_v9  ;;  %v3683_v9 = vld [vmem:[%s4881_s0 + $0xf8] sm:$0xff]  }
 0x106   :  { %v2774_v46 = vadd.f32 %v2773_v23, %v2024_v44  ;;  %v2936_v47 = vmul.f32 %v2024_v44, %v2024_v44  ;;  %v2026_v49 = vpop.f32.mrb[9].mxu1  ;;  %823 = vmatprep.mubr.bf16.mxu0 %v3736_v1 }
 0x107   :  { %v3465_v51 = vpack.c.bf16 %v2026_v49, %v2024_v44  ;;  %v2843_v52 = vadd.f32 %v2842_v30, %v2026_v49  ;;  %v2937_v53 = vmul.f32 %v2026_v49, %v2026_v49  ;;  %v2028_v54 = vpop.f32.mrb[10].mxu1  ;;  %v393_v44 = vmax.f32 %v4405_v13, 0.0 }
 0x108   :  { %v3059_v57 = vadd.f32 %v3058_v34, %v2936_v47  ;;  %v2775_v58 = vadd.f32 %v2774_v46, %v2028_v54  ;;  %v2938_v59 = vmul.f32 %v2028_v54, %v2028_v54  ;;  %v2030_v60 = vpop.f32.mrb[11].mxu1  ;;  %v394_v46 = vmax.f32 %v4408_v14, 0.0 }
 0x109   :  { %2711 = vst [vmem:[%s4884_s11 + $0x20] sm:$0xff] %v3465_v51  ;;  %v3128_v61 = vadd.f32 %v3127_v35, %v2937_v53  ;;  %v3466_v62 = vpack.c.bf16 %v2030_v60, %v2028_v54  ;;  %v2844_v63 = vadd.f32 %v2843_v52, %v2030_v60  ;;  %v2939_v0 = vmul.f32 %v2030_v60, %v2030_v60 }
 0x10a   :  { %2293 = vmatmul.mubr.bf16.gmra.mrb[116].mxu1 %v1871_v48  ;;  %v3060_v2 = vadd.f32 %v3059_v57, %v2938_v59  ;;  %v4435_v47 = vadd.f32 %v3976_v31, %v261_v20  ;;  %v4438_v48 = vadd.f32 %v3976_v31, %v262_v27  ;;  %v264_v54 = vmul.f32 %v3644_v39, %v3972_v25 }
 0x10b   :  { %2712 = vst [vmem:[%s4884_s11 + $0x28] sm:$0xff] %v3466_v62  ;;  %v3129_v4 = vadd.f32 %v3128_v61, %v2939_v0  ;;  %2302 = vmatprep.mubr.bf16.mxu1 %v3736_v1  ;;  %v3647_v60 = vunpack.c.l.bf16 %v3682_v45  ;;  %v430_v12 = vpack.c.bf16 %v394_v46, %v393_v44 }
 0x10c   :  { %v395_v13 = vmax.f32 %v4435_v47, 0.0  ;;  %v396_v14 = vmax.f32 %v4438_v48, 0.0 }
 0x10d   :  { %v2034_v15 = vpop.f32.mrb[12].mxu1  ;;  %824 = vmatmul.mubr.bf16.gmra.mrb[104].mxu0 %v429_v43 }
 0x10e   :  { %v2776_v17 = vadd.f32 %v2775_v58, %v2034_v15  ;;  %v2940_v18 = vmul.f32 %v2034_v15, %v2034_v15  ;;  %v2036_v19 = vpop.f32.mrb[13].mxu1  ;;  %833 = vmatprep.mubr.bf16.mxu0 %v3736_v1 }
 0x10f   :  { %v3467_v22 = vpack.c.bf16 %v2036_v19, %v2034_v15  ;;  %v2845_v23 = vadd.f32 %v2844_v63, %v2036_v19  ;;  %v2941_v24 = vmul.f32 %v2036_v19, %v2036_v19  ;;  %v2038_v26 = vpop.f32.mrb[14].mxu1  ;;  %v4455_v15 = vadd.f32 %v3976_v31, %v263_v50 }
 0x110   :  { %v3061_v28 = vadd.f32 %v3060_v2, %v2940_v18  ;;  %v2777_v29 = vadd.f32 %v2776_v17, %v2038_v26  ;;  %v2942_v30 = vmul.f32 %v2038_v26, %v2038_v26  ;;  %v2040_v32 = vpop.f32.mrb[15].mxu1  ;;  %v3648_v2 = vunpack.c.h.bf16 %v3682_v45  ;;  %v565_v16 = vpop.f32.mrb[0].mxu0 }
 0x111   :  { %2713 = vst [vmem:[%s4884_s11 + $0x30] sm:$0xff] %v3467_v22  ;;  %v3130_v34 = vadd.f32 %v3129_v4, %v2941_v24  ;;  %v3468_v35 = vpack.c.bf16 %v2040_v32, %v2038_v26  ;;  %v2846_v36 = vadd.f32 %v2845_v23, %v2040_v32  ;;  %v2943_v37 = vmul.f32 %v2040_v32, %v2040_v32  ;;  %v567_v23 = vpop.f32.mrb[1].mxu0 }
 0x112   :  { %v3062_v38 = vadd.f32 %v3061_v28, %v2942_v30  ;;  %2303 = vmatmul.mubr.bf16.gmra.mrb[120].mxu1 %v1872_v21  ;;  %v4458_v17 = vadd.f32 %v3976_v31, %v264_v54  ;;  %v265_v19 = vmul.f32 %v3647_v60, %v3972_v25  ;;  %v266_v20 = vmul.f32 %v3648_v2, %v3972_v25  ;;  %v569_v32 = vpop.f32.mrb[2].mxu0 }
 0x113   :  { %2714 = vst [vmem:[%s4884_s11 + $0x38] sm:$0xff] %v3468_v35  ;;  %v3131_v40 = vadd.f32 %v3130_v34, %v2943_v37  ;;  %2312 = vmatprep.mubr.bf16.mxu1 %v3736_v1  ;;  %v3651_v21 = vunpack.c.l.bf16 %v3683_v9  ;;  %v1493_v22 = vmul.f32 %v565_v16, %v565_v16  ;;  %v3652_v28 = vunpack.c.h.bf16 %v3683_v9 }
 0x114   :  { %v1494_v30 = vmul.f32 %v567_v23, %v567_v23  ;;  %v1495_v37 = vmul.f32 %v569_v32, %v569_v32  ;;  %v397_v54 = vmax.f32 %v4455_v15, 0.0  ;;  %v4481_v60 = vadd.f32 %v3976_v31, %v266_v20 }
 0x115   :  { %v2044_v49 = vpop.f32.mrb[16].mxu1  ;;  %834 = vmatmul.mubr.bf16.gmra.mrb[108].mxu0 %v430_v12 }
 0x116   :  { %v2778_v51 = vadd.f32 %v2777_v29, %v2044_v49  ;;  %v2944_v52 = vmul.f32 %v2044_v49, %v2044_v49  ;;  %v2046_v53 = vpop.f32.mrb[17].mxu1  ;;  %v3397_v29 = vpack.c.bf16 %v567_v23, %v565_v16  ;;  %v1621_v46 = vadd.f32 %v1495_v37, %v1493_v22  ;;  %843 = vmatprep.mubr.bf16.mxu0 %v3736_v1 }
 0x117   :  { %v3469_v56 = vpack.c.bf16 %v2046_v53, %v2044_v49  ;;  %v2847_v57 = vadd.f32 %v2846_v36, %v2046_v53  ;;  %v2945_v58 = vmul.f32 %v2046_v53, %v2046_v53  ;;  %v2048_v59 = vpop.f32.mrb[18].mxu1  ;;  %v1332_v36 = vadd.f32 %v569_v32, %v565_v16 }
 0x118   :  { %v3063_v61 = vadd.f32 %v3062_v38, %v2944_v52  ;;  %v2779_v62 = vadd.f32 %v2778_v51, %v2048_v59  ;;  %v2946_v63 = vmul.f32 %v2048_v59, %v2048_v59  ;;  %v2050_v0 = vpop.f32.mrb[19].mxu1  ;;  %v571_v38 = vpop.f32.mrb[3].mxu0  ;;  %1268 = vst [vmem:[%s4885_s8] sm:$0xff] %v3397_v29  ;;  %v431_v51 = vpack.c.bf16 %v396_v14, %v395_v13 }
 0x119   :  { %2715 = vst [vmem:[%s4884_s11 + $0x40] sm:$0xff] %v3469_v56  ;;  %v3132_v3 = vadd.f32 %v3131_v40, %v2945_v58  ;;  %v3470_v4 = vpack.c.bf16 %v2050_v0, %v2048_v59  ;;  %v2848_v5 = vadd.f32 %v2847_v57, %v2050_v0  ;;  %v2947_v6 = vmul.f32 %v2050_v0, %v2050_v0  ;;  %v575_v58 = vpop.f32.mrb[4].mxu0 }
 0x11a   :  { %v3064_v8 = vadd.f32 %v3063_v61, %v2946_v63  ;;  %2313 = vmatmul.mubr.bf16.gmra.mrb[124].mxu1 %v1873_v55  ;;  %v3398_v42 = vpack.c.bf16 %v571_v38, %v569_v32  ;;  %v1401_v43 = vadd.f32 %v571_v38, %v567_v23  ;;  %v1496_v44 = vmul.f32 %v571_v38, %v571_v38 }
 0x11b   :  { %2716 = vst [vmem:[%s4884_s11 + $0x48] sm:$0xff] %v3470_v4  ;;  %v3133_v11 = vadd.f32 %v3132_v3, %v2947_v6  ;;  %v398_v55 = vmax.f32 %v4458_v17, 0.0  ;;  %v4478_v57 = vadd.f32 %v3976_v31, %v265_v19  ;;  %v268_v63 = vmul.f32 %v3652_v28, %v3972_v25  ;;  %v577_v3 = vpop.f32.mrb[5].mxu0 }
 0x11c   :  { %1269 = vst [vmem:[%s4885_s8 + $0x8] sm:$0xff] %v3398_v42  ;;  %v1690_v50 = vadd.f32 %v1496_v44, %v1494_v30  ;;  %v1333_v0 = vadd.f32 %v1332_v36, %v575_v58  ;;  %v1497_v2 = vmul.f32 %v575_v58, %v575_v58  ;;  %v1402_v9 = vadd.f32 %v1401_v43, %v577_v3  ;;  %v579_v12 = vpop.f32.mrb[6].mxu0 }
 0x11d   :  { %v2054_v18 = vpop.f32.mrb[20].mxu1  ;;  %v1499_v17 = vmul.f32 %v579_v12, %v579_v12  ;;  %844 = vmatmul.mubr.bf16.gmra.mrb[112].mxu0 %v431_v51  ;;  %v4504_v42 = vadd.f32 %v3976_v31, %v268_v63 }
 0x11e   :  { %v2780_v24 = vadd.f32 %v2779_v62, %v2054_v18  ;;  %v2948_v26 = vmul.f32 %v2054_v18, %v2054_v18  ;;  %v2056_v27 = vpop.f32.mrb[21].mxu1  ;;  %v267_v62 = vmul.f32 %v3651_v21, %v3972_v25  ;;  %v1622_v15 = vadd.f32 %v1621_v46, %v1497_v2  ;;  %853 = vmatprep.mubr.bf16.mxu0 %v3736_v1 }
 0x11f   :  { %v3471_v33 = vpack.c.bf16 %v2056_v27, %v2054_v18  ;;  %v2849_v34 = vadd.f32 %v2848_v5, %v2056_v27  ;;  %v2058_v35 = vpop.f32.mrb[22].mxu1  ;;  %v2949_v40 = vmul.f32 %v2056_v27, %v2056_v27  ;;  %v1334_v16 = vadd.f32 %v1333_v0, %v579_v12  ;;  %v581_v18 = vpop.f32.mrb[7].mxu0 }
 0x120   :  { %v3065_v39 = vadd.f32 %v3064_v8, %v2948_v26  ;;  %v2060_v41 = vpop.f32.mrb[23].mxu1  ;;  %v2781_v45 = vadd.f32 %v2780_v24, %v2058_v35  ;;  %v2950_v48 = vmul.f32 %v2058_v35, %v2058_v35  ;;  %v3399_v8 = vpack.c.bf16 %v577_v3, %v575_v58  ;;  %v585_v38 = vpop.f32.mrb[8].mxu0 }
 0x121   :  { %2717 = vst [vmem:[%s4884_s11 + $0x50] sm:$0xff] %v3471_v33  ;;  %v3134_v47 = vadd.f32 %v3133_v11, %v2949_v40  ;;  %v3472_v49 = vpack.c.bf16 %v2060_v41, %v2058_v35  ;;  %v2850_v52 = vadd.f32 %v2849_v34, %v2060_v41  ;;  %v2951_v53 = vmul.f32 %v2060_v41, %v2060_v41  ;;  %v587_v46 = vpop.f32.mrb[9].mxu0 }
 0x122   :  { %v3066_v56 = vadd.f32 %v3065_v39, %v2950_v48  ;;  %v1498_v11 = vmul.f32 %v577_v3, %v577_v3  ;;  %1270 = vst [vmem:[%s4885_s8 + $0x10] sm:$0xff] %v3399_v8  ;;  %v3400_v21 = vpack.c.bf16 %v581_v18, %v579_v12  ;;  %v1403_v22 = vadd.f32 %v1402_v9, %v581_v18 }
 0x123   :  { %2718 = vst [vmem:[%s4884_s11 + $0x58] sm:$0xff] %v3472_v49  ;;  %v3135_v59 = vadd.f32 %v3134_v47, %v2951_v53  ;;  %v1500_v23 = vmul.f32 %v581_v18, %v581_v18  ;;  %v1623_v24 = vadd.f32 %v1622_v15, %v1499_v17  ;;  %v432_v34 = vpack.c.bf16 %v398_v55, %v397_v54  ;;  %v589_v53 = vpop.f32.mrb[10].mxu0 }
 0x124   :  { %v1691_v25 = vadd.f32 %v1690_v50, %v1498_v11  ;;  %1271 = vst [vmem:[%s4885_s8 + $0x18] sm:$0xff] %v3400_v21  ;;  %v399_v35 = vmax.f32 %v4478_v57, 0.0  ;;  %v400_v39 = vmax.f32 %v4481_v60, 0.0  ;;  %v4501_v41 = vadd.f32 %v3976_v31, %v267_v62 }
 0x125   :  { %v2064_v61 = vpop.f32.mrb[24].mxu1  ;;  %v1335_v44 = vadd.f32 %v1334_v16, %v585_v38  ;;  %v3401_v50 = vpack.c.bf16 %v587_v46, %v585_v38  ;;  %v1404_v51 = vadd.f32 %v1403_v22, %v587_v46  ;;  %v1503_v58 = vmul.f32 %v589_v53, %v589_v53  ;;  %854 = vmatmul.mubr.bf16.gmra.mrb[116].mxu0 %v432_v34 }
 0x126   :  { %v2782_v4 = vadd.f32 %v2781_v45, %v2064_v61  ;;  %v2952_v5 = vmul.f32 %v2064_v61, %v2064_v61  ;;  %v2066_v6 = vpop.f32.mrb[25].mxu1  ;;  %v1692_v29 = vadd.f32 %v1691_v25, %v1500_v23  ;;  %v1501_v45 = vmul.f32 %v585_v38, %v585_v38  ;;  %863 = vmatprep.mubr.bf16.mxu0 %v3736_v1 }
 0x127   :  { %v3473_v13 = vpack.c.bf16 %v2066_v6, %v2064_v61  ;;  %v2068_v14 = vpop.f32.mrb[26].mxu1  ;;  %v2851_v26 = vadd.f32 %v2850_v52, %v2066_v6  ;;  %v2953_v27 = vmul.f32 %v2066_v6, %v2066_v6  ;;  %v1502_v52 = vmul.f32 %v587_v46, %v587_v46  ;;  %1272 = vst [vmem:[%s4885_s8 + $0x20] sm:$0xff] %v3401_v50 }
 0x128   :  { %v3067_v19 = vadd.f32 %v3066_v56, %v2952_v5  ;;  %v2070_v20 = vpop.f32.mrb[27].mxu1  ;;  %v2783_v28 = vadd.f32 %v2782_v4, %v2068_v14  ;;  %v2954_v30 = vmul.f32 %v2068_v14, %v2068_v14  ;;  %v1624_v56 = vadd.f32 %v1623_v24, %v1501_v45 }
 0x129   :  { %2719 = vst [vmem:[%s4884_s11 + $0x60] sm:$0xff] %v3473_v13  ;;  %v3474_v32 = vpack.c.bf16 %v2070_v20, %v2068_v14  ;;  %v2955_v33 = vmul.f32 %v2070_v20, %v2070_v20  ;;  %v3136_v36 = vadd.f32 %v3135_v59, %v2953_v27  ;;  %v2852_v37 = vadd.f32 %v2851_v26, %v2070_v20  ;;  %v591_v59 = vpop.f32.mrb[11].mxu0 }
 0x12a   :  { %v3068_v40 = vadd.f32 %v3067_v19, %v2954_v30  ;;  %v1336_v57 = vadd.f32 %v1335_v44, %v589_v53  ;;  %v1693_v61 = vadd.f32 %v1692_v29, %v1502_v52  ;;  %v3402_v62 = vpack.c.bf16 %v591_v59, %v589_v53  ;;  %v595_v15 = vpop.f32.mrb[12].mxu0 }
 0x12b   :  { %2720 = vst [vmem:[%s4884_s11 + $0x68] sm:$0xff] %v3474_v32  ;;  %v3137_v47 = vadd.f32 %v3136_v36, %v2955_v33  ;;  %v1405_v63 = vadd.f32 %v1404_v51, %v591_v59  ;;  %v1504_v0 = vmul.f32 %v591_v59, %v591_v59  ;;  %v1625_v2 = vadd.f32 %v1624_v56, %v1503_v58  ;;  %v597_v22 = vpop.f32.mrb[13].mxu0 }
 0x12c   :  { %1273 = vst [vmem:[%s4885_s8 + $0x28] sm:$0xff] %v3402_v62  ;;  %v433_v16 = vpack.c.bf16 %v400_v39, %v399_v35  ;;  %v401_v17 = vmax.f32 %v4501_v41, 0.0  ;;  %v402_v18 = vmax.f32 %v4504_v42, 0.0  ;;  %v1337_v25 = vadd.f32 %v1336_v57, %v595_v15  ;;  %v599_v30 = vpop.f32.mrb[14].mxu0 }
 0x12d   :  { %v2074_v43 = vpop.f32.mrb[28].mxu1  ;;  %v1694_v6 = vadd.f32 %v1693_v61, %v1504_v0  ;;  %v1505_v21 = vmul.f32 %v595_v15, %v595_v15  ;;  %v3403_v27 = vpack.c.bf16 %v597_v22, %v595_v15  ;;  %v1506_v29 = vmul.f32 %v597_v22, %v597_v22 }
 0x12e   :  { %v2784_v48 = vadd.f32 %v2783_v28, %v2074_v43  ;;  %v2076_v49 = vpop.f32.mrb[29].mxu1  ;;  %v2956_v54 = vmul.f32 %v2074_v43, %v2074_v43  ;;  %v1406_v28 = vadd.f32 %v1405_v63, %v597_v22  ;;  %v1338_v35 = vadd.f32 %v1337_v25, %v599_v30  ;;  %864 = vmatmul.mubr.bf16.gmra.mrb[120].mxu0 %v433_v16 }
 0x12f   :  { %v2078_v55 = vpop.f32.mrb[30].mxu1  ;;  %v3475_v60 = vpack.c.bf16 %v2076_v49, %v2074_v43  ;;  %v2853_v4 = vadd.f32 %v2852_v37, %v2076_v49  ;;  %v2957_v5 = vmul.f32 %v2076_v49, %v2076_v49  ;;  %v1626_v34 = vadd.f32 %v1625_v2, %v1505_v21  ;;  %v601_v37 = vpop.f32.mrb[15].mxu0  ;;  %1274 = vst [vmem:[%s4885_s8 + $0x30] sm:$0xff] %v3403_v27 }
 0x130   :  { %v2080_v31 = vpop.f32.mrb[31].mxu1  ;;  %v3069_v3 = vadd.f32 %v3068_v40, %v2956_v54  ;;  %v2785_v8 = vadd.f32 %v2784_v48, %v2078_v55  ;;  %v2958_v9 = vmul.f32 %v2078_v55, %v2078_v55  ;;  %v1507_v36 = vmul.f32 %v599_v30, %v599_v30  ;;  %873 = vmatprep.mubr.bf16.mxu0 %v3736_v1 }
 0x131   :  { %2721 = vst [vmem:[%s4884_s11 + $0x70] sm:$0xff] %v3475_v60  ;;  %v3476_v11 = vpack.c.bf16 %v2080_v31, %v2078_v55  ;;  %v3138_v12 = vadd.f32 %v3137_v47, %v2957_v5  ;;  %v2854_v13 = vadd.f32 %v2853_v4, %v2080_v31  ;;  %v2959_v14 = vmul.f32 %v2080_v31, %v2080_v31  ;;  %v605_v55 = vpop.f32.mrb[16].mxu0 }
 0x132   :  { %v3070_v19 = vadd.f32 %v3069_v3, %v2958_v9  ;;  %v1695_v40 = vadd.f32 %v1694_v6, %v1506_v29  ;;  %v3404_v41 = vpack.c.bf16 %v601_v37, %v599_v30  ;;  %v1407_v42 = vadd.f32 %v1406_v28, %v601_v37  ;;  %v607_v31 = vpop.f32.mrb[17].mxu0 }
 0x133   :  { %2722 = vst [vmem:[%s4884_s11 + $0x78] sm:$0xff] %v3476_v11  ;;  %v3139_v23 = vadd.f32 %v3138_v12, %v2959_v14  ;;  %v1508_v43 = vmul.f32 %v601_v37, %v601_v37  ;;  %v1627_v44 = vadd.f32 %v1626_v34, %v1507_v36  ;;  %v434_v56 = vpack.c.bf16 %v402_v18, %v401_v17  ;;  %v609_v3 = vpop.f32.mrb[18].mxu0 }
 0x134   :  { %1275 = vst [vmem:[%s4885_s8 + $0x38] sm:$0xff] %v3404_v41  ;;  %v1339_v59 = vadd.f32 %v1338_v35, %v605_v55  ;;  %v1509_v60 = vmul.f32 %v605_v55, %v605_v55  ;;  %v3405_v63 = vpack.c.bf16 %v607_v31, %v605_v55  ;;  %v1408_v0 = vadd.f32 %v1407_v42, %v607_v31  ;;  %v611_v11 = vpop.f32.mrb[19].mxu0 }
 0x135   :  { %v2084_v20 = vpop.f32.mrb[32].mxu1  ;;  %v1696_v48 = vadd.f32 %v1695_v40, %v1508_v43  ;;  %v1510_v2 = vmul.f32 %v607_v31, %v607_v31  ;;  %v1511_v9 = vmul.f32 %v609_v3, %v609_v3  ;;  %v3406_v15 = vpack.c.bf16 %v611_v11, %v609_v3 }
 0x136   :  { %v2786_v24 = vadd.f32 %v2785_v8, %v2084_v20  ;;  %v2086_v26 = vpop.f32.mrb[33].mxu1  ;;  %v2960_v32 = vmul.f32 %v2084_v20, %v2084_v20  ;;  %v1628_v6 = vadd.f32 %v1627_v44, %v1509_v60  ;;  %v1340_v8 = vadd.f32 %v1339_v59, %v609_v3  ;;  %1276 = vst [vmem:[%s4885_s8 + $0x40] sm:$0xff] %v3405_v63 }
 0x137   :  { %v2088_v33 = vpop.f32.mrb[34].mxu1  ;;  %v3477_v38 = vpack.c.bf16 %v2086_v26, %v2084_v20  ;;  %v2855_v46 = vadd.f32 %v2854_v13, %v2086_v26  ;;  %v2961_v47 = vmul.f32 %v2086_v26, %v2086_v26  ;;  %v1697_v14 = vadd.f32 %v1696_v48, %v1510_v2  ;;  %874 = vmatmul.mubr.bf16.gmra.mrb[124].mxu0 %v434_v56 }
 0x138   :  { %v2090_v39 = vpop.f32.mrb[35].mxu1  ;;  %v3071_v45 = vadd.f32 %v3070_v19, %v2960_v32  ;;  %v2787_v49 = vadd.f32 %v2786_v24, %v2088_v33  ;;  %v2962_v50 = vmul.f32 %v2088_v33, %v2088_v33  ;;  %v1409_v16 = vadd.f32 %v1408_v0, %v611_v11  ;;  %1277 = vst [vmem:[%s4885_s8 + $0x48] sm:$0xff] %v3406_v15  ;;  %v615_v29 = vpop.f32.mrb[20].mxu0 }
 0x139   :  { %2723 = vst [vmem:[%s4884_s11 + $0x80] sm:$0xff] %v3477_v38  ;;  %v3478_v51 = vpack.c.bf16 %v2090_v39, %v2088_v33  ;;  %v3140_v52 = vadd.f32 %v3139_v23, %v2961_v47  ;;  %v2856_v53 = vadd.f32 %v2855_v46, %v2090_v39  ;;  %v2963_v54 = vmul.f32 %v2090_v39, %v2090_v39  ;;  %v617_v35 = vpop.f32.mrb[21].mxu0 }
 0x13a   :  { %v3072_v57 = vadd.f32 %v3071_v45, %v2962_v50  ;;  %v1512_v17 = vmul.f32 %v611_v11, %v611_v11  ;;  %v1629_v18 = vadd.f32 %v1628_v6, %v1511_v9  ;;  %v1341_v33 = vadd.f32 %v1340_v8, %v615_v29  ;;  %v619_v42 = vpop.f32.mrb[22].mxu0 }
 0x13b   :  { %2724 = vst [vmem:[%s4884_s11 + $0x88] sm:$0xff] %v3478_v51  ;;  %v3141_v61 = vadd.f32 %v3140_v52, %v2963_v54  ;;  %v1513_v34 = vmul.f32 %v615_v29, %v615_v29  ;;  %v3407_v39 = vpack.c.bf16 %v617_v35, %v615_v29  ;;  %v1410_v40 = vadd.f32 %v1409_v16, %v617_v35  ;;  %v621_v48 = vpop.f32.mrb[23].mxu0 }
 0x13c   :  { %v1698_v21 = vadd.f32 %v1697_v14, %v1512_v17  ;;  %v1514_v41 = vmul.f32 %v617_v35, %v617_v35  ;;  %v1342_v46 = vadd.f32 %v1341_v33, %v619_v42  ;;  %v1515_v47 = vmul.f32 %v619_v42, %v619_v42 }
 0x13d   :  { %v2094_v58 = vpop.f32.mrb[36].mxu1  ;;  %v1630_v45 = vadd.f32 %v1629_v18, %v1513_v34  ;;  %1278 = vst [vmem:[%s4885_s8 + $0x50] sm:$0xff] %v3407_v39  ;;  %v3408_v52 = vpack.c.bf16 %v621_v48, %v619_v42  ;;  %v1516_v54 = vmul.f32 %v621_v48, %v621_v48 }
 0x13e   :  { %v2788_v62 = vadd.f32 %v2787_v49, %v2094_v58  ;;  %v2096_v1 = vpop.f32.mrb[37].mxu1  ;;  %v2964_v4 = vmul.f32 %v2094_v58, %v2094_v58  ;;  %v1699_v51 = vadd.f32 %v1698_v21, %v1514_v41 }
 0x13f   :  { %v2098_v5 = vpop.f32.mrb[38].mxu1  ;;  %v3479_v12 = vpack.c.bf16 %v2096_v1, %v2094_v58  ;;  %v2857_v20 = vadd.f32 %v2856_v53, %v2096_v1  ;;  %v2965_v25 = vmul.f32 %v2096_v1, %v2096_v1  ;;  %v1411_v53 = vadd.f32 %v1410_v40, %v621_v48  ;;  %1279 = vst [vmem:[%s4885_s8 + $0x58] sm:$0xff] %v3408_v52 }
 0x140   :  { %v2100_v13 = vpop.f32.mrb[39].mxu1  ;;  %v3073_v19 = vadd.f32 %v3072_v57, %v2964_v4  ;;  %v2789_v22 = vadd.f32 %v2788_v62, %v2098_v5  ;;  %v2966_v23 = vmul.f32 %v2098_v5, %v2098_v5  ;;  %v1631_v55 = vadd.f32 %v1630_v45, %v1515_v47  ;;  %v625_v0 = vpop.f32.mrb[24].mxu0 }
 0x141   :  { %2725 = vst [vmem:[%s4884_s11 + $0x90] sm:$0xff] %v3479_v12  ;;  %v3480_v24 = vpack.c.bf16 %v2100_v13, %v2098_v5  ;;  %v3142_v26 = vadd.f32 %v3141_v61, %v2965_v25  ;;  %v2858_v27 = vadd.f32 %v2857_v20, %v2100_v13  ;;  %v2967_v28 = vmul.f32 %v2100_v13, %v2100_v13  ;;  %v627_v6 = vpop.f32.mrb[25].mxu0 }
 0x142   :  { %v3074_v30 = vadd.f32 %v3073_v19, %v2966_v23  ;;  %v1700_v59 = vadd.f32 %v1699_v51, %v1516_v54  ;;  %v1343_v4 = vadd.f32 %v1342_v46, %v625_v0  ;;  %v1517_v5 = vmul.f32 %v625_v0, %v625_v0  ;;  %v629_v15 = vpop.f32.mrb[26].mxu0 }
 0x143   :  { %2726 = vst [vmem:[%s4884_s11 + $0x98] sm:$0xff] %v3480_v24  ;;  %v3143_v36 = vadd.f32 %v3142_v26, %v2967_v28  ;;  %v3409_v12 = vpack.c.bf16 %v627_v6, %v625_v0  ;;  %v1412_v13 = vadd.f32 %v1411_v53, %v627_v6  ;;  %v1518_v14 = vmul.f32 %v627_v6, %v627_v6  ;;  %v631_v25 = vpop.f32.mrb[27].mxu0 }
 0x144   :  { %v1632_v18 = vadd.f32 %v1631_v55, %v1517_v5  ;;  %v1344_v19 = vadd.f32 %v1343_v4, %v629_v15  ;;  %v1519_v20 = vmul.f32 %v629_v15, %v629_v15  ;;  %v3410_v24 = vpack.c.bf16 %v631_v25, %v629_v15 }
 0x145   :  { %v2104_v32 = vpop.f32.mrb[40].mxu1  ;;  %1280 = vst [vmem:[%s4885_s8 + $0x60] sm:$0xff] %v3409_v12  ;;  %v1701_v23 = vadd.f32 %v1700_v59, %v1518_v14  ;;  %v1413_v26 = vadd.f32 %v1412_v13, %v631_v25 }
 0x146   :  { %v2790_v37 = vadd.f32 %v2789_v22, %v2104_v32  ;;  %v2106_v38 = vpop.f32.mrb[41].mxu1  ;;  %v2968_v43 = vmul.f32 %v2104_v32, %v2104_v32  ;;  %v1633_v28 = vadd.f32 %v1632_v18, %v1519_v20  ;;  %1281 = vst [vmem:[%s4885_s8 + $0x68] sm:$0xff] %v3410_v24 }
 0x147   :  { %v2108_v44 = vpop.f32.mrb[42].mxu1  ;;  %v3481_v49 = vpack.c.bf16 %v2106_v38, %v2104_v32  ;;  %v2859_v57 = vadd.f32 %v2858_v27, %v2106_v38  ;;  %v2969_v58 = vmul.f32 %v2106_v38, %v2106_v38  ;;  %v1520_v27 = vmul.f32 %v631_v25, %v631_v25 }
 0x148   :  { %v2110_v50 = vpop.f32.mrb[43].mxu1  ;;  %v3075_v56 = vadd.f32 %v3074_v30, %v2968_v43  ;;  %v2791_v60 = vadd.f32 %v2790_v37, %v2108_v44  ;;  %v2970_v31 = vmul.f32 %v2108_v44, %v2108_v44  ;;  %v635_v40 = vpop.f32.mrb[28].mxu0 }
 0x149   :  { %2727 = vst [vmem:[%s4884_s11 + $0xa0] sm:$0xff] %v3481_v49  ;;  %v3482_v61 = vpack.c.bf16 %v2110_v50, %v2108_v44  ;;  %v3144_v62 = vadd.f32 %v3143_v36, %v2969_v58  ;;  %v2860_v1 = vadd.f32 %v2859_v57, %v2110_v50  ;;  %v2971_v63 = vmul.f32 %v2110_v50, %v2110_v50  ;;  %v637_v45 = vpop.f32.mrb[29].mxu0 }
 0x14a   :  { %v3076_v2 = vadd.f32 %v3075_v56, %v2970_v31  ;;  %v1702_v33 = vadd.f32 %v1701_v23, %v1520_v27  ;;  %v1345_v43 = vadd.f32 %v1344_v19, %v635_v40  ;;  %v1521_v44 = vmul.f32 %v635_v40, %v635_v40  ;;  %v639_v52 = vpop.f32.mrb[30].mxu0 }
 0x14b   :  { %2728 = vst [vmem:[%s4884_s11 + $0xa8] sm:$0xff] %v3482_v61  ;;  %v3145_v8 = vadd.f32 %v3144_v62, %v2971_v63  ;;  %v3411_v49 = vpack.c.bf16 %v637_v45, %v635_v40  ;;  %v1414_v50 = vadd.f32 %v1413_v26, %v637_v45  ;;  %v1522_v51 = vmul.f32 %v637_v45, %v637_v45  ;;  %v641_v58 = vpop.f32.mrb[31].mxu0 }
 0x14c   :  { %v1634_v55 = vadd.f32 %v1633_v28, %v1521_v44  ;;  %v1346_v56 = vadd.f32 %v1345_v43, %v639_v52  ;;  %v1523_v57 = vmul.f32 %v639_v52, %v639_v52  ;;  %v3412_v61 = vpack.c.bf16 %v641_v58, %v639_v52 }
 0x14d   :  { %v2114_v3 = vpop.f32.mrb[44].mxu1  ;;  %1282 = vst [vmem:[%s4885_s8 + $0x70] sm:$0xff] %v3411_v49  ;;  %v1703_v31 = vadd.f32 %v1702_v33, %v1522_v51  ;;  %v1415_v62 = vadd.f32 %v1414_v50, %v641_v58 }
 0x14e   :  { %v2792_v9 = vadd.f32 %v2791_v60, %v2114_v3  ;;  %v2116_v11 = vpop.f32.mrb[45].mxu1  ;;  %v2972_v16 = vmul.f32 %v2114_v3, %v2114_v3  ;;  %v1635_v63 = vadd.f32 %v1634_v55, %v1523_v57  ;;  %1283 = vst [vmem:[%s4885_s8 + $0x78] sm:$0xff] %v3412_v61 }
 0x14f   :  { %v2118_v17 = vpop.f32.mrb[46].mxu1  ;;  %v3483_v21 = vpack.c.bf16 %v2116_v11, %v2114_v3  ;;  %v2861_v30 = vadd.f32 %v2860_v1, %v2116_v11  ;;  %v2973_v32 = vmul.f32 %v2116_v11, %v2116_v11  ;;  %v1524_v1 = vmul.f32 %v641_v58, %v641_v58 }
 0x150   :  { %v2120_v22 = vpop.f32.mrb[47].mxu1  ;;  %v3077_v29 = vadd.f32 %v3076_v2, %v2972_v16  ;;  %v2793_v34 = vadd.f32 %v2792_v9, %v2118_v17  ;;  %v2974_v35 = vmul.f32 %v2118_v17, %v2118_v17  ;;  %v645_v13 = vpop.f32.mrb[32].mxu0 }
 0x151   :  { %2729 = vst [vmem:[%s4884_s11 + $0xb0] sm:$0xff] %v3483_v21  ;;  %v3484_v36 = vpack.c.bf16 %v2120_v22, %v2118_v17  ;;  %v3146_v37 = vadd.f32 %v3145_v8, %v2973_v32  ;;  %v2862_v38 = vadd.f32 %v2861_v30, %v2120_v22  ;;  %v2975_v39 = vmul.f32 %v2120_v22, %v2120_v22  ;;  %v647_v18 = vpop.f32.mrb[33].mxu0 }
 0x152   :  { %v3078_v41 = vadd.f32 %v3077_v29, %v2974_v35  ;;  %v1704_v4 = vadd.f32 %v1703_v31, %v1524_v1  ;;  %v1347_v16 = vadd.f32 %v1346_v56, %v645_v13  ;;  %v1525_v17 = vmul.f32 %v645_v13, %v645_v13  ;;  %v649_v24 = vpop.f32.mrb[34].mxu0 }
 0x153   :  { %2730 = vst [vmem:[%s4884_s11 + $0xb8] sm:$0xff] %v3484_v36  ;;  %v3147_v46 = vadd.f32 %v3146_v37, %v2975_v39  ;;  %v3413_v21 = vpack.c.bf16 %v647_v18, %v645_v13  ;;  %v1416_v22 = vadd.f32 %v1415_v62, %v647_v18  ;;  %v1526_v23 = vmul.f32 %v647_v18, %v647_v18  ;;  %v651_v32 = vpop.f32.mrb[35].mxu0 }
 0x154   :  { %v1636_v28 = vadd.f32 %v1635_v63, %v1525_v17  ;;  %v1348_v29 = vadd.f32 %v1347_v16, %v649_v24  ;;  %v1527_v30 = vmul.f32 %v649_v24, %v649_v24  ;;  %v3414_v36 = vpack.c.bf16 %v651_v32, %v649_v24 }
 0x155   :  { %v2124_v42 = vpop.f32.mrb[48].mxu1  ;;  %1284 = vst [vmem:[%s4885_s8 + $0x80] sm:$0xff] %v3413_v21  ;;  %v1705_v35 = vadd.f32 %v1704_v4, %v1526_v23  ;;  %v1417_v37 = vadd.f32 %v1416_v22, %v651_v32 }
 0x156   :  { %v2794_v47 = vadd.f32 %v2793_v34, %v2124_v42  ;;  %v2126_v48 = vpop.f32.mrb[49].mxu1  ;;  %v2976_v53 = vmul.f32 %v2124_v42, %v2124_v42  ;;  %v1637_v39 = vadd.f32 %v1636_v28, %v1527_v30  ;;  %1285 = vst [vmem:[%s4885_s8 + $0x88] sm:$0xff] %v3414_v36 }
 0x157   :  { %v2128_v54 = vpop.f32.mrb[50].mxu1  ;;  %v3485_v59 = vpack.c.bf16 %v2126_v48, %v2124_v42  ;;  %v2863_v2 = vadd.f32 %v2862_v38, %v2126_v48  ;;  %v2977_v3 = vmul.f32 %v2126_v48, %v2126_v48  ;;  %v1528_v38 = vmul.f32 %v651_v32, %v651_v32 }
 0x158   :  { %v2130_v60 = vpop.f32.mrb[51].mxu1  ;;  %v3079_v0 = vadd.f32 %v3078_v41, %v2976_v53  ;;  %v2795_v5 = vadd.f32 %v2794_v47, %v2128_v54  ;;  %v2978_v6 = vmul.f32 %v2128_v54, %v2128_v54  ;;  %v655_v50 = vpop.f32.mrb[36].mxu0 }
 0x159   :  { %2731 = vst [vmem:[%s4884_s11 + $0xc0] sm:$0xff] %v3485_v59  ;;  %v3486_v8 = vpack.c.bf16 %v2130_v60, %v2128_v54  ;;  %v3148_v9 = vadd.f32 %v3147_v46, %v2977_v3  ;;  %v2864_v11 = vadd.f32 %v2863_v2, %v2130_v60  ;;  %v2979_v12 = vmul.f32 %v2130_v60, %v2130_v60  ;;  %v657_v55 = vpop.f32.mrb[37].mxu0 }
 0x15a   :  { %v3080_v14 = vadd.f32 %v3079_v0, %v2978_v6  ;;  %v1706_v43 = vadd.f32 %v1705_v35, %v1528_v38  ;;  %v1349_v53 = vadd.f32 %v1348_v29, %v655_v50  ;;  %v1529_v54 = vmul.f32 %v655_v50, %v655_v50  ;;  %v659_v61 = vpop.f32.mrb[38].mxu0 }
 0x15b   :  { %2732 = vst [vmem:[%s4884_s11 + $0xc8] sm:$0xff] %v3486_v8  ;;  %v3149_v19 = vadd.f32 %v3148_v9, %v2979_v12  ;;  %v3415_v59 = vpack.c.bf16 %v657_v55, %v655_v50  ;;  %v1418_v60 = vadd.f32 %v1417_v37, %v657_v55  ;;  %v1530_v31 = vmul.f32 %v657_v55, %v657_v55  ;;  %v661_v3 = vpop.f32.mrb[39].mxu0 }
 0x15c   :  { %v1638_v63 = vadd.f32 %v1637_v39, %v1529_v54  ;;  %v1350_v0 = vadd.f32 %v1349_v53, %v659_v61  ;;  %v1531_v2 = vmul.f32 %v659_v61, %v659_v61  ;;  %v3416_v8 = vpack.c.bf16 %v661_v3, %v659_v61 }
 0x15d   :  { %v2134_v15 = vpop.f32.mrb[52].mxu1  ;;  %1286 = vst [vmem:[%s4885_s8 + $0x90] sm:$0xff] %v3415_v59  ;;  %v1707_v6 = vadd.f32 %v1706_v43, %v1530_v31  ;;  %v1419_v9 = vadd.f32 %v1418_v60, %v661_v3 }
 0x15e   :  { %v2796_v20 = vadd.f32 %v2795_v5, %v2134_v15  ;;  %v2136_v25 = vpop.f32.mrb[53].mxu1  ;;  %v2980_v26 = vmul.f32 %v2134_v15, %v2134_v15  ;;  %v1639_v12 = vadd.f32 %v1638_v63, %v1531_v2  ;;  %1287 = vst [vmem:[%s4885_s8 + $0x98] sm:$0xff] %v3416_v8 }
 0x15f   :  { %v2138_v27 = vpop.f32.mrb[54].mxu1  ;;  %v3487_v33 = vpack.c.bf16 %v2136_v25, %v2134_v15  ;;  %v2865_v41 = vadd.f32 %v2864_v11, %v2136_v25  ;;  %v2981_v42 = vmul.f32 %v2136_v25, %v2136_v25  ;;  %v1532_v11 = vmul.f32 %v661_v3, %v661_v3 }
 0x160   :  { %v2140_v34 = vpop.f32.mrb[55].mxu1  ;;  %v3081_v40 = vadd.f32 %v3080_v14, %v2980_v26  ;;  %v2797_v44 = vadd.f32 %v2796_v20, %v2138_v27  ;;  %v2982_v45 = vmul.f32 %v2138_v27, %v2138_v27  ;;  %v665_v22 = vpop.f32.mrb[40].mxu0 }
 0x161   :  { %2733 = vst [vmem:[%s4884_s11 + $0xd0] sm:$0xff] %v3487_v33  ;;  %v3488_v46 = vpack.c.bf16 %v2140_v34, %v2138_v27  ;;  %v3150_v47 = vadd.f32 %v3149_v19, %v2981_v42  ;;  %v2866_v48 = vadd.f32 %v2865_v41, %v2140_v34  ;;  %v2983_v49 = vmul.f32 %v2140_v34, %v2140_v34  ;;  %v667_v28 = vpop.f32.mrb[41].mxu0 }
 0x162   :  { %v3082_v51 = vadd.f32 %v3081_v40, %v2982_v45  ;;  %v1708_v16 = vadd.f32 %v1707_v6, %v1532_v11  ;;  %v1351_v26 = vadd.f32 %v1350_v0, %v665_v22  ;;  %v1533_v27 = vmul.f32 %v665_v22, %v665_v22  ;;  %v669_v36 = vpop.f32.mrb[42].mxu0 }
 0x163   :  { %2734 = vst [vmem:[%s4884_s11 + $0xd8] sm:$0xff] %v3488_v46  ;;  %v3151_v56 = vadd.f32 %v3150_v47, %v2983_v49  ;;  %v3417_v33 = vpack.c.bf16 %v667_v28, %v665_v22  ;;  %v1420_v34 = vadd.f32 %v1419_v9, %v667_v28  ;;  %v1534_v35 = vmul.f32 %v667_v28, %v667_v28  ;;  %v671_v42 = vpop.f32.mrb[43].mxu0 }
 0x164   :  { %v1640_v39 = vadd.f32 %v1639_v12, %v1533_v27  ;;  %v1352_v40 = vadd.f32 %v1351_v26, %v669_v36  ;;  %v1535_v41 = vmul.f32 %v669_v36, %v669_v36  ;;  %v3418_v46 = vpack.c.bf16 %v671_v42, %v669_v36 }
 0x165   :  { %v2144_v52 = vpop.f32.mrb[56].mxu1  ;;  %1288 = vst [vmem:[%s4885_s8 + $0xa0] sm:$0xff] %v3417_v33  ;;  %v1709_v45 = vadd.f32 %v1708_v16, %v1534_v35  ;;  %v1421_v47 = vadd.f32 %v1420_v34, %v671_v42 }
 0x166   :  { %v2798_v57 = vadd.f32 %v2797_v44, %v2144_v52  ;;  %v2146_v58 = vpop.f32.mrb[57].mxu1  ;;  %v2984_v62 = vmul.f32 %v2144_v52, %v2144_v52  ;;  %v1641_v49 = vadd.f32 %v1640_v39, %v1535_v41  ;;  %1289 = vst [vmem:[%s4885_s8 + $0xa8] sm:$0xff] %v3418_v46 }
 0x167   :  { %v2148_v1 = vpop.f32.mrb[58].mxu1  ;;  %v3489_v4 = vpack.c.bf16 %v2146_v58, %v2144_v52  ;;  %v2867_v14 = vadd.f32 %v2866_v48, %v2146_v58  ;;  %v2985_v15 = vmul.f32 %v2146_v58, %v2146_v58  ;;  %v1536_v48 = vmul.f32 %v671_v42, %v671_v42 }
 0x168   :  { %v2150_v5 = vpop.f32.mrb[59].mxu1  ;;  %v3083_v13 = vadd.f32 %v3082_v51, %v2984_v62  ;;  %v2799_v17 = vadd.f32 %v2798_v57, %v2148_v1  ;;  %v2986_v18 = vmul.f32 %v2148_v1, %v2148_v1  ;;  %v675_v60 = vpop.f32.mrb[44].mxu0 }
 0x169   :  { %2735 = vst [vmem:[%s4884_s11 + $0xe0] sm:$0xff] %v3489_v4  ;;  %v3490_v19 = vpack.c.bf16 %v2150_v5, %v2148_v1  ;;  %v3152_v20 = vadd.f32 %v3151_v56, %v2985_v15  ;;  %v2868_v25 = vadd.f32 %v2867_v14, %v2150_v5  ;;  %v2987_v21 = vmul.f32 %v2150_v5, %v2150_v5  ;;  %v677_v63 = vpop.f32.mrb[45].mxu0 }
 0x16a   :  { %v3084_v23 = vadd.f32 %v3083_v13, %v2986_v18  ;;  %v1710_v53 = vadd.f32 %v1709_v45, %v1536_v48  ;;  %v1353_v62 = vadd.f32 %v1352_v40, %v675_v60  ;;  %v1537_v1 = vmul.f32 %v675_v60, %v675_v60  ;;  %v679_v8 = vpop.f32.mrb[46].mxu0 }
 0x16b   :  { %2736 = vst [vmem:[%s4884_s11 + $0xe8] sm:$0xff] %v3490_v19  ;;  %v3153_v29 = vadd.f32 %v3152_v20, %v2987_v21  ;;  %v3419_v4 = vpack.c.bf16 %v677_v63, %v675_v60  ;;  %v1422_v5 = vadd.f32 %v1421_v47, %v677_v63  ;;  %v1538_v6 = vmul.f32 %v677_v63, %v677_v63  ;;  %v681_v15 = vpop.f32.mrb[47].mxu0 }
 0x16c   :  { %v1642_v12 = vadd.f32 %v1641_v49, %v1537_v1  ;;  %v1354_v13 = vadd.f32 %v1353_v62, %v679_v8  ;;  %v1539_v14 = vmul.f32 %v679_v8, %v679_v8  ;;  %v3420_v19 = vpack.c.bf16 %v681_v15, %v679_v8 }
 0x16d   :  { %v2154_v24 = vpop.f32.mrb[60].mxu1  ;;  %1290 = vst [vmem:[%s4885_s8 + $0xb0] sm:$0xff] %v3419_v4  ;;  %v1711_v18 = vadd.f32 %v1710_v53, %v1538_v6  ;;  %v1423_v20 = vadd.f32 %v1422_v5, %v681_v15 }
 0x16e   :  { %v2800_v30 = vadd.f32 %v2799_v17, %v2154_v24  ;;  %v2156_v32 = vpop.f32.mrb[61].mxu1  ;;  %v2988_v37 = vmul.f32 %v2154_v24, %v2154_v24  ;;  %v1643_v21 = vadd.f32 %v1642_v12, %v1539_v14  ;;  %1291 = vst [vmem:[%s4885_s8 + $0xb8] sm:$0xff] %v3420_v19 }
 0x16f   :  { %v2158_v38 = vpop.f32.mrb[62].mxu1  ;;  %v3491_v43 = vpack.c.bf16 %v2156_v32, %v2154_v24  ;;  %v2869_v51 = vadd.f32 %v2868_v25, %v2156_v32  ;;  %v2989_v52 = vmul.f32 %v2156_v32, %v2156_v32  ;;  %v1540_v25 = vmul.f32 %v681_v15, %v681_v15 }
 0x170   :  { %v2160_v44 = vpop.f32.mrb[63].mxu1  ;;  %v3085_v50 = vadd.f32 %v3084_v23, %v2988_v37  ;;  %v2801_v54 = vadd.f32 %v2800_v30, %v2158_v38  ;;  %v2990_v55 = vmul.f32 %v2158_v38, %v2158_v38  ;;  %v685_v34 = vpop.f32.mrb[48].mxu0 }
 0x171   :  { %2737 = vst [vmem:[%s4884_s11 + $0xf0] sm:$0xff] %v3491_v43  ;;  %v3492_v56 = vpack.c.bf16 %v2160_v44, %v2158_v38  ;;  %v3154_v57 = vadd.f32 %v3153_v29, %v2989_v52  ;;  %v2870_v58 = vadd.f32 %v2869_v51, %v2160_v44  ;;  %v2991_v59 = vmul.f32 %v2160_v44, %v2160_v44  ;;  %v687_v39 = vpop.f32.mrb[49].mxu0 }
 0x172   :  { %v3086_v31 = vadd.f32 %v3085_v50, %v2990_v55  ;;  %v1712_v26 = vadd.f32 %v1711_v18, %v1540_v25  ;;  %v1355_v37 = vadd.f32 %v1354_v13, %v685_v34  ;;  %v1541_v38 = vmul.f32 %v685_v34, %v685_v34  ;;  %v689_v46 = vpop.f32.mrb[50].mxu0 }
 0x173   :  { %2738 = vst [vmem:[%s4884_s11 + $0xf8] sm:$0xff] %v3492_v56  ;;  %v3155_v0 = vadd.f32 %v3154_v57, %v2991_v59  ;;  %v3421_v43 = vpack.c.bf16 %v687_v39, %v685_v34  ;;  %v1424_v44 = vadd.f32 %v1423_v20, %v687_v39  ;;  %v1542_v45 = vmul.f32 %v687_v39, %v687_v39  ;;  %v691_v52 = vpop.f32.mrb[51].mxu0 }
 0x174   :  { %v1644_v49 = vadd.f32 %v1643_v21, %v1541_v38  ;;  %v1356_v50 = vadd.f32 %v1355_v37, %v689_v46  ;;  %v1543_v51 = vmul.f32 %v689_v46, %v689_v46  ;;  %v3422_v56 = vpack.c.bf16 %v691_v52, %v689_v46 }
 0x175   :  { %v2164_v61 = vpop.f32.mrb[64].mxu1  ;;  %1292 = vst [vmem:[%s4885_s8 + $0xc0] sm:$0xff] %v3421_v43  ;;  %v1713_v55 = vadd.f32 %v1712_v26, %v1542_v45  ;;  %v1425_v57 = vadd.f32 %v1424_v44, %v691_v52 }
 0x176   :  { %v2802_v2 = vadd.f32 %v2801_v54, %v2164_v61  ;;  %v2166_v3 = vpop.f32.mrb[65].mxu1  ;;  %v2992_v9 = vmul.f32 %v2164_v61, %v2164_v61  ;;  %v1645_v59 = vadd.f32 %v1644_v49, %v1543_v51  ;;  %1293 = vst [vmem:[%s4885_s8 + $0xc8] sm:$0xff] %v3422_v56 }
 0x177   :  { %v2168_v11 = vpop.f32.mrb[66].mxu1  ;;  %v3493_v16 = vpack.c.bf16 %v2166_v3, %v2164_v61  ;;  %v2871_v23 = vadd.f32 %v2870_v58, %v2166_v3  ;;  %v2993_v24 = vmul.f32 %v2166_v3, %v2166_v3  ;;  %v1544_v58 = vmul.f32 %v691_v52, %v691_v52 }
 0x178   :  { %v2170_v17 = vpop.f32.mrb[67].mxu1  ;;  %v3087_v22 = vadd.f32 %v3086_v31, %v2992_v9  ;;  %v2803_v27 = vadd.f32 %v2802_v2, %v2168_v11  ;;  %v2994_v28 = vmul.f32 %v2168_v11, %v2168_v11  ;;  %v695_v5 = vpop.f32.mrb[52].mxu0 }
 0x179   :  { %2739 = vst [vmem:[%s4884_s11 + $0x100] sm:$0xff] %v3493_v16  ;;  %v3494_v29 = vpack.c.bf16 %v2170_v17, %v2168_v11  ;;  %v3156_v30 = vadd.f32 %v3155_v0, %v2993_v24  ;;  %v2872_v32 = vadd.f32 %v2871_v23, %v2170_v17  ;;  %v2995_v33 = vmul.f32 %v2170_v17, %v2170_v17  ;;  %v697_v12 = vpop.f32.mrb[53].mxu0 }
 0x17a   :  { %v3088_v35 = vadd.f32 %v3087_v22, %v2994_v28  ;;  %v1714_v62 = vadd.f32 %v1713_v55, %v1544_v58  ;;  %v1357_v9 = vadd.f32 %v1356_v50, %v695_v5  ;;  %v1545_v11 = vmul.f32 %v695_v5, %v695_v5  ;;  %v699_v19 = vpop.f32.mrb[54].mxu0 }
 0x17b   :  { %2740 = vst [vmem:[%s4884_s11 + $0x108] sm:$0xff] %v3494_v29  ;;  %v3157_v40 = vadd.f32 %v3156_v30, %v2995_v33  ;;  %v3423_v16 = vpack.c.bf16 %v697_v12, %v695_v5  ;;  %v1426_v17 = vadd.f32 %v1425_v57, %v697_v12  ;;  %v1546_v18 = vmul.f32 %v697_v12, %v697_v12  ;;  %v701_v24 = vpop.f32.mrb[55].mxu0 }
 0x17c   :  { %v1646_v21 = vadd.f32 %v1645_v59, %v1545_v11  ;;  %v1358_v22 = vadd.f32 %v1357_v9, %v699_v19  ;;  %v1547_v23 = vmul.f32 %v699_v19, %v699_v19  ;;  %v3424_v29 = vpack.c.bf16 %v701_v24, %v699_v19 }
 0x17d   :  { %v2174_v36 = vpop.f32.mrb[68].mxu1  ;;  %1294 = vst [vmem:[%s4885_s8 + $0xd0] sm:$0xff] %v3423_v16  ;;  %v1715_v28 = vadd.f32 %v1714_v62, %v1546_v18  ;;  %v1427_v30 = vadd.f32 %v1426_v17, %v701_v24 }
 0x17e   :  { %v2804_v41 = vadd.f32 %v2803_v27, %v2174_v36  ;;  %v2176_v42 = vpop.f32.mrb[69].mxu1  ;;  %v2996_v47 = vmul.f32 %v2174_v36, %v2174_v36  ;;  %v1647_v33 = vadd.f32 %v1646_v21, %v1547_v23  ;;  %1295 = vst [vmem:[%s4885_s8 + $0xd8] sm:$0xff] %v3424_v29 }
 0x17f   :  { %v2178_v48 = vpop.f32.mrb[70].mxu1  ;;  %v3495_v53 = vpack.c.bf16 %v2176_v42, %v2174_v36  ;;  %v2873_v31 = vadd.f32 %v2872_v32, %v2176_v42  ;;  %v2997_v61 = vmul.f32 %v2176_v42, %v2176_v42  ;;  %v1548_v32 = vmul.f32 %v701_v24, %v701_v24 }
 0x180   :  { %v2180_v54 = vpop.f32.mrb[71].mxu1  ;;  %v3089_v60 = vadd.f32 %v3088_v35, %v2996_v47  ;;  %v2805_v1 = vadd.f32 %v2804_v41, %v2178_v48  ;;  %v2998_v63 = vmul.f32 %v2178_v48, %v2178_v48  ;;  %v705_v44 = vpop.f32.mrb[56].mxu0 }
 0x181   :  { %2741 = vst [vmem:[%s4884_s11 + $0x110] sm:$0xff] %v3495_v53  ;;  %v3496_v0 = vpack.c.bf16 %v2180_v54, %v2178_v48  ;;  %v3158_v2 = vadd.f32 %v3157_v40, %v2997_v61  ;;  %v2874_v3 = vadd.f32 %v2873_v31, %v2180_v54  ;;  %v2999_v4 = vmul.f32 %v2180_v54, %v2180_v54  ;;  %v707_v49 = vpop.f32.mrb[57].mxu0 }
 0x182   :  { %v3090_v6 = vadd.f32 %v3089_v60, %v2998_v63  ;;  %v1716_v37 = vadd.f32 %v1715_v28, %v1548_v32  ;;  %v1359_v47 = vadd.f32 %v1358_v22, %v705_v44  ;;  %v1549_v48 = vmul.f32 %v705_v44, %v705_v44  ;;  %v709_v56 = vpop.f32.mrb[58].mxu0 }
 0x183   :  { %2742 = vst [vmem:[%s4884_s11 + $0x118] sm:$0xff] %v3496_v0  ;;  %v3159_v13 = vadd.f32 %v3158_v2, %v2999_v4  ;;  %v3425_v53 = vpack.c.bf16 %v707_v49, %v705_v44  ;;  %v1428_v54 = vadd.f32 %v1427_v30, %v707_v49  ;;  %v1550_v55 = vmul.f32 %v707_v49, %v707_v49  ;;  %v711_v61 = vpop.f32.mrb[59].mxu0 }
 0x184   :  { %v1648_v59 = vadd.f32 %v1647_v33, %v1549_v48  ;;  %v1360_v60 = vadd.f32 %v1359_v47, %v709_v56  ;;  %v1551_v31 = vmul.f32 %v709_v56, %v709_v56  ;;  %v3426_v0 = vpack.c.bf16 %v711_v61, %v709_v56 }
 0x185   :  { %v2184_v8 = vpop.f32.mrb[72].mxu1  ;;  %1296 = vst [vmem:[%s4885_s8 + $0xe0] sm:$0xff] %v3425_v53  ;;  %v1717_v63 = vadd.f32 %v1716_v37, %v1550_v55  ;;  %v1429_v2 = vadd.f32 %v1428_v54, %v711_v61 }
 0x186   :  { %v2806_v14 = vadd.f32 %v2805_v1, %v2184_v8  ;;  %v2186_v15 = vpop.f32.mrb[73].mxu1  ;;  %v3000_v20 = vmul.f32 %v2184_v8, %v2184_v8  ;;  %v1649_v4 = vadd.f32 %v1648_v59, %v1551_v31  ;;  %1297 = vst [vmem:[%s4885_s8 + $0xe8] sm:$0xff] %v3426_v0 }
 0x187   :  { %v2188_v25 = vpop.f32.mrb[74].mxu1  ;;  %v3497_v26 = vpack.c.bf16 %v2186_v15, %v2184_v8  ;;  %v2875_v35 = vadd.f32 %v2874_v3, %v2186_v15  ;;  %v3001_v36 = vmul.f32 %v2186_v15, %v2186_v15  ;;  %v1552_v3 = vmul.f32 %v711_v61, %v711_v61 }
 0x188   :  { %v2190_v27 = vpop.f32.mrb[75].mxu1  ;;  %v3091_v34 = vadd.f32 %v3090_v6, %v3000_v20  ;;  %v2807_v38 = vadd.f32 %v2806_v14, %v2188_v25  ;;  %v3002_v39 = vmul.f32 %v2188_v25, %v2188_v25  ;;  %v715_v17 = vpop.f32.mrb[60].mxu0 }
 0x189   :  { %2743 = vst [vmem:[%s4884_s11 + $0x120] sm:$0xff] %v3497_v26  ;;  %v3498_v40 = vpack.c.bf16 %v2190_v27, %v2188_v25  ;;  %v3160_v41 = vadd.f32 %v3159_v13, %v3001_v36  ;;  %v2876_v42 = vadd.f32 %v2875_v35, %v2190_v27  ;;  %v3003_v43 = vmul.f32 %v2190_v27, %v2190_v27  ;;  %v717_v21 = vpop.f32.mrb[61].mxu0 }
 0x18a   :  { %v3092_v45 = vadd.f32 %v3091_v34, %v3002_v39  ;;  %v1718_v9 = vadd.f32 %v1717_v63, %v1552_v3  ;;  %v1361_v20 = vadd.f32 %v1360_v60, %v715_v17  ;;  %v1553_v25 = vmul.f32 %v715_v17, %v715_v17  ;;  %v719_v29 = vpop.f32.mrb[62].mxu0 }
 0x18b   :  { %2744 = vst [vmem:[%s4884_s11 + $0x128] sm:$0xff] %v3498_v40  ;;  %v3161_v50 = vadd.f32 %v3160_v41, %v3003_v43  ;;  %v3427_v26 = vpack.c.bf16 %v717_v21, %v715_v17  ;;  %v1430_v27 = vadd.f32 %v1429_v2, %v717_v21  ;;  %v1554_v28 = vmul.f32 %v717_v21, %v717_v21  ;;  %v721_v36 = vpop.f32.mrb[63].mxu0 }
 0x18c   :  { %v1650_v33 = vadd.f32 %v1649_v4, %v1553_v25  ;;  %v1362_v34 = vadd.f32 %v1361_v20, %v719_v29  ;;  %v1555_v35 = vmul.f32 %v719_v29, %v719_v29  ;;  %v3428_v40 = vpack.c.bf16 %v721_v36, %v719_v29 }
 0x18d   :  { %v2194_v46 = vpop.f32.mrb[76].mxu1  ;;  %1298 = vst [vmem:[%s4885_s8 + $0xf0] sm:$0xff] %v3427_v26  ;;  %v1719_v39 = vadd.f32 %v1718_v9, %v1554_v28  ;;  %v1431_v41 = vadd.f32 %v1430_v27, %v721_v36 }
 0x18e   :  { %v2808_v51 = vadd.f32 %v2807_v38, %v2194_v46  ;;  %v2196_v52 = vpop.f32.mrb[77].mxu1  ;;  %v3004_v57 = vmul.f32 %v2194_v46, %v2194_v46  ;;  %v1651_v43 = vadd.f32 %v1650_v33, %v1555_v35  ;;  %1299 = vst [vmem:[%s4885_s8 + $0xf8] sm:$0xff] %v3428_v40 }
 0x18f   :  { %v2198_v58 = vpop.f32.mrb[78].mxu1  ;;  %v3499_v62 = vpack.c.bf16 %v2196_v52, %v2194_v46  ;;  %v2877_v6 = vadd.f32 %v2876_v42, %v2196_v52  ;;  %v3005_v8 = vmul.f32 %v2196_v52, %v2196_v52  ;;  %v1556_v42 = vmul.f32 %v721_v36, %v721_v36 }
 0x190   :  { %v2200_v1 = vpop.f32.mrb[79].mxu1  ;;  %v3093_v5 = vadd.f32 %v3092_v45, %v3004_v57  ;;  %v2809_v11 = vadd.f32 %v2808_v51, %v2198_v58  ;;  %v3006_v12 = vmul.f32 %v2198_v58, %v2198_v58  ;;  %v725_v54 = vpop.f32.mrb[64].mxu0 }
 0x191   :  { %2745 = vst [vmem:[%s4884_s11 + $0x130] sm:$0xff] %v3499_v62  ;;  %v3500_v13 = vpack.c.bf16 %v2200_v1, %v2198_v58  ;;  %v3162_v14 = vadd.f32 %v3161_v50, %v3005_v8  ;;  %v2878_v15 = vadd.f32 %v2877_v6, %v2200_v1  ;;  %v3007_v16 = vmul.f32 %v2200_v1, %v2200_v1  ;;  %v727_v59 = vpop.f32.mrb[65].mxu0 }
 0x192   :  { %v3094_v18 = vadd.f32 %v3093_v5, %v3006_v12  ;;  %v1720_v47 = vadd.f32 %v1719_v39, %v1556_v42  ;;  %v1363_v57 = vadd.f32 %v1362_v34, %v725_v54  ;;  %v1557_v58 = vmul.f32 %v725_v54, %v725_v54  ;;  %v729_v0 = vpop.f32.mrb[66].mxu0 }
 0x193   :  { %2746 = vst [vmem:[%s4884_s11 + $0x138] sm:$0xff] %v3500_v13  ;;  %v3163_v22 = vadd.f32 %v3162_v14, %v3007_v16  ;;  %v3429_v62 = vpack.c.bf16 %v727_v59, %v725_v54  ;;  %v1432_v1 = vadd.f32 %v1431_v41, %v727_v59  ;;  %v1558_v63 = vmul.f32 %v727_v59, %v727_v59  ;;  %v731_v8 = vpop.f32.mrb[67].mxu0 }
 0x194   :  { %v1652_v4 = vadd.f32 %v1651_v43, %v1557_v58  ;;  %v1364_v5 = vadd.f32 %v1363_v57, %v729_v0  ;;  %v1559_v6 = vmul.f32 %v729_v0, %v729_v0  ;;  %v3430_v13 = vpack.c.bf16 %v731_v8, %v729_v0 }
 0x195   :  { %v2204_v19 = vpop.f32.mrb[80].mxu1  ;;  %1300 = vst [vmem:[%s4885_s8 + $0x100] sm:$0xff] %v3429_v62  ;;  %v1721_v12 = vadd.f32 %v1720_v47, %v1558_v63  ;;  %v1433_v14 = vadd.f32 %v1432_v1, %v731_v8 }
 0x196   :  { %v2810_v23 = vadd.f32 %v2809_v11, %v2204_v19  ;;  %v2206_v24 = vpop.f32.mrb[81].mxu1  ;;  %v3008_v30 = vmul.f32 %v2204_v19, %v2204_v19  ;;  %v1653_v16 = vadd.f32 %v1652_v4, %v1559_v6  ;;  %1301 = vst [vmem:[%s4885_s8 + $0x108] sm:$0xff] %v3430_v13 }
 0x197   :  { %v2208_v32 = vpop.f32.mrb[82].mxu1  ;;  %v3501_v37 = vpack.c.bf16 %v2206_v24, %v2204_v19  ;;  %v2879_v45 = vadd.f32 %v2878_v15, %v2206_v24  ;;  %v3009_v46 = vmul.f32 %v2206_v24, %v2206_v24  ;;  %v1560_v15 = vmul.f32 %v731_v8, %v731_v8 }
 0x198   :  { %v2210_v38 = vpop.f32.mrb[83].mxu1  ;;  %v3095_v44 = vadd.f32 %v3094_v18, %v3008_v30  ;;  %v2811_v48 = vadd.f32 %v2810_v23, %v2208_v32  ;;  %v3010_v49 = vmul.f32 %v2208_v32, %v2208_v32  ;;  %v735_v27 = vpop.f32.mrb[68].mxu0 }
 0x199   :  { %2747 = vst [vmem:[%s4884_s11 + $0x140] sm:$0xff] %v3501_v37  ;;  %v3502_v50 = vpack.c.bf16 %v2210_v38, %v2208_v32  ;;  %v3164_v51 = vadd.f32 %v3163_v22, %v3009_v46  ;;  %v2880_v52 = vadd.f32 %v2879_v45, %v2210_v38  ;;  %v3011_v53 = vmul.f32 %v2210_v38, %v2210_v38  ;;  %v737_v33 = vpop.f32.mrb[69].mxu0 }
 0x19a   :  { %v3096_v55 = vadd.f32 %v3095_v44, %v3010_v49  ;;  %v1722_v20 = vadd.f32 %v1721_v12, %v1560_v15  ;;  %v1365_v30 = vadd.f32 %v1364_v5, %v735_v27  ;;  %v1561_v32 = vmul.f32 %v735_v27, %v735_v27  ;;  %v739_v40 = vpop.f32.mrb[70].mxu0 }
 0x19b   :  { %2748 = vst [vmem:[%s4884_s11 + $0x148] sm:$0xff] %v3502_v50  ;;  %v3165_v60 = vadd.f32 %v3164_v51, %v3011_v53  ;;  %v3431_v37 = vpack.c.bf16 %v737_v33, %v735_v27  ;;  %v1434_v38 = vadd.f32 %v1433_v14, %v737_v33  ;;  %v1562_v39 = vmul.f32 %v737_v33, %v737_v33  ;;  %v741_v46 = vpop.f32.mrb[71].mxu0 }
 0x19c   :  { %v1654_v43 = vadd.f32 %v1653_v16, %v1561_v32  ;;  %v1366_v44 = vadd.f32 %v1365_v30, %v739_v40  ;;  %v1563_v45 = vmul.f32 %v739_v40, %v739_v40  ;;  %v3432_v50 = vpack.c.bf16 %v741_v46, %v739_v40 }
 0x19d   :  { %v2214_v56 = vpop.f32.mrb[84].mxu1  ;;  %1302 = vst [vmem:[%s4885_s8 + $0x110] sm:$0xff] %v3431_v37  ;;  %v1723_v49 = vadd.f32 %v1722_v20, %v1562_v39  ;;  %v1435_v51 = vadd.f32 %v1434_v38, %v741_v46 }
 0x19e   :  { %v2812_v31 = vadd.f32 %v2811_v48, %v2214_v56  ;;  %v2216_v61 = vpop.f32.mrb[85].mxu1  ;;  %v3012_v2 = vmul.f32 %v2214_v56, %v2214_v56  ;;  %v1655_v53 = vadd.f32 %v1654_v43, %v1563_v45  ;;  %1303 = vst [vmem:[%s4885_s8 + $0x118] sm:$0xff] %v3432_v50 }
 0x19f   :  { %v2218_v3 = vpop.f32.mrb[86].mxu1  ;;  %v3503_v9 = vpack.c.bf16 %v2216_v61, %v2214_v56  ;;  %v2881_v18 = vadd.f32 %v2880_v52, %v2216_v61  ;;  %v3013_v19 = vmul.f32 %v2216_v61, %v2216_v61  ;;  %v1564_v52 = vmul.f32 %v741_v46, %v741_v46 }
 0x1a0   :  { %v2220_v11 = vpop.f32.mrb[87].mxu1  ;;  %v3097_v17 = vadd.f32 %v3096_v55, %v3012_v2  ;;  %v2813_v25 = vadd.f32 %v2812_v31, %v2218_v3  ;;  %v3014_v21 = vmul.f32 %v2218_v3, %v2218_v3  ;;  %v745_v1 = vpop.f32.mrb[72].mxu0 }
 0x1a1   :  { %2749 = vst [vmem:[%s4884_s11 + $0x150] sm:$0xff] %v3503_v9  ;;  %v3504_v22 = vpack.c.bf16 %v2220_v11, %v2218_v3  ;;  %v3166_v23 = vadd.f32 %v3165_v60, %v3013_v19  ;;  %v2882_v24 = vadd.f32 %v2881_v18, %v2220_v11  ;;  %v3015_v26 = vmul.f32 %v2220_v11, %v2220_v11  ;;  %v747_v4 = vpop.f32.mrb[73].mxu0 }
 0x1a2   :  { %v3098_v28 = vadd.f32 %v3097_v17, %v3014_v21  ;;  %v1724_v57 = vadd.f32 %v1723_v49, %v1564_v52  ;;  %v1367_v2 = vadd.f32 %v1366_v44, %v745_v1  ;;  %v1565_v3 = vmul.f32 %v745_v1, %v745_v1  ;;  %v749_v13 = vpop.f32.mrb[74].mxu0 }
 0x1a3   :  { %2750 = vst [vmem:[%s4884_s11 + $0x158] sm:$0xff] %v3504_v22  ;;  %v3167_v34 = vadd.f32 %v3166_v23, %v3015_v26  ;;  %v3433_v9 = vpack.c.bf16 %v747_v4, %v745_v1  ;;  %v1436_v11 = vadd.f32 %v1435_v51, %v747_v4  ;;  %v1566_v12 = vmul.f32 %v747_v4, %v747_v4  ;;  %v751_v19 = vpop.f32.mrb[75].mxu0 }
 0x1a4   :  { %v1656_v16 = vadd.f32 %v1655_v53, %v1565_v3  ;;  %v1368_v17 = vadd.f32 %v1367_v2, %v749_v13  ;;  %v1567_v18 = vmul.f32 %v749_v13, %v749_v13  ;;  %v3434_v22 = vpack.c.bf16 %v751_v19, %v749_v13 }
 0x1a5   :  { %v2224_v29 = vpop.f32.mrb[88].mxu1  ;;  %1304 = vst [vmem:[%s4885_s8 + $0x120] sm:$0xff] %v3433_v9  ;;  %v1725_v21 = vadd.f32 %v1724_v57, %v1566_v12  ;;  %v1437_v23 = vadd.f32 %v1436_v11, %v751_v19 }
 0x1a6   :  { %v2814_v35 = vadd.f32 %v2813_v25, %v2224_v29  ;;  %v2226_v36 = vpop.f32.mrb[89].mxu1  ;;  %v3016_v41 = vmul.f32 %v2224_v29, %v2224_v29  ;;  %v1657_v26 = vadd.f32 %v1656_v16, %v1567_v18  ;;  %1305 = vst [vmem:[%s4885_s8 + $0x128] sm:$0xff] %v3434_v22 }
 0x1a7   :  { %v2228_v42 = vpop.f32.mrb[90].mxu1  ;;  %v3505_v47 = vpack.c.bf16 %v2226_v36, %v2224_v29  ;;  %v2883_v55 = vadd.f32 %v2882_v24, %v2226_v36  ;;  %v3017_v56 = vmul.f32 %v2226_v36, %v2226_v36  ;;  %v1568_v24 = vmul.f32 %v751_v19, %v751_v19 }
 0x1a8   :  { %v2230_v48 = vpop.f32.mrb[91].mxu1  ;;  %v3099_v54 = vadd.f32 %v3098_v28, %v3016_v41  ;;  %v2815_v58 = vadd.f32 %v2814_v35, %v2228_v42  ;;  %v3018_v59 = vmul.f32 %v2228_v42, %v2228_v42  ;;  %v755_v38 = vpop.f32.mrb[76].mxu0 }
 0x1a9   :  { %2751 = vst [vmem:[%s4884_s11 + $0x160] sm:$0xff] %v3505_v47  ;;  %v3506_v60 = vpack.c.bf16 %v2230_v48, %v2228_v42  ;;  %v3168_v31 = vadd.f32 %v3167_v34, %v3017_v56  ;;  %v2884_v61 = vadd.f32 %v2883_v55, %v2230_v48  ;;  %v3019_v62 = vmul.f32 %v2230_v48, %v2230_v48  ;;  %v757_v43 = vpop.f32.mrb[77].mxu0 }
 0x1aa   :  { %v3100_v63 = vadd.f32 %v3099_v54, %v3018_v59  ;;  %v1726_v30 = vadd.f32 %v1725_v21, %v1568_v24  ;;  %v1369_v41 = vadd.f32 %v1368_v17, %v755_v38  ;;  %v1569_v42 = vmul.f32 %v755_v38, %v755_v38  ;;  %v759_v50 = vpop.f32.mrb[78].mxu0 }
 0x1ab   :  { %2752 = vst [vmem:[%s4884_s11 + $0x168] sm:$0xff] %v3506_v60  ;;  %v3169_v5 = vadd.f32 %v3168_v31, %v3019_v62  ;;  %v3435_v47 = vpack.c.bf16 %v757_v43, %v755_v38  ;;  %v1438_v48 = vadd.f32 %v1437_v23, %v757_v43  ;;  %v1570_v49 = vmul.f32 %v757_v43, %v757_v43  ;;  %v761_v56 = vpop.f32.mrb[79].mxu0 }
 0x1ac   :  { %v1658_v53 = vadd.f32 %v1657_v26, %v1569_v42  ;;  %v1370_v54 = vadd.f32 %v1369_v41, %v759_v50  ;;  %v1571_v55 = vmul.f32 %v759_v50, %v759_v50  ;;  %v3436_v60 = vpack.c.bf16 %v761_v56, %v759_v50 }
 0x1ad   :  { %v2234_v0 = vpop.f32.mrb[92].mxu1  ;;  %1306 = vst [vmem:[%s4885_s8 + $0x130] sm:$0xff] %v3435_v47  ;;  %v1727_v59 = vadd.f32 %v1726_v30, %v1570_v49  ;;  %v1439_v31 = vadd.f32 %v1438_v48, %v761_v56 }
 0x1ae   :  { %v2816_v6 = vadd.f32 %v2815_v58, %v2234_v0  ;;  %v2236_v8 = vpop.f32.mrb[93].mxu1  ;;  %v3020_v14 = vmul.f32 %v2234_v0, %v2234_v0  ;;  %v1659_v62 = vadd.f32 %v1658_v53, %v1571_v55  ;;  %1307 = vst [vmem:[%s4885_s8 + $0x138] sm:$0xff] %v3436_v60 }
 0x1af   :  { %v2238_v15 = vpop.f32.mrb[94].mxu1  ;;  %v3507_v20 = vpack.c.bf16 %v2236_v8, %v2234_v0  ;;  %v2885_v28 = vadd.f32 %v2884_v61, %v2236_v8  ;;  %v3021_v29 = vmul.f32 %v2236_v8, %v2236_v8  ;;  %v1572_v61 = vmul.f32 %v761_v56, %v761_v56 }
 0x1b0   :  { %v2240_v25 = vpop.f32.mrb[95].mxu1  ;;  %v3101_v27 = vadd.f32 %v3100_v63, %v3020_v14  ;;  %v2817_v32 = vadd.f32 %v2816_v6, %v2238_v15  ;;  %v3022_v33 = vmul.f32 %v2238_v15, %v2238_v15  ;;  %v765_v11 = vpop.f32.mrb[80].mxu0 }
 0x1b1   :  { %2753 = vst [vmem:[%s4884_s11 + $0x170] sm:$0xff] %v3507_v20  ;;  %v3508_v34 = vpack.c.bf16 %v2240_v25, %v2238_v15  ;;  %v3170_v35 = vadd.f32 %v3169_v5, %v3021_v29  ;;  %v2886_v36 = vadd.f32 %v2885_v28, %v2240_v25  ;;  %v3023_v37 = vmul.f32 %v2240_v25, %v2240_v25  ;;  %v767_v16 = vpop.f32.mrb[81].mxu0 }
 0x1b2   :  { %v3102_v39 = vadd.f32 %v3101_v27, %v3022_v33  ;;  %v1728_v2 = vadd.f32 %v1727_v59, %v1572_v61  ;;  %v1371_v14 = vadd.f32 %v1370_v54, %v765_v11  ;;  %v1573_v15 = vmul.f32 %v765_v11, %v765_v11  ;;  %v769_v22 = vpop.f32.mrb[82].mxu0 }
 0x1b3   :  { %2754 = vst [vmem:[%s4884_s11 + $0x178] sm:$0xff] %v3508_v34  ;;  %v3171_v44 = vadd.f32 %v3170_v35, %v3023_v37  ;;  %v3437_v20 = vpack.c.bf16 %v767_v16, %v765_v11  ;;  %v1440_v25 = vadd.f32 %v1439_v31, %v767_v16  ;;  %v1574_v21 = vmul.f32 %v767_v16, %v767_v16  ;;  %v771_v29 = vpop.f32.mrb[83].mxu0 }
 0x1b4   :  { %v1660_v26 = vadd.f32 %v1659_v62, %v1573_v15  ;;  %v1372_v27 = vadd.f32 %v1371_v14, %v769_v22  ;;  %v1575_v28 = vmul.f32 %v769_v22, %v769_v22  ;;  %v3438_v34 = vpack.c.bf16 %v771_v29, %v769_v22 }
 0x1b5   :  { %v2244_v40 = vpop.f32.mrb[96].mxu1  ;;  %1308 = vst [vmem:[%s4885_s8 + $0x140] sm:$0xff] %v3437_v20  ;;  %v1729_v33 = vadd.f32 %v1728_v2, %v1574_v21  ;;  %v1441_v35 = vadd.f32 %v1440_v25, %v771_v29 }
 0x1b6   :  { %v2818_v45 = vadd.f32 %v2817_v32, %v2244_v40  ;;  %v2246_v46 = vpop.f32.mrb[97].mxu1  ;;  %v3024_v51 = vmul.f32 %v2244_v40, %v2244_v40  ;;  %v1661_v37 = vadd.f32 %v1660_v26, %v1575_v28  ;;  %1309 = vst [vmem:[%s4885_s8 + $0x148] sm:$0xff] %v3438_v34 }
 0x1b7   :  { %v2248_v52 = vpop.f32.mrb[98].mxu1  ;;  %v3509_v57 = vpack.c.bf16 %v2246_v46, %v2244_v40  ;;  %v2887_v63 = vadd.f32 %v2886_v36, %v2246_v46  ;;  %v3025_v0 = vmul.f32 %v2246_v46, %v2246_v46  ;;  %v1576_v36 = vmul.f32 %v771_v29, %v771_v29 }
 0x1b8   :  { %v2250_v58 = vpop.f32.mrb[99].mxu1  ;;  %v3103_v1 = vadd.f32 %v3102_v39, %v3024_v51  ;;  %v2819_v3 = vadd.f32 %v2818_v45, %v2248_v52  ;;  %v3026_v4 = vmul.f32 %v2248_v52, %v2248_v52  ;;  %v775_v48 = vpop.f32.mrb[84].mxu0 }
 0x1b9   :  { %2755 = vst [vmem:[%s4884_s11 + $0x180] sm:$0xff] %v3509_v57  ;;  %v3510_v5 = vpack.c.bf16 %v2250_v58, %v2248_v52  ;;  %v3172_v6 = vadd.f32 %v3171_v44, %v3025_v0  ;;  %v2888_v8 = vadd.f32 %v2887_v63, %v2250_v58  ;;  %v3027_v9 = vmul.f32 %v2250_v58, %v2250_v58  ;;  %v777_v53 = vpop.f32.mrb[85].mxu0 }
 0x1ba   :  { %v3104_v12 = vadd.f32 %v3103_v1, %v3026_v4  ;;  %v1730_v41 = vadd.f32 %v1729_v33, %v1576_v36  ;;  %v1373_v51 = vadd.f32 %v1372_v27, %v775_v48  ;;  %v1577_v52 = vmul.f32 %v775_v48, %v775_v48  ;;  %v779_v60 = vpop.f32.mrb[86].mxu0 }
 0x1bb   :  { %2756 = vst [vmem:[%s4884_s11 + $0x188] sm:$0xff] %v3510_v5  ;;  %v3173_v17 = vadd.f32 %v3172_v6, %v3027_v9  ;;  %v3439_v57 = vpack.c.bf16 %v777_v53, %v775_v48  ;;  %v1442_v58 = vadd.f32 %v1441_v35, %v777_v53  ;;  %v1578_v59 = vmul.f32 %v777_v53, %v777_v53  ;;  %v781_v0 = vpop.f32.mrb[87].mxu0 }
 0x1bc   :  { %v1662_v62 = vadd.f32 %v1661_v37, %v1577_v52  ;;  %v1374_v1 = vadd.f32 %v1373_v51, %v779_v60  ;;  %v1579_v63 = vmul.f32 %v779_v60, %v779_v60  ;;  %v3440_v5 = vpack.c.bf16 %v781_v0, %v779_v60 }
 0x1bd   :  { %v2254_v13 = vpop.f32.mrb[100].mxu1  ;;  %1310 = vst [vmem:[%s4885_s8 + $0x150] sm:$0xff] %v3439_v57  ;;  %v1731_v4 = vadd.f32 %v1730_v41, %v1578_v59  ;;  %v1443_v6 = vadd.f32 %v1442_v58, %v781_v0 }
 0x1be   :  { %v2820_v18 = vadd.f32 %v2819_v3, %v2254_v13  ;;  %v2256_v19 = vpop.f32.mrb[101].mxu1  ;;  %v3028_v23 = vmul.f32 %v2254_v13, %v2254_v13  ;;  %v1663_v9 = vadd.f32 %v1662_v62, %v1579_v63  ;;  %1311 = vst [vmem:[%s4885_s8 + $0x158] sm:$0xff] %v3440_v5 }
 0x1bf   :  { %v2258_v24 = vpop.f32.mrb[102].mxu1  ;;  %v3511_v30 = vpack.c.bf16 %v2256_v19, %v2254_v13  ;;  %v2889_v39 = vadd.f32 %v2888_v8, %v2256_v19  ;;  %v3029_v40 = vmul.f32 %v2256_v19, %v2256_v19  ;;  %v1580_v8 = vmul.f32 %v781_v0, %v781_v0 }
 0x1c0   :  { %v2260_v32 = vpop.f32.mrb[103].mxu1  ;;  %v3105_v38 = vadd.f32 %v3104_v12, %v3028_v23  ;;  %v2821_v42 = vadd.f32 %v2820_v18, %v2258_v24  ;;  %v3030_v43 = vmul.f32 %v2258_v24, %v2258_v24  ;;  %v785_v25 = vpop.f32.mrb[88].mxu0 }
 0x1c1   :  { %2757 = vst [vmem:[%s4884_s11 + $0x190] sm:$0xff] %v3511_v30  ;;  %v3512_v44 = vpack.c.bf16 %v2260_v32, %v2258_v24  ;;  %v3174_v45 = vadd.f32 %v3173_v17, %v3029_v40  ;;  %v2890_v46 = vadd.f32 %v2889_v39, %v2260_v32  ;;  %v3031_v47 = vmul.f32 %v2260_v32, %v2260_v32  ;;  %v787_v26 = vpop.f32.mrb[89].mxu0 }
 0x1c2   :  { %v3106_v49 = vadd.f32 %v3105_v38, %v3030_v43  ;;  %v1732_v14 = vadd.f32 %v1731_v4, %v1580_v8  ;;  %v1375_v23 = vadd.f32 %v1374_v1, %v785_v25  ;;  %v1581_v24 = vmul.f32 %v785_v25, %v785_v25  ;;  %v789_v34 = vpop.f32.mrb[90].mxu0 }
 0x1c3   :  { %2758 = vst [vmem:[%s4884_s11 + $0x198] sm:$0xff] %v3512_v44  ;;  %v3175_v54 = vadd.f32 %v3174_v45, %v3031_v47  ;;  %v3441_v30 = vpack.c.bf16 %v787_v26, %v785_v25  ;;  %v1444_v32 = vadd.f32 %v1443_v6, %v787_v26  ;;  %v1582_v33 = vmul.f32 %v787_v26, %v787_v26  ;;  %v791_v40 = vpop.f32.mrb[91].mxu0 }
 0x1c4   :  { %v1664_v37 = vadd.f32 %v1663_v9, %v1581_v24  ;;  %v1376_v38 = vadd.f32 %v1375_v23, %v789_v34  ;;  %v1583_v39 = vmul.f32 %v789_v34, %v789_v34  ;;  %v3442_v44 = vpack.c.bf16 %v791_v40, %v789_v34 }
 0x1c5   :  { %v2264_v50 = vpop.f32.mrb[104].mxu1  ;;  %1312 = vst [vmem:[%s4885_s8 + $0x160] sm:$0xff] %v3441_v30  ;;  %v1733_v43 = vadd.f32 %v1732_v14, %v1582_v33  ;;  %v1445_v45 = vadd.f32 %v1444_v32, %v791_v40 }
 0x1c6   :  { %v2822_v55 = vadd.f32 %v2821_v42, %v2264_v50  ;;  %v2266_v56 = vpop.f32.mrb[105].mxu1  ;;  %v3032_v31 = vmul.f32 %v2264_v50, %v2264_v50  ;;  %v1665_v47 = vadd.f32 %v1664_v37, %v1583_v39  ;;  %1313 = vst [vmem:[%s4885_s8 + $0x168] sm:$0xff] %v3442_v44 }
 0x1c7   :  { %v2268_v61 = vpop.f32.mrb[106].mxu1  ;;  %v3513_v2 = vpack.c.bf16 %v2266_v56, %v2264_v50  ;;  %v2891_v12 = vadd.f32 %v2890_v46, %v2266_v56  ;;  %v3033_v13 = vmul.f32 %v2266_v56, %v2266_v56  ;;  %v1584_v46 = vmul.f32 %v791_v40, %v791_v40 }
 0x1c8   :  { %v2270_v3 = vpop.f32.mrb[107].mxu1  ;;  %v3107_v11 = vadd.f32 %v3106_v49, %v3032_v31  ;;  %v2823_v15 = vadd.f32 %v2822_v55, %v2268_v61  ;;  %v3034_v16 = vmul.f32 %v2268_v61, %v2268_v61  ;;  %v795_v58 = vpop.f32.mrb[92].mxu0 }
 0x1c9   :  { %2759 = vst [vmem:[%s4884_s11 + $0x1a0] sm:$0xff] %v3513_v2  ;;  %v3514_v17 = vpack.c.bf16 %v2270_v3, %v2268_v61  ;;  %v3176_v18 = vadd.f32 %v3175_v54, %v3033_v13  ;;  %v2892_v19 = vadd.f32 %v2891_v12, %v2270_v3  ;;  %v3035_v20 = vmul.f32 %v2270_v3, %v2270_v3  ;;  %v797_v62 = vpop.f32.mrb[93].mxu0 }
 0x1ca   :  { %v3108_v21 = vadd.f32 %v3107_v11, %v3034_v16  ;;  %v1734_v51 = vadd.f32 %v1733_v43, %v1584_v46  ;;  %v1377_v31 = vadd.f32 %v1376_v38, %v795_v58  ;;  %v1585_v61 = vmul.f32 %v795_v58, %v795_v58  ;;  %v799_v5 = vpop.f32.mrb[94].mxu0 }
 0x1cb   :  { %2760 = vst [vmem:[%s4884_s11 + $0x1a8] sm:$0xff] %v3514_v17  ;;  %v3177_v27 = vadd.f32 %v3176_v18, %v3035_v20  ;;  %v3443_v2 = vpack.c.bf16 %v797_v62, %v795_v58  ;;  %v1446_v3 = vadd.f32 %v1445_v45, %v797_v62  ;;  %v1586_v4 = vmul.f32 %v797_v62, %v797_v62  ;;  %v801_v13 = vpop.f32.mrb[95].mxu0 }
 0x1cc   :  { %v1666_v9 = vadd.f32 %v1665_v47, %v1585_v61  ;;  %v1378_v11 = vadd.f32 %v1377_v31, %v799_v5  ;;  %v1587_v12 = vmul.f32 %v799_v5, %v799_v5  ;;  %v3444_v17 = vpack.c.bf16 %v801_v13, %v799_v5 }
 0x1cd   :  { %v2274_v22 = vpop.f32.mrb[108].mxu1  ;;  %1314 = vst [vmem:[%s4885_s8 + $0x170] sm:$0xff] %v3443_v2  ;;  %v1735_v16 = vadd.f32 %v1734_v51, %v1586_v4  ;;  %v1447_v18 = vadd.f32 %v1446_v3, %v801_v13 }
 0x1ce   :  { %v2824_v28 = vadd.f32 %v2823_v15, %v2274_v22  ;;  %v2276_v29 = vpop.f32.mrb[109].mxu1  ;;  %v3036_v35 = vmul.f32 %v2274_v22, %v2274_v22  ;;  %v1667_v20 = vadd.f32 %v1666_v9, %v1587_v12  ;;  %1315 = vst [vmem:[%s4885_s8 + $0x178] sm:$0xff] %v3444_v17 }
 0x1cf   :  { %v2278_v36 = vpop.f32.mrb[110].mxu1  ;;  %v3515_v41 = vpack.c.bf16 %v2276_v29, %v2274_v22  ;;  %v2893_v49 = vadd.f32 %v2892_v19, %v2276_v29  ;;  %v3037_v50 = vmul.f32 %v2276_v29, %v2276_v29  ;;  %v1588_v19 = vmul.f32 %v801_v13, %v801_v13 }
 0x1d0   :  { %v2280_v42 = vpop.f32.mrb[111].mxu1  ;;  %v3109_v48 = vadd.f32 %v3108_v21, %v3036_v35  ;;  %v2825_v52 = vadd.f32 %v2824_v28, %v2278_v36  ;;  %v3038_v53 = vmul.f32 %v2278_v36, %v2278_v36  ;;  %v805_v32 = vpop.f32.mrb[96].mxu0 }
 0x1d1   :  { %2761 = vst [vmem:[%s4884_s11 + $0x1b0] sm:$0xff] %v3515_v41  ;;  %v3516_v54 = vpack.c.bf16 %v2280_v42, %v2278_v36  ;;  %v3178_v55 = vadd.f32 %v3177_v27, %v3037_v50  ;;  %v2894_v56 = vadd.f32 %v2893_v49, %v2280_v42  ;;  %v3039_v57 = vmul.f32 %v2280_v42, %v2280_v42  ;;  %v807_v37 = vpop.f32.mrb[97].mxu0 }
 0x1d2   :  { %v3110_v59 = vadd.f32 %v3109_v48, %v3038_v53  ;;  %v1736_v23 = vadd.f32 %v1735_v16, %v1588_v19  ;;  %v1379_v35 = vadd.f32 %v1378_v11, %v805_v32  ;;  %v1589_v36 = vmul.f32 %v805_v32, %v805_v32  ;;  %v809_v44 = vpop.f32.mrb[98].mxu0 }
 0x1d3   :  { %2762 = vst [vmem:[%s4884_s11 + $0x1b8] sm:$0xff] %v3516_v54  ;;  %v3179_v1 = vadd.f32 %v3178_v55, %v3039_v57  ;;  %v3445_v41 = vpack.c.bf16 %v807_v37, %v805_v32  ;;  %v1448_v42 = vadd.f32 %v1447_v18, %v807_v37  ;;  %v1590_v43 = vmul.f32 %v807_v37, %v807_v37  ;;  %v811_v50 = vpop.f32.mrb[99].mxu0 }
 0x1d4   :  { %v1668_v47 = vadd.f32 %v1667_v20, %v1589_v36  ;;  %v1380_v48 = vadd.f32 %v1379_v35, %v809_v44  ;;  %v1591_v49 = vmul.f32 %v809_v44, %v809_v44  ;;  %v3446_v54 = vpack.c.bf16 %v811_v50, %v809_v44 }
 0x1d5   :  { %v2284_v60 = vpop.f32.mrb[112].mxu1  ;;  %1316 = vst [vmem:[%s4885_s8 + $0x180] sm:$0xff] %v3445_v41  ;;  %v1737_v53 = vadd.f32 %v1736_v23, %v1590_v43  ;;  %v1449_v55 = vadd.f32 %v1448_v42, %v811_v50 }
 0x1d6   :  { %v2826_v63 = vadd.f32 %v2825_v52, %v2284_v60  ;;  %v2286_v0 = vpop.f32.mrb[113].mxu1  ;;  %v3040_v6 = vmul.f32 %v2284_v60, %v2284_v60  ;;  %v1669_v57 = vadd.f32 %v1668_v47, %v1591_v49  ;;  %1317 = vst [vmem:[%s4885_s8 + $0x188] sm:$0xff] %v3446_v54 }
 0x1d7   :  { %v2288_v8 = vpop.f32.mrb[114].mxu1  ;;  %v3517_v14 = vpack.c.bf16 %v2286_v0, %v2284_v60  ;;  %v2895_v21 = vadd.f32 %v2894_v56, %v2286_v0  ;;  %v3041_v22 = vmul.f32 %v2286_v0, %v2286_v0  ;;  %v1592_v56 = vmul.f32 %v811_v50, %v811_v50 }
 0x1d8   :  { %v2290_v15 = vpop.f32.mrb[115].mxu1  ;;  %v3111_v25 = vadd.f32 %v3110_v59, %v3040_v6  ;;  %v2827_v24 = vadd.f32 %v2826_v63, %v2288_v8  ;;  %v3042_v26 = vmul.f32 %v2288_v8, %v2288_v8  ;;  %v815_v3 = vpop.f32.mrb[100].mxu0 }
 0x1d9   :  { %2763 = vst [vmem:[%s4884_s11 + $0x1c0] sm:$0xff] %v3517_v14  ;;  %v3518_v27 = vpack.c.bf16 %v2290_v15, %v2288_v8  ;;  %v3180_v28 = vadd.f32 %v3179_v1, %v3041_v22  ;;  %v2896_v29 = vadd.f32 %v2895_v21, %v2290_v15  ;;  %v3043_v30 = vmul.f32 %v2290_v15, %v2290_v15  ;;  %v817_v9 = vpop.f32.mrb[101].mxu0 }
 0x1da   :  { %v3112_v33 = vadd.f32 %v3111_v25, %v3042_v26  ;;  %v1738_v31 = vadd.f32 %v1737_v53, %v1592_v56  ;;  %v1381_v6 = vadd.f32 %v1380_v48, %v815_v3  ;;  %v1593_v8 = vmul.f32 %v815_v3, %v815_v3  ;;  %v819_v17 = vpop.f32.mrb[102].mxu0 }
 0x1db   :  { %2764 = vst [vmem:[%s4884_s11 + $0x1c8] sm:$0xff] %v3518_v27  ;;  %v3181_v38 = vadd.f32 %v3180_v28, %v3043_v30  ;;  %v3447_v14 = vpack.c.bf16 %v817_v9, %v815_v3  ;;  %v1450_v15 = vadd.f32 %v1449_v55, %v817_v9  ;;  %v1594_v16 = vmul.f32 %v817_v9, %v817_v9  ;;  %v821_v22 = vpop.f32.mrb[103].mxu0 }
 0x1dc   :  { %v1670_v20 = vadd.f32 %v1669_v57, %v1593_v8  ;;  %v1382_v25 = vadd.f32 %v1381_v6, %v819_v17  ;;  %v1595_v21 = vmul.f32 %v819_v17, %v819_v17  ;;  %v3448_v27 = vpack.c.bf16 %v821_v22, %v819_v17 }
 0x1dd   :  { %v2294_v34 = vpop.f32.mrb[116].mxu1  ;;  %1318 = vst [vmem:[%s4885_s8 + $0x190] sm:$0xff] %v3447_v14  ;;  %v1739_v26 = vadd.f32 %v1738_v31, %v1594_v16  ;;  %v1451_v28 = vadd.f32 %v1450_v15, %v821_v22 }
 0x1de   :  { %v2828_v39 = vadd.f32 %v2827_v24, %v2294_v34  ;;  %v2296_v40 = vpop.f32.mrb[117].mxu1  ;;  %v3044_v45 = vmul.f32 %v2294_v34, %v2294_v34  ;;  %v1671_v30 = vadd.f32 %v1670_v20, %v1595_v21  ;;  %1319 = vst [vmem:[%s4885_s8 + $0x198] sm:$0xff] %v3448_v27 }
 0x1df   :  { %v2298_v46 = vpop.f32.mrb[118].mxu1  ;;  %v3519_v51 = vpack.c.bf16 %v2296_v40, %v2294_v34  ;;  %v2897_v59 = vadd.f32 %v2896_v29, %v2296_v40  ;;  %v3045_v60 = vmul.f32 %v2296_v40, %v2296_v40  ;;  %v1596_v29 = vmul.f32 %v821_v22, %v821_v22 }
 0x1e0   :  { %v2300_v52 = vpop.f32.mrb[119].mxu1  ;;  %v3113_v58 = vadd.f32 %v3112_v33, %v3044_v45  ;;  %v2829_v61 = vadd.f32 %v2828_v39, %v2298_v46  ;;  %v3046_v62 = vmul.f32 %v2298_v46, %v2298_v46  ;;  %v825_v42 = vpop.f32.mrb[104].mxu0 }
 0x1e1   :  { %2765 = vst [vmem:[%s4884_s11 + $0x1d0] sm:$0xff] %v3519_v51  ;;  %v3520_v1 = vpack.c.bf16 %v2300_v52, %v2298_v46  ;;  %v3182_v63 = vadd.f32 %v3181_v38, %v3045_v60  ;;  %v2898_v0 = vadd.f32 %v2897_v59, %v2300_v52  ;;  %v3047_v2 = vmul.f32 %v2300_v52, %v2300_v52  ;;  %v827_v47 = vpop.f32.mrb[105].mxu0 }
 0x1e2   :  { %v3114_v4 = vadd.f32 %v3113_v58, %v3046_v62  ;;  %v1740_v35 = vadd.f32 %v1739_v26, %v1596_v29  ;;  %v1383_v45 = vadd.f32 %v1382_v25, %v825_v42  ;;  %v1597_v46 = vmul.f32 %v825_v42, %v825_v42  ;;  %v829_v54 = vpop.f32.mrb[106].mxu0 }
 0x1e3   :  { %2766 = vst [vmem:[%s4884_s11 + $0x1d8] sm:$0xff] %v3520_v1  ;;  %v3183_v11 = vadd.f32 %v3182_v63, %v3047_v2  ;;  %v3449_v51 = vpack.c.bf16 %v827_v47, %v825_v42  ;;  %v1452_v52 = vadd.f32 %v1451_v28, %v827_v47  ;;  %v1598_v53 = vmul.f32 %v827_v47, %v827_v47  ;;  %v831_v60 = vpop.f32.mrb[107].mxu0 }
 0x1e4   :  { %v1672_v57 = vadd.f32 %v1671_v30, %v1597_v46  ;;  %v1384_v58 = vadd.f32 %v1383_v45, %v829_v54  ;;  %v1599_v59 = vmul.f32 %v829_v54, %v829_v54  ;;  %v3450_v1 = vpack.c.bf16 %v831_v60, %v829_v54 }
 0x1e5   :  { %v2304_v5 = vpop.f32.mrb[120].mxu1  ;;  %1320 = vst [vmem:[%s4885_s8 + $0x1a0] sm:$0xff] %v3449_v51  ;;  %v1741_v62 = vadd.f32 %v1740_v35, %v1598_v53  ;;  %v1453_v63 = vadd.f32 %v1452_v52, %v831_v60  ;;  %v3737_v46 = vmov 1966171168  }
 0x1e6   :  { %v2830_v12 = vadd.f32 %v2829_v61, %v2304_v5  ;;  %v2306_v13 = vpop.f32.mrb[121].mxu1  ;;  %v3048_v18 = vmul.f32 %v2304_v5, %v2304_v5  ;;  %v1673_v2 = vadd.f32 %v1672_v57, %v1599_v59  ;;  %1321 = vst [vmem:[%s4885_s8 + $0x1a8] sm:$0xff] %v3450_v1  ;;  %v1474_v47 = vunpack.c.l.s4 %v3737_v46 }
 0x1e7   :  { %v2308_v19 = vpop.f32.mrb[122].mxu1  ;;  %v3521_v23 = vpack.c.bf16 %v2306_v13, %v2304_v5  ;;  %v2899_v33 = vadd.f32 %v2898_v0, %v2306_v13  ;;  %v3049_v34 = vmul.f32 %v2306_v13, %v2306_v13  ;;  %v1600_v0 = vmul.f32 %v831_v60, %v831_v60 }
 0x1e8   :  { %v2310_v24 = vpop.f32.mrb[123].mxu1  ;;  %v3115_v32 = vadd.f32 %v3114_v4, %v3048_v18  ;;  %v2831_v36 = vadd.f32 %v2830_v12, %v2308_v19  ;;  %v3050_v37 = vmul.f32 %v2308_v19, %v2308_v19  ;;  %v835_v15 = vpop.f32.mrb[108].mxu0 }
 0x1e9   :  { %2767 = vst [vmem:[%s4884_s11 + $0x1e0] sm:$0xff] %v3521_v23  ;;  %v3522_v38 = vpack.c.bf16 %v2310_v24, %v2308_v19  ;;  %v3184_v39 = vadd.f32 %v3183_v11, %v3049_v34  ;;  %v2900_v40 = vadd.f32 %v2899_v33, %v2310_v24  ;;  %v3051_v41 = vmul.f32 %v2310_v24, %v2310_v24  ;;  %v837_v20 = vpop.f32.mrb[109].mxu0 }
 0x1ea   :  { %v3116_v43 = vadd.f32 %v3115_v32, %v3050_v37  ;;  %v1742_v6 = vadd.f32 %v1741_v62, %v1600_v0  ;;  %v1385_v18 = vadd.f32 %v1384_v58, %v835_v15  ;;  %v1601_v19 = vmul.f32 %v835_v15, %v835_v15  ;;  %v839_v26 = vpop.f32.mrb[110].mxu0 }
 0x1eb   :  { %2768 = vst [vmem:[%s4884_s11 + $0x1e8] sm:$0xff] %v3522_v38  ;;  %v3185_v48 = vadd.f32 %v3184_v39, %v3051_v41  ;;  %v3451_v22 = vpack.c.bf16 %v837_v20, %v835_v15  ;;  %v1454_v23 = vadd.f32 %v1453_v63, %v837_v20  ;;  %v1602_v24 = vmul.f32 %v837_v20, %v837_v20  ;;  %v841_v32 = vpop.f32.mrb[111].mxu0 }
 0x1ec   :  { %v1674_v28 = vadd.f32 %v1673_v2, %v1601_v19  ;;  %v1386_v29 = vadd.f32 %v1385_v18, %v839_v26  ;;  %v1603_v30 = vmul.f32 %v839_v26, %v839_v26  ;;  %v3452_v35 = vpack.c.bf16 %v841_v32, %v839_v26 }
 0x1ed   :  { %v2314_v44 = vpop.f32.mrb[124].mxu1  ;;  %1322 = vst [vmem:[%s4885_s8 + $0x1b0] sm:$0xff] %v3451_v22  ;;  %v1743_v34 = vadd.f32 %v1742_v6, %v1602_v24  ;;  %v1604_v37 = vmul.f32 %v841_v32, %v841_v32  ;;  %v1475_v63 = vunpack.c.0.s8 %v1474_v47 }
 0x1ee   :  { %v2832_v49 = vadd.f32 %v2831_v36, %v2314_v44  ;;  %v2316_v50 = vpop.f32.mrb[125].mxu1  ;;  %v3052_v55 = vmul.f32 %v2314_v44, %v2314_v44  ;;  %v1455_v36 = vadd.f32 %v1454_v23, %v841_v32  ;;  %v1675_v38 = vadd.f32 %v1674_v28, %v1603_v30  ;;  %1323 = vst [vmem:[%s4885_s8 + $0x1b8] sm:$0xff] %v3452_v35 }
 0x1ef   :  { %v2318_v56 = vpop.f32.mrb[126].mxu1  ;;  %v3523_v31 = vpack.c.bf16 %v2316_v50, %v2314_v44  ;;  %v2901_v4 = vadd.f32 %v2900_v40, %v2316_v50  ;;  %v3053_v5 = vmul.f32 %v2316_v50, %v2316_v50  ;;  %v1744_v42 = vadd.f32 %v1743_v34, %v1604_v37 }
 0x1f0   :  { %v2320_v61 = vpop.f32.mrb[127].mxu1  ;;  %v3117_v3 = vadd.f32 %v3116_v43, %v3052_v55  ;;  %v2833_v8 = vadd.f32 %v2832_v49, %v2318_v56  ;;  %v3054_v9 = vmul.f32 %v2318_v56, %v2318_v56  ;;  %v845_v49 = vpop.f32.mrb[112].mxu0 }
 0x1f1   :  { %2769 = vst [vmem:[%s4884_s11 + $0x1f0] sm:$0xff] %v3523_v31  ;;  %v3524_v11 = vpack.c.bf16 %v2320_v61, %v2318_v56  ;;  %v3186_v12 = vadd.f32 %v3185_v48, %v3053_v5  ;;  %v2902_v13 = vadd.f32 %v2901_v4, %v2320_v61  ;;  %v3055_v14 = vmul.f32 %v2320_v61, %v2320_v61  ;;  %v847_v53 = vpop.f32.mrb[113].mxu0 }
 0x1f2   :  { %v2834_v16 = vrot.slane %v2833_v8, 4  ;;  %v3118_v17 = vadd.f32 %v3117_v3, %v3054_v9  ;;  %v1387_v51 = vadd.f32 %v1386_v29, %v845_v49  ;;  %v1605_v52 = vmul.f32 %v845_v49, %v845_v49  ;;  %v849_v59 = vpop.f32.mrb[114].mxu0 }
 0x1f3   :  { %2770 = vst [vmem:[%s4884_s11 + $0x1f8] sm:$0xff] %v3524_v11  ;;  %v2903_v25 = vrot.slane %v2902_v13, 4  ;;  %v3187_v21 = vadd.f32 %v3186_v12, %v3055_v14  ;;  %v3453_v56 = vpack.c.bf16 %v847_v53, %v845_v49  ;;  %v1456_v57 = vadd.f32 %v1455_v36, %v847_v53  ;;  %v851_v1 = vpop.f32.mrb[115].mxu0 }
 0x1f4   :  { %v2835_v27 = vadd.f32 %v2834_v16, %v2833_v8  ;;  %v3119_v33 = vrot.slane %v3118_v17, 4  ;;  %v1606_v58 = vmul.f32 %v847_v53, %v847_v53  ;;  %v1676_v31 = vadd.f32 %v1675_v38, %v1605_v52 }
 0x1f5   :  { %v2904_v41 = vadd.f32 %v2903_v25, %v2902_v13  ;;  %v3188_v43 = vrot.slane %v3187_v21, 4  ;;  %v1388_v61 = vadd.f32 %v1387_v51, %v849_v59  ;;  %v1607_v62 = vmul.f32 %v849_v59, %v849_v59  ;;  %1324 = vst [vmem:[%s4885_s8 + $0x1c0] sm:$0xff] %v3453_v56 }
 0x1f6   :  { %v2836_v39 = vrot.slane %v2835_v27, 2  ;;  %v3120_v40 = vadd.f32 %v3119_v33, %v3118_v17  ;;  %v1745_v0 = vadd.f32 %v1744_v42, %v1606_v58  ;;  %v3454_v2 = vpack.c.bf16 %v851_v1, %v849_v59 }
 0x1f7   :  { %v2905_v48 = vrot.slane %v2904_v41, 2  ;;  %v3189_v50 = vadd.f32 %v3188_v43, %v3187_v21  ;;  %v1457_v3 = vadd.f32 %v1456_v57, %v851_v1  ;;  %v1608_v4 = vmul.f32 %v851_v1, %v851_v1 }
 0x1f8   :  { %v2837_v44 = vadd.f32 %v2836_v39, %v2835_v27  ;;  %v3121_v45 = vrot.slane %v3120_v40, 2  ;;  %v1677_v5 = vadd.f32 %v1676_v31, %v1607_v62  ;;  %1325 = vst [vmem:[%s4885_s8 + $0x1c8] sm:$0xff] %v3454_v2  ;;  %v4823_v13 = vsub.s32 %v1475_v63, %v3950_v10  ;;  %v855_v16 = vpop.f32.mrb[116].mxu0 }
 0x1f9   :  { %v2906_v60 = vadd.f32 %v2905_v48, %v2904_v41  ;;  %v3190_v9 = vrot.slane %v3189_v50, 2  ;;  %v1746_v11 = vadd.f32 %v1745_v0, %v1608_v4  ;;  %v1389_v18 = vadd.f32 %v1388_v61, %v855_v16  ;;  %v857_v20 = vpop.f32.mrb[117].mxu0 }
 0x1fa   :  { %v2838_v54 = vrot.slane %v2837_v44, 1  ;;  %v3122_v55 = vadd.f32 %v3121_v45, %v3120_v40  ;;  %v1609_v19 = vmul.f32 %v855_v16, %v855_v16  ;;  %v3455_v22 = vpack.c.bf16 %v857_v20, %v855_v16  ;;  %v859_v26 = vpop.f32.mrb[118].mxu0 }
 0x1fb   :  { %v2907_v8 = vrot.slane %v2906_v60, 1  ;;  %v3191_v15 = vadd.f32 %v3190_v9, %v3189_v50  ;;  %v1458_v23 = vadd.f32 %v1457_v3, %v857_v20  ;;  %v1610_v24 = vmul.f32 %v857_v20, %v857_v20  ;;  %v861_v30 = vpop.f32.mrb[119].mxu0 }
 0x1fc   :  { %v2839_v6 = vadd.f32 %v2838_v54, %v2837_v44  ;;  %v3123_v12 = vrot.slane %v3122_v55, 1  ;;  %v1678_v10 = vadd.f32 %v1677_v5, %v1609_v19  ;;  %v1390_v28 = vadd.f32 %v1389_v18, %v859_v26  ;;  %1326 = vst [vmem:[%s4885_s8 + $0x1d0] sm:$0xff] %v3455_v22 }
 0x1fd   :  { %v2908_v14 = vadd.f32 %v2907_v8, %v2906_v60  ;;  %v3192_v21 = vrot.slane %v3191_v15, 1  ;;  %v1611_v29 = vmul.f32 %v859_v26, %v859_v26  ;;  %v1747_v7 = vadd.f32 %v1746_v11, %v1610_v24 }
 0x1fe   :  { %v3124_v27 = vadd.f32 %v3123_v12, %v3122_v55  ;;  %v3456_v33 = vpack.c.bf16 %v861_v30, %v859_v26  ;;  %v1459_v34 = vadd.f32 %v1458_v23, %v861_v30  ;;  %v1612_v35 = vmul.f32 %v861_v30, %v861_v30 }
 0x1ff   :  { %v2911_v25 = vcombine.low %v2839_v6, %v2908_v14  ;;  %v1679_v36 = vadd.f32 %v1678_v10, %v1611_v29  ;;  %v3193_v38 = vadd.f32 %v3192_v21, %v3191_v15 }
 0x200   :  { %1327 = vst [vmem:[%s4885_s8 + $0x1d8] sm:$0xff] %v3456_v33  ;;  %v1748_v39 = vadd.f32 %v1747_v7, %v1612_v35 }
 0x201   :  { %v2918_v32 = vrot.slane %v2911_v25, %v4823_v13  ;;  %v3196_v40 = vcombine.low %v3124_v27, %v3193_v38  ;;  %v865_v41 = vpop.f32.mrb[120].mxu0 }
 0x202   :  { %v1391_v43 = vadd.f32 %v1390_v28, %v865_v41  ;;  %v1613_v44 = vmul.f32 %v865_v41, %v865_v41  ;;  %v867_v45 = vpop.f32.mrb[121].mxu0 }
 0x203   :  { %v2925_v37 = vrot.slane %v2918_v32, %v4823_v13  ;;  %v3203_v42 = vrot.slane %v3196_v40, %v4823_v13  ;;  %v3457_v46 = vpack.c.bf16 %v867_v45, %v865_v41  ;;  %v1460_v47 = vadd.f32 %v1459_v34, %v867_v45  ;;  %v869_v49 = vpop.f32.mrb[122].mxu0 }
 0x204   :  { %v1614_v48 = vmul.f32 %v867_v45, %v867_v45  ;;  %v1680_v51 = vadd.f32 %v1679_v36, %v1613_v44  ;;  %v1392_v52 = vadd.f32 %v1391_v43, %v869_v49  ;;  %v1615_v53 = vmul.f32 %v869_v49, %v869_v49  ;;  %v871_v54 = vpop.f32.mrb[123].mxu0 }
 0x205   :  { %2927 = vst.msk [vmem:[%s4886_s12] sm:$0x3] %vm4826_vm1, %v2925_v37  ;;  %v3210_v50 = vrot.slane %v3203_v42, %v4823_v13  ;;  %1328 = vst [vmem:[%s4885_s8 + $0x1e0] sm:$0xff] %v3457_v46  ;;  %v3458_v56 = vpack.c.bf16 %v871_v54, %v869_v49  ;;  %v1461_v57 = vadd.f32 %v1460_v47, %v871_v54 }
 0x206   :  { %v1749_v55 = vadd.f32 %v1748_v39, %v1614_v48  ;;  %v1616_v58 = vmul.f32 %v871_v54, %v871_v54  ;;  %v1681_v59 = vadd.f32 %v1680_v51, %v1615_v53 }
 0x207   :  { %3212 = vst.msk [vmem:[%s4887_s13] sm:$0x3] %vm4826_vm1, %v3210_v50  ;;  %1329 = vst [vmem:[%s4885_s8 + $0x1e8] sm:$0xff] %v3458_v56 }
 0x208   :  { %v1750_v60 = vadd.f32 %v1749_v55, %v1616_v58 }
 0x20a   :  { %v875_v31 = vpop.f32.mrb[124].mxu0 }
 0x20b   :  { %v1393_v61 = vadd.f32 %v1392_v52, %v875_v31  ;;  %v1617_v62 = vmul.f32 %v875_v31, %v875_v31  ;;  %v877_v1 = vpop.f32.mrb[125].mxu0 }
 0x20c   :  { %v3459_v63 = vpack.c.bf16 %v877_v1, %v875_v31  ;;  %v1462_v0 = vadd.f32 %v1461_v57, %v877_v1  ;;  %v1618_v2 = vmul.f32 %v877_v1, %v877_v1  ;;  %v879_v3 = vpop.f32.mrb[126].mxu0 }
 0x20d   :  { %v1682_v4 = vadd.f32 %v1681_v59, %v1617_v62  ;;  %v1394_v5 = vadd.f32 %v1393_v61, %v879_v3  ;;  %v1619_v6 = vmul.f32 %v879_v3, %v879_v3  ;;  %v881_v8 = vpop.f32.mrb[127].mxu0 }
 0x20e   :  { %1330 = vst [vmem:[%s4885_s8 + $0x1f0] sm:$0xff] %v3459_v63  ;;  %v1751_v9 = vadd.f32 %v1750_v60, %v1618_v2  ;;  %v3460_v11 = vpack.c.bf16 %v881_v8, %v879_v3  ;;  %v1463_v12 = vadd.f32 %v1462_v0, %v881_v8  ;;  %v1620_v14 = vmul.f32 %v881_v8, %v881_v8 }
 0x20f   :  { %v1395_v15 = vrot.slane %v1394_v5, 4  ;;  %v1683_v16 = vadd.f32 %v1682_v4, %v1619_v6 }
 0x210   :  { %1331 = vst [vmem:[%s4885_s8 + $0x1f8] sm:$0xff] %v3460_v11  ;;  %v1464_v18 = vrot.slane %v1463_v12, 4  ;;  %v1752_v19 = vadd.f32 %v1751_v9, %v1620_v14 }
 0x211   :  { %v1396_v20 = vadd.f32 %v1395_v15, %v1394_v5  ;;  %v1684_v25 = vrot.slane %v1683_v16, 4 }
 0x212   :  { %v1465_v21 = vadd.f32 %v1464_v18, %v1463_v12  ;;  %v1753_v22 = vrot.slane %v1752_v19, 4 }
 0x213   :  { %v1397_v23 = vrot.slane %v1396_v20, 2  ;;  %v1685_v24 = vadd.f32 %v1684_v25, %v1683_v16 }
 0x214   :  { %v1466_v26 = vrot.slane %v1465_v21, 2  ;;  %v1754_v27 = vadd.f32 %v1753_v22, %v1752_v19 }
 0x215   :  { %v1398_v10 = vadd.f32 %v1397_v23, %v1396_v20  ;;  %v1686_v28 = vrot.slane %v1685_v24, 2 }
 0x216   :  { %v1467_v29 = vadd.f32 %v1466_v26, %v1465_v21  ;;  %v1755_v30 = vrot.slane %v1754_v27, 2 }
 0x217   :  { %v1399_v32 = vrot.slane %v1398_v10, 1  ;;  %v1687_v7 = vadd.f32 %v1686_v28, %v1685_v24 }
 0x218   :  { %v1468_v33 = vrot.slane %v1467_v29, 1  ;;  %v1756_v34 = vadd.f32 %v1755_v30, %v1754_v27 }
 0x219   :  { %v1400_v35 = vadd.f32 %v1399_v32, %v1398_v10  ;;  %v1688_v36 = vrot.slane %v1687_v7, 1 }
 0x21a   :  { %v1469_v37 = vadd.f32 %v1468_v33, %v1467_v29  ;;  %v1757_v38 = vrot.slane %v1756_v34, 1 }
 0x21b   :  { %v1689_v39 = vadd.f32 %v1688_v36, %v1687_v7 }
 0x21c   :  { %v1472_v40 = vcombine.low %v1400_v35, %v1469_v37  ;;  %v1758_v41 = vadd.f32 %v1757_v38, %v1756_v34 }
 0x21e   :  { %v1479_v42 = vrot.slane %v1472_v40, %v4823_v13  ;;  %v1761_v43 = vcombine.low %v1689_v39, %v1758_v41 }
 0x220   :  { %v1486_v44 = vrot.slane %v1479_v42, %v4823_v13  ;;  %v1768_v45 = vrot.slane %v1761_v43, %v4823_v13 }
 0x222   :  { %1492 = vst.msk [vmem:[%s4888_s9] sm:$0x3] %vm4826_vm1, %v1486_v44  ;;  %v1775_v46 = vrot.slane %v1768_v45, %v4823_v13 }
 0x224   :  { %1777 = vst.msk [vmem:[%s4889_s10] sm:$0x3] %vm4826_vm1, %v1775_v46 }

// kernel: resnext_bottleneck_c.5
= control target key start
LH: loop header
LB: loop body
LE: loop exit
PB: predicated region body
PF: predicated region fallthrough
CT: control target
= control target key end

     0   :  { %s5258_s27 = smov 0   ;;  %s6881_s0 = inlined_call_operand.vmem [shape: bf16[2,16,16,128], index: 0, kind: input, shape index: {}]   ;;  %s6882_s1 = inlined_call_operand.vmem [shape: f32[1,1,128], index: 1, kind: input, shape index: {}]   ;;  %s6883_s2 = inlined_call_operand.vmem [shape: f32[1,1,128], index: 2, kind: input, shape index: {}]   ;;  %s6884_s3 = inlined_call_operand.vmem [shape: f32[1,128], index: 3, kind: input, shape index: {}]   ;;  %s6885_s4 = inlined_call_operand.vmem [shape: f32[1,128], index: 4, kind: input, shape index: {}]   ;;  %s6886_s5 = inlined_call_operand.vmem [shape: bf16[1152,128], index: 5, kind: input, shape index: {}]   ;;  %s6887_s6 = inlined_call_operand.vmem [shape: bf16[2,16,16,128], index: 6, kind: output, shape index: {0}]   ;;  %s6888_s7 = inlined_call_operand.vmem [shape: f32[2,1,128], index: 7, kind: output, shape index: {1}]   ;;  %s6889_s8 = inlined_call_operand.vmem [shape: f32[2,1,128], index: 8, kind: output, shape index: {2}]  }
   0x1 LB: > { %s4095_s28 = sadd.s32 4294967295, %s5210_s27   ;;  %p4099_p0 = scmp.ge.s32.totalorder %s5210_s27, 1  ;;  %s5210_s27 = sphi %s5258_s27, %s19_s27  }
   0x2   : > { %p267_p1 = scmp.lt.s32.totalorder %s5210_s27, 3 }
   0x4   : > { %p268_p2 = pnand %p4099_p0, %p267_p1 }
   0x6   : > { %271 = sbr.rel (%p268_p2) target bundleno = 661 (0x295), region = 44 }
   0xd   : > { %v5099_v0 = vld [vmem:[%s6886_s5 + $0x40] sm:$0xff]   ;;  %v5212_v2 = vmov 0   ;;  %v5101_v3 = vld [vmem:[%s6886_s5 + $0x48] sm:$0xff]   ;;  %v5103_v5 = vld [vmem:[%s6886_s5 + $0x50] sm:$0xff]   ;;  %vm519_vm0 = vcmask 1040384   ;;  %vm1814_vm5 = vcmask 1042432  }
   0xe   : > { %v5100_v1 = vld [vmem:[%s6886_s5] sm:$0xff]   ;;  %512 = vst [vmem:[#allocation2] sm:$0xf] %v5212_v2  ;;  %513 = vst [vmem:[#allocation2 + $0x4] sm:$0xf] %v5212_v2  ;;  %4554 = vmatprep.subr.bf16.mxu0 %v5099_v0  ;;  %5074 = vmatprep.subr.bf16.mxu1 %v5099_v0  ;;  %v5102_v4 = vld [vmem:[%s6886_s5 + $0x8] sm:$0xff]  }
   0xf   : > { %514 = vst [vmem:[#allocation2 + $0x8] sm:$0x1] %v5212_v2  ;;  %516 = vst [vmem:[#allocation2 + $0xcc] sm:$0xf] %v5212_v2  ;;  %4555 = vmatpush3.bf16.msra.mxu0 %v5100_v1  ;;  %5082 = vmatpush3.bf16.msra.mxu1 %v5100_v1  ;;  %v5104_v6 = vld [vmem:[%s6886_s5 + $0x10] sm:$0xff]   ;;  %v5105_v7 = vld [vmem:[%s6886_s5 + $0x58] sm:$0xff]  }
  0x10   : > { %517 = vst [vmem:[#allocation2 + $0xd0] sm:$0xf] %v5212_v2  ;;  %518 = vst [vmem:[#allocation2 + $0xd4] sm:$0x1] %v5212_v2  ;;  %4556 = vmatprep.subr.bf16.mxu0 %v5101_v3  ;;  %5075 = vmatprep.subr.bf16.mxu1 %v5101_v3  ;;  %v5106_v8 = vld [vmem:[%s6886_s5 + $0x18] sm:$0xff]   ;;  %v5107_v9 = vld [vmem:[%s6886_s5 + $0x60] sm:$0xff]  }
  0x11   : > { %v5108_v10 = vld [vmem:[%s6886_s5 + $0x20] sm:$0xff]   ;;  %v5109_v11 = vld [vmem:[%s6886_s5 + $0x68] sm:$0xff]   ;;  %vm520_vm1 = vsmask.f32 256  ;;  %vm576_vm2 = vsmask.f32 7938 }
  0x12   : > { %vm5300_vm3 = vmand %vm519_vm0, %vm520_vm1  ;;  %p5317_p3 = scmp.lt.s32.totalorder %s4095_s28, 1  ;;  %v5110_v20 = vld [vmem:[%s6886_s5 + $0x28] sm:$0xff]   ;;  %v324_v22 = vld [vmem:[%s6882_s1] sm:$0x1]  ;;  %vm1815_vm6 = vcmask 1046532   ;;  %vm1051_vm11 = vcmask 1043456  }
  0x13   : > { %4557 = vmatpush3.bf16.msra.mxu0 %v5102_v4  ;;  %5083 = vmatpush3.bf16.msra.mxu1 %v5102_v4  ;;  %vm5309_vm4 = vmand %vm519_vm0, %vm576_vm2  ;;  %v325_v23 = vld [vmem:[%s6883_s2] sm:$0x1]  ;;  %v5111_v24 = vld [vmem:[%s6886_s5 + $0x70] sm:$0xff]   ;;  %vm1331_vm7 = vsmask.f32 3328  ;;  %v5338_v28 = vmul.f32 0.001953125, %v324_v22  ;;  %v405_v4 = vlaneseq }
  0x14   : > { %4558 = vmatprep.subr.bf16.mxu0 %v5103_v5  ;;  %5076 = vmatprep.subr.bf16.mxu1 %v5103_v5  ;;  %v331_v29 = vmul.f32 0.001953125, %v325_v23  ;;  %v525_v30 = vld [vmem:[#allocation2 + $0xc] sm:$0x1]  ;;  %vm1332_vm8 = vsmask.f32 7440  ;;  %s6954_s28 = smov (!%p5317_p3, %s4095_s28), 1  ;;  %vm5361_vm9 = vmor %vm1814_vm5, %vm1815_vm6 }
  0x15   : > { %v522_v12 = vld [vmem:[#allocation2] sm:$0x1]  ;;  %v5304_v15 = vld [vmem:[#allocation2 + $0x4] sm:$0xf]  ;;  %v526_v31 = vsel %vm5300_vm3, 0, %v525_v30  ;;  %v5112_v33 = vld [vmem:[%s6886_s5 + $0x30] sm:$0xff]   ;;  %v332_v35 = vmul.f32 %v5338_v28, %v5338_v28  ;;  %s319_s20 = scalar_lea.vmem %s6888_s7, %s6954_s28  ;;  %s322_s23 = scalar_lea.vmem %s6889_s8, %s6954_s28 }
  0x16   : > { %v578_v14 = vld [vmem:[#allocation2 + $0x8] sm:$0x1]  ;;  %v523_v16 = vsel %vm5300_vm3, 0, %v522_v12  ;;  %v1344_v18 = vshll.u32 %v5304_v15, 16  ;;  %v1348_v19 = vshrl.u32 %v5304_v15, 16  ;;  %v1819_v27 = vrot.slane %v5304_v15, 5  ;;  %vm5384_vm10 = vmor %vm1331_vm7, %vm1332_vm8 }
  0x17   : > { %4559 = vmatpush3.bf16.msra.mxu0 %v5104_v6  ;;  %5084 = vmatpush3.bf16.msra.mxu1 %v5104_v6  ;;  %524 = vst [vmem:[#allocation2] sm:$0x1] %v523_v16  ;;  %v579_v21 = vsel %vm5309_vm4, 0, %v578_v14  ;;  %v581_v32 = vld [vmem:[#allocation2 + $0x14] sm:$0x1]  ;;  %v5113_v39 = vld [vmem:[%s6886_s5 + $0x78] sm:$0xff]   ;;  %v333_v45 = vsub.f32 %v331_v29, %v332_v35  ;;  %vm5495_vm13 = vmand %vm1051_vm11, %vm576_vm2 }
  0x18   : > { %4560 = vmatprep.subr.bf16.mxu0 %v5105_v7  ;;  %5077 = vmatprep.subr.bf16.mxu1 %v5105_v7  ;;  %580 = vst [vmem:[#allocation2 + $0x8] sm:$0x1] %v579_v21  ;;  %v5335_v25 = vrot.slane %v1344_v18, 5  ;;  %v1350_v26 = vrot.slane %v1348_v19, 4  ;;  %527 = vst [vmem:[#allocation2 + $0xc] sm:$0x1] %v526_v31 }
  0x19   : > { %v582_v36 = vsel %vm5309_vm4, 0, %v581_v32  ;;  %v558_v37 = vld [vmem:[#allocation2 + $0x90] sm:$0x1]  ;;  %v614_v38 = vld [vmem:[#allocation2 + $0x98] sm:$0x1]  ;;  %v1821_v41 = vrot.slane %v1819_v27, 4 }
  0x1a   : > { %v1351_v34 = vor.u32 %v1350_v26, %v5335_v25  ;;  %583 = vst [vmem:[#allocation2 + $0x14] sm:$0x1] %v582_v36  ;;  %v559_v42 = vsel %vm5300_vm3, 0, %v558_v37  ;;  %v615_v43 = vsel %vm5309_vm4, 0, %v614_v38  ;;  %v5114_v44 = vld [vmem:[%s6886_s5 + $0x38] sm:$0xff]   ;;  %v5116_v47 = vld [vmem:[%s6886_s5 + $0xc0] sm:$0xff]  }
  0x1b   : > { %4561 = vmatpush3.bf16.msra.mxu0 %v5106_v8  ;;  %5085 = vmatpush3.bf16.msra.mxu1 %v5106_v8  ;;  %560 = vst [vmem:[#allocation2 + $0x90] sm:$0x1] %v559_v42  ;;  %616 = vst [vmem:[#allocation2 + $0x98] sm:$0x1] %v615_v43  ;;  %v334_v55 = vmax.f32 %v333_v45, 0.0  ;;  %v5117_v56 = vld [vmem:[%s6886_s5 + $0x140] sm:$0xff]  }
  0x1c   : > { %4562 = vmatprep.subr.bf16.mxu0 %v5107_v9  ;;  %5078 = vmatprep.subr.bf16.mxu1 %v5107_v9  ;;  %v1352_v51 = vrot.slane %v1351_v34, 4  ;;  %s4314_s30 = sshll.u32 %s6954_s28, 7  ;;  %v528_v5 = vld [vmem:[#allocation2 + $0x18] sm:$0x1]  ;;  %v584_v7 = vld [vmem:[#allocation2 + $0x20] sm:$0x1] }
  0x1d   : > { %v335_v63 = vadd.f32 1e-05, %v334_v55  ;;  %s5402_s11 = scalar_lea.vmem %s6881_s0, %s4314_s30  ;;  %v529_v6 = vsel %vm5300_vm3, 0, %v528_v5  ;;  %v561_v8 = vld [vmem:[#allocation2 + $0x9c] sm:$0x1]  ;;  %v585_v12 = vsel %vm5309_vm4, 0, %v584_v7  ;;  %s6796_s19 = scalar_lea.vmem %s6887_s6, %s4314_s30 }
  0x1e   : > { %v1165_v46 = vld [vmem:[#allocation2] sm:$0xf]  ;;  %530 = vst [vmem:[#allocation2 + $0x18] sm:$0x1] %v529_v6  ;;  %v617_v14 = vld [vmem:[#allocation2 + $0xa4] sm:$0x1] }
  0x1f   : > { %4563 = vmatpush3.bf16.msra.mxu0 %v5108_v10  ;;  %5086 = vmatpush3.bf16.msra.mxu1 %v5108_v10  ;;  %v1167_v48 = vld [vmem:[#allocation2 + $0x8] sm:$0x1]  ;;  %v1335_v49 = vshrl.u32 %v1165_v46, 16  ;;  %v1338_v50 = vshll.u32 %v1165_v46, 16  ;;  %v4168_v52 = vrot.slane %v1165_v46, 9  ;;  %5189 = vrsqrt.f32 %v335_v63  ;;  %v4534_v21 = vld [vmem:[%s5402_s11 + $0x58] sm:$0xff]  }
  0x20   : > { %4564 = vmatprep.subr.bf16.mxu0 %v5109_v11  ;;  %5079 = vmatprep.subr.bf16.mxu1 %v5109_v11  ;;  %v1354_v53 = vshll.u32 %v1167_v48, 16  ;;  %v1822_v54 = vrot.slane %v1167_v48, 5  ;;  %v4136_v10 = vcombine.low %v1165_v46, %v5304_v15  ;;  %v5121_v11 = vld [vmem:[%s6886_s5 + $0x100] sm:$0xff]   ;;  %586 = vst [vmem:[#allocation2 + $0x20] sm:$0x1] %v585_v12  ;;  %v562_v18 = vsel %vm5300_vm3, 0, %v561_v8 }
  0x21   : > { %v1337_v57 = vrot.slane %v1335_v49, 4  ;;  %v1340_v58 = vrot.slane %v1338_v50, 5  ;;  %v5380_v59 = vsel %vm5361_vm9, %v4168_v52, %v1819_v27  ;;  %v618_v19 = vsel %vm5309_vm4, 0, %v617_v14  ;;  %v4381_v15 = vld [vmem:[%s5402_s11] sm:$0xff]   ;;  %563 = vst [vmem:[#allocation2 + $0x9c] sm:$0x1] %v562_v18 }
  0x22   : > { %v1356_v61 = vrot.slane %v1354_v53, 5  ;;  %v5390_v62 = vsel %vm5361_vm9, %v1821_v41, %v1822_v54  ;;  %619 = vst [vmem:[#allocation2 + $0xa4] sm:$0x1] %v618_v19  ;;  %v326_v22 = vld [vmem:[%s6884_s3] sm:$0x1]  ;;  %v4524_v23 = vld [vmem:[%s5402_s11 + $0x8] sm:$0xff]   ;;  %v4382_v31 = vunpack.c.l.bf16 %v4381_v15  ;;  %v4383_v32 = vunpack.c.h.bf16 %v4381_v15 }
  0x23   : > { %4565 = vmatpush3.bf16.msra.mxu0 %v5110_v20  ;;  %5087 = vmatpush3.bf16.msra.mxu1 %v5110_v20  ;;  %v1341_v0 = vor.u32 %v1340_v58, %v1337_v57  ;;  %v406_v20 = vshrl.u32 %v405_v4, 7  ;;  %v5131_v27 = vld [vmem:[%s6886_s5 + $0x108] sm:$0xff]   ;;  %v4525_v29 = vld [vmem:[%s5402_s11 + $0x10] sm:$0xff]   ;;  %v4427_v34 = vunpack.c.h.bf16 %v4534_v21  ;;  %v531_v35 = vld [vmem:[#allocation2 + $0x24] sm:$0x1]  ;;  %v4386_v38 = vunpack.c.l.bf16 %v4524_v23 }
  0x24   : > { %4566 = vmatprep.subr.bf16.mxu0 %v5111_v24  ;;  %5080 = vmatprep.subr.bf16.mxu1 %v5111_v24  ;;  %v1357_v3 = vsel %vm5384_vm10, %v1352_v51, %v1356_v61  ;;  %v5129_v24 = vld [vmem:[%s6886_s5 + $0x148] sm:$0xff]   ;;  %v327_v43 = vld [vmem:[%s6885_s4] sm:$0x1]  ;;  %v4391_v51 = vunpack.c.h.bf16 %v4525_v29  ;;  %v620_v53 = vld [vmem:[#allocation2 + $0xb0] sm:$0x1] }
  0x25   : > { %v1342_v2 = vrot.slane %v1341_v0, 4  ;;  %v407_v26 = vsub.s32 0, %v406_v20  ;;  %v587_v36 = vld [vmem:[#allocation2 + $0x2c] sm:$0x1]  ;;  %v564_v48 = vld [vmem:[#allocation2 + $0xa8] sm:$0x1] }
  0x26   : > { %v588_v41 = vsel %vm5309_vm4, 0, %v587_v36  ;;  %v4536_v42 = vld [vmem:[%s5402_s11 + $0x68] sm:$0xff]   ;;  %v565_v52 = vsel %vm5300_vm3, 0, %v564_v48  ;;  %vm728_vm12 = vsmask.f32 4368  ;;  %v5465_v8 = vld [vmem:[%s5402_s11 + $0x18] sm:$0xff]  }
  0x27   : > { %4567 = vmatpush3.bf16.msra.mxu0 %v5112_v33  ;;  %5088 = vmatpush3.bf16.msra.mxu1 %v5112_v33  ;;  %v1347_v9 = vsel %vm5384_vm10, %v1342_v2, %v5335_v25  ;;  %v4535_v25 = vld [vmem:[%s5402_s11 + $0x60] sm:$0xff]   ;;  %v4426_v33 = vunpack.c.l.bf16 %v4534_v21  ;;  %589 = vst [vmem:[#allocation2 + $0x2c] sm:$0x1] %v588_v41  ;;  %v4434_v54 = vunpack.c.l.bf16 %v4536_v42  ;;  %v4435_v55 = vunpack.c.h.bf16 %v4536_v42  ;;  %566 = vst [vmem:[#allocation2 + $0xa8] sm:$0x1] %v565_v52  ;;  %v5139_v36 = vld [vmem:[%s6886_s5 + $0x150] sm:$0xff]  }
  0x28   : > { %4568 = vmatprep.subr.bf16.mxu0 %v5113_v39  ;;  %5081 = vmatprep.subr.bf16.mxu1 %v5113_v39  ;;  %v4152_v16 = vcombine.low %v1347_v9, %v1357_v3  ;;  %v532_v39 = vsel %vm5300_vm3, 0, %v531_v35  ;;  %v4430_v45 = vunpack.c.l.bf16 %v4535_v25  ;;  %v4431_v46 = vunpack.c.h.bf16 %v4535_v25  ;;  %vm5501_vm14 = vmor %vm520_vm1, %vm728_vm12 }
  0x29   : > { %v5190_v30 = vpop.eup %5189  ;;  %533 = vst [vmem:[#allocation2 + $0x24] sm:$0x1] %v532_v39  ;;  %v4395_v12 = vunpack.c.h.bf16 %v5465_v8 }
  0x2a   : > { %2949 = vmatprep.mubr.bf16.mxu0 %v4152_v16  ;;  %v337_v37 = vmul.f32 %v5190_v30, %v326_v22 }
  0x2b   : > { %4569 = vmatpush3.bf16.msra.mxu0 %v5114_v44  ;;  %5089 = vmatpush3.bf16.msra.mxu1 %v5114_v44  ;;  %v4387_v44 = vunpack.c.h.bf16 %v4524_v23 }
  0x2c   : > { %4666 = vmatprep.subr.bf16.mxu1 %v5116_v47  ;;  %4778 = vmatprep.subr.bf16.mxu0 %v5117_v56  ;;  %v4390_v47 = vunpack.c.l.bf16 %v4525_v29  ;;  %v338_v49 = vmul.f32 %v337_v37, %v5338_v28  ;;  %v5442_v50 = vrot.slane %v337_v37, %v407_v26  ;;  %v621_v56 = vsel %vm5309_vm4, 0, %v620_v53  ;;  %v5143_v53 = vld [vmem:[%s6886_s5 + $0x110] sm:$0xff]  }
  0x2d   : > { %622 = vst [vmem:[#allocation2 + $0xb0] sm:$0x1] %v621_v56 }
  0x2e   : > { %2950 = vmatmul.mubr.bf16.vlgmr.msra.gmra.mrb[0].mxu0 %v4136_v10  ;;  %v339_v57 = vsub.f32 %v327_v43, %v338_v49  ;;  %v410_v58 = vmul.f32 %v4382_v31, %v5442_v50  ;;  %v411_v61 = vmul.f32 %v4383_v32, %v5442_v50  ;;  %v432_v28 = vmul.f32 %v4426_v33, %v5442_v50 }
  0x2f   : > { %4779 = vmatpush3.bf16.msra.mxu0 %v5121_v11  ;;  %v433_v63 = vmul.f32 %v4427_v34, %v5442_v50  ;;  %v412_v0 = vmul.f32 %v4386_v38, %v5442_v50  ;;  %v413_v2 = vmul.f32 %v4387_v44, %v5442_v50  ;;  %v434_v3 = vmul.f32 %v4430_v45, %v5442_v50 }
  0x30   : > { %4780 = vmatprep.subr.bf16.mxu0 %v5129_v24  ;;  %v5455_v4 = vrot.slane %v339_v57, %v407_v26  ;;  %v435_v5 = vmul.f32 %v4431_v46, %v5442_v50  ;;  %v5459_v6 = vmul.f32 %v4390_v47, %v5442_v50  ;;  %v5462_v7 = vmul.f32 %v4391_v51, %v5442_v50  ;;  %v1053_v46 = vld [vmem:[#allocation2 + $0xc] sm:$0xf]  ;;  %v1057_v47 = vld [vmem:[#allocation2 + $0x14] sm:$0x1]  ;;  %v1130_v57 = vld [vmem:[#allocation2 + $0x90] sm:$0xf] }
  0x31   : > { %v5468_v9 = vmul.f32 %v4434_v54, %v5442_v50  ;;  %v5471_v10 = vmul.f32 %v4435_v55, %v5442_v50  ;;  %v4394_v11 = vunpack.c.l.bf16 %v5465_v8 }
  0x32   : > { %v448_v14 = vadd.f32 %v5455_v4, %v410_v58  ;;  %v449_v16 = vadd.f32 %v5455_v4, %v411_v61  ;;  %v470_v18 = vadd.f32 %v5455_v4, %v432_v28  ;;  %v471_v19 = vadd.f32 %v5455_v4, %v433_v63  ;;  %v1134_v58 = vld [vmem:[#allocation2 + $0x98] sm:$0x1] }
  0x33   : > { %4781 = vmatpush3.bf16.msra.mxu0 %v5131_v27  ;;  %v450_v15 = vadd.f32 %v5455_v4, %v412_v0  ;;  %v451_v20 = vadd.f32 %v5455_v4, %v413_v2  ;;  %v472_v21 = vadd.f32 %v5455_v4, %v434_v3  ;;  %v473_v22 = vadd.f32 %v5455_v4, %v435_v5  ;;  %v5181_v63 = vld [vmem:[%s6886_s5 + $0x218] sm:$0xff]  }
  0x34   : > { %v480_v23 = vmax.f32 %v448_v14, 0.0  ;;  %v481_v24 = vmax.f32 %v449_v16, 0.0  ;;  %v502_v25 = vmax.f32 %v470_v18, 0.0  ;;  %v503_v26 = vmax.f32 %v471_v19, 0.0  ;;  %4782 = vmatprep.subr.bf16.mxu0 %v5139_v36 }
  0x35   : > { %v482_v27 = vmax.f32 %v450_v15, 0.0  ;;  %v483_v29 = vmax.f32 %v451_v20, 0.0  ;;  %v504_v30 = vmax.f32 %v472_v21, 0.0  ;;  %v505_v31 = vmax.f32 %v473_v22, 0.0 }
  0x36   : > { %v4316_v32 = vpack.c.bf16 %v480_v23, %v480_v23  ;;  %v4317_v33 = vpack.c.bf16 %v481_v24, %v481_v24  ;;  %v4338_v34 = vpack.c.bf16 %v502_v25, %v502_v25  ;;  %v4339_v35 = vpack.c.bf16 %v503_v26, %v503_v26  ;;  %v1060_v23 = vld [vmem:[#allocation2 + $0x18] sm:$0xf] }
  0x37   : > { %v4318_v37 = vpack.c.bf16 %v482_v27, %v482_v27  ;;  %v4319_v38 = vpack.c.bf16 %v483_v29, %v483_v29  ;;  %v5486_v39 = vpack.c.bf16 %v504_v30, %v504_v30  ;;  %v5488_v41 = vpack.c.bf16 %v505_v31, %v505_v31  ;;  %4783 = vmatpush3.bf16.msra.mxu0 %v5143_v53  ;;  %v1064_v29 = vld [vmem:[#allocation2 + $0x20] sm:$0x1]  ;;  %v1137_v53 = vld [vmem:[#allocation2 + $0x9c] sm:$0xf] }
  0x38   : > { %v731_v42 = vshrl.u32 %v4316_v32, 16  ;;  %v734_v43 = vshll.u32 %v4316_v32, 16  ;;  %v739_v44 = vshrl.u32 %v4317_v33, 16  ;;  %v742_v45 = vshll.u32 %v4317_v33, 16 }
  0x39   : > { %v918_v48 = vshrl.u32 %v4338_v34, 16  ;;  %v921_v49 = vshll.u32 %v4338_v34, 16  ;;  %v926_v51 = vshrl.u32 %v4339_v35, 16  ;;  %v929_v52 = vshll.u32 %v4339_v35, 16 }
  0x3a   : > { %v733_v54 = vrot.slane %v731_v42, 7  ;;  %v741_v55 = vrot.slane %v739_v44, 7  ;;  %v748_v61 = vshrl.u32 %v4318_v37, 16  ;;  %v751_v28 = vshll.u32 %v4318_v37, 16 }
  0x3b   : > { %v920_v0 = vrot.slane %v918_v48, 7  ;;  %v928_v2 = vrot.slane %v926_v51, 7  ;;  %v756_v3 = vshrl.u32 %v4319_v38, 16  ;;  %v759_v5 = vshll.u32 %v4319_v38, 16  ;;  %v5149_v38 = vld [vmem:[%s6886_s5 + $0x158] sm:$0xff]  }
  0x3c   : > { %v736_v14 = vor.u32 %v734_v43, %v733_v54  ;;  %v737_v16 = vrot.slane %v733_v54, 4  ;;  %v744_v18 = vor.u32 %v742_v45, %v741_v55  ;;  %v746_v19 = vrot.slane %v741_v55, 4  ;;  %4784 = vmatprep.subr.bf16.mxu0 %v5149_v38 }
  0x3d   : > { %v923_v15 = vor.u32 %v921_v49, %v920_v0  ;;  %v924_v20 = vrot.slane %v920_v0, 4  ;;  %v931_v21 = vor.u32 %v929_v52, %v928_v2  ;;  %v933_v22 = vrot.slane %v928_v2, 4 }
  0x3e   : > { %v745_v24 = vsel %vm5501_vm14, %v737_v16, %v744_v18  ;;  %v1054_v25 = vsel %vm5495_vm13, %v736_v14, %v1053_v46  ;;  %v1058_v26 = vsel %vm5300_vm3, %v746_v19, %v1057_v47  ;;  %v750_v27 = vrot.slane %v748_v61, 7  ;;  %v5150_v46 = vld [vmem:[%s6886_s5 + $0x118] sm:$0xff]  }
  0x3f   : > { %1055 = vst [vmem:[#allocation2 + $0xc] sm:$0xf] %v1054_v25  ;;  %1056 = vst [vmem:[#allocation2 + $0x10] sm:$0xf] %v745_v24  ;;  %v932_v30 = vsel %vm5501_vm14, %v924_v20, %v931_v21  ;;  %v1131_v31 = vsel %vm5495_vm13, %v923_v15, %v1130_v57  ;;  %v1135_v32 = vsel %vm5300_vm3, %v933_v22, %v1134_v58  ;;  %v758_v33 = vrot.slane %v756_v3, 7  ;;  %v5152_v58 = vld [vmem:[%s6886_s5 + $0x160] sm:$0xff]  }
  0x40   : > { %1059 = vst [vmem:[#allocation2 + $0x14] sm:$0x1] %v1058_v26  ;;  %1132 = vst [vmem:[#allocation2 + $0x90] sm:$0xf] %v1131_v31  ;;  %v753_v34 = vor.u32 %v751_v28, %v750_v27  ;;  %v754_v35 = vrot.slane %v750_v27, 4  ;;  %v935_v36 = vshrl.u32 %v5486_v39, 16  ;;  %v453_v49 = vadd.f32 %v5455_v4, %v5462_v7  ;;  %4785 = vmatpush3.bf16.msra.mxu0 %v5150_v46 }
  0x41   : > { %1133 = vst [vmem:[#allocation2 + $0x94] sm:$0xf] %v932_v30  ;;  %1136 = vst [vmem:[#allocation2 + $0x98] sm:$0x1] %v1135_v32  ;;  %v938_v37 = vshll.u32 %v5486_v39, 16  ;;  %v761_v42 = vor.u32 %v759_v5, %v758_v33  ;;  %v763_v43 = vrot.slane %v758_v33, 4  ;;  %v452_v39 = vadd.f32 %v5455_v4, %v5459_v6  ;;  %4786 = vmatprep.subr.bf16.mxu0 %v5152_v58 }
  0x42   : > { %v943_v44 = vshrl.u32 %v5488_v41, 16  ;;  %v946_v45 = vshll.u32 %v5488_v41, 16  ;;  %v1061_v47 = vsel %vm5495_vm13, %v753_v34, %v1060_v23  ;;  %v937_v48 = vrot.slane %v935_v36, 7 }
  0x43   : > { %v762_v51 = vsel %vm5501_vm14, %v754_v35, %v761_v42  ;;  %1062 = vst [vmem:[#allocation2 + $0x18] sm:$0xf] %v1061_v47  ;;  %v1065_v41 = vsel %vm5300_vm3, %v763_v43, %v1064_v29  ;;  %v5541_v54 = vadd.f32 %v5455_v4, %v5468_v9  ;;  %v484_v55 = vmax.f32 %v452_v39, 0.0 }
  0x44   : > { %v5537_v52 = vrot.slane %v943_v44, 7  ;;  %1063 = vst [vmem:[#allocation2 + $0x1c] sm:$0xf] %v762_v51  ;;  %1066 = vst [vmem:[#allocation2 + $0x20] sm:$0x1] %v1065_v41  ;;  %v940_v6 = vor.u32 %v938_v37, %v937_v48  ;;  %v941_v7 = vrot.slane %v937_v48, 4  ;;  %v5550_v0 = vadd.f32 %v5455_v4, %v5471_v10 }
  0x45   : > { %v485_v57 = vmax.f32 %v453_v49, 0.0  ;;  %v506_v9 = vmax.f32 %v5541_v54, 0.0  ;;  %v5561_v16 = vpack.c.bf16 %v484_v55, %v484_v55  ;;  %v5568_v10 = vmul.f32 %v4394_v11, %v5442_v50  ;;  %v1141_v51 = vld [vmem:[#allocation2 + $0xa4] sm:$0x1] }
  0x46   : > { %v948_v61 = vor.u32 %v946_v45, %v5537_v52  ;;  %v950_v28 = vrot.slane %v5537_v52, 4  ;;  %v5553_v2 = vld [vmem:[#allocation2 + $0xc] sm:$0xf]  ;;  %v5555_v3 = vld [vmem:[#allocation2 + $0x10] sm:$0xf]  ;;  %v1138_v14 = vsel %vm5495_vm13, %v940_v6, %v1137_v53  ;;  %v5120_v52 = vld [vmem:[%s6886_s5 + $0x80] sm:$0xff]  }
  0x47   : > { %v5557_v5 = vld [vmem:[#allocation2 + $0x14] sm:$0x1]  ;;  %v5563_v18 = vpack.c.bf16 %v485_v57, %v485_v57  ;;  %v1359_v19 = vshrl.u32 %v5553_v2, 16  ;;  %v1362_v15 = vshll.u32 %v5553_v2, 16  ;;  %v1368_v20 = vshll.u32 %v5555_v3, 16 }
  0x48   : > { %v1372_v21 = vshrl.u32 %v5555_v3, 16  ;;  %v1201_v22 = vld [vmem:[#allocation2 + $0x90] sm:$0xf]  ;;  %1139 = vst [vmem:[#allocation2 + $0x9c] sm:$0xf] %v1138_v14  ;;  %v1378_v23 = vshll.u32 %v5557_v5, 16  ;;  %v5577_v11 = vcombine.low %v5553_v2, %v5555_v3  ;;  %v949_v27 = vsel %vm5501_vm14, %v941_v7, %v948_v61 }
  0x49   : > { %v1202_v24 = vld [vmem:[#allocation2 + $0x94] sm:$0xf]  ;;  %v1203_v25 = vld [vmem:[#allocation2 + $0x98] sm:$0x1]  ;;  %v1623_v26 = vshrl.u32 %v1201_v22, 16  ;;  %v1361_v29 = vrot.slane %v1359_v19, 4 }
  0x4a   : > { %v1364_v30 = vrot.slane %v1362_v15, 5  ;;  %v1370_v31 = vrot.slane %v1368_v20, 5  ;;  %v1374_v32 = vrot.slane %v1372_v21, 4  ;;  %1140 = vst [vmem:[#allocation2 + $0xa0] sm:$0xf] %v949_v27  ;;  %v1380_v33 = vrot.slane %v1378_v23, 5 }
  0x4b   : > { %v1625_v34 = vrot.slane %v1623_v26, 4  ;;  %v1626_v35 = vshll.u32 %v1201_v22, 16  ;;  %v1632_v36 = vshll.u32 %v1202_v24, 16  ;;  %v5581_v37 = vld [vmem:[#allocation2 + $0x18] sm:$0xf]  ;;  %v1636_v43 = vshrl.u32 %v1202_v24, 16 }
  0x4c   : > { %v1365_v38 = vor.u32 %v1364_v30, %v1361_v29  ;;  %v1375_v42 = vor.u32 %v1374_v32, %v1370_v31  ;;  %v1642_v44 = vshll.u32 %v1203_v25, 16  ;;  %v5583_v45 = vld [vmem:[#allocation2 + $0x1c] sm:$0xf]  ;;  %v5585_v48 = vcombine.low %v1201_v22, %v1202_v24  ;;  %v5587_v39 = vld [vmem:[#allocation2 + $0x20] sm:$0x1] }
  0x4d   : > { %v1628_v46 = vrot.slane %v1626_v35, 5  ;;  %v1634_v47 = vrot.slane %v1632_v36, 5  ;;  %v1383_v49 = vshrl.u32 %v5581_v37, 16  ;;  %v1638_v6 = vrot.slane %v1636_v43, 4  ;;  %v5155_v19 = vld [vmem:[%s6886_s5 + $0x120] sm:$0xff]  }
  0x4e   : > { %v1366_v41 = vrot.slane %v1365_v38, 4  ;;  %v1376_v53 = vrot.slane %v1375_v42, 4  ;;  %v1644_v7 = vrot.slane %v1642_v44, 5  ;;  %v1386_v58 = vshll.u32 %v5581_v37, 16  ;;  %4787 = vmatpush3.bf16.msra.mxu0 %v5155_v19 }
  0x4f   : > { %v1629_v55 = vor.u32 %v1628_v46, %v1625_v34  ;;  %v1385_v57 = vrot.slane %v1383_v49, 4  ;;  %v1392_v61 = vshll.u32 %v5583_v45, 16  ;;  %v1204_v14 = vld [vmem:[#allocation2 + $0x9c] sm:$0xf]  ;;  %v1639_v21 = vor.u32 %v1638_v6, %v1634_v47 }
  0x50   : > { %v1371_v15 = vsel %vm5384_vm10, %v1366_v41, %v1370_v31  ;;  %v1381_v20 = vsel %vm5384_vm10, %v1376_v53, %v1380_v33  ;;  %v1396_v22 = vshrl.u32 %v5583_v45, 16  ;;  %v1388_v25 = vrot.slane %v1386_v58, 5  ;;  %v5158_v33 = vld [vmem:[%s6886_s5 + $0x168] sm:$0xff]   ;;  %v5195_v56 = vld [vmem:[#allocation2 + $0x9c] sm:$0xf] }
  0x51   : > { %v5600_v23 = vcombine.low %v1371_v15, %v1381_v20  ;;  %v1630_v24 = vrot.slane %v1629_v55, 4  ;;  %v1394_v26 = vrot.slane %v1392_v61, 5  ;;  %v1205_v27 = vld [vmem:[#allocation2 + $0xa0] sm:$0xf]  ;;  %v1640_v29 = vrot.slane %v1639_v21, 4  ;;  %4788 = vmatprep.subr.bf16.mxu0 %v5158_v33  ;;  %v5159_v41 = vld [vmem:[%s6886_s5 + $0x128] sm:$0xff]  }
  0x52   : > { %v1398_v30 = vrot.slane %v1396_v22, 4  ;;  %v1402_v32 = vshll.u32 %v5587_v39, 16  ;;  %v1142_v31 = vsel %vm5300_vm3, %v950_v28, %v1141_v51  ;;  %v1389_v35 = vor.u32 %v1388_v25, %v1385_v57  ;;  %v5122_v53 = vld [vmem:[%s6886_s5 + $0xc8] sm:$0xff]   ;;  %4789 = vmatpush3.bf16.msra.mxu0 %v5159_v41 }
  0x53   : > { %2957 = vmatprep.mubr.bf16.mxu0 %v5600_v23  ;;  %v1635_v34 = vsel %vm5384_vm10, %v1630_v24, %v1634_v47  ;;  %1143 = vst [vmem:[#allocation2 + $0xa4] sm:$0x1] %v1142_v31  ;;  %v1647_v36 = vshrl.u32 %v1204_v14, 16  ;;  %v1650_v38 = vshll.u32 %v1204_v14, 16  ;;  %v1645_v42 = vsel %vm5384_vm10, %v1640_v29, %v1644_v7  ;;  %v5123_v20 = vld [vmem:[%s6886_s5 + $0x88] sm:$0xff]   ;;  %v5124_v29 = vld [vmem:[%s6886_s5 + $0xd0] sm:$0xff]  }
  0x54   : > { %2958 = vmatmul.mubr.bf16.gmra.mrb[4].mxu0 %v5577_v11  ;;  %v1399_v28 = vor.u32 %v1398_v30, %v1394_v26  ;;  %v1404_v43 = vrot.slane %v1402_v32, 5  ;;  %v1656_v44 = vshll.u32 %v1205_v27, 16  ;;  %v5619_v46 = vcombine.low %v1635_v34, %v1645_v42  ;;  %v1071_v31 = vld [vmem:[#allocation2 + $0x2c] sm:$0x1] }
  0x55   : > { %v1390_v47 = vrot.slane %v1389_v35, 4  ;;  %v1649_v49 = vrot.slane %v1647_v36, 4  ;;  %v1652_v51 = vrot.slane %v1650_v38, 5  ;;  %v1660_v55 = vshrl.u32 %v1205_v27, 16 }
  0x56   : > { %6924 = vst [vmem:[#allocation4_spill] sm:$0xff] %v5619_v46  ;;  %v1400_v6 = vrot.slane %v1399_v28, 4  ;;  %v5627_v7 = vrot.slane %v1656_v44, 5  ;;  %v5631_v57 = vcombine.low %v5581_v37, %v5583_v45  ;;  %3045 = vmatprep.mubr.bf16.mxu1 %v5619_v46  ;;  %v5636_v19 = vcombine.low %v1204_v14, %v1205_v27 }
  0x57   : > { %v1395_v58 = vsel %vm5384_vm10, %v1390_v47, %v1394_v26  ;;  %v1653_v61 = vor.u32 %v1652_v51, %v1649_v49  ;;  %v765_v15 = vshrl.u32 %v5561_v16, 16  ;;  %3046 = vmatmul.mubr.bf16.vlgmr.msra.gmra.mrb[0].mxu1 %v5585_v48  ;;  %v1662_v22 = vrot.slane %v1660_v55, 4  ;;  %v1067_v26 = vld [vmem:[#allocation2 + $0x24] sm:$0xf]  ;;  %v590_v47 = vld [vmem:[#allocation2 + $0x38] sm:$0x1] }
  0x58   : > { %6925 = vst [vmem:[#allocation5_spill] sm:$0xff] %v5631_v57  ;;  %v1405_v21 = vsel %vm5384_vm10, %v1400_v6, %v1404_v43  ;;  %v768_v24 = vshll.u32 %v5561_v16, 16  ;;  %v773_v25 = vshrl.u32 %v5563_v18, 16  ;;  %4667 = vmatpush3.bf16.msra.mxu1 %v5120_v52  ;;  %v776_v32 = vshll.u32 %v5563_v18, 16  ;;  %v5127_v18 = vld [vmem:[%s6886_s5 + $0x90] sm:$0xff]   ;;  %v5128_v51 = vld [vmem:[%s6886_s5 + $0xd8] sm:$0xff]  }
  0x59   : > { %v5647_v14 = vcombine.low %v1395_v58, %v1405_v21  ;;  %v1654_v27 = vrot.slane %v1653_v61, 4  ;;  %v767_v30 = vrot.slane %v765_v15, 7  ;;  %4668 = vmatprep.subr.bf16.mxu1 %v5122_v53  ;;  %v1663_v34 = vor.u32 %v1662_v22, %v5627_v7  ;;  %v534_v43 = vld [vmem:[#allocation2 + $0x30] sm:$0x1]  ;;  %v567_v21 = vld [vmem:[#allocation2 + $0xb4] sm:$0x1] }
  0x5a   : > { %v1206_v33 = vld [vmem:[#allocation2 + $0xa4] sm:$0x1]  ;;  %v775_v16 = vrot.slane %v773_v25, 7  ;;  %v507_v35 = vmax.f32 %v5550_v0, 0.0  ;;  %v4342_v36 = vpack.c.bf16 %v506_v9, %v506_v9  ;;  %v5163_v55 = vld [vmem:[%s6886_s5 + $0x170] sm:$0xff]   ;;  %v417_v25 = vmul.f32 %v4395_v12, %v5442_v50 }
  0x5b   : > { %2965 = vmatprep.mubr.bf16.mxu0 %v5647_v14  ;;  %v1659_v38 = vsel %vm5384_vm10, %v1654_v27, %v5627_v7  ;;  %v1666_v42 = vshll.u32 %v1206_v33, 16  ;;  %v770_v52 = vor.u32 %v768_v24, %v767_v30  ;;  %v771_v28 = vrot.slane %v767_v30, 4  ;;  %v4537_v7 = vld [vmem:[%s5402_s11 + $0x70] sm:$0xff]   ;;  %4790 = vmatprep.subr.bf16.mxu0 %v5163_v55  ;;  %v5130_v30 = vld [vmem:[%s6886_s5 + $0x98] sm:$0xff]  }
  0x5c   : > { %v1664_v0 = vrot.slane %v1663_v34, 4  ;;  %2966 = vmatmul.mubr.bf16.gmra.mrb[8].mxu0 %v5631_v57  ;;  %v778_v54 = vor.u32 %v776_v32, %v775_v16  ;;  %v780_v9 = vrot.slane %v775_v16, 4  ;;  %v4343_v44 = vpack.c.bf16 %v507_v35, %v507_v35  ;;  %4669 = vmatpush3.bf16.msra.mxu1 %v5123_v20  ;;  %v5165_v27 = vld [vmem:[%s6886_s5 + $0x130] sm:$0xff]  }
  0x5d   : > { %v1668_v49 = vrot.slane %v1666_v42, 5  ;;  %v1068_v41 = vsel %vm5495_vm13, %v770_v52, %v1067_v26  ;;  %v952_v53 = vshrl.u32 %v4342_v36, 16  ;;  %v955_v6 = vshll.u32 %v4342_v36, 16  ;;  %4670 = vmatprep.subr.bf16.mxu1 %v5124_v29  ;;  %v1148_v16 = vld [vmem:[#allocation2 + $0xb0] sm:$0x1]  ;;  %4791 = vmatpush3.bf16.msra.mxu0 %v5165_v27  ;;  %v5132_v52 = vld [vmem:[%s6886_s5 + $0xe0] sm:$0xff]  }
  0x5e   : > { %v779_v58 = vsel %vm5501_vm14, %v771_v28, %v778_v54  ;;  %1069 = vst [vmem:[#allocation2 + $0x24] sm:$0xf] %v1068_v41  ;;  %v1072_v61 = vsel %vm5300_vm3, %v780_v9, %v1071_v31  ;;  %v960_v15 = vshrl.u32 %v4343_v44, 16  ;;  %v963_v20 = vshll.u32 %v4343_v44, 16  ;;  %v1144_v31 = vld [vmem:[#allocation2 + $0xa8] sm:$0xf] }
  0x5f   : > { %v1669_v22 = vsel %vm5384_vm10, %v1664_v0, %v1668_v49  ;;  %1070 = vst [vmem:[#allocation2 + $0x28] sm:$0xf] %v779_v58  ;;  %1073 = vst [vmem:[#allocation2 + $0x2c] sm:$0x1] %v1072_v61  ;;  %v954_v24 = vrot.slane %v952_v53, 7  ;;  %v454_v26 = vadd.f32 %v5455_v4, %v5568_v10  ;;  %v535_v8 = vsel %vm5300_vm3, 0, %v534_v43 }
  0x60   : > { %v5689_v29 = vcombine.low %v1659_v38, %v1669_v22  ;;  %v962_v32 = vrot.slane %v960_v15, 7  ;;  %v591_v12 = vsel %vm5309_vm4, 0, %v590_v47  ;;  %v623_v10 = vld [vmem:[#allocation2 + $0xbc] sm:$0x1]  ;;  %4671 = vmatpush3.bf16.msra.mxu1 %v5127_v18  ;;  %v455_v35 = vadd.f32 %v5455_v4, %v417_v25  ;;  %536 = vst [vmem:[#allocation2 + $0x30] sm:$0x1] %v535_v8 }
  0x61   : > { %v957_v33 = vor.u32 %v955_v6, %v954_v24  ;;  %v958_v34 = vrot.slane %v954_v24, 4  ;;  %v486_v36 = vmax.f32 %v454_v26, 0.0  ;;  %592 = vst [vmem:[#allocation2 + $0x38] sm:$0x1] %v591_v12  ;;  %4672 = vmatprep.subr.bf16.mxu1 %v5128_v51  ;;  %v4438_v28 = vunpack.c.l.bf16 %v4537_v7  ;;  %v5135_v0 = vld [vmem:[%s6886_s5 + $0xa0] sm:$0xff]   ;;  %v5136_v6 = vld [vmem:[%s6886_s5 + $0xe8] sm:$0xff]  }
  0x62   : > { %6926 = vst [vmem:[#allocation6_spill] sm:$0xff] %v5689_v29  ;;  %3053 = vmatprep.mubr.bf16.mxu1 %v5689_v29  ;;  %v965_v38 = vor.u32 %v963_v20, %v962_v32  ;;  %v967_v42 = vrot.slane %v962_v32, 4  ;;  %v4439_v18 = vunpack.c.h.bf16 %v4537_v7  ;;  %v487_v54 = vmax.f32 %v455_v35, 0.0  ;;  %v5169_v8 = vld [vmem:[%s6886_s5 + $0x178] sm:$0xff]   ;;  %v5138_v35 = vld [vmem:[%s6886_s5 + $0xf0] sm:$0xff]  }
  0x63   : > { %3054 = vmatmul.mubr.bf16.gmra.mrb[4].mxu1 %v5636_v19  ;;  %v1145_v43 = vsel %vm5495_vm13, %v957_v33, %v1144_v31  ;;  %v4322_v9 = vpack.c.bf16 %v486_v36, %v486_v36  ;;  %v568_v44 = vsel %vm5300_vm3, 0, %v567_v21  ;;  %v438_v51 = vmul.f32 %v4438_v28, %v5442_v50  ;;  %v5137_v31 = vld [vmem:[%s6886_s5 + $0xa8] sm:$0xff]   ;;  %v5170_v12 = vld [vmem:[%s6886_s5 + $0x138] sm:$0xff]   ;;  %v5756_v36 = vld [vmem:[%s5402_s11 + $0x20] sm:$0xff]   ;;  %4792 = vmatprep.subr.bf16.mxu0 %v5169_v8 }
  0x64   : > { %v966_v47 = vsel %vm5501_vm14, %v958_v34, %v965_v38  ;;  %1146 = vst [vmem:[#allocation2 + $0xa8] sm:$0xf] %v1145_v43  ;;  %v1149_v49 = vsel %vm5300_vm3, %v967_v42, %v1148_v16  ;;  %v439_v41 = vmul.f32 %v4439_v18, %v5442_v50  ;;  %569 = vst [vmem:[#allocation2 + $0xb4] sm:$0x1] %v568_v44  ;;  %4673 = vmatpush3.bf16.msra.mxu1 %v5130_v30  ;;  %v537_v8 = vld [vmem:[#allocation2 + $0x3c] sm:$0x1] }
  0x65   : > { %v5717_v53 = vld [vmem:[#allocation2 + $0x24] sm:$0xf]  ;;  %1147 = vst [vmem:[#allocation2 + $0xac] sm:$0xf] %v966_v47  ;;  %1150 = vst [vmem:[#allocation2 + $0xb0] sm:$0x1] %v1149_v49  ;;  %v4323_v7 = vpack.c.bf16 %v487_v54, %v487_v54  ;;  %4674 = vmatprep.subr.bf16.mxu1 %v5132_v52  ;;  %v5731_v24 = vadd.f32 %v5455_v4, %v438_v51  ;;  %4793 = vmatpush3.bf16.msra.mxu0 %v5170_v12 }
  0x66   : > { %v782_v55 = vshrl.u32 %v4322_v9, 16  ;;  %v785_v58 = vshll.u32 %v4322_v9, 16  ;;  %v624_v61 = vsel %vm5309_vm4, 0, %v623_v10  ;;  %v5724_v15 = vld [vmem:[#allocation2 + $0x28] sm:$0xf]  ;;  %v1407_v21 = vshrl.u32 %v5717_v53, 16 }
  0x67   : > { %v5726_v20 = vld [vmem:[#allocation2 + $0x2c] sm:$0x1]  ;;  %v1410_v22 = vshll.u32 %v5717_v53, 16  ;;  %v5734_v25 = vadd.f32 %v5455_v4, %v439_v41  ;;  %625 = vst [vmem:[#allocation2 + $0xbc] sm:$0x1] %v624_v61  ;;  %v1416_v26 = vshll.u32 %v5724_v15, 16  ;;  %v5741_v32 = vcombine.low %v5717_v53, %v5724_v15 }
  0x68   : > { %v1420_v27 = vshrl.u32 %v5724_v15, 16  ;;  %v1426_v30 = vshll.u32 %v5726_v20, 16  ;;  %v1409_v10 = vrot.slane %v1407_v21, 4  ;;  %v784_v34 = vrot.slane %v782_v55, 7  ;;  %4675 = vmatpush3.bf16.msra.mxu1 %v5135_v0  ;;  %v1074_v18 = vld [vmem:[#allocation2 + $0x30] sm:$0xf] }
  0x69   : > { %6927 = vst [vmem:[#allocation7_spill] sm:$0xff] %v5741_v32  ;;  %v1412_v33 = vrot.slane %v1410_v22, 5  ;;  %v790_v16 = vshrl.u32 %v4323_v7, 16  ;;  %v1418_v38 = vrot.slane %v1416_v26, 5  ;;  %v793_v28 = vshll.u32 %v4323_v7, 16  ;;  %4676 = vmatprep.subr.bf16.mxu1 %v5136_v6  ;;  %v5142_v55 = vld [vmem:[%s6886_s5 + $0xb0] sm:$0xff]  }
  0x6a   : > { %v1422_v42 = vrot.slane %v1420_v27, 4  ;;  %v1428_v52 = vrot.slane %v1426_v30, 5  ;;  %v787_v54 = vor.u32 %v785_v58, %v784_v34  ;;  %v788_v9 = vrot.slane %v784_v34, 4 }
  0x6b   : > { %v1413_v43 = vor.u32 %v1412_v33, %v1409_v10  ;;  %v792_v44 = vrot.slane %v790_v16, 7  ;;  %v1207_v49 = vld [vmem:[#allocation2 + $0xa8] sm:$0xf]  ;;  %v508_v51 = vmax.f32 %v5731_v24, 0.0  ;;  %v509_v41 = vmax.f32 %v5734_v25, 0.0  ;;  %v5144_v24 = vld [vmem:[%s6886_s5 + $0xf8] sm:$0xff]  }
  0x6c   : > { %v1423_v47 = vor.u32 %v1422_v42, %v1418_v38  ;;  %v4398_v0 = vunpack.c.l.bf16 %v5756_v36  ;;  %v1208_v61 = vld [vmem:[#allocation2 + $0xac] sm:$0xf]  ;;  %v1209_v21 = vld [vmem:[#allocation2 + $0xb0] sm:$0x1]  ;;  %v1671_v6 = vshrl.u32 %v1207_v49, 16  ;;  %v1075_v22 = vsel %vm5495_vm13, %v787_v54, %v1074_v18  ;;  %4677 = vmatpush3.bf16.msra.mxu1 %v5137_v31  ;;  %v5145_v31 = vld [vmem:[%s6886_s5 + $0xb8] sm:$0xff]  }
  0x6d   : > { %v1414_v7 = vrot.slane %v1413_v43, 4  ;;  %v795_v58 = vor.u32 %v793_v28, %v792_v44  ;;  %v1674_v25 = vshll.u32 %v1207_v49, 16  ;;  %v1680_v27 = vshll.u32 %v1208_v61, 16  ;;  %1076 = vst [vmem:[#allocation2 + $0x30] sm:$0xf] %v1075_v22  ;;  %4678 = vmatprep.subr.bf16.mxu1 %v5138_v35 }
  0x6e   : > { %v1424_v26 = vrot.slane %v1423_v47, 4  ;;  %v1684_v30 = vshrl.u32 %v1208_v61, 16  ;;  %v1673_v10 = vrot.slane %v1671_v6, 4  ;;  %v1690_v33 = vshll.u32 %v1209_v21, 16  ;;  %v1078_v43 = vld [vmem:[#allocation2 + $0x38] sm:$0x1] }
  0x6f   : > { %v1419_v12 = vsel %vm5384_vm10, %v1414_v7, %v1418_v38  ;;  %v5771_v34 = vcombine.low %v1207_v49, %v1208_v61  ;;  %v1676_v42 = vrot.slane %v1674_v25, 5  ;;  %v1682_v28 = vrot.slane %v1680_v27, 5  ;;  %v5172_v38 = vld [vmem:[%s6886_s5 + $0x200] sm:$0xff]  }
  0x70   : > { %v1429_v16 = vsel %vm5384_vm10, %v1424_v26, %v1428_v52  ;;  %v1686_v18 = vrot.slane %v1684_v30, 4  ;;  %v1692_v47 = vrot.slane %v1690_v33, 5  ;;  %v796_v35 = vsel %vm5501_vm14, %v788_v9, %v795_v58  ;;  %4679 = vmatpush3.bf16.msra.mxu1 %v5142_v55  ;;  %5026 = vmatprep.subr.bf16.mxu0 %v5172_v38  ;;  %v1155_v38 = vld [vmem:[#allocation2 + $0xbc] sm:$0x1] }
  0x71   : > { %v5781_v54 = vcombine.low %v1419_v12, %v1429_v16  ;;  %v797_v49 = vrot.slane %v792_v44, 4  ;;  %v1677_v52 = vor.u32 %v1676_v42, %v1673_v10  ;;  %1077 = vst [vmem:[#allocation2 + $0x34] sm:$0xf] %v796_v35  ;;  %v4344_v61 = vpack.c.bf16 %v508_v51, %v508_v51  ;;  %4680 = vmatprep.subr.bf16.mxu1 %v5144_v24  ;;  %v593_v44 = vld [vmem:[#allocation2 + $0x44] sm:$0x1] }
  0x72   : > { %v1687_v7 = vor.u32 %v1686_v18, %v1682_v28  ;;  %v4345_v21 = vpack.c.bf16 %v509_v41, %v509_v41  ;;  %v4399_v22 = vunpack.c.h.bf16 %v5756_v36  ;;  %v418_v26 = vmul.f32 %v4398_v0, %v5442_v50  ;;  %v5146_v51 = vld [vmem:[%s6886_s5 + $0x1c0] sm:$0xff]   ;;  %v1151_v16 = vld [vmem:[#allocation2 + $0xb4] sm:$0xf] }
  0x73   : > { %2973 = vmatprep.mubr.bf16.mxu0 %v5781_v54  ;;  %v1079_v6 = vsel %vm5300_vm3, %v797_v49, %v1078_v43  ;;  %v538_v9 = vsel %vm5300_vm3, 0, %v537_v8  ;;  %v1678_v41 = vrot.slane %v1677_v52, 4  ;;  %v969_v58 = vshrl.u32 %v4344_v61, 16 }
  0x74   : > { %v1688_v55 = vrot.slane %v1687_v7, 4  ;;  %2974 = vmatmul.mubr.bf16.gmra.mrb[12].mxu0 %v5741_v32  ;;  %1080 = vst [vmem:[#allocation2 + $0x38] sm:$0x1] %v1079_v6  ;;  %v972_v25 = vshll.u32 %v4344_v61, 16  ;;  %539 = vst [vmem:[#allocation2 + $0x3c] sm:$0x1] %v538_v9  ;;  %v419_v27 = vmul.f32 %v4399_v22, %v5442_v50  ;;  %v456_v30 = vadd.f32 %v5455_v4, %v418_v26 }
  0x75   : > { %v5796_v36 = vld [vmem:[#allocation2 + $0x30] sm:$0xf]  ;;  %v977_v0 = vshrl.u32 %v4345_v21, 16  ;;  %v980_v24 = vshll.u32 %v4345_v21, 16  ;;  %v1683_v8 = vsel %vm5384_vm10, %v1678_v41, %v1682_v28  ;;  %4681 = vmatpush3.bf16.msra.mxu1 %v5145_v31  ;;  %v971_v18 = vrot.slane %v969_v58, 7  ;;  %v4528_v7 = vld [vmem:[%s5402_s11 + $0x28] sm:$0xff]  }
  0x76   : > { %v1693_v12 = vsel %vm5384_vm10, %v1688_v55, %v1692_v47  ;;  %v1431_v10 = vshrl.u32 %v5796_v36, 16  ;;  %v1434_v33 = vshll.u32 %v5796_v36, 16  ;;  %v457_v35 = vadd.f32 %v5455_v4, %v419_v27  ;;  %4890 = vmatprep.subr.bf16.mxu1 %v5146_v51  ;;  %v540_v26 = vld [vmem:[#allocation2 + $0x48] sm:$0x1]  ;;  %v596_v27 = vld [vmem:[#allocation2 + $0x50] sm:$0x1] }
  0x77   : > { %v5806_v42 = vcombine.low %v1683_v8, %v1693_v12  ;;  %v979_v43 = vrot.slane %v977_v0, 7  ;;  %v488_v52 = vmax.f32 %v456_v30, 0.0  ;;  %v594_v47 = vsel %vm5309_vm4, 0, %v593_v44 }
  0x78   : > { %v1433_v49 = vrot.slane %v1431_v10, 4  ;;  %v1436_v28 = vrot.slane %v1434_v33, 5  ;;  %v5813_v61 = vld [vmem:[#allocation2 + $0x34] sm:$0xf]  ;;  %v974_v31 = vor.u32 %v972_v25, %v971_v18  ;;  %v975_v21 = vrot.slane %v971_v18, 4 }
  0x79   : > { %6928 = vst [vmem:[#allocation8_spill] sm:$0xff] %v5806_v42  ;;  %3061 = vmatprep.mubr.bf16.mxu1 %v5806_v42  ;;  %v982_v6 = vor.u32 %v980_v24, %v979_v43  ;;  %v984_v22 = vrot.slane %v979_v43, 4  ;;  %595 = vst [vmem:[#allocation2 + $0x44] sm:$0x1] %v594_v47  ;;  %v1440_v51 = vshll.u32 %v5813_v61, 16  ;;  %v1444_v41 = vshrl.u32 %v5813_v61, 16 }
  0x7a   : > { %3062 = vmatmul.mubr.bf16.gmra.mrb[8].mxu1 %v5771_v34  ;;  %v1437_v9 = vor.u32 %v1436_v28, %v1433_v49  ;;  %v5820_v44 = vcombine.low %v5796_v36, %v5813_v61  ;;  %v1152_v25 = vsel %vm5495_vm13, %v974_v31, %v1151_v16  ;;  %v489_v24 = vmax.f32 %v457_v35, 0.0 }
  0x7b   : > { %v5822_v55 = vld [vmem:[#allocation2 + $0x38] sm:$0x1]  ;;  %v983_v58 = vsel %vm5501_vm14, %v975_v21, %v982_v6  ;;  %v1156_v0 = vsel %vm5300_vm3, %v984_v22, %v1155_v38  ;;  %v1442_v8 = vrot.slane %v1440_v51, 5  ;;  %v1446_v12 = vrot.slane %v1444_v41, 4  ;;  %1153 = vst [vmem:[#allocation2 + $0xb4] sm:$0xf] %v1152_v25 }
  0x7c   : > { %6929 = vst [vmem:[#allocation9_spill] sm:$0xff] %v5820_v44  ;;  %v1438_v30 = vrot.slane %v1437_v9, 4  ;;  %v1450_v10 = vshll.u32 %v5822_v55, 16  ;;  %1154 = vst [vmem:[#allocation2 + $0xb8] sm:$0xf] %v983_v58  ;;  %v4324_v33 = vpack.c.bf16 %v488_v52, %v488_v52  ;;  %v4325_v18 = vpack.c.bf16 %v489_v24, %v489_v24 }
  0x7d   : > { %1157 = vst [vmem:[#allocation2 + $0xbc] sm:$0x1] %v1156_v0  ;;  %v4402_v43 = vunpack.c.l.bf16 %v4528_v7  ;;  %v4403_v49 = vunpack.c.h.bf16 %v4528_v7  ;;  %v1447_v28 = vor.u32 %v1446_v12, %v1442_v8  ;;  %v541_v38 = vsel %vm5300_vm3, 0, %v540_v26  ;;  %v1081_v0 = vld [vmem:[#allocation2 + $0x3c] sm:$0xf] }
  0x7e   : > { %v1443_v16 = vsel %vm5384_vm10, %v1438_v30, %v1442_v8  ;;  %v1452_v47 = vrot.slane %v1450_v10, 5  ;;  %v799_v35 = vshrl.u32 %v4324_v33, 16  ;;  %v802_v31 = vshll.u32 %v4324_v33, 16  ;;  %542 = vst [vmem:[#allocation2 + $0x48] sm:$0x1] %v541_v38 }
  0x7f   : > { %v807_v21 = vshrl.u32 %v4325_v18, 16  ;;  %v810_v6 = vshll.u32 %v4325_v18, 16  ;;  %v1448_v22 = vrot.slane %v1447_v28, 4  ;;  %v420_v9 = vmul.f32 %v4402_v43, %v5442_v50 }
  0x80   : > { %v421_v52 = vmul.f32 %v4403_v49, %v5442_v50  ;;  %v597_v7 = vsel %vm5309_vm4, 0, %v596_v27  ;;  %v801_v51 = vrot.slane %v799_v35, 7  ;;  %v4169_v58 = vrot.slane %v5553_v2, 9  ;;  %v1085_v24 = vld [vmem:[#allocation2 + $0x44] sm:$0x1] }
  0x81   : > { %v809_v41 = vrot.slane %v807_v21, 7  ;;  %598 = vst [vmem:[#allocation2 + $0x50] sm:$0x1] %v597_v7  ;;  %v1826_v26 = vrot.slane %v5555_v3, 5  ;;  %v1453_v25 = vsel %vm5384_vm10, %v1448_v22, %v1452_v47  ;;  %v458_v30 = vadd.f32 %v5455_v4, %v420_v9  ;;  %v4529_v22 = vld [vmem:[%s5402_s11 + $0x30] sm:$0xff]  }
  0x82   : > { %v459_v8 = vadd.f32 %v5455_v4, %v421_v52  ;;  %v1829_v12 = vrot.slane %v5557_v5, 5  ;;  %v5846_v10 = vcombine.low %v1443_v16, %v1453_v25  ;;  %v1210_v27 = vld [vmem:[#allocation2 + $0xb4] sm:$0xf]  ;;  %v804_v2 = vor.u32 %v802_v31, %v801_v51 }
  0x83   : > { %v1211_v33 = vld [vmem:[#allocation2 + $0xb8] sm:$0xf]  ;;  %v812_v43 = vor.u32 %v810_v6, %v809_v41  ;;  %v1827_v3 = vsel %vm5361_vm9, %v4169_v58, %v1826_v26  ;;  %v1695_v49 = vshrl.u32 %v1210_v27, 16  ;;  %v1698_v28 = vshll.u32 %v1210_v27, 16  ;;  %v543_v6 = vld [vmem:[#allocation2 + $0x54] sm:$0x1] }
  0x84   : > { %v1212_v18 = vld [vmem:[#allocation2 + $0xbc] sm:$0x1]  ;;  %v1704_v47 = vshll.u32 %v1211_v33, 16  ;;  %v1708_v38 = vshrl.u32 %v1211_v33, 16  ;;  %2981 = vmatprep.mubr.bf16.mxu0 %v5846_v10  ;;  %v5851_v21 = vcombine.low %v1210_v27, %v1211_v33  ;;  %v805_v5 = vrot.slane %v801_v51, 4 }
  0x85   : > { %v1714_v35 = vshll.u32 %v1212_v18, 16  ;;  %v814_v16 = vrot.slane %v809_v41, 4  ;;  %v1697_v9 = vrot.slane %v1695_v49, 4  ;;  %v1700_v52 = vrot.slane %v1698_v28, 5  ;;  %2982 = vmatmul.mubr.bf16.gmra.mrb[16].mxu0 %v5820_v44  ;;  %v599_v49 = vld [vmem:[#allocation2 + $0x5c] sm:$0x1] }
  0x86   : > { %6930 = vst [vmem:[#allocation10_spill] sm:$0xff] %v5851_v21  ;;  %v1706_v7 = vrot.slane %v1704_v47, 5  ;;  %v1710_v31 = vrot.slane %v1708_v38, 4  ;;  %v813_v25 = vsel %vm5501_vm14, %v805_v5, %v812_v43  ;;  %v1082_v1 = vsel %vm5495_vm13, %v804_v2, %v1081_v0 }
  0x87   : > { %v1716_v58 = vrot.slane %v1714_v35, 5  ;;  %v1086_v27 = vsel %vm5300_vm3, %v814_v16, %v1085_v24  ;;  %v1701_v51 = vor.u32 %v1700_v52, %v1697_v9  ;;  %1083 = vst [vmem:[#allocation2 + $0x3c] sm:$0xf] %v1082_v1  ;;  %1084 = vst [vmem:[#allocation2 + $0x40] sm:$0xf] %v813_v25  ;;  %v490_v33 = vmax.f32 %v458_v30, 0.0 }
  0x88   : > { %v1711_v41 = vor.u32 %v1710_v31, %v1706_v7  ;;  %1087 = vst [vmem:[#allocation2 + $0x44] sm:$0x1] %v1086_v27  ;;  %v491_v18 = vmax.f32 %v459_v8, 0.0  ;;  %v1828_v28 = vrot.slane %v1826_v26, 4  ;;  %v4406_v47 = vunpack.c.l.bf16 %v4529_v22  ;;  %v5874_v52 = vld [vmem:[%s5402_s11 + $0x38] sm:$0xff]   ;;  %v5877_v31 = vld [vmem:[%s5402_s11 + $0x40] sm:$0xff]  }
  0x89   : > { %v4407_v38 = vunpack.c.h.bf16 %v4529_v22  ;;  %v544_v43 = vsel %vm5300_vm3, 0, %v543_v6  ;;  %v1702_v0 = vrot.slane %v1701_v51, 4  ;;  %v4326_v35 = vpack.c.bf16 %v490_v33, %v490_v33 }
  0x8a   : > { %v1712_v2 = vrot.slane %v1711_v41, 4  ;;  %v4327_v24 = vpack.c.bf16 %v491_v18, %v491_v18  ;;  %545 = vst [vmem:[#allocation2 + $0x54] sm:$0x1] %v544_v43  ;;  %v1830_v1 = vsel %vm5361_vm9, %v1828_v28, %v1829_v12  ;;  %v422_v30 = vmul.f32 %v4406_v47, %v5442_v50 }
  0x8b   : > { %v423_v8 = vmul.f32 %v4407_v38, %v5442_v50  ;;  %v600_v26 = vsel %vm5309_vm4, 0, %v599_v49  ;;  %v1707_v5 = vsel %vm5384_vm10, %v1702_v0, %v1706_v7  ;;  %v816_v22 = vshrl.u32 %v4326_v35, 16 }
  0x8c   : > { %v1717_v16 = vsel %vm5384_vm10, %v1712_v2, %v1716_v58  ;;  %v819_v9 = vshll.u32 %v4326_v35, 16  ;;  %601 = vst [vmem:[#allocation2 + $0x5c] sm:$0x1] %v600_v26  ;;  %v824_v6 = vshrl.u32 %v4327_v24, 16  ;;  %v827_v25 = vshll.u32 %v4327_v24, 16 }
  0x8d   : > { %v5879_v12 = vcombine.low %v1707_v5, %v1717_v16  ;;  %v5881_v27 = vcombine.low %v1827_v3, %v1830_v1  ;;  %v818_v51 = vrot.slane %v816_v22, 7  ;;  %v460_v41 = vadd.f32 %v5455_v4, %v422_v30  ;;  %v1088_v35 = vld [vmem:[#allocation2 + $0x48] sm:$0xf] }
  0x8e   : > { %v461_v7 = vadd.f32 %v5455_v4, %v423_v8  ;;  %v4170_v58 = vrot.slane %v5581_v37, 9  ;;  %v5887_v33 = vld [vmem:[#allocation2 + $0x3c] sm:$0xf]  ;;  %v5889_v18 = vld [vmem:[#allocation2 + $0x40] sm:$0xf]  ;;  %v4410_v28 = vunpack.c.l.bf16 %v5874_v52  ;;  %v4411_v3 = vunpack.c.h.bf16 %v5874_v52 }
  0x8f   : > { %6931 = vst [vmem:[#allocation11_spill] sm:$0xff] %v5879_v12  ;;  %3069 = vmatprep.mubr.bf16.mxu1 %v5879_v12  ;;  %v5891_v49 = vld [vmem:[#allocation2 + $0x44] sm:$0x1]  ;;  %v1455_v37 = vshrl.u32 %v5887_v33, 16  ;;  %v1458_v43 = vshll.u32 %v5887_v33, 16  ;;  %v1464_v0 = vshll.u32 %v5889_v18, 16  ;;  %v5906_v1 = vcombine.low %v5887_v33, %v5889_v18 }
  0x90   : > { %3070 = vmatmul.mubr.bf16.gmra.mrb[12].mxu1 %v5851_v21  ;;  %v1468_v2 = vshrl.u32 %v5889_v18, 16  ;;  %v1474_v24 = vshll.u32 %v5891_v49, 16  ;;  %v821_v30 = vor.u32 %v819_v9, %v818_v51  ;;  %v822_v8 = vrot.slane %v818_v51, 4  ;;  %v5148_v9 = vld [vmem:[%s6886_s5 + $0x180] sm:$0xff]  }
  0x91   : > { %3110 = vmatprep.mubr.bf16.mxu1 %v5577_v11  ;;  %6932 = vst [vmem:[#allocation12_spill] sm:$0xff] %v5906_v1  ;;  %v1457_v26 = vrot.slane %v1455_v37, 4  ;;  %v1460_v5 = vrot.slane %v1458_v43, 5  ;;  %v1466_v16 = vrot.slane %v1464_v0, 5  ;;  %v826_v38 = vrot.slane %v824_v6, 7 }
  0x92   : > { %v1470_v22 = vrot.slane %v1468_v2, 4  ;;  %v1476_v52 = vrot.slane %v1474_v24, 5  ;;  %v1089_v47 = vsel %vm5495_vm13, %v821_v30, %v1088_v35  ;;  %v492_v12 = vmax.f32 %v460_v41, 0.0  ;;  %v1092_v11 = vld [vmem:[#allocation2 + $0x50] sm:$0x1]  ;;  %v5153_v41 = vld [vmem:[%s6886_s5 + $0x1c8] sm:$0xff]  }
  0x93   : > { %v1461_v42 = vor.u32 %v1460_v5, %v1457_v26  ;;  %1090 = vst [vmem:[#allocation2 + $0x48] sm:$0xf] %v1089_v47  ;;  %v493_v46 = vmax.f32 %v461_v7, 0.0  ;;  %v1833_v21 = vrot.slane %v5583_v45, 5  ;;  %v829_v51 = vor.u32 %v827_v25, %v826_v38  ;;  %v5156_v5 = vld [vmem:[%s6886_s5 + $0x188] sm:$0xff]  }
  0x94   : > { %v1471_v29 = vor.u32 %v1470_v22, %v1466_v16  ;;  %v831_v37 = vrot.slane %v826_v38, 4  ;;  %v4328_v43 = vpack.c.bf16 %v492_v12, %v492_v12  ;;  %v1836_v6 = vrot.slane %v5587_v39, 5  ;;  %v546_v38 = vld [vmem:[#allocation2 + $0x60] sm:$0x1]  ;;  %v602_v39 = vld [vmem:[#allocation2 + $0x68] sm:$0x1] }
  0x95   : > { %v1462_v0 = vrot.slane %v1461_v42, 4  ;;  %v4329_v35 = vpack.c.bf16 %v493_v46, %v493_v46  ;;  %v1834_v7 = vsel %vm5361_vm9, %v4170_v58, %v1833_v21  ;;  %v830_v45 = vsel %vm5501_vm14, %v822_v8, %v829_v51 }
  0x96   : > { %v1472_v2 = vrot.slane %v1471_v29, 4  ;;  %v1093_v25 = vsel %vm5300_vm3, %v831_v37, %v1092_v11  ;;  %v833_v47 = vshrl.u32 %v4328_v43, 16  ;;  %v836_v12 = vshll.u32 %v4328_v43, 16  ;;  %1091 = vst [vmem:[#allocation2 + $0x4c] sm:$0xf] %v830_v45 }
  0x97   : > { %v1467_v46 = vsel %vm5384_vm10, %v1462_v0, %v1466_v16  ;;  %v6933_v42 = vcombine.low %v5380_v59, %v5390_v62  ;;  %1094 = vst [vmem:[#allocation2 + $0x50] sm:$0x1] %v1093_v25  ;;  %v841_v58 = vshrl.u32 %v4329_v35, 16  ;;  %v844_v24 = vshll.u32 %v4329_v35, 16  ;;  %v1095_v59 = vld [vmem:[#allocation2 + $0x54] sm:$0xf] }
  0x98   : > { %v1477_v29 = vsel %vm5384_vm10, %v1472_v2, %v1476_v52  ;;  %v835_v8 = vrot.slane %v833_v47, 7  ;;  %v1835_v26 = vrot.slane %v1833_v21, 4  ;;  %v424_v16 = vmul.f32 %v4410_v28, %v5442_v50  ;;  %v5160_v21 = vld [vmem:[%s6886_s5 + $0x1d0] sm:$0xff]   ;;  %v1099_v37 = vld [vmem:[#allocation2 + $0x5c] sm:$0x1] }
  0x99   : > { %3111 = vmatmul.mubr.bf16.vlgmr.msra.gmra.mrb[16].mxu1 %v6933_v42  ;;  %v5931_v30 = vcombine.low %v1467_v46, %v1477_v29  ;;  %v843_v22 = vrot.slane %v841_v58, 7  ;;  %v425_v62 = vmul.f32 %v4411_v3, %v5442_v50  ;;  %v547_v52 = vsel %vm5300_vm3, 0, %v546_v38 }
  0x9a   : > { %4891 = vmatpush3.bf16.msra.mxu1 %v5148_v9  ;;  %3118 = vmatprep.mubr.bf16.mxu1 %v5631_v57  ;;  %v603_v11 = vsel %vm5309_vm4, 0, %v602_v39  ;;  %v5947_v9 = vld [vmem:[#allocation2 + $0x48] sm:$0xf]  ;;  %v838_v28 = vor.u32 %v836_v12, %v835_v8  ;;  %v839_v51 = vrot.slane %v835_v8, 4  ;;  %v1837_v3 = vsel %vm5361_vm9, %v1835_v26, %v1836_v6  ;;  %548 = vst [vmem:[#allocation2 + $0x60] sm:$0x1] %v547_v52 }
  0x9b   : > { %4892 = vmatprep.subr.bf16.mxu1 %v5153_v41  ;;  %2989 = vmatprep.mubr.bf16.mxu0 %v5931_v30  ;;  %v462_v43 = vadd.f32 %v5455_v4, %v424_v16  ;;  %604 = vst [vmem:[#allocation2 + $0x68] sm:$0x1] %v603_v11  ;;  %v1479_v0 = vshrl.u32 %v5947_v9, 16  ;;  %v1482_v2 = vshll.u32 %v5947_v9, 16  ;;  %v846_v35 = vor.u32 %v844_v24, %v843_v22  ;;  %v5162_v12 = vld [vmem:[%s6886_s5 + $0x190] sm:$0xff]  }
  0x9c   : > { %2990 = vmatmul.mubr.bf16.gmra.mrb[20].mxu0 %v5906_v1  ;;  %v848_v41 = vrot.slane %v843_v22, 4  ;;  %v1096_v45 = vsel %vm5495_vm13, %v838_v28, %v1095_v59  ;;  %v5957_v25 = vcombine.low %v1834_v7, %v1837_v3  ;;  %v463_v6 = vadd.f32 %v5455_v4, %v425_v62  ;;  %v5166_v7 = vld [vmem:[%s6886_s5 + $0x1d8] sm:$0xff]  }
  0x9d   : > { %v494_v47 = vmax.f32 %v462_v43, 0.0  ;;  %v1481_v38 = vrot.slane %v1479_v0, 4  ;;  %v1484_v39 = vrot.slane %v1482_v2, 5  ;;  %v847_v46 = vsel %vm5501_vm14, %v839_v51, %v846_v35  ;;  %1097 = vst [vmem:[#allocation2 + $0x54] sm:$0xf] %v1096_v45  ;;  %v5168_v51 = vld [vmem:[%s6886_s5 + $0x198] sm:$0xff]  }
  0x9e   : > { %4893 = vmatpush3.bf16.msra.mxu1 %v5156_v5  ;;  %v1100_v29 = vsel %vm5300_vm3, %v848_v41, %v1099_v37  ;;  %v5970_v42 = vld [vmem:[#allocation2 + $0x4c] sm:$0xf]  ;;  %v5972_v58 = vld [vmem:[#allocation2 + $0x50] sm:$0x1]  ;;  %1098 = vst [vmem:[#allocation2 + $0x58] sm:$0xf] %v847_v46  ;;  %v6934_v5 = vunpack.c.l.bf16 %v5877_v31 }
  0x9f   : > { %4894 = vmatprep.subr.bf16.mxu1 %v5160_v21  ;;  %1101 = vst [vmem:[#allocation2 + $0x5c] sm:$0x1] %v1100_v29  ;;  %v495_v24 = vmax.f32 %v463_v6, 0.0  ;;  %v4330_v8 = vpack.c.bf16 %v494_v47, %v494_v47  ;;  %v4171_v26 = vrot.slane %v5717_v53, 9  ;;  %v1485_v22 = vor.u32 %v1484_v39, %v1481_v38  ;;  %v5171_v2 = vld [vmem:[%s6886_s5 + $0x1e0] sm:$0xff]  }
  0xa0   : > { %v426_v16 = vmul.f32 %v6934_v5, %v5442_v50  ;;  %v1488_v59 = vshll.u32 %v5970_v42, 16  ;;  %v1492_v62 = vshrl.u32 %v5970_v42, 16  ;;  %v1498_v52 = vshll.u32 %v5972_v58, 16 }
  0xa1   : > { %3119 = vmatmul.mubr.bf16.gmra.mrb[20].mxu1 %v5881_v27  ;;  %v5984_v11 = vcombine.low %v5947_v9, %v5970_v42  ;;  %v4331_v53 = vpack.c.bf16 %v495_v24, %v495_v24  ;;  %v850_v21 = vshrl.u32 %v4330_v8, 16  ;;  %v853_v28 = vshll.u32 %v4330_v8, 16 }
  0xa2   : > { %3126 = vmatprep.mubr.bf16.mxu1 %v5741_v32  ;;  %4895 = vmatpush3.bf16.msra.mxu1 %v5162_v12  ;;  %v1486_v37 = vrot.slane %v1485_v22, 4  ;;  %v1490_v3 = vrot.slane %v1488_v59, 5  ;;  %v1494_v43 = vrot.slane %v1492_v62, 4  ;;  %v1500_v0 = vrot.slane %v1498_v52, 5  ;;  %v1106_v57 = vld [vmem:[#allocation2 + $0x68] sm:$0x1] }
  0xa3   : > { %6935 = vst [vmem:[#allocation13_spill] sm:$0xff] %v5984_v11  ;;  %4896 = vmatprep.subr.bf16.mxu1 %v5166_v7  ;;  %v852_v35 = vrot.slane %v850_v21, 7  ;;  %v858_v41 = vshrl.u32 %v4331_v53, 16  ;;  %v861_v45 = vshll.u32 %v4331_v53, 16  ;;  %v1840_v6 = vrot.slane %v5724_v15, 5  ;;  %v5173_v15 = vld [vmem:[%s6886_s5 + $0x1a0] sm:$0xff]  }
  0xa4   : > { %v1491_v47 = vsel %vm5384_vm10, %v1486_v37, %v1490_v3  ;;  %v1495_v12 = vor.u32 %v1494_v43, %v1490_v3  ;;  %v1843_v38 = vrot.slane %v5726_v20, 5  ;;  %v6936_v39 = vunpack.c.h.bf16 %v5877_v31  ;;  %v6000_v29 = vld [vmem:[#allocation2 + $0x54] sm:$0xf]  ;;  %v5174_v20 = vld [vmem:[%s6886_s5 + $0x1e8] sm:$0xff]   ;;  %v1102_v37 = vld [vmem:[#allocation2 + $0x60] sm:$0xf] }
  0xa5   : > { %v855_v7 = vor.u32 %v853_v28, %v852_v35  ;;  %v856_v24 = vrot.slane %v852_v35, 4  ;;  %v860_v8 = vrot.slane %v858_v41, 7  ;;  %v1841_v5 = vsel %vm5361_vm9, %v4171_v26, %v1840_v6  ;;  %v6010_v31 = vld [vmem:[#allocation2 + $0x58] sm:$0xf]  ;;  %v605_v41 = vld [vmem:[#allocation2 + $0x74] sm:$0x1] }
  0xa6   : > { %v427_v46 = vmul.f32 %v6936_v39, %v5442_v50  ;;  %4897 = vmatpush3.bf16.msra.mxu1 %v5168_v51  ;;  %v1496_v22 = vrot.slane %v1495_v12, 4  ;;  %v6012_v59 = vld [vmem:[#allocation2 + $0x5c] sm:$0x1]  ;;  %v1503_v62 = vshrl.u32 %v6000_v29, 16  ;;  %v464_v52 = vadd.f32 %v5455_v4, %v426_v16 }
  0xa7   : > { %4898 = vmatprep.subr.bf16.mxu1 %v5171_v2  ;;  %v1506_v53 = vshll.u32 %v6000_v29, 16  ;;  %v1512_v21 = vshll.u32 %v6010_v31, 16  ;;  %v1516_v28 = vshrl.u32 %v6010_v31, 16  ;;  %v1522_v51 = vshll.u32 %v6012_v59, 16  ;;  %v549_v2 = vld [vmem:[#allocation2 + $0x6c] sm:$0x1] }
  0xa8   : > { %v465_v26 = vadd.f32 %v5455_v4, %v427_v46  ;;  %v1501_v3 = vsel %vm5384_vm10, %v1496_v22, %v1500_v0  ;;  %v1505_v43 = vrot.slane %v1503_v62, 4  ;;  %v6025_v35 = vcombine.low %v6000_v29, %v6010_v31  ;;  %v5176_v0 = vld [vmem:[%s6886_s5 + $0x1a8] sm:$0xff]  }
  0xa9   : > { %3127 = vmatmul.mubr.bf16.gmra.mrb[24].mxu1 %v5957_v25  ;;  %v863_v16 = vor.u32 %v861_v45, %v860_v8  ;;  %v6028_v12 = vcombine.low %v1491_v47, %v1501_v3  ;;  %v1508_v39 = vrot.slane %v1506_v53, 5  ;;  %v1514_v46 = vrot.slane %v1512_v21, 5  ;;  %v5177_v53 = vld [vmem:[%s6886_s5 + $0x1f0] sm:$0xff]  }
  0xaa   : > { %v1518_v32 = vrot.slane %v1516_v28, 4  ;;  %3134 = vmatprep.mubr.bf16.mxu1 %v5820_v44  ;;  %4899 = vmatpush3.bf16.msra.mxu1 %v5173_v15  ;;  %v1524_v22 = vrot.slane %v1522_v51, 5  ;;  %v865_v45 = vrot.slane %v860_v8, 4  ;;  %v1103_v47 = vsel %vm5495_vm13, %v855_v7, %v1102_v37 }
  0xab   : > { %6937 = vst [vmem:[#allocation14_spill] sm:$0xff] %v6028_v12  ;;  %v864_v62 = vsel %vm5501_vm14, %v856_v24, %v863_v16  ;;  %4900 = vmatprep.subr.bf16.mxu1 %v5174_v20  ;;  %2997 = vmatprep.mubr.bf16.mxu0 %v6028_v12  ;;  %v1509_v15 = vor.u32 %v1508_v39, %v1505_v43  ;;  %1104 = vst [vmem:[#allocation2 + $0x60] sm:$0xf] %v1103_v47  ;;  %v1842_v28 = vrot.slane %v1840_v6, 4  ;;  %v608_v12 = vld [vmem:[#allocation2 + $0x80] sm:$0x1] }
  0xac   : > { %v1519_v21 = vor.u32 %v1518_v32, %v1514_v46  ;;  %1105 = vst [vmem:[#allocation2 + $0x64] sm:$0xf] %v864_v62  ;;  %v496_v51 = vmax.f32 %v464_v52, 0.0  ;;  %2998 = vmatmul.mubr.bf16.gmra.mrb[24].mxu0 %v5984_v11  ;;  %v1107_v24 = vsel %vm5300_vm3, %v865_v45, %v1106_v57  ;;  %v497_v8 = vmax.f32 %v465_v26, 0.0  ;;  %v5179_v57 = vld [vmem:[%s6886_s5 + $0x1b0] sm:$0xff]  }
  0xad   : > { %v550_v7 = vsel %vm5300_vm3, 0, %v549_v2  ;;  %v606_v20 = vsel %vm5309_vm4, 0, %v605_v41  ;;  %v1510_v37 = vrot.slane %v1509_v15, 4  ;;  %1108 = vst [vmem:[#allocation2 + $0x68] sm:$0x1] %v1107_v24  ;;  %v1844_v32 = vsel %vm5361_vm9, %v1842_v28, %v1843_v38  ;;  %v4532_v2 = vld [vmem:[%s5402_s11 + $0x48] sm:$0xff]  }
  0xae   : > { %v1520_v3 = vrot.slane %v1519_v21, 4  ;;  %551 = vst [vmem:[#allocation2 + $0x6c] sm:$0x1] %v550_v7  ;;  %607 = vst [vmem:[#allocation2 + $0x74] sm:$0x1] %v606_v20  ;;  %v4332_v6 = vpack.c.bf16 %v496_v51, %v496_v51  ;;  %4901 = vmatpush3.bf16.msra.mxu1 %v5176_v0  ;;  %v6054_v52 = vcombine.low %v1841_v5, %v1844_v32  ;;  %v4172_v43 = vrot.slane %v5796_v36, 9 }
  0xaf   : > { %v4333_v26 = vpack.c.bf16 %v497_v8, %v497_v8  ;;  %v1847_v16 = vrot.slane %v5813_v61, 5  ;;  %4902 = vmatprep.subr.bf16.mxu1 %v5177_v53  ;;  %v5180_v38 = vld [vmem:[%s6886_s5 + $0x1f8] sm:$0xff]   ;;  %v1515_v41 = vsel %vm5384_vm10, %v1510_v37, %v1514_v46  ;;  %v6067_v45 = vld [vmem:[%s5402_s11 + $0x50] sm:$0xff]   ;;  %v4418_v21 = vunpack.c.l.bf16 %v4532_v2 }
  0xb0   : > { %v1525_v39 = vsel %vm5384_vm10, %v1520_v3, %v1524_v22  ;;  %v867_v0 = vshrl.u32 %v4332_v6, 16  ;;  %v870_v5 = vshll.u32 %v4332_v6, 16  ;;  %v552_v62 = vld [vmem:[#allocation2 + $0x78] sm:$0x1]  ;;  %v1850_v22 = vrot.slane %v5822_v55, 5 }
  0xb1   : > { %v6069_v36 = vcombine.low %v1515_v41, %v1525_v39  ;;  %3135 = vmatmul.mubr.bf16.gmra.mrb[28].mxu1 %v6054_v52  ;;  %v875_v61 = vshrl.u32 %v4333_v26, 16  ;;  %v878_v47 = vshll.u32 %v4333_v26, 16  ;;  %v1848_v53 = vsel %vm5361_vm9, %v4172_v43, %v1847_v16  ;;  %v5182_v28 = vld [vmem:[%s6886_s5 + $0x1b8] sm:$0xff]  }
  0xb2   : > { %v869_v15 = vrot.slane %v867_v0, 7  ;;  %3142 = vmatprep.mubr.bf16.mxu1 %v5906_v1  ;;  %v1849_v46 = vrot.slane %v1847_v16, 4  ;;  %4903 = vmatpush3.bf16.msra.mxu1 %v5179_v57  ;;  %v6080_v51 = vld [vmem:[#allocation2 + $0x60] sm:$0xf]  ;;  %v4419_v7 = vunpack.c.h.bf16 %v4532_v2  ;;  %v553_v20 = vsel %vm5300_vm3, 0, %v552_v62 }
  0xb3   : > { %6938 = vst [vmem:[#allocation15_spill] sm:$0xff] %v6069_v36  ;;  %3005 = vmatprep.mubr.bf16.mxu0 %v6069_v36  ;;  %v6082_v24 = vld [vmem:[#allocation2 + $0x64] sm:$0xf]  ;;  %v877_v8 = vrot.slane %v875_v61, 7  ;;  %v4422_v37 = vunpack.c.l.bf16 %v6067_v45  ;;  %4904 = vmatprep.subr.bf16.mxu1 %v5180_v38  ;;  %v1527_v55 = vshrl.u32 %v6080_v51, 16  ;;  %v1530_v3 = vshll.u32 %v6080_v51, 16 }
  0xb4   : > { %v1536_v32 = vshll.u32 %v6082_v24, 16  ;;  %v1540_v6 = vshrl.u32 %v6082_v24, 16  ;;  %554 = vst [vmem:[#allocation2 + $0x78] sm:$0x1] %v553_v20  ;;  %3006 = vmatmul.mubr.bf16.gmra.mrb[28].mxu0 %v6025_v35  ;;  %v6092_v57 = vld [vmem:[#allocation2 + $0x68] sm:$0x1]  ;;  %v6096_v26 = vcombine.low %v6080_v51, %v6082_v24  ;;  %v872_v43 = vor.u32 %v870_v5, %v869_v15 }
  0xb5   : > { %v873_v16 = vrot.slane %v869_v15, 4  ;;  %v880_v2 = vor.u32 %v878_v47, %v877_v8  ;;  %v1109_v38 = vld [vmem:[#allocation2 + $0x6c] sm:$0xf]  ;;  %v1529_v41 = vrot.slane %v1527_v55, 4  ;;  %v1532_v39 = vrot.slane %v1530_v3, 5 }
  0xb6   : > { %v1538_v0 = vrot.slane %v1536_v32, 5  ;;  %v1542_v62 = vrot.slane %v1540_v6, 4  ;;  %v1113_v61 = vld [vmem:[#allocation2 + $0x74] sm:$0x1]  ;;  %4905 = vmatpush3.bf16.msra.mxu1 %v5182_v28  ;;  %v1546_v20 = vshll.u32 %v6092_v57, 16  ;;  %v882_v44 = vrot.slane %v877_v8, 4 }
  0xb7   : > { %v881_v1 = vsel %vm5501_vm14, %v873_v16, %v880_v2  ;;  %v1110_v36 = vsel %vm5495_vm13, %v872_v43, %v1109_v38  ;;  %v1533_v5 = vor.u32 %v1532_v39, %v1529_v41  ;;  %v1851_v47 = vsel %vm5361_vm9, %v1849_v46, %v1850_v22  ;;  %v555_v22 = vld [vmem:[#allocation2 + $0x84] sm:$0x1]  ;;  %v611_v38 = vld [vmem:[#allocation2 + $0x8c] sm:$0x1] }
  0xb8   : > { %v1543_v15 = vor.u32 %v1542_v62, %v1538_v0  ;;  %1111 = vst [vmem:[#allocation2 + $0x6c] sm:$0xf] %v1110_v36  ;;  %1112 = vst [vmem:[#allocation2 + $0x70] sm:$0xf] %v881_v1  ;;  %v428_v55 = vmul.f32 %v4418_v21, %v5442_v50  ;;  %v1548_v28 = vrot.slane %v1546_v20, 5  ;;  %v1114_v3 = vsel %vm5300_vm3, %v882_v44, %v1113_v61 }
  0xb9   : > { %v6108_v32 = vcombine.low %v1848_v53, %v1851_v47  ;;  %v429_v8 = vmul.f32 %v4419_v7, %v5442_v50  ;;  %v1534_v6 = vrot.slane %v1533_v5, 4  ;;  %1115 = vst [vmem:[#allocation2 + $0x74] sm:$0x1] %v1114_v3  ;;  %v609_v1 = vsel %vm5309_vm4, 0, %v608_v12 }
  0xba   : > { %v1544_v43 = vrot.slane %v1543_v15, 4  ;;  %v466_v16 = vadd.f32 %v5455_v4, %v428_v55  ;;  %610 = vst [vmem:[#allocation2 + $0x80] sm:$0x1] %v609_v1  ;;  %v4173_v46 = vrot.slane %v5887_v33, 9  ;;  %v1854_v44 = vrot.slane %v5889_v18, 5 }
  0xbb   : > { %3143 = vmatmul.mubr.bf16.gmra.mrb[32].mxu1 %v6108_v32  ;;  %v467_v36 = vadd.f32 %v5455_v4, %v429_v8  ;;  %v1857_v53 = vrot.slane %v5891_v49, 5  ;;  %v1539_v21 = vsel %vm5384_vm10, %v1534_v6, %v1538_v0  ;;  %v4423_v12 = vunpack.c.h.bf16 %v6067_v45 }
  0xbc   : > { %v1549_v7 = vsel %vm5384_vm10, %v1544_v43, %v1548_v28  ;;  %v498_v2 = vmax.f32 %v466_v16, 0.0  ;;  %3150 = vmatprep.mubr.bf16.mxu1 %v5984_v11  ;;  %v1855_v18 = vsel %vm5361_vm9, %v4173_v46, %v1854_v44  ;;  %v1856_v49 = vrot.slane %v1854_v44, 4 }
  0xbd   : > { %v6125_v41 = vcombine.low %v1539_v21, %v1549_v7  ;;  %v499_v33 = vmax.f32 %v467_v36, 0.0  ;;  %v430_v62 = vmul.f32 %v4422_v37, %v5442_v50  ;;  %v431_v0 = vmul.f32 %v4423_v12, %v5442_v50 }
  0xbe   : > { %v4334_v39 = vpack.c.bf16 %v498_v2, %v498_v2  ;;  %v556_v61 = vsel %vm5300_vm3, 0, %v555_v22  ;;  %v1858_v15 = vsel %vm5361_vm9, %v1856_v49, %v1857_v53  ;;  %v612_v47 = vsel %vm5309_vm4, 0, %v611_v38 }
  0xbf   : > { %6939 = vst [vmem:[#allocation16_spill] sm:$0xff] %v6125_v41  ;;  %3013 = vmatprep.mubr.bf16.mxu0 %v6125_v41  ;;  %v6134_v20 = vld [vmem:[#allocation2 + $0x6c] sm:$0xf]  ;;  %v6136_v45 = vld [vmem:[#allocation2 + $0x70] sm:$0xf]  ;;  %v4335_v5 = vpack.c.bf16 %v499_v33, %v499_v33  ;;  %v4174_v37 = vrot.slane %v5947_v9, 9  ;;  %v6155_v49 = vcombine.low %v1855_v18, %v1858_v15 }
  0xc0   : > { %557 = vst [vmem:[#allocation2 + $0x84] sm:$0x1] %v556_v61  ;;  %3014 = vmatmul.mubr.bf16.gmra.mrb[32].mxu0 %v6096_v26  ;;  %v1551_v55 = vshrl.u32 %v6134_v20, 16  ;;  %v1554_v28 = vshll.u32 %v6134_v20, 16  ;;  %v1560_v3 = vshll.u32 %v6136_v45, 16  ;;  %v1564_v8 = vshrl.u32 %v6136_v45, 16 }
  0xc1   : > { %613 = vst [vmem:[#allocation2 + $0x8c] sm:$0x1] %v612_v47  ;;  %v6148_v6 = vld [vmem:[#allocation2 + $0x74] sm:$0x1]  ;;  %v6152_v43 = vcombine.low %v6134_v20, %v6136_v45  ;;  %v884_v16 = vshrl.u32 %v4334_v39, 16  ;;  %v887_v1 = vshll.u32 %v4334_v39, 16  ;;  %v468_v61 = vadd.f32 %v5455_v4, %v430_v62 }
  0xc2   : > { %v892_v9 = vshrl.u32 %v4335_v5, 16  ;;  %v1553_v36 = vrot.slane %v1551_v55, 4  ;;  %v1556_v46 = vrot.slane %v1554_v28, 5  ;;  %v1562_v44 = vrot.slane %v1560_v3, 5  ;;  %v1116_v33 = vld [vmem:[#allocation2 + $0x78] sm:$0xf] }
  0xc3   : > { %v1566_v53 = vrot.slane %v1564_v8, 4  ;;  %v1570_v22 = vshll.u32 %v6148_v6, 16  ;;  %v886_v21 = vrot.slane %v884_v16, 7  ;;  %v895_v2 = vshll.u32 %v4335_v5, 16  ;;  %v1120_v55 = vld [vmem:[#allocation2 + $0x80] sm:$0x1]  ;;  %3151 = vmatmul.mubr.bf16.gmra.mrb[36].mxu1 %v6155_v49 }
  0xc4   : > { %v894_v7 = vrot.slane %v892_v9, 7  ;;  %v1557_v12 = vor.u32 %v1556_v46, %v1553_v36  ;;  %v469_v16 = vadd.f32 %v5455_v4, %v431_v0  ;;  %v500_v15 = vmax.f32 %v468_v61, 0.0  ;;  %3158 = vmatprep.mubr.bf16.mxu1 %v6025_v35 }
  0xc5   : > { %v1567_v38 = vor.u32 %v1566_v53, %v1562_v44  ;;  %v1572_v47 = vrot.slane %v1570_v22, 5  ;;  %v889_v11 = vor.u32 %v887_v1, %v886_v21  ;;  %v890_v39 = vrot.slane %v886_v21, 4 }
  0xc6   : > { %v897_v41 = vor.u32 %v895_v2, %v894_v7  ;;  %v1558_v28 = vrot.slane %v1557_v12, 4  ;;  %v899_v8 = vrot.slane %v894_v7, 4  ;;  %v1861_v62 = vrot.slane %v5970_v42, 5 }
  0xc7   : > { %v1568_v3 = vrot.slane %v1567_v38, 4  ;;  %v1117_v18 = vsel %vm5495_vm13, %v889_v11, %v1116_v33  ;;  %v4336_v11 = vpack.c.bf16 %v500_v15, %v500_v15  ;;  %v1868_v22 = vrot.slane %v6010_v31, 5 }
  0xc8   : > { %v898_v5 = vsel %vm5501_vm14, %v890_v39, %v897_v41  ;;  %v1563_v1 = vsel %vm5384_vm10, %v1558_v28, %v1562_v44  ;;  %1118 = vst [vmem:[#allocation2 + $0x78] sm:$0xf] %v1117_v18  ;;  %v1121_v0 = vsel %vm5300_vm3, %v899_v8, %v1120_v55  ;;  %v501_v41 = vmax.f32 %v469_v16, 0.0  ;;  %v1123_v39 = vld [vmem:[#allocation2 + $0x84] sm:$0xf] }
  0xc9   : > { %v1573_v9 = vsel %vm5384_vm10, %v1568_v3, %v1572_v47  ;;  %1119 = vst [vmem:[#allocation2 + $0x7c] sm:$0xf] %v898_v5  ;;  %1122 = vst [vmem:[#allocation2 + $0x80] sm:$0x1] %v1121_v0  ;;  %v1863_v46 = vrot.slane %v1861_v62, 4  ;;  %v1862_v42 = vsel %vm5361_vm9, %v4174_v37, %v1861_v62  ;;  %v1864_v44 = vrot.slane %v5972_v58, 5 }
  0xca   : > { %v6172_v36 = vcombine.low %v1563_v1, %v1573_v9  ;;  %v4337_v53 = vpack.c.bf16 %v501_v41, %v501_v41  ;;  %v901_v21 = vshrl.u32 %v4336_v11, 16  ;;  %v904_v7 = vshll.u32 %v4336_v11, 16  ;;  %v1127_v55 = vld [vmem:[#allocation2 + $0x8c] sm:$0x1] }
  0xcb   : > { %v4175_v2 = vrot.slane %v6000_v29, 9  ;;  %v1865_v38 = vsel %vm5361_vm9, %v1863_v46, %v1864_v44  ;;  %v1871_v33 = vrot.slane %v6012_v59, 5  ;;  %v1870_v58 = vrot.slane %v1868_v22, 4 }
  0xcc   : > { %3021 = vmatprep.mubr.bf16.mxu0 %v6172_v36  ;;  %v909_v12 = vshrl.u32 %v4337_v53, 16  ;;  %v903_v61 = vrot.slane %v901_v21, 7  ;;  %v912_v37 = vshll.u32 %v4337_v53, 16  ;;  %v6184_v47 = vcombine.low %v1862_v42, %v1865_v38 }
  0xcd   : > { %3022 = vmatmul.mubr.bf16.gmra.mrb[36].mxu0 %v6152_v43  ;;  %v4176_v28 = vrot.slane %v6080_v51, 9  ;;  %v1875_v29 = vrot.slane %v6082_v24, 5  ;;  %v1869_v59 = vsel %vm5361_vm9, %v4175_v2, %v1868_v22  ;;  %v1878_v18 = vrot.slane %v6092_v57, 5 }
  0xce   : > { %v911_v31 = vrot.slane %v909_v12, 7  ;;  %v906_v16 = vor.u32 %v904_v7, %v903_v61  ;;  %v907_v5 = vrot.slane %v903_v61, 4  ;;  %3159 = vmatmul.mubr.bf16.gmra.mrb[40].mxu1 %v6184_v47  ;;  %v1872_v11 = vsel %vm5361_vm9, %v1870_v58, %v1871_v33 }
  0xcf   : > { %v6188_v3 = vld [vmem:[#allocation2 + $0x78] sm:$0xf]  ;;  %3166 = vmatprep.mubr.bf16.mxu1 %v6096_v26  ;;  %v6212_v38 = vcombine.low %v1869_v59, %v1872_v11  ;;  %v1877_v33 = vrot.slane %v1875_v29, 4  ;;  %v1882_v58 = vrot.slane %v6136_v45, 5  ;;  %v4177_v59 = vrot.slane %v6134_v20, 9 }
  0xd0   : > { %v6190_v8 = vld [vmem:[#allocation2 + $0x7c] sm:$0xf]  ;;  %v6196_v15 = vld [vmem:[#allocation2 + $0x80] sm:$0x1]  ;;  %v1575_v62 = vshrl.u32 %v6188_v3, 16  ;;  %v1578_v51 = vshll.u32 %v6188_v3, 16  ;;  %v914_v0 = vor.u32 %v912_v37, %v911_v31  ;;  %v1124_v21 = vsel %vm5495_vm13, %v906_v16, %v1123_v39 }
  0xd1   : > { %v1584_v24 = vshll.u32 %v6190_v8, 16  ;;  %v1588_v1 = vshrl.u32 %v6190_v8, 16  ;;  %v1594_v9 = vshll.u32 %v6196_v15, 16  ;;  %v916_v41 = vrot.slane %v911_v31, 4  ;;  %1125 = vst [vmem:[#allocation2 + $0x84] sm:$0xf] %v1124_v21 }
  0xd2   : > { %v1577_v57 = vrot.slane %v1575_v62, 4  ;;  %v1580_v46 = vrot.slane %v1578_v51, 5  ;;  %v915_v22 = vsel %vm5501_vm14, %v907_v5, %v914_v0  ;;  %v1876_v31 = vsel %vm5361_vm9, %v4176_v28, %v1875_v29 }
  0xd3   : > { %v1586_v53 = vrot.slane %v1584_v24, 5  ;;  %v1590_v42 = vrot.slane %v1588_v1, 4  ;;  %v1596_v44 = vrot.slane %v1594_v9, 5  ;;  %v1128_v7 = vsel %vm5300_vm3, %v916_v41, %v1127_v55  ;;  %1126 = vst [vmem:[#allocation2 + $0x88] sm:$0xf] %v915_v22 }
  0xd4   : > { %v1581_v2 = vor.u32 %v1580_v46, %v1577_v57  ;;  %1129 = vst [vmem:[#allocation2 + $0x8c] sm:$0x1] %v1128_v7  ;;  %v6224_v16 = vcombine.low %v6188_v3, %v6190_v8  ;;  %v1879_v45 = vsel %vm5361_vm9, %v1877_v33, %v1878_v18  ;;  %v1884_v28 = vrot.slane %v1882_v58, 4 }
  0xd5   : > { %v1591_v12 = vor.u32 %v1590_v42, %v1586_v53  ;;  %v1885_v29 = vrot.slane %v6148_v6, 5  ;;  %v6240_v1 = vcombine.low %v1876_v31, %v1879_v45  ;;  %v1883_v42 = vsel %vm5361_vm9, %v4177_v59, %v1882_v58  ;;  %v570_v31 = vld [vmem:[#allocation2 + $0xc0] sm:$0x1] }
  0xd6   : > { %v1582_v61 = vrot.slane %v1581_v2, 4  ;;  %3167 = vmatmul.mubr.bf16.gmra.mrb[44].mxu1 %v6212_v38  ;;  %v1892_v58 = vrot.slane %v6196_v15, 5  ;;  %v571_v15 = vsel %vm5300_vm3, 0, %v570_v31 }
  0xd7   : > { %v1592_v37 = vrot.slane %v1591_v12, 4  ;;  %3174 = vmatprep.mubr.bf16.mxu1 %v6152_v43  ;;  %v1886_v2 = vsel %vm5361_vm9, %v1884_v28, %v1885_v29  ;;  %v626_v29 = vld [vmem:[#allocation2 + $0xc8] sm:$0x1]  ;;  %572 = vst [vmem:[#allocation2 + $0xc0] sm:$0x1] %v571_v15 }
  0xd8   : > { %v1587_v39 = vsel %vm5384_vm10, %v1582_v61, %v1586_v53  ;;  %v6234_v62 = vld [vmem:[#allocation2 + $0x84] sm:$0xf]  ;;  %v4538_v53 = vld [vmem:[%s5402_s11 + $0x78] sm:$0xff]  }
  0xd9   : > { %v1597_v55 = vsel %vm5384_vm10, %v1592_v37, %v1596_v44  ;;  %v1599_v18 = vshrl.u32 %v6234_v62, 16  ;;  %v1602_v20 = vshll.u32 %v6234_v62, 16  ;;  %v1889_v44 = vrot.slane %v6190_v8, 5 }
  0xda   : > { %v6229_v5 = vcombine.low %v1587_v39, %v1597_v55  ;;  %v6236_v51 = vld [vmem:[#allocation2 + $0x88] sm:$0xf]  ;;  %v4442_v12 = vunpack.c.l.bf16 %v4538_v53  ;;  %v4443_v33 = vunpack.c.h.bf16 %v4538_v53  ;;  %v6256_v39 = vcombine.low %v1883_v42, %v1886_v2 }
  0xdb   : > { %v6238_v24 = vld [vmem:[#allocation2 + $0x8c] sm:$0x1]  ;;  %v1608_v9 = vshll.u32 %v6236_v51, 16  ;;  %v1612_v6 = vshrl.u32 %v6236_v51, 16  ;;  %v1601_v41 = vrot.slane %v1599_v18, 4  ;;  %v1604_v11 = vrot.slane %v1602_v20, 5 }
  0xdc   : > { %3029 = vmatprep.mubr.bf16.mxu0 %v6229_v5  ;;  %v1618_v0 = vshll.u32 %v6238_v24, 16  ;;  %v4178_v55 = vrot.slane %v6188_v3, 9  ;;  %v6266_v59 = vcombine.low %v6234_v62, %v6236_v51  ;;  %v1891_v28 = vrot.slane %v1889_v44, 4 }
  0xdd   : > { %3030 = vmatmul.mubr.bf16.gmra.mrb[40].mxu0 %v6224_v16  ;;  %v1610_v57 = vrot.slane %v1608_v9, 5  ;;  %v1614_v46 = vrot.slane %v1612_v6, 4  ;;  %v1605_v22 = vor.u32 %v1604_v11, %v1601_v41  ;;  %v440_v20 = vmul.f32 %v4442_v12, %v5442_v50 }
  0xde   : > { %3175 = vmatmul.mubr.bf16.gmra.mrb[48].mxu1 %v6240_v1  ;;  %v1620_v7 = vrot.slane %v1618_v0, 5  ;;  %v441_v3 = vmul.f32 %v4443_v33, %v5442_v50  ;;  %v627_v0 = vsel %vm5309_vm4, 0, %v626_v29  ;;  %v1890_v50 = vsel %vm5361_vm9, %v4178_v55, %v1889_v44  ;;  %v1158_v55 = vld [vmem:[#allocation2 + $0xc0] sm:$0xf] }
  0xdf   : > { %v1615_v21 = vor.u32 %v1614_v46, %v1610_v57  ;;  %3182 = vmatprep.mubr.bf16.mxu1 %v6224_v16  ;;  %v1606_v61 = vrot.slane %v1605_v22, 4  ;;  %v478_v9 = vadd.f32 %v5455_v4, %v440_v20  ;;  %v1893_v41 = vsel %vm5361_vm9, %v1891_v28, %v1892_v58  ;;  %628 = vst [vmem:[#allocation2 + $0xc8] sm:$0x1] %v627_v0  ;;  %v5178_v20 = vld [vmem:[%s6886_s5 + $0x210] sm:$0xff]  }
  0xe0   : > { %v479_v6 = vadd.f32 %v5455_v4, %v441_v3  ;;  %v1896_v11 = vrot.slane %v6236_v51, 5  ;;  %v6288_v46 = vcombine.low %v1890_v50, %v1893_v41  ;;  %v4179_v22 = vrot.slane %v6234_v62, 9  ;;  %v5175_v51 = vld [vmem:[%s6886_s5 + $0x208] sm:$0xff]   ;;  %v5193_v0 = vld [vmem:[#allocation2 + $0x90] sm:$0xf] }
  0xe1   : > { %v1616_v37 = vrot.slane %v1615_v21, 4  ;;  %v1611_v8 = vsel %vm5384_vm10, %v1606_v61, %v1610_v57  ;;  %v510_v57 = vmax.f32 %v478_v9, 0.0  ;;  %v4180_v50 = vrot.slane %v5193_v0, 9 }
  0xe2   : > { %v511_v4 = vmax.f32 %v479_v6, 0.0  ;;  %v1898_v21 = vrot.slane %v1896_v11, 4  ;;  %v1897_v62 = vsel %vm5361_vm9, %v4179_v22, %v1896_v11  ;;  %v5194_v11 = vld [vmem:[#allocation2 + $0x98] sm:$0x1]  ;;  %v5196_v22 = vld [vmem:[#allocation2 + $0xa0] sm:$0xf] }
  0xe3   : > { %v1621_v45 = vsel %vm5384_vm10, %v1616_v37, %v1620_v7  ;;  %v4346_v53 = vpack.c.bf16 %v510_v57, %v510_v57  ;;  %v1899_v7 = vrot.slane %v6238_v24, 5  ;;  %v5191_v37 = vld [vmem:[#allocation2 + $0x94] sm:$0xf]  ;;  %v1906_v57 = vrot.slane %v5194_v11, 5 }
  0xe4   : > { %v6268_v18 = vcombine.low %v1611_v8, %v1621_v45  ;;  %v4347_v42 = vpack.c.bf16 %v511_v4, %v511_v4  ;;  %v1903_v31 = vrot.slane %v5191_v37, 5  ;;  %v5192_v8 = vld [vmem:[%s6886_s5 + $0x200] sm:$0xff]   ;;  %v4181_v4 = vrot.slane %v5195_v56, 9 }
  0xe5   : > { %v986_v44 = vshrl.u32 %v4346_v53, 16  ;;  %v989_v2 = vshll.u32 %v4346_v53, 16  ;;  %v1900_v24 = vsel %vm5361_vm9, %v1898_v21, %v1899_v7  ;;  %v1910_v21 = vrot.slane %v5196_v22, 5  ;;  %v5197_v7 = vld [vmem:[#allocation2 + $0xa4] sm:$0x1] }
  0xe6   : > { %3037 = vmatprep.mubr.bf16.mxu0 %v6268_v18  ;;  %3183 = vmatmul.mubr.bf16.gmra.mrb[52].mxu1 %v6256_v39  ;;  %v994_v12 = vshrl.u32 %v4347_v42, 16  ;;  %v997_v33 = vshll.u32 %v4347_v42, 16  ;;  %v1162_v58 = vld [vmem:[#allocation2 + $0xc8] sm:$0x1]  ;;  %v6309_v3 = vcombine.low %v1897_v62, %v1900_v24  ;;  %v1905_v41 = vrot.slane %v1903_v31, 4 }
  0xe7   : > { %3038 = vmatmul.mubr.bf16.gmra.mrb[44].mxu0 %v6266_v59  ;;  %3190 = vmatprep.mubr.bf16.mxu1 %v6266_v59  ;;  %v1904_v53 = vsel %vm5361_vm9, %v4180_v50, %v1903_v31  ;;  %v1912_v62 = vrot.slane %v1910_v21, 4 }
  0xe8   : > { %3271 = vmatprep.mubr.bf16.mxu0 %v5881_v27  ;;  %v988_v27 = vrot.slane %v986_v44, 7  ;;  %v996_v61 = vrot.slane %v994_v12, 7  ;;  %v1907_v42 = vsel %vm5361_vm9, %v1905_v41, %v1906_v57  ;;  %v1913_v44 = vrot.slane %v5197_v7, 5 }
  0xe9   : > { %v6331_v12 = vcombine.low %v1904_v53, %v1907_v42 }
  0xea   : > { %v992_v45 = vrot.slane %v988_v27, 4  ;;  %v999_v28 = vor.u32 %v997_v33, %v996_v61  ;;  %v1001_v29 = vrot.slane %v996_v61, 4  ;;  %v1911_v33 = vsel %vm5361_vm9, %v4181_v4, %v1910_v21  ;;  %v5198_v4 = vld [vmem:[#allocation2 + $0xac] sm:$0xf] }
  0xeb   : > { %v1914_v56 = vsel %vm5361_vm9, %v1912_v62, %v1913_v44  ;;  %v1917_v53 = vrot.slane %v5198_v4, 5  ;;  %v5203_v4 = vld [vmem:[#allocation2 + $0xbc] sm:$0x1] }
  0xec   : > { %v1000_v15 = vsel %vm5501_vm14, %v992_v45, %v999_v28  ;;  %v1163_v6 = vsel %vm5300_vm3, %v1001_v29, %v1162_v58  ;;  %v5185_v29 = vld [vmem:[%s6886_s5 + $0x228] sm:$0xff]   ;;  %v6367_v62 = vcombine.low %v1911_v33, %v1914_v56 }
  0xed   : > { %1161 = vst [vmem:[#allocation2 + $0xc4] sm:$0xf] %v1000_v15  ;;  %1164 = vst [vmem:[#allocation2 + $0xc8] sm:$0x1] %v1163_v6 }
  0xee   : > { %3191 = vmatmul.mubr.bf16.gmra.mrb[56].mxu1 %v6288_v46 }
  0xef   : > { %3272 = vmatmul.mubr.bf16.vlgmr.msra.gmra.mrb[48].mxu0 %v5600_v23  ;;  %3198 = vmatprep.mubr.bf16.mxu1 %v5585_v48  ;;  %v991_v23 = vor.u32 %v989_v2, %v988_v27  ;;  %v5184_v2 = vld [vmem:[%s6886_s5 + $0x220] sm:$0xff]  }
  0xf0   : > { %3279 = vmatprep.mubr.bf16.mxu0 %v5957_v25  ;;  %5027 = vmatpush3.bf16.msra.mxu0 %v5192_v8 }
  0xf1   : > { %5028 = vmatprep.subr.bf16.mxu0 %v5175_v51  ;;  %v1159_v9 = vsel %vm5495_vm13, %v991_v23, %v1158_v55 }
  0xf2   : > { %1160 = vst [vmem:[#allocation2 + $0xc0] sm:$0xf] %v1159_v9 }
  0xf4   : > { %5029 = vmatpush3.bf16.msra.mxu0 %v5175_v51  ;;  %v6337_v27 = vld [vmem:[#allocation2 + $0xc4] sm:$0xf]  ;;  %v1215_v61 = vld [vmem:[#allocation2 + $0xc8] sm:$0x1] }
  0xf5   : > { %5030 = vmatprep.subr.bf16.mxu0 %v5178_v20  ;;  %v2045_v31 = vshrl.u32 %v6337_v27, 16  ;;  %v2078_v8 = vrot.slane %v6337_v27, 5  ;;  %v2081_v23 = vrot.slane %v1215_v61, 5  ;;  %v2041_v45 = vshll.u32 %v6337_v27, 16 }
  0xf6   : > { %3199 = vmatmul.mubr.bf16.gmra.mrb[60].mxu1 %v6309_v3  ;;  %v2051_v6 = vshll.u32 %v1215_v61, 16 }
  0xf7   : > { %3280 = vmatmul.mubr.bf16.gmra.mrb[52].mxu0 %v5647_v14  ;;  %3206 = vmatprep.mubr.bf16.mxu1 %v5636_v19  ;;  %v2047_v9 = vrot.slane %v2045_v31, 4  ;;  %v2080_v41 = vrot.slane %v2078_v8, 4  ;;  %v2043_v11 = vrot.slane %v2041_v45, 5 }
  0xf8   : > { %3287 = vmatprep.mubr.bf16.mxu0 %v6054_v52  ;;  %5031 = vmatpush3.bf16.msra.mxu0 %v5178_v20  ;;  %v2053_v61 = vrot.slane %v2051_v6, 5  ;;  %v5201_v6 = vld [vmem:[#allocation2 + $0xb8] sm:$0xf] }
  0xf9   : > { %5032 = vmatprep.subr.bf16.mxu0 %v5181_v63  ;;  %v6335_v51 = vld [vmem:[#allocation2 + $0xc0] sm:$0xf]  ;;  %v2082_v21 = vsel %vm5361_vm9, %v2080_v41, %v2081_v23  ;;  %v2048_v7 = vor.u32 %v2047_v9, %v2043_v11 }
  0xfa   : > { %v2032_v24 = vshrl.u32 %v6335_v51, 16  ;;  %v2035_v37 = vshll.u32 %v6335_v51, 16  ;;  %v4202_v58 = vrot.slane %v6335_v51, 9  ;;  %v6390_v41 = vcombine.low %v6335_v51, %v6337_v27  ;;  %v6941_v27 = vld [vmem:[#allocation14_spill] sm:$0xff] }
  0xfb   : > { %v2049_v31 = vrot.slane %v2048_v7, 4  ;;  %v573_v7 = vld [vmem:[#allocation2 + $0xcc] sm:$0x1] }
  0xfc   : > { %5033 = vmatpush3.bf16.msra.mxu0 %v5181_v63  ;;  %v2034_v20 = vrot.slane %v2032_v24, 4  ;;  %v2037_v15 = vrot.slane %v2035_v37, 5  ;;  %v2079_v50 = vsel %vm5361_vm9, %v4202_v58, %v2078_v8  ;;  %v5186_v24 = vld [vmem:[%s6886_s5 + $0x230] sm:$0xff]   ;;  %v1919_v8 = vrot.slane %v1917_v53, 4 }
  0xfd   : > { %5034 = vmatprep.subr.bf16.mxu0 %v5184_v2  ;;  %v6365_v37 = vcombine.low %v2079_v50, %v2082_v21 }
  0xfe   : > { %3207 = vmatmul.mubr.bf16.gmra.mrb[64].mxu1 %v6331_v12  ;;  %v2038_v42 = vor.u32 %v2037_v15, %v2034_v20  ;;  %v5187_v20 = vld [vmem:[%s6886_s5 + $0x238] sm:$0xff]   ;;  %v6940_v15 = vld [vmem:[#allocation10_spill] sm:$0xff] }
  0xff   : > { %3288 = vmatmul.mubr.bf16.gmra.mrb[56].mxu0 %v5781_v54  ;;  %3214 = vmatprep.mubr.bf16.mxu1 %v5771_v34 }
 0x100   : > { %3295 = vmatprep.mubr.bf16.mxu0 %v6108_v32  ;;  %5035 = vmatpush3.bf16.msra.mxu0 %v5184_v2  ;;  %v2039_v44 = vrot.slane %v2038_v42, 4  ;;  %v5200_v2 = vld [vmem:[#allocation2 + $0xb0] sm:$0x1] }
 0x101   : > { %v4570_v55 = vpop.f32.mrb[0].mxu0  ;;  %5036 = vmatprep.subr.bf16.mxu0 %v5185_v29  ;;  %v1920_v45 = vrot.slane %v5200_v2, 5 }
 0x102   : > { %v4571_v28 = vpop.f32.mrb[1].mxu0  ;;  %v2044_v23 = vsel %vm5384_vm10, %v2039_v44, %v2043_v11  ;;  %v5202_v11 = vld [vmem:[#allocation2 + $0xb4] sm:$0xf] }
 0x103   : > { %v4573_v0 = vpop.f32.mrb[2].mxu0  ;;  %v6351_v57 = vadd.f32 %v4571_v28, %v4570_v55  ;;  %v5199_v55 = vld [vmem:[#allocation2 + $0xa8] sm:$0xf]  ;;  %v2054_v28 = vsel %vm5384_vm10, %v2049_v31, %v2053_v61  ;;  %v574_v61 = vsel %vm5300_vm3, 0, %v573_v7  ;;  %v6942_v31 = vld [vmem:[#allocation5_spill] sm:$0xff] }
 0x104   : > { %v4574_v63 = vpop.f32.mrb[3].mxu0  ;;  %v4182_v58 = vrot.slane %v5199_v55, 9  ;;  %5037 = vmatpush3.bf16.msra.mxu0 %v5185_v29  ;;  %v6376_v33 = vcombine.low %v2044_v23, %v2054_v28  ;;  %v1921_v29 = vsel %vm5361_vm9, %v1919_v8, %v1920_v45  ;;  %575 = vst [vmem:[#allocation2 + $0xcc] sm:$0x1] %v574_v61  ;;  %v6943_v55 = vld [vmem:[#allocation15_spill] sm:$0xff] }
 0x105   : > { %v6357_v22 = vadd.f32 %v4574_v63, %v4573_v0  ;;  %5038 = vmatprep.subr.bf16.mxu0 %v5186_v24  ;;  %v1924_v0 = vrot.slane %v5201_v6, 5  ;;  %v4183_v63 = vrot.slane %v5202_v11, 9 }
 0x106   : > { %3215 = vmatmul.mubr.bf16.gmra.mrb[68].mxu1 %v6367_v62  ;;  %v1918_v9 = vsel %vm5361_vm9, %v4182_v58, %v1917_v53  ;;  %v1927_v53 = vrot.slane %v5203_v4, 5  ;;  %v6945_v58 = vld [vmem:[#allocation16_spill] sm:$0xff] }
 0x107   : > { %3296 = vmatmul.mubr.bf16.gmra.mrb[60].mxu0 %v5846_v10  ;;  %3222 = vmatprep.mubr.bf16.mxu1 %v6940_v15  ;;  %v6386_v50 = vcombine.low %v1918_v9, %v1921_v29  ;;  %v1926_v56 = vrot.slane %v1924_v0, 4  ;;  %v1925_v42 = vsel %vm5361_vm9, %v4183_v63, %v1924_v0 }
 0x108   : > { %3303 = vmatprep.mubr.bf16.mxu0 %v6155_v49  ;;  %5039 = vmatpush3.bf16.msra.mxu0 %v5186_v24  ;;  %v629_v24 = vld [vmem:[#allocation2 + $0xd4] sm:$0x1] }
 0x109   : > { %5040 = vmatprep.subr.bf16.mxu0 %v5187_v20  ;;  %v1928_v21 = vsel %vm5361_vm9, %v1926_v56, %v1927_v53  ;;  %v630_v44 = vsel %vm5309_vm4, 0, %v629_v24 }
 0x10a   : > { %v6400_v51 = vcombine.low %v1925_v42, %v1928_v21  ;;  %631 = vst [vmem:[#allocation2 + $0xd4] sm:$0x1] %v630_v44  ;;  %v6947_v42 = vld [vmem:[#allocation12_spill] sm:$0xff] }
 0x10c   : > { %5041 = vmatpush3.bf16.msra.mxu0 %v5187_v20  ;;  %v6946_v20 = vld [vmem:[#allocation9_spill] sm:$0xff] }
 0x10e   : > { %3223 = vmatmul.mubr.bf16.gmra.mrb[72].mxu1 %v6386_v50 }
 0x10f   : > { %3304 = vmatmul.mubr.bf16.gmra.mrb[64].mxu0 %v5931_v30  ;;  %3230 = vmatprep.mubr.bf16.mxu1 %v6390_v41 }
 0x110   : > { %3311 = vmatprep.mubr.bf16.mxu0 %v6184_v47 }
 0x116   : > { %3231 = vmatmul.mubr.bf16.gmra.mrb[76].mxu1 %v6400_v51 }
 0x117   : > { %3312 = vmatmul.mubr.bf16.gmra.mrb[68].mxu0 %v6941_v27  ;;  %3432 = vmatprep.mubr.bf16.mxu1 %v5647_v14  ;;  %v6944_v14 = vld [vmem:[#allocation7_spill] sm:$0xff] }
 0x118   : > { %3319 = vmatprep.mubr.bf16.mxu0 %v6212_v38 }
 0x11e   : > { %3433 = vmatmul.mubr.bf16.vlgmr.msra.gmra.mrb[80].mxu1 %v6942_v31  ;;  %v6948_v31 = vld [vmem:[#allocation13_spill] sm:$0xff] }
 0x11f   : > { %3320 = vmatmul.mubr.bf16.gmra.mrb[72].mxu0 %v6943_v55  ;;  %3440 = vmatprep.mubr.bf16.mxu1 %v5781_v54 }
 0x120   : > { %3327 = vmatprep.mubr.bf16.mxu0 %v6240_v1 }
 0x126   : > { %3441 = vmatmul.mubr.bf16.gmra.mrb[84].mxu1 %v6944_v14 }
 0x127   : > { %3328 = vmatmul.mubr.bf16.gmra.mrb[76].mxu0 %v6945_v58  ;;  %3448 = vmatprep.mubr.bf16.mxu1 %v5846_v10  ;;  %v4576_v13 = vpop.f32.mrb[4].mxu0 }
 0x128   : > { %3335 = vmatprep.mubr.bf16.mxu0 %v6256_v39  ;;  %v4577_v17 = vpop.f32.mrb[5].mxu0 }
 0x129   : > { %v6418_v8 = vadd.f32 %v4577_v17, %v4576_v13  ;;  %v4579_v2 = vpop.f32.mrb[6].mxu0 }
 0x12a   : > { %v4580_v45 = vpop.f32.mrb[7].mxu0  ;;  %v4642_v23 = vpop.f32.mrb[0].mxu1 }
 0x12b   : > { %v6420_v28 = vadd.f32 %v4580_v45, %v4579_v2  ;;  %v4643_v54 = vpop.f32.mrb[1].mxu1 }
 0x12c   : > { %v6423_v9 = vadd.f32 %v4643_v54, %v4642_v23  ;;  %v4645_v29 = vpop.f32.mrb[2].mxu1 }
 0x12d   : > { %v4646_v10 = vpop.f32.mrb[3].mxu1 }
 0x12e   : > { %3449 = vmatmul.mubr.bf16.gmra.mrb[88].mxu1 %v6946_v20  ;;  %v6428_v6 = vadd.f32 %v4646_v10, %v4645_v29  ;;  %v6950_v20 = vld [vmem:[#allocation6_spill] sm:$0xff] }
 0x12f   : > { %3336 = vmatmul.mubr.bf16.gmra.mrb[80].mxu0 %v6172_v36  ;;  %3456 = vmatprep.mubr.bf16.mxu1 %v5931_v30  ;;  %v4582_v0 = vpop.f32.mrb[8].mxu0 }
 0x130   : > { %3343 = vmatprep.mubr.bf16.mxu0 %v6288_v46  ;;  %v4583_v11 = vpop.f32.mrb[9].mxu0 }
 0x131   : > { %v6430_v63 = vadd.f32 %v4583_v11, %v4582_v0  ;;  %v4585_v56 = vpop.f32.mrb[10].mxu0  ;;  %v6951_v0 = vld [vmem:[#allocation8_spill] sm:$0xff] }
 0x132   : > { %v4586_v4 = vpop.f32.mrb[11].mxu0 }
 0x133   : > { %v6432_v53 = vadd.f32 %v4586_v4, %v4585_v56 }
 0x136   : > { %3457 = vmatmul.mubr.bf16.gmra.mrb[92].mxu1 %v6947_v42  ;;  %v4648_v30 = vpop.f32.mrb[4].mxu1 }
 0x137   : > { %3344 = vmatmul.mubr.bf16.gmra.mrb[84].mxu0 %v6229_v5  ;;  %3464 = vmatprep.mubr.bf16.mxu1 %v6941_v27  ;;  %v4649_v21 = vpop.f32.mrb[5].mxu1  ;;  %v6949_v27 = vld [vmem:[#allocation4_spill] sm:$0xff] }
 0x138   : > { %3351 = vmatprep.mubr.bf16.mxu0 %v6309_v3  ;;  %v6438_v7 = vadd.f32 %v4649_v21, %v4648_v30  ;;  %v4651_v61 = vpop.f32.mrb[6].mxu1  ;;  %v6952_v30 = vld [vmem:[#allocation11_spill] sm:$0xff] }
 0x139   : > { %v4652_v24 = vpop.f32.mrb[7].mxu1 }
 0x13a   : > { %v6440_v44 = vadd.f32 %v4652_v24, %v4651_v61 }
 0x13e   : > { %3465 = vmatmul.mubr.bf16.gmra.mrb[96].mxu1 %v6948_v31 }
 0x13f   : > { %3352 = vmatmul.mubr.bf16.gmra.mrb[88].mxu0 %v6268_v18  ;;  %3472 = vmatprep.mubr.bf16.mxu1 %v6943_v55 }
 0x140   : > { %3359 = vmatprep.mubr.bf16.mxu0 %v6331_v12 }
 0x146   : > { %3473 = vmatmul.mubr.bf16.gmra.mrb[100].mxu1 %v6025_v35 }
 0x147   : > { %3360 = vmatmul.mubr.bf16.gmra.mrb[92].mxu0 %v6949_v27  ;;  %3480 = vmatprep.mubr.bf16.mxu1 %v6945_v58  ;;  %v4588_v14 = vpop.f32.mrb[12].mxu0 }
 0x148   : > { %3367 = vmatprep.mubr.bf16.mxu0 %v6367_v62  ;;  %v4589_v13 = vpop.f32.mrb[13].mxu0 }
 0x149   : > { %v6450_v17 = vadd.f32 %v4589_v13, %v4588_v14  ;;  %v4591_v2 = vpop.f32.mrb[14].mxu0 }
 0x14a   : > { %v4592_v45 = vpop.f32.mrb[15].mxu0 }
 0x14b   : > { %v6452_v23 = vadd.f32 %v4592_v45, %v4591_v2 }
 0x14d   : > { %v4654_v54 = vpop.f32.mrb[8].mxu1 }
 0x14e   : > { %3481 = vmatmul.mubr.bf16.gmra.mrb[104].mxu1 %v6096_v26  ;;  %v4655_v55 = vpop.f32.mrb[9].mxu1 }
 0x14f   : > { %3368 = vmatmul.mubr.bf16.gmra.mrb[96].mxu0 %v6950_v20  ;;  %3488 = vmatprep.mubr.bf16.mxu1 %v6172_v36  ;;  %v6457_v35 = vadd.f32 %v4655_v55, %v4654_v54  ;;  %v4657_v58 = vpop.f32.mrb[10].mxu1 }
 0x150   : > { %3375 = vmatprep.mubr.bf16.mxu0 %v6386_v50  ;;  %v4658_v29 = vpop.f32.mrb[11].mxu1 }
 0x151   : > { %v6460_v10 = vadd.f32 %v4658_v29, %v4657_v58 }
 0x156   : > { %3489 = vmatmul.mubr.bf16.gmra.mrb[108].mxu1 %v6152_v43 }
 0x157   : > { %3376 = vmatmul.mubr.bf16.gmra.mrb[100].mxu0 %v6951_v0  ;;  %3496 = vmatprep.mubr.bf16.mxu1 %v6229_v5 }
 0x158   : > { %3383 = vmatprep.mubr.bf16.mxu0 %v6400_v51  ;;  %v4594_v26 = vpop.f32.mrb[16].mxu0 }
 0x159   : > { %v4595_v11 = vpop.f32.mrb[17].mxu0 }
 0x15a   : > { %v6466_v56 = vadd.f32 %v4595_v11, %v4594_v26  ;;  %v4597_v36 = vpop.f32.mrb[18].mxu0 }
 0x15b   : > { %v4598_v4 = vpop.f32.mrb[19].mxu0 }
 0x15c   : > { %v6468_v42 = vadd.f32 %v4598_v4, %v4597_v36  ;;  %v6496_v36 = vld [vmem:[#allocation2 + $0xcc] sm:$0xf] }
 0x15e   : > { %3497 = vmatmul.mubr.bf16.gmra.mrb[112].mxu1 %v6224_v16 }
 0x15f   : > { %3384 = vmatmul.mubr.bf16.gmra.mrb[104].mxu0 %v6952_v30  ;;  %3504 = vmatprep.mubr.bf16.mxu1 %v6268_v18 }
 0x160   : > { %3391 = vmatprep.mubr.bf16.mxu0 %v6365_v37 }
 0x163   : > { %v4660_v43 = vpop.f32.mrb[12].mxu1 }
 0x164   : > { %v4661_v5 = vpop.f32.mrb[13].mxu1 }
 0x165   : > { %v6474_v21 = vadd.f32 %v4661_v5, %v4660_v43  ;;  %v4663_v61 = vpop.f32.mrb[14].mxu1  ;;  %v2126_v43 = vshrl.u32 %v6496_v36, 16  ;;  %v2129_v5 = vshll.u32 %v6496_v36, 16 }
 0x166   : > { %3505 = vmatmul.mubr.bf16.gmra.mrb[116].mxu1 %v6266_v59  ;;  %v4664_v24 = vpop.f32.mrb[15].mxu1 }
 0x167   : > { %3392 = vmatmul.mubr.bf16.gmra.mrb[108].mxu0 %v6376_v33  ;;  %v6478_v31 = vadd.f32 %v4664_v24, %v4663_v61  ;;  %3512 = vmatprep.mubr.bf16.mxu1 %v6949_v27 }
 0x168   : > { %5042 = vmatprep.mubr.bf16.mxu0 %v5957_v25 }
 0x16c   : > { %v4682_v16 = vpop.f32.mrb[16].mxu1 }
 0x16d   : > { %v4683_v18 = vpop.f32.mrb[17].mxu1 }
 0x16e   : > { %v4684_v14 = vadd.f32 %v4683_v18, %v4682_v16  ;;  %v4685_v13 = vpop.f32.mrb[18].mxu1  ;;  %3513 = vmatmul.mubr.bf16.gmra.mrb[120].mxu1 %v5585_v48  ;;  %v2131_v18 = vrot.slane %v2129_v5, 5 }
 0x16f   : > { %v4686_v2 = vpop.f32.mrb[19].mxu1  ;;  %5043 = vmatmul.mubr.bf16.vlgmr.msra.gmra.mrb[112].mxu0 %v6054_v52  ;;  %3520 = vmatprep.mubr.bf16.mxu1 %v6950_v20  ;;  %v4600_v54 = vpop.f32.mrb[20].mxu0  ;;  %v6498_v20 = vld [vmem:[#allocation2 + $0xd0] sm:$0xf] }
 0x170   : > { %v6485_v59 = vadd.f32 %v4684_v14, %v6351_v57  ;;  %v4687_v45 = vadd.f32 %v4686_v2, %v4685_v13  ;;  %5046 = vmatprep.mubr.bf16.mxu0 %v6108_v32  ;;  %v4601_v27 = vpop.f32.mrb[21].mxu0  ;;  %v2135_v61 = vshll.u32 %v6498_v20, 16  ;;  %v2139_v24 = vshrl.u32 %v6498_v20, 16 }
 0x171   : > { %v6492_v55 = vadd.f32 %v4601_v27, %v4600_v54  ;;  %v4603_v58 = vpop.f32.mrb[22].mxu0 }
 0x172   : > { %v6490_v25 = vadd.f32 %v4687_v45, %v6357_v22  ;;  %v4604_v48 = vpop.f32.mrb[23].mxu0  ;;  %v2137_v14 = vrot.slane %v2135_v61, 5  ;;  %v2141_v13 = vrot.slane %v2139_v24, 4 }
 0x173   : > { %v6494_v29 = vadd.f32 %v4604_v48, %v4603_v58 }
 0x174   : > { %v4688_v52 = vpop.f32.mrb[20].mxu1 }
 0x175   : > { %v4689_v26 = vpop.f32.mrb[21].mxu1 }
 0x176   : > { %v4690_v57 = vadd.f32 %v4689_v26, %v4688_v52  ;;  %v4691_v11 = vpop.f32.mrb[22].mxu1  ;;  %3521 = vmatmul.mubr.bf16.gmra.mrb[124].mxu1 %v5636_v19  ;;  %v2142_v52 = vor.u32 %v2141_v13, %v2137_v14 }
 0x177   : > { %v4692_v32 = vpop.f32.mrb[23].mxu1  ;;  %5047 = vmatmul.mubr.bf16.gmra.mrb[116].mxu0 %v6155_v49  ;;  %3528 = vmatprep.mubr.bf16.mxu1 %v6951_v0 }
 0x178   : > { %v6503_v22 = vadd.f32 %v4690_v57, %v6418_v8  ;;  %v4693_v4 = vadd.f32 %v4692_v32, %v4691_v11  ;;  %5050 = vmatprep.mubr.bf16.mxu0 %v6184_v47  ;;  %v2128_v8 = vrot.slane %v2126_v43, 4  ;;  %v6514_v47 = vld [vmem:[#allocation2 + $0xd4] sm:$0x1] }
 0x179   : > { %v2145_v26 = vshll.u32 %v6514_v47, 16 }
 0x17a   : > { %v6512_v19 = vadd.f32 %v4693_v4, %v6420_v28  ;;  %v2132_v48 = vor.u32 %v2131_v18, %v2128_v8 }
 0x17b   : > { %v2147_v5 = vrot.slane %v2145_v26, 5 }
 0x17c   : > { %v4694_v49 = vpop.f32.mrb[24].mxu1  ;;  %v2133_v43 = vrot.slane %v2132_v48, 4  ;;  %v4204_v48 = vcombine.low %v6496_v36, %v6498_v20 }
 0x17d   : > { %v4695_v16 = vpop.f32.mrb[25].mxu1 }
 0x17e   : > { %v4696_v0 = vadd.f32 %v4695_v16, %v4694_v49  ;;  %v4697_v2 = vpop.f32.mrb[26].mxu1  ;;  %3529 = vmatmul.mubr.bf16.gmra.mrb[128].mxu1 %v5771_v34  ;;  %v2138_v18 = vsel %vm5384_vm10, %v2133_v43, %v2137_v14 }
 0x17f   : > { %v4698_v45 = vpop.f32.mrb[27].mxu1  ;;  %5051 = vmatmul.mubr.bf16.gmra.mrb[120].mxu0 %v6212_v38  ;;  %v4606_v54 = vpop.f32.mrb[24].mxu0  ;;  %3536 = vmatprep.mubr.bf16.mxu1 %v6952_v30  ;;  %v2143_v30 = vrot.slane %v2142_v52, 4 }
 0x180   : > { %v6519_v27 = vadd.f32 %v4696_v0, %v6430_v63  ;;  %v4699_v28 = vadd.f32 %v4698_v45, %v4697_v2  ;;  %5054 = vmatprep.mubr.bf16.mxu0 %v6240_v1  ;;  %v4607_v58 = vpop.f32.mrb[25].mxu0 }
 0x181   : > { %v6524_v57 = vadd.f32 %v4607_v58, %v4606_v54  ;;  %v4609_v34 = vpop.f32.mrb[26].mxu0  ;;  %v2148_v13 = vsel %vm5384_vm10, %v2143_v30, %v2147_v5  ;;  %v4206_v30 = vrot.slane %v6496_v36, 9 }
 0x182   : > { %v6527_v11 = vadd.f32 %v4699_v28, %v6432_v53  ;;  %v4610_v38 = vpop.f32.mrb[27].mxu0  ;;  %v4205_v45 = vcombine.low %v2138_v18, %v2148_v13 }
 0x183   : > { %v6529_v32 = vadd.f32 %v4610_v38, %v4609_v34 }
 0x184   : > { %v4700_v63 = vpop.f32.mrb[28].mxu1 }
 0x185   : > { %v4701_v4 = vpop.f32.mrb[29].mxu1 }
 0x186   : > { %v4702_v1 = vadd.f32 %v4701_v4, %v4700_v63  ;;  %v4703_v61 = vpop.f32.mrb[30].mxu1  ;;  %3537 = vmatmul.mubr.bf16.gmra.mrb[132].mxu1 %v6940_v15 }
 0x187   : > { %v4704_v24 = vpop.f32.mrb[31].mxu1  ;;  %5055 = vmatmul.mubr.bf16.gmra.mrb[124].mxu0 %v6256_v39  ;;  %v4612_v49 = vpop.f32.mrb[28].mxu0  ;;  %3544 = vmatprep.mubr.bf16.mxu1 %v6376_v33 }
 0x188   : > { %v6534_v16 = vadd.f32 %v4702_v1, %v6450_v17  ;;  %v4705_v53 = vadd.f32 %v4704_v24, %v4703_v61  ;;  %5058 = vmatprep.mubr.bf16.mxu0 %v6288_v46  ;;  %v4613_v8 = vpop.f32.mrb[29].mxu0  ;;  %v2175_v1 = vrot.slane %v6514_v47, 5 }
 0x189   : > { %v6542_v15 = vadd.f32 %v4613_v8, %v4612_v49  ;;  %v4615_v0 = vpop.f32.mrb[30].mxu0 }
 0x18a   : > { %v6545_v39 = vadd.f32 %v4705_v53, %v6452_v23  ;;  %v4616_v17 = vpop.f32.mrb[31].mxu0 }
 0x18b   : > { %v6547_v2 = vadd.f32 %v4616_v17, %v4615_v0 }
 0x18e   : > { %v4706_v33 = vpop.f32.mrb[32].mxu1  ;;  %3545 = vmatmul.mubr.bf16.gmra.mrb[136].mxu1 %v6390_v41 }
 0x18f   : > { %v4707_v46 = vpop.f32.mrb[33].mxu1  ;;  %5059 = vmatmul.mubr.bf16.gmra.mrb[128].mxu0 %v6309_v3  ;;  %3552 = vmatprep.mubr.bf16.mxu1 %v4205_v45 }
 0x190   : > { %v4708_v14 = vadd.f32 %v4707_v46, %v4706_v33  ;;  %v4709_v54 = vpop.f32.mrb[34].mxu1  ;;  %5062 = vmatprep.mubr.bf16.mxu0 %v6331_v12  ;;  %v2172_v12 = vrot.slane %v6498_v20, 5 }
 0x191   : > { %v4710_v60 = vpop.f32.mrb[35].mxu1 }
 0x192   : > { %v6553_v28 = vadd.f32 %v4708_v14, %v6466_v56  ;;  %v4711_v23 = vadd.f32 %v4710_v60, %v4709_v54  ;;  %v2173_v36 = vsel %vm5361_vm9, %v4206_v30, %v2172_v12 }
 0x193   : > { %v4618_v58 = vpop.f32.mrb[32].mxu0 }
 0x194   : > { %v4619_v52 = vpop.f32.mrb[33].mxu0  ;;  %v6558_v41 = vadd.f32 %v4711_v23, %v6468_v42  ;;  %v2174_v42 = vrot.slane %v2172_v12, 4 }
 0x195   : > { %v4620_v26 = vadd.f32 %v4619_v52, %v4618_v58  ;;  %v4621_v3 = vpop.f32.mrb[34].mxu0 }
 0x196   : > { %v4622_v34 = vpop.f32.mrb[35].mxu0  ;;  %3553 = vmatmul.mubr.bf16.gmra.mrb[140].mxu1 %v4204_v48  ;;  %v4712_v56 = vpop.f32.mrb[36].mxu1  ;;  %v2176_v20 = vsel %vm5361_vm9, %v2174_v42, %v2175_v1 }
 0x197   : > { %v4623_v38 = vadd.f32 %v4622_v34, %v4621_v3  ;;  %5063 = vmatmul.mubr.bf16.gmra.mrb[132].mxu0 %v6367_v62  ;;  %v4713_v63 = vpop.f32.mrb[37].mxu1  ;;  %v4207_v0 = vcombine.low %v2173_v36, %v2176_v20 }
 0x198   : > { %5066 = vmatprep.mubr.bf16.mxu0 %v6386_v50  ;;  %v4714_v4 = vadd.f32 %v4713_v63, %v4712_v56  ;;  %v4715_v43 = vpop.f32.mrb[38].mxu1 }
 0x199   : > { %v4716_v5 = vpop.f32.mrb[39].mxu1 }
 0x19a   : > { %v6566_v61 = vadd.f32 %v4714_v4, %v6492_v55  ;;  %v4717_v24 = vadd.f32 %v4716_v5, %v4715_v43 }
 0x19c   : > { %v6569_v62 = vadd.f32 %v4717_v24, %v6494_v29 }
 0x19f   : > { %5067 = vmatmul.mubr.bf16.gmra.mrb[136].mxu0 %v6400_v51 }
 0x1a0   : > { %v4624_v49 = vpop.f32.mrb[36].mxu0  ;;  %5070 = vmatprep.mubr.bf16.mxu0 %v6365_v37 }
 0x1a1   : > { %v4625_v50 = vpop.f32.mrb[37].mxu0  ;;  %v4718_v8 = vpop.f32.mrb[40].mxu1 }
 0x1a2   : > { %v4626_v47 = vadd.f32 %v4625_v50, %v4624_v49  ;;  %v4627_v53 = vpop.f32.mrb[38].mxu0  ;;  %v4719_v13 = vpop.f32.mrb[41].mxu1 }
 0x1a3   : > { %v4628_v55 = vpop.f32.mrb[39].mxu0  ;;  %v4720_v29 = vadd.f32 %v4719_v13, %v4718_v8  ;;  %v4721_v17 = vpop.f32.mrb[42].mxu1 }
 0x1a4   : > { %v4629_v18 = vadd.f32 %v4628_v55, %v4627_v53  ;;  %v4722_v45 = vpop.f32.mrb[43].mxu1 }
 0x1a5   : > { %v6578_v51 = vadd.f32 %v4720_v29, %v6524_v57  ;;  %v4723_v37 = vadd.f32 %v4722_v45, %v4721_v17 }
 0x1a7   : > { %5071 = vmatmul.mubr.bf16.gmra.mrb[140].mxu0 %v4207_v0  ;;  %v6581_v33 = vadd.f32 %v4723_v37, %v6529_v32 }
 0x1a9   : > { %v4724_v40 = vpop.f32.mrb[44].mxu1 }
 0x1aa   : > { %v4725_v46 = vpop.f32.mrb[45].mxu1 }
 0x1ab   : > { %v4726_v14 = vadd.f32 %v4725_v46, %v4724_v40  ;;  %v4727_v54 = vpop.f32.mrb[46].mxu1 }
 0x1ac   : > { %v4728_v60 = vpop.f32.mrb[47].mxu1 }
 0x1ad   : > { %v6584_v23 = vadd.f32 %v4726_v14, %v6542_v15  ;;  %v4729_v58 = vadd.f32 %v4728_v60, %v4727_v54 }
 0x1af   : > { %v6587_v3 = vadd.f32 %v4729_v58, %v6547_v2 }
 0x1b0   : > { %v4630_v48 = vpop.f32.mrb[40].mxu0 }
 0x1b1   : > { %v4631_v52 = vpop.f32.mrb[41].mxu0  ;;  %v4730_v56 = vpop.f32.mrb[48].mxu1 }
 0x1b2   : > { %v4632_v57 = vadd.f32 %v4631_v52, %v4630_v48  ;;  %v4633_v34 = vpop.f32.mrb[42].mxu0  ;;  %v4731_v63 = vpop.f32.mrb[49].mxu1 }
 0x1b3   : > { %v4634_v12 = vpop.f32.mrb[43].mxu0  ;;  %v4732_v4 = vadd.f32 %v4731_v63, %v4730_v56  ;;  %v4733_v43 = vpop.f32.mrb[50].mxu1 }
 0x1b4   : > { %v4635_v32 = vadd.f32 %v4634_v12, %v4633_v34  ;;  %v4734_v30 = vpop.f32.mrb[51].mxu1 }
 0x1b5   : > { %v6589_v5 = vadd.f32 %v4732_v4, %v4620_v26  ;;  %v4735_v42 = vadd.f32 %v4734_v30, %v4733_v43 }
 0x1b7   : > { %v6591_v15 = vadd.f32 %v4735_v42, %v4623_v38 }
 0x1b9   : > { %v4736_v1 = vpop.f32.mrb[52].mxu1 }
 0x1ba   : > { %v4636_v24 = vpop.f32.mrb[44].mxu0  ;;  %v4737_v49 = vpop.f32.mrb[53].mxu1 }
 0x1bb   : > { %v4637_v50 = vpop.f32.mrb[45].mxu0  ;;  %v4738_v2 = vadd.f32 %v4737_v49, %v4736_v1  ;;  %v4739_v36 = vpop.f32.mrb[54].mxu1 }
 0x1bc   : > { %v4638_v20 = vadd.f32 %v4637_v50, %v4636_v24  ;;  %v4639_v53 = vpop.f32.mrb[46].mxu0  ;;  %v4740_v55 = vpop.f32.mrb[55].mxu1 }
 0x1bd   : > { %v4640_v8 = vpop.f32.mrb[47].mxu0  ;;  %v6593_v13 = vadd.f32 %v4738_v2, %v4626_v47  ;;  %v4741_v0 = vadd.f32 %v4740_v55, %v4739_v36 }
 0x1be   : > { %v4641_v29 = vadd.f32 %v4640_v8, %v4639_v53 }
 0x1bf   : > { %v6595_v17 = vadd.f32 %v4741_v0, %v4629_v18 }
 0x1c1   : > { %v4742_v26 = vpop.f32.mrb[56].mxu1 }
 0x1c2   : > { %v4794_v45 = vpop.f32.mrb[48].mxu0  ;;  %v4743_v38 = vpop.f32.mrb[57].mxu1 }
 0x1c3   : > { %v4795_v37 = vpop.f32.mrb[49].mxu0  ;;  %v4744_v40 = vadd.f32 %v4743_v38, %v4742_v26  ;;  %v4745_v46 = vpop.f32.mrb[58].mxu1 }
 0x1c4   : > { %v4796_v14 = vadd.f32 %v4795_v37, %v4794_v45  ;;  %v4797_v54 = vpop.f32.mrb[50].mxu0  ;;  %v4746_v60 = vpop.f32.mrb[59].mxu1 }
 0x1c5   : > { %v4798_v58 = vpop.f32.mrb[51].mxu0  ;;  %v6597_v48 = vadd.f32 %v4744_v40, %v4632_v57  ;;  %v4747_v52 = vadd.f32 %v4746_v60, %v4745_v46 }
 0x1c6   : > { %v6600_v47 = vadd.f32 %v4796_v14, %v6485_v59  ;;  %v4799_v34 = vadd.f32 %v4798_v58, %v4797_v54 }
 0x1c7   : > { %v6602_v12 = vadd.f32 %v4747_v52, %v4635_v32 }
 0x1c8   : > { %v6605_v18 = vadd.f32 %v4799_v34, %v6490_v25 }
 0x1c9   : > { %v4748_v56 = vpop.f32.mrb[60].mxu1 }
 0x1ca   : > { %v4800_v63 = vpop.f32.mrb[52].mxu0  ;;  %v4749_v4 = vpop.f32.mrb[61].mxu1 }
 0x1cb   : > { %v4801_v43 = vpop.f32.mrb[53].mxu0  ;;  %v4750_v30 = vadd.f32 %v4749_v4, %v4748_v56  ;;  %v4751_v42 = vpop.f32.mrb[62].mxu1 }
 0x1cc   : > { %v4802_v1 = vadd.f32 %v4801_v43, %v4800_v63  ;;  %v4803_v24 = vpop.f32.mrb[54].mxu0  ;;  %v4752_v57 = vpop.f32.mrb[63].mxu1 }
 0x1cd   : > { %v4804_v49 = vpop.f32.mrb[55].mxu0  ;;  %v6607_v50 = vadd.f32 %v4750_v30, %v4638_v20  ;;  %v4753_v59 = vadd.f32 %v4752_v57, %v4751_v42 }
 0x1ce   : > { %v6610_v2 = vadd.f32 %v4802_v1, %v6503_v22  ;;  %v4805_v32 = vadd.f32 %v4804_v49, %v4803_v24 }
 0x1cf   : > { %v6612_v36 = vadd.f32 %v4753_v59, %v4641_v29 }
 0x1d0   : > { %v6615_v25 = vadd.f32 %v4805_v32, %v6512_v19 }
 0x1d1   : > { %v4754_v53 = vpop.f32.mrb[64].mxu1 }
 0x1d2   : > { %v4806_v55 = vpop.f32.mrb[56].mxu0  ;;  %v4755_v8 = vpop.f32.mrb[65].mxu1 }
 0x1d3   : > { %v4807_v0 = vpop.f32.mrb[57].mxu0  ;;  %v4756_v26 = vadd.f32 %v4755_v8, %v4754_v53  ;;  %v4757_v45 = vpop.f32.mrb[66].mxu1 }
 0x1d4   : > { %v4808_v38 = vadd.f32 %v4807_v0, %v4806_v55  ;;  %v4809_v37 = vpop.f32.mrb[58].mxu0  ;;  %v4758_v20 = vpop.f32.mrb[67].mxu1 }
 0x1d5   : > { %v4810_v40 = vpop.f32.mrb[59].mxu0  ;;  %v6618_v46 = vadd.f32 %v4756_v26, %v6423_v9  ;;  %v4759_v22 = vadd.f32 %v4758_v20, %v4757_v45 }
 0x1d6   : > { %v6621_v29 = vadd.f32 %v4808_v38, %v6519_v27  ;;  %v4811_v14 = vadd.f32 %v4810_v40, %v4809_v37 }
 0x1d7   : > { %v6624_v19 = vadd.f32 %v4759_v22, %v6428_v6 }
 0x1d8   : > { %v6627_v54 = vadd.f32 %v4811_v14, %v6527_v11 }
 0x1d9   : > { %v4760_v60 = vpop.f32.mrb[68].mxu1 }
 0x1da   : > { %v4812_v58 = vpop.f32.mrb[60].mxu0  ;;  %v4761_v52 = vpop.f32.mrb[69].mxu1 }
 0x1db   : > { %v4813_v34 = vpop.f32.mrb[61].mxu0  ;;  %v4762_v56 = vadd.f32 %v4761_v52, %v4760_v60  ;;  %v4763_v63 = vpop.f32.mrb[70].mxu1 }
 0x1dc   : > { %v4814_v4 = vadd.f32 %v4813_v34, %v4812_v58  ;;  %v4815_v9 = vpop.f32.mrb[62].mxu0  ;;  %v4764_v43 = vpop.f32.mrb[71].mxu1 }
 0x1dd   : > { %v4816_v30 = vpop.f32.mrb[63].mxu0  ;;  %v6630_v27 = vadd.f32 %v4762_v56, %v6438_v7  ;;  %v4765_v42 = vadd.f32 %v4764_v43, %v4763_v63 }
 0x1de   : > { %v6633_v6 = vadd.f32 %v4814_v4, %v6534_v16  ;;  %v4817_v1 = vadd.f32 %v4816_v30, %v4815_v9 }
 0x1df   : > { %v6636_v11 = vadd.f32 %v4765_v42, %v6440_v44 }
 0x1e0   : > { %v6639_v24 = vadd.f32 %v4817_v1, %v6545_v39 }
 0x1e1   : > { %v4766_v57 = vpop.f32.mrb[72].mxu1 }
 0x1e2   : > { %v4818_v49 = vpop.f32.mrb[64].mxu0  ;;  %v4767_v59 = vpop.f32.mrb[73].mxu1 }
 0x1e3   : > { %v4819_v32 = vpop.f32.mrb[65].mxu0  ;;  %v4768_v53 = vadd.f32 %v4767_v59, %v4766_v57  ;;  %v4769_v55 = vpop.f32.mrb[74].mxu1 }
 0x1e4   : > { %v4820_v8 = vadd.f32 %v4819_v32, %v4818_v49  ;;  %v4821_v7 = vpop.f32.mrb[66].mxu0  ;;  %v4770_v0 = vpop.f32.mrb[75].mxu1 }
 0x1e5   : > { %v4822_v26 = vpop.f32.mrb[67].mxu0  ;;  %v6642_v16 = vadd.f32 %v4768_v53, %v6457_v35  ;;  %v4771_v45 = vadd.f32 %v4770_v0, %v4769_v55 }
 0x1e6   : > { %v6645_v44 = vadd.f32 %v4820_v8, %v6553_v28  ;;  %v4823_v38 = vadd.f32 %v4822_v26, %v4821_v7 }
 0x1e7   : > { %v6648_v39 = vadd.f32 %v4771_v45, %v6460_v10 }
 0x1e8   : > { %v6651_v37 = vadd.f32 %v4823_v38, %v6558_v41 }
 0x1e9   : > { %v4772_v20 = vpop.f32.mrb[76].mxu1 }
 0x1ea   : > { %v4824_v40 = vpop.f32.mrb[68].mxu0  ;;  %v4773_v22 = vpop.f32.mrb[77].mxu1 }
 0x1eb   : > { %v4825_v14 = vpop.f32.mrb[69].mxu0  ;;  %v4774_v60 = vadd.f32 %v4773_v22, %v4772_v20  ;;  %v4775_v58 = vpop.f32.mrb[78].mxu1 }
 0x1ec   : > { %v4826_v52 = vadd.f32 %v4825_v14, %v4824_v40  ;;  %v4827_v35 = vpop.f32.mrb[70].mxu0  ;;  %v4776_v34 = vpop.f32.mrb[79].mxu1 }
 0x1ed   : > { %v4828_v56 = vpop.f32.mrb[71].mxu0  ;;  %v6654_v28 = vadd.f32 %v4774_v60, %v6474_v21  ;;  %v4777_v63 = vadd.f32 %v4776_v34, %v4775_v58 }
 0x1ee   : > { %v6657_v10 = vadd.f32 %v4826_v52, %v6566_v61  ;;  %v4829_v4 = vadd.f32 %v4828_v56, %v4827_v35 }
 0x1ef   : > { %v6660_v41 = vadd.f32 %v4777_v63, %v6478_v31 }
 0x1f0   : > { %v6663_v9 = vadd.f32 %v4829_v4, %v6569_v62 }
 0x1f1   : > { %v4906_v43 = vpop.f32.mrb[80].mxu1 }
 0x1f2   : > { %v4830_v30 = vpop.f32.mrb[72].mxu0  ;;  %v4907_v42 = vpop.f32.mrb[81].mxu1 }
 0x1f3   : > { %v4831_v1 = vpop.f32.mrb[73].mxu0  ;;  %v4908_v57 = vadd.f32 %v4907_v42, %v4906_v43  ;;  %v4909_v49 = vpop.f32.mrb[82].mxu1 }
 0x1f4   : > { %v4832_v59 = vadd.f32 %v4831_v1, %v4830_v30  ;;  %v4833_v21 = vpop.f32.mrb[74].mxu0  ;;  %v4910_v32 = vpop.f32.mrb[83].mxu1 }
 0x1f5   : > { %v4834_v53 = vpop.f32.mrb[75].mxu0  ;;  %v4911_v55 = vadd.f32 %v4910_v32, %v4909_v49  ;;  %v6666_v61 = vadd.f32 %v4908_v57, %v6600_v47 }
 0x1f6   : > { %v6669_v31 = vadd.f32 %v4832_v59, %v6578_v51  ;;  %v4835_v8 = vadd.f32 %v4834_v53, %v4833_v21 }
 0x1f7   : > { %v6672_v62 = vadd.f32 %v4911_v55, %v6605_v18 }
 0x1f8   : > { %v6675_v7 = vadd.f32 %v4835_v8, %v6581_v33 }
 0x1f9   : > { %v4912_v0 = vpop.f32.mrb[84].mxu1 }
 0x1fa   : > { %v4836_v26 = vpop.f32.mrb[76].mxu0  ;;  %v4913_v45 = vpop.f32.mrb[85].mxu1 }
 0x1fb   : > { %v4837_v38 = vpop.f32.mrb[77].mxu0  ;;  %v4914_v20 = vadd.f32 %v4913_v45, %v4912_v0  ;;  %v4915_v40 = vpop.f32.mrb[86].mxu1 }
 0x1fc   : > { %v4838_v22 = vadd.f32 %v4837_v38, %v4836_v26  ;;  %v4839_v14 = vpop.f32.mrb[78].mxu0  ;;  %v4916_v47 = vpop.f32.mrb[87].mxu1 }
 0x1fd   : > { %v4840_v60 = vpop.f32.mrb[79].mxu0  ;;  %v4917_v58 = vadd.f32 %v4916_v47, %v4915_v40  ;;  %v6678_v51 = vadd.f32 %v4914_v20, %v6610_v2 }
 0x1fe   : > { %v6681_v18 = vadd.f32 %v4838_v22, %v6584_v23  ;;  %v4841_v52 = vadd.f32 %v4840_v60, %v4839_v14 }
 0x1ff   : > { %v6684_v33 = vadd.f32 %v4917_v58, %v6615_v25 }
 0x200   : > { %v6687_v35 = vadd.f32 %v4841_v52, %v6587_v3 }
 0x201   : > { %v4918_v34 = vpop.f32.mrb[88].mxu1 }
 0x202   : > { %v4842_v56 = vpop.f32.mrb[80].mxu0  ;;  %v4919_v63 = vpop.f32.mrb[89].mxu1 }
 0x203   : > { %v4843_v4 = vpop.f32.mrb[81].mxu0  ;;  %v4920_v43 = vadd.f32 %v4919_v63, %v4918_v34  ;;  %v4921_v30 = vpop.f32.mrb[90].mxu1 }
 0x204   : > { %v4844_v42 = vadd.f32 %v4843_v4, %v4842_v56  ;;  %v4845_v1 = vpop.f32.mrb[82].mxu0  ;;  %v4922_v2 = vpop.f32.mrb[91].mxu1 }
 0x205   : > { %v4846_v57 = vpop.f32.mrb[83].mxu0  ;;  %v4923_v49 = vadd.f32 %v4922_v2, %v4921_v30  ;;  %v6690_v23 = vadd.f32 %v4920_v43, %v6621_v29 }
 0x206   : > { %v6693_v25 = vadd.f32 %v4844_v42, %v6589_v5  ;;  %v4847_v59 = vadd.f32 %v4846_v57, %v4845_v1 }
 0x207   : > { %v6696_v3 = vadd.f32 %v4923_v49, %v6627_v54 }
 0x208   : > { %v6699_v21 = vadd.f32 %v4847_v59, %v6591_v15 }
 0x209   : > { %v4924_v32 = vpop.f32.mrb[92].mxu1 }
 0x20a   : > { %v4848_v53 = vpop.f32.mrb[84].mxu0  ;;  %v4925_v55 = vpop.f32.mrb[93].mxu1 }
 0x20b   : > { %v4849_v8 = vpop.f32.mrb[85].mxu0  ;;  %v4926_v0 = vadd.f32 %v4925_v55, %v4924_v32  ;;  %v4927_v26 = vpop.f32.mrb[94].mxu1 }
 0x20c   : > { %v4850_v45 = vadd.f32 %v4849_v8, %v4848_v53  ;;  %v4851_v38 = vpop.f32.mrb[86].mxu0  ;;  %v4928_v29 = vpop.f32.mrb[95].mxu1 }
 0x20d   : > { %v4852_v20 = vpop.f32.mrb[87].mxu0  ;;  %v4929_v40 = vadd.f32 %v4928_v29, %v4927_v26  ;;  %v6702_v5 = vadd.f32 %v4926_v0, %v6633_v6 }
 0x20e   : > { %v6705_v54 = vadd.f32 %v4850_v45, %v6593_v13  ;;  %v4853_v22 = vadd.f32 %v4852_v20, %v4851_v38 }
 0x20f   : > { %v6708_v15 = vadd.f32 %v4929_v40, %v6639_v24 }
 0x210   : > { %v6711_v14 = vadd.f32 %v4853_v22, %v6595_v17 }
 0x211   : > { %v4930_v47 = vpop.f32.mrb[96].mxu1 }
 0x212   : > { %v4854_v60 = vpop.f32.mrb[88].mxu0  ;;  %v4931_v58 = vpop.f32.mrb[97].mxu1 }
 0x213   : > { %v4855_v52 = vpop.f32.mrb[89].mxu0  ;;  %v4932_v34 = vadd.f32 %v4931_v58, %v4930_v47  ;;  %v4933_v56 = vpop.f32.mrb[98].mxu1 }
 0x214   : > { %v4856_v63 = vadd.f32 %v4855_v52, %v4854_v60  ;;  %v4857_v4 = vpop.f32.mrb[90].mxu0  ;;  %v4934_v6 = vpop.f32.mrb[99].mxu1 }
 0x215   : > { %v4858_v43 = vpop.f32.mrb[91].mxu0  ;;  %v4935_v30 = vadd.f32 %v4934_v6, %v4933_v56  ;;  %v6714_v13 = vadd.f32 %v4932_v34, %v6645_v44 }
 0x216   : > { %v6717_v24 = vadd.f32 %v4856_v63, %v6597_v48  ;;  %v4859_v42 = vadd.f32 %v4858_v43, %v4857_v4 }
 0x217   : > { %v6720_v17 = vadd.f32 %v4935_v30, %v6651_v37 }
 0x218   : > { %v6723_v1 = vadd.f32 %v4859_v42, %v6602_v12 }
 0x219   : > { %v4936_v2 = vpop.f32.mrb[100].mxu1 }
 0x21a   : > { %v4860_v57 = vpop.f32.mrb[92].mxu0  ;;  %v4937_v49 = vpop.f32.mrb[101].mxu1 }
 0x21b   : > { %v4861_v59 = vpop.f32.mrb[93].mxu0  ;;  %v4938_v32 = vadd.f32 %v4937_v49, %v4936_v2  ;;  %v4939_v53 = vpop.f32.mrb[102].mxu1 }
 0x21c   : > { %v4862_v55 = vadd.f32 %v4861_v59, %v4860_v57  ;;  %v4863_v8 = vpop.f32.mrb[94].mxu0  ;;  %v4940_v44 = vpop.f32.mrb[103].mxu1 }
 0x21d   : > { %v4864_v0 = vpop.f32.mrb[95].mxu0  ;;  %v4941_v26 = vadd.f32 %v4940_v44, %v4939_v53  ;;  %v6726_v48 = vadd.f32 %v4938_v32, %v6657_v10 }
 0x21e   : > { %v6729_v37 = vadd.f32 %v4862_v55, %v6607_v50  ;;  %v4865_v45 = vadd.f32 %v4864_v0, %v4863_v8 }
 0x21f   : > { %v6732_v12 = vadd.f32 %v4941_v26, %v6663_v9 }
 0x220   : > { %v6735_v38 = vadd.f32 %v4865_v45, %v6612_v36 }
 0x221   : > { %v4942_v29 = vpop.f32.mrb[104].mxu1 }
 0x222   : > { %v4866_v20 = vpop.f32.mrb[96].mxu0  ;;  %v4943_v40 = vpop.f32.mrb[105].mxu1 }
 0x223   : > { %v4867_v22 = vpop.f32.mrb[97].mxu0  ;;  %v4944_v47 = vadd.f32 %v4943_v40, %v4942_v29  ;;  %v4945_v60 = vpop.f32.mrb[106].mxu1 }
 0x224   : > { %v4868_v58 = vadd.f32 %v4867_v22, %v4866_v20  ;;  %v4869_v52 = vpop.f32.mrb[98].mxu0  ;;  %v4946_v10 = vpop.f32.mrb[107].mxu1 }
 0x225   : > { %v4870_v34 = vpop.f32.mrb[99].mxu0  ;;  %v4947_v56 = vadd.f32 %v4946_v10, %v4945_v60  ;;  %v6738_v50 = vadd.f32 %v4944_v47, %v6669_v31 }
 0x226   : > { %v6741_v9 = vadd.f32 %v4868_v58, %v6618_v46  ;;  %v4871_v63 = vadd.f32 %v4870_v34, %v4869_v52 }
 0x227   : > { %v6744_v36 = vadd.f32 %v4947_v56, %v6675_v7 }
 0x228   : > { %v6747_v4 = vadd.f32 %v4871_v63, %v6624_v19 }
 0x229   : > { %v4948_v6 = vpop.f32.mrb[108].mxu1 }
 0x22a   : > { %v4872_v43 = vpop.f32.mrb[100].mxu0  ;;  %v4949_v30 = vpop.f32.mrb[109].mxu1 }
 0x22b   : > { %v4873_v42 = vpop.f32.mrb[101].mxu0  ;;  %v4950_v2 = vadd.f32 %v4949_v30, %v4948_v6  ;;  %v4951_v57 = vpop.f32.mrb[110].mxu1 }
 0x22c   : > { %v4874_v49 = vadd.f32 %v4873_v42, %v4872_v43  ;;  %v4875_v59 = vpop.f32.mrb[102].mxu0  ;;  %v4952_v31 = vpop.f32.mrb[111].mxu1 }
 0x22d   : > { %v4876_v32 = vpop.f32.mrb[103].mxu0  ;;  %v4953_v53 = vadd.f32 %v4952_v31, %v4951_v57  ;;  %v6750_v46 = vadd.f32 %v4950_v2, %v6681_v18 }
 0x22e   : > { %v6753_v7 = vadd.f32 %v4874_v49, %v6630_v27  ;;  %v4877_v55 = vadd.f32 %v4876_v32, %v4875_v59 }
 0x22f   : > { %v6756_v19 = vadd.f32 %v4953_v53, %v6687_v35 }
 0x230   : > { %v6759_v8 = vadd.f32 %v4877_v55, %v6636_v11 }
 0x231   : > { %v4954_v44 = vpop.f32.mrb[112].mxu1 }
 0x232   : > { %v4878_v0 = vpop.f32.mrb[104].mxu0  ;;  %v4955_v26 = vpop.f32.mrb[113].mxu1 }
 0x233   : > { %v4879_v45 = vpop.f32.mrb[105].mxu0  ;;  %v4956_v29 = vadd.f32 %v4955_v26, %v4954_v44  ;;  %v4957_v20 = vpop.f32.mrb[114].mxu1 }
 0x234   : > { %v4880_v40 = vadd.f32 %v4879_v45, %v4878_v0  ;;  %v4881_v22 = vpop.f32.mrb[106].mxu0  ;;  %v4958_v18 = vpop.f32.mrb[115].mxu1 }
 0x235   : > { %v4882_v47 = vpop.f32.mrb[107].mxu0  ;;  %v4959_v60 = vadd.f32 %v4958_v18, %v4957_v20  ;;  %v6762_v27 = vadd.f32 %v4956_v29, %v6693_v25 }
 0x236   : > { %v6765_v35 = vadd.f32 %v4880_v40, %v6642_v16  ;;  %v4883_v58 = vadd.f32 %v4882_v47, %v4881_v22 }
 0x237   : > { %v6768_v11 = vadd.f32 %v4959_v60, %v6699_v21 }
 0x238   : > { %v6771_v52 = vadd.f32 %v4883_v58, %v6648_v39 }
 0x239   : > { %v4960_v10 = vpop.f32.mrb[116].mxu1 }
 0x23a   : > { %v4884_v34 = vpop.f32.mrb[108].mxu0  ;;  %v4961_v56 = vpop.f32.mrb[117].mxu1 }
 0x23b   : > { %v4885_v63 = vpop.f32.mrb[109].mxu0  ;;  %v4962_v6 = vadd.f32 %v4961_v56, %v4960_v10  ;;  %v4963_v43 = vpop.f32.mrb[118].mxu1 }
 0x23c   : > { %v4886_v30 = vadd.f32 %v4885_v63, %v4884_v34  ;;  %v4887_v42 = vpop.f32.mrb[110].mxu0  ;;  %v4964_v25 = vpop.f32.mrb[119].mxu1 }
 0x23d   : > { %v4888_v2 = vpop.f32.mrb[111].mxu0  ;;  %v4965_v57 = vadd.f32 %v4964_v25, %v4963_v43  ;;  %v6774_v16 = vadd.f32 %v4962_v6, %v6705_v54 }
 0x23e   : > { %v6777_v21 = vadd.f32 %v4886_v30, %v6654_v28  ;;  %v4889_v49 = vadd.f32 %v4888_v2, %v4887_v42 }
 0x23f   : > { %v6780_v39 = vadd.f32 %v4965_v57, %v6711_v14 }
 0x240   : > { %v6783_v59 = vadd.f32 %v4889_v49, %v6660_v41 }
 0x241   : > { %v4966_v31 = vpop.f32.mrb[120].mxu1 }
 0x242   : > { %v5044_v32 = vpop.f32.mrb[112].mxu0  ;;  %v4967_v53 = vpop.f32.mrb[121].mxu1 }
 0x243   : > { %v3604_v55 = vadd.f32 %v5044_v32, %v6678_v51  ;;  %v3595_v44 = vpop.f32.mrb[113].mxu0  ;;  %v4968_v0 = vadd.f32 %v4967_v53, %v4966_v31  ;;  %v4969_v54 = vpop.f32.mrb[122].mxu1 }
 0x244   : > { %v3596_v26 = vadd.f32 %v3595_v44, %v6666_v61  ;;  %v5045_v28 = vpop.f32.mrb[114].mxu0  ;;  %v4970_v45 = vpop.f32.mrb[123].mxu1 }
 0x245   : > { %v3607_v29 = vadd.f32 %v5045_v28, %v6684_v33  ;;  %v3598_v14 = vpop.f32.mrb[115].mxu0  ;;  %v4971_v20 = vadd.f32 %v4970_v45, %v4969_v54  ;;  %v6789_v40 = vadd.f32 %v4968_v0, %v6717_v24  ;;  %v3922_v60 = vmul.f32 %v3604_v55, %v3604_v55 }
 0x246   : > { %v3599_v41 = vadd.f32 %v3598_v14, %v6672_v62  ;;  %v3920_v33 = vmul.f32 %v3596_v26, %v3596_v26 }
 0x247   : > { %v4452_v61 = vpack.c.bf16 %v3607_v29, %v3604_v55  ;;  %v6800_v51 = vadd.f32 %v4971_v20, %v6723_v1  ;;  %v3923_v30 = vmul.f32 %v3607_v29, %v3607_v29 }
 0x248   : > { %v4447_v22 = vpack.c.bf16 %v3599_v41, %v3596_v26  ;;  %v3882_v18 = vadd.f32 %v3599_v41, %v3596_v26  ;;  %v3921_v47 = vmul.f32 %v3599_v41, %v3599_v41 }
 0x249   : > { %4539 = vst [vmem:[%s6796_s19 + $0x8] sm:$0xff] %v4452_v61   ;;  %v4972_v24 = vpop.f32.mrb[124].mxu1 }
 0x24a   : > { %4448 = vst [vmem:[%s6796_s19] sm:$0xff] %v4447_v22   ;;  %v3883_v58 = vadd.f32 %v3882_v18, %v3604_v55  ;;  %v3952_v10 = vadd.f32 %v3921_v47, %v3920_v33  ;;  %v5048_v34 = vpop.f32.mrb[116].mxu0  ;;  %v4973_v56 = vpop.f32.mrb[125].mxu1 }
 0x24b   : > { %v3620_v63 = vadd.f32 %v5048_v34, %v6702_v5  ;;  %v3611_v6 = vpop.f32.mrb[117].mxu0  ;;  %v4974_v62 = vadd.f32 %v4973_v56, %v4972_v24  ;;  %v4975_v43 = vpop.f32.mrb[126].mxu1 }
 0x24c   : > { %v3953_v1 = vadd.f32 %v3952_v10, %v3922_v60  ;;  %v3612_v42 = vadd.f32 %v3611_v6, %v6690_v23  ;;  %v3884_v25 = vadd.f32 %v3883_v58, %v3607_v29  ;;  %v5049_v2 = vpop.f32.mrb[118].mxu0  ;;  %v4976_v57 = vpop.f32.mrb[127].mxu1 }
 0x24d   : > { %v3623_v49 = vadd.f32 %v5049_v2, %v6708_v15  ;;  %v3614_v31 = vpop.f32.mrb[119].mxu0  ;;  %v4977_v32 = vadd.f32 %v4976_v57, %v4975_v43  ;;  %v6808_v53 = vadd.f32 %v4974_v62, %v6729_v37  ;;  %v3926_v14 = vmul.f32 %v3620_v63, %v3620_v63 }
 0x24e   : > { %v3885_v5 = vadd.f32 %v3884_v25, %v3612_v42  ;;  %v3924_v55 = vmul.f32 %v3612_v42, %v3612_v42  ;;  %v3954_v44 = vadd.f32 %v3953_v1, %v3923_v30  ;;  %v3615_v0 = vadd.f32 %v3614_v31, %v6696_v3 }
 0x24f   : > { %v4462_v54 = vpack.c.bf16 %v3623_v49, %v3620_v63  ;;  %v6812_v23 = vadd.f32 %v4977_v32, %v6735_v38  ;;  %v3927_v47 = vmul.f32 %v3623_v49, %v3623_v49 }
 0x250   : > { %v3955_v26 = vadd.f32 %v3954_v44, %v3924_v55  ;;  %v4457_v28 = vpack.c.bf16 %v3615_v0, %v3612_v42  ;;  %v3886_v45 = vadd.f32 %v3885_v5, %v3615_v0  ;;  %v3925_v29 = vmul.f32 %v3615_v0, %v3615_v0 }
 0x251   : > { %4541 = vst [vmem:[%s6796_s19 + $0x18] sm:$0xff] %v4462_v54   ;;  %v4978_v15 = vpop.f32.mrb[128].mxu1 }
 0x252   : > { %4540 = vst [vmem:[%s6796_s19 + $0x10] sm:$0xff] %v4457_v28   ;;  %v3887_v20 = vadd.f32 %v3886_v45, %v3620_v63  ;;  %v3956_v37 = vadd.f32 %v3955_v26, %v3925_v29  ;;  %v5052_v41 = vpop.f32.mrb[120].mxu0  ;;  %v4979_v61 = vpop.f32.mrb[129].mxu1 }
 0x253   : > { %v3636_v33 = vadd.f32 %v5052_v41, %v6726_v48  ;;  %v3627_v22 = vpop.f32.mrb[121].mxu0  ;;  %v4980_v3 = vadd.f32 %v4979_v61, %v4978_v15  ;;  %v4981_v18 = vpop.f32.mrb[130].mxu1 }
 0x254   : > { %v3957_v38 = vadd.f32 %v3956_v37, %v3926_v14  ;;  %v3628_v24 = vadd.f32 %v3627_v22, %v6714_v13  ;;  %v3888_v60 = vadd.f32 %v3887_v20, %v3623_v49  ;;  %v5053_v58 = vpop.f32.mrb[122].mxu0  ;;  %v4982_v10 = vpop.f32.mrb[131].mxu1 }
 0x255   : > { %v3639_v34 = vadd.f32 %v5053_v58, %v6732_v12  ;;  %v3630_v56 = vpop.f32.mrb[123].mxu0  ;;  %v4983_v63 = vadd.f32 %v4982_v10, %v4981_v18  ;;  %v6820_v6 = vadd.f32 %v4980_v3, %v6741_v9  ;;  %v3930_v49 = vmul.f32 %v3636_v33, %v3636_v33 }
 0x256   : > { %v3889_v48 = vadd.f32 %v3888_v60, %v3628_v24  ;;  %v3928_v62 = vmul.f32 %v3628_v24, %v3628_v24  ;;  %v3958_v43 = vadd.f32 %v3957_v38, %v3927_v47  ;;  %v3631_v30 = vadd.f32 %v3630_v56, %v6720_v17 }
 0x257   : > { %v4472_v1 = vpack.c.bf16 %v3639_v34, %v3636_v33  ;;  %v6824_v13 = vadd.f32 %v4983_v63, %v6747_v4  ;;  %v3931_v54 = vmul.f32 %v3639_v34, %v3639_v34 }
 0x258   : > { %v3959_v42 = vadd.f32 %v3958_v43, %v3928_v62  ;;  %v4467_v25 = vpack.c.bf16 %v3631_v30, %v3628_v24  ;;  %v3890_v2 = vadd.f32 %v3889_v48, %v3631_v30  ;;  %v3929_v57 = vmul.f32 %v3631_v30, %v3631_v30 }
 0x259   : > { %4543 = vst [vmem:[%s6796_s19 + $0x28] sm:$0xff] %v4472_v1   ;;  %v4984_v12 = vpop.f32.mrb[132].mxu1 }
 0x25a   : > { %4542 = vst [vmem:[%s6796_s19 + $0x20] sm:$0xff] %v4467_v25   ;;  %v3891_v31 = vadd.f32 %v3890_v2, %v3636_v33  ;;  %v3960_v9 = vadd.f32 %v3959_v42, %v3929_v57  ;;  %v5056_v32 = vpop.f32.mrb[124].mxu0  ;;  %v4985_v5 = vpop.f32.mrb[133].mxu1 }
 0x25b   : > { %v3652_v55 = vadd.f32 %v5056_v32, %v6750_v46  ;;  %v3643_v44 = vpop.f32.mrb[125].mxu0  ;;  %v4986_v17 = vadd.f32 %v4985_v5, %v4984_v12  ;;  %v4987_v0 = vpop.f32.mrb[134].mxu1 }
 0x25c   : > { %v3961_v4 = vadd.f32 %v3960_v9, %v3930_v49  ;;  %v3644_v26 = vadd.f32 %v3643_v44, %v6738_v50  ;;  %v3892_v28 = vadd.f32 %v3891_v31, %v3639_v34  ;;  %v5057_v45 = vpop.f32.mrb[126].mxu0  ;;  %v4988_v29 = vpop.f32.mrb[135].mxu1 }
 0x25d   : > { %v3655_v15 = vadd.f32 %v5057_v45, %v6756_v19  ;;  %v3646_v14 = vpop.f32.mrb[127].mxu0  ;;  %v6832_v20 = vadd.f32 %v4986_v17, %v6753_v7  ;;  %v4989_v37 = vadd.f32 %v4988_v29, %v4987_v0  ;;  %v3934_v24 = vmul.f32 %v3652_v55, %v3652_v55 }
 0x25e   : > { %v3893_v46 = vadd.f32 %v3892_v28, %v3644_v26  ;;  %v3932_v41 = vmul.f32 %v3644_v26, %v3644_v26  ;;  %v3962_v61 = vadd.f32 %v3961_v4, %v3931_v54  ;;  %v3647_v33 = vadd.f32 %v3646_v14, %v6744_v36 }
 0x25f   : > { %v4482_v22 = vpack.c.bf16 %v3655_v15, %v3652_v55  ;;  %v6836_v50 = vadd.f32 %v4989_v37, %v6759_v8  ;;  %v3935_v48 = vmul.f32 %v3655_v15, %v3655_v15 }
 0x260   : > { %v3963_v3 = vadd.f32 %v3962_v61, %v3932_v41  ;;  %v4477_v18 = vpack.c.bf16 %v3647_v33, %v3644_v26  ;;  %v3894_v47 = vadd.f32 %v3893_v46, %v3647_v33  ;;  %v3933_v38 = vmul.f32 %v3647_v33, %v3647_v33 }
 0x261   : > { %4545 = vst [vmem:[%s6796_s19 + $0x38] sm:$0xff] %v4482_v22   ;;  %v4990_v19 = vpop.f32.mrb[136].mxu1 }
 0x262   : > { %4544 = vst [vmem:[%s6796_s19 + $0x30] sm:$0xff] %v4477_v18   ;;  %v3895_v7 = vadd.f32 %v3894_v47, %v3652_v55  ;;  %v3964_v60 = vadd.f32 %v3963_v3, %v3933_v38  ;;  %v5060_v58 = vpop.f32.mrb[128].mxu0  ;;  %v4991_v10 = vpop.f32.mrb[137].mxu1 }
 0x263   : > { %v3668_v34 = vadd.f32 %v5060_v58, %v6774_v16  ;;  %v3659_v56 = vpop.f32.mrb[129].mxu0  ;;  %v4992_v36 = vadd.f32 %v4991_v10, %v4990_v19  ;;  %v4993_v63 = vpop.f32.mrb[138].mxu1 }
 0x264   : > { %v3965_v8 = vadd.f32 %v3964_v60, %v3934_v24  ;;  %v3660_v62 = vadd.f32 %v3659_v56, %v6762_v27  ;;  %v3896_v43 = vadd.f32 %v3895_v7, %v3655_v15  ;;  %v5061_v30 = vpop.f32.mrb[130].mxu0  ;;  %v4994_v1 = vpop.f32.mrb[139].mxu1 }
 0x265   : > { %v3671_v42 = vadd.f32 %v5061_v30, %v6780_v39  ;;  %v3662_v25 = vpop.f32.mrb[131].mxu0  ;;  %v4995_v2 = vadd.f32 %v4994_v1, %v4993_v63  ;;  %v6844_v57 = vadd.f32 %v4992_v36, %v6765_v35  ;;  %v3938_v17 = vmul.f32 %v3668_v34, %v3668_v34 }
 0x266   : > { %v3897_v16 = vadd.f32 %v3896_v43, %v3660_v62  ;;  %v3936_v12 = vmul.f32 %v3660_v62, %v3660_v62  ;;  %v3966_v49 = vadd.f32 %v3965_v8, %v3935_v48  ;;  %v3663_v31 = vadd.f32 %v3662_v25, %v6768_v11 }
 0x267   : > { %v4492_v9 = vpack.c.bf16 %v3671_v42, %v3668_v34  ;;  %v6848_v27 = vadd.f32 %v4995_v2, %v6771_v52  ;;  %v3939_v29 = vmul.f32 %v3671_v42, %v3671_v42 }
 0x268   : > { %v3967_v32 = vadd.f32 %v3966_v49, %v3936_v12  ;;  %v4487_v5 = vpack.c.bf16 %v3663_v31, %v3660_v62  ;;  %v3898_v55 = vadd.f32 %v3897_v16, %v3663_v31  ;;  %v3937_v44 = vmul.f32 %v3663_v31, %v3663_v31 }
 0x269   : > { %4547 = vst [vmem:[%s6796_s19 + $0x48] sm:$0xff] %v4492_v9   ;;  %v4996_v39 = vpop.f32.mrb[140].mxu1 }
 0x26a   : > { %4546 = vst [vmem:[%s6796_s19 + $0x40] sm:$0xff] %v4487_v5   ;;  %v3899_v0 = vadd.f32 %v3898_v55, %v3668_v34  ;;  %v3968_v35 = vadd.f32 %v3967_v32, %v3937_v44  ;;  %v5064_v54 = vpop.f32.mrb[132].mxu0  ;;  %v4997_v4 = vpop.f32.mrb[141].mxu1 }
 0x26b   : > { %v3684_v26 = vadd.f32 %v5064_v54, %v6808_v53  ;;  %v3675_v28 = vpop.f32.mrb[133].mxu0  ;;  %v4998_v11 = vadd.f32 %v4997_v4, %v4996_v39  ;;  %v4999_v45 = vpop.f32.mrb[142].mxu1 }
 0x26c   : > { %v3969_v52 = vadd.f32 %v3968_v35, %v3938_v17  ;;  %v3676_v15 = vadd.f32 %v3675_v28, %v6789_v40  ;;  %v3900_v14 = vadd.f32 %v3899_v0, %v3671_v42  ;;  %v5065_v37 = vpop.f32.mrb[134].mxu0  ;;  %v5000_v46 = vpop.f32.mrb[143].mxu1 }
 0x26d   : > { %v3687_v41 = vadd.f32 %v5065_v37, %v6812_v23  ;;  %v3678_v61 = vpop.f32.mrb[135].mxu0  ;;  %v3555_v33 = vadd.f32 %v4998_v11, %v6777_v21  ;;  %v5001_v22 = vadd.f32 %v5000_v46, %v4999_v45  ;;  %v3942_v58 = vmul.f32 %v3684_v26, %v3684_v26 }
 0x26e   : > { %v3901_v3 = vadd.f32 %v3900_v14, %v3676_v15  ;;  %v3940_v53 = vmul.f32 %v3676_v15, %v3676_v15  ;;  %v3970_v18 = vadd.f32 %v3969_v52, %v3939_v29  ;;  %v3679_v47 = vadd.f32 %v3678_v61, %v6800_v51 }
 0x26f   : > { %v4502_v38 = vpack.c.bf16 %v3687_v41, %v3684_v26  ;;  %v3558_v19 = vadd.f32 %v5001_v22, %v6783_v59  ;;  %v3943_v36 = vmul.f32 %v3687_v41, %v3687_v41 }
 0x270   : > { %v3971_v40 = vadd.f32 %v3970_v18, %v3940_v53  ;;  %v4497_v24 = vpack.c.bf16 %v3679_v47, %v3676_v15  ;;  %v3902_v7 = vadd.f32 %v3901_v3, %v3679_v47  ;;  %v3941_v60 = vmul.f32 %v3679_v47, %v3679_v47 }
 0x271   : > { %4549 = vst [vmem:[%s6796_s19 + $0x58] sm:$0xff] %v4502_v38  }
 0x272   : > { %4548 = vst [vmem:[%s6796_s19 + $0x50] sm:$0xff] %v4497_v24   ;;  %v3903_v23 = vadd.f32 %v3902_v7, %v3684_v26  ;;  %v3972_v10 = vadd.f32 %v3971_v40, %v3941_v60  ;;  %v5068_v34 = vpop.f32.mrb[136].mxu0 }
 0x273   : > { %v3700_v21 = vadd.f32 %v5068_v34, %v6832_v20  ;;  %v3691_v56 = vpop.f32.mrb[137].mxu0 }
 0x274   : > { %v3973_v63 = vadd.f32 %v3972_v10, %v3942_v58  ;;  %v3692_v51 = vadd.f32 %v3691_v56, %v6820_v6  ;;  %v3904_v48 = vadd.f32 %v3903_v23, %v3687_v41  ;;  %v5069_v59 = vpop.f32.mrb[138].mxu0 }
 0x275   : > { %v3703_v8 = vadd.f32 %v5069_v59, %v6836_v50  ;;  %v3694_v62 = vpop.f32.mrb[139].mxu0  ;;  %v3946_v25 = vmul.f32 %v3700_v21, %v3700_v21 }
 0x276   : > { %v3905_v43 = vadd.f32 %v3904_v48, %v3692_v51  ;;  %v3944_v30 = vmul.f32 %v3692_v51, %v3692_v51  ;;  %v3974_v1 = vadd.f32 %v3973_v63, %v3943_v36  ;;  %v3695_v42 = vadd.f32 %v3694_v62, %v6824_v13 }
 0x277   : > { %v4512_v2 = vpack.c.bf16 %v3703_v8, %v3700_v21  ;;  %v3947_v31 = vmul.f32 %v3703_v8, %v3703_v8 }
 0x278   : > { %v3975_v20 = vadd.f32 %v3974_v1, %v3944_v30  ;;  %v4507_v16 = vpack.c.bf16 %v3695_v42, %v3692_v51  ;;  %v3906_v12 = vadd.f32 %v3905_v43, %v3695_v42  ;;  %v3945_v49 = vmul.f32 %v3695_v42, %v3695_v42 }
 0x279   : > { %4551 = vst [vmem:[%s6796_s19 + $0x68] sm:$0xff] %v4512_v2  }
 0x27a   : > { %4550 = vst [vmem:[%s6796_s19 + $0x60] sm:$0xff] %v4507_v16   ;;  %v3907_v6 = vadd.f32 %v3906_v12, %v3700_v21  ;;  %v3976_v9 = vadd.f32 %v3975_v20, %v3945_v49  ;;  %v5072_v32 = vpop.f32.mrb[140].mxu0 }
 0x27b   : > { %v3707_v5 = vpop.f32.mrb[141].mxu0  ;;  %v3716_v50 = vadd.f32 %v5072_v32, %v3555_v33 }
 0x27c   : > { %v3977_v55 = vadd.f32 %v3976_v9, %v3946_v25  ;;  %v3708_v44 = vadd.f32 %v3707_v5, %v6844_v57  ;;  %v3908_v13 = vadd.f32 %v3907_v6, %v3703_v8  ;;  %v5073_v39 = vpop.f32.mrb[142].mxu0 }
 0x27d   : > { %v3710_v17 = vpop.f32.mrb[143].mxu0  ;;  %v3719_v0 = vadd.f32 %v5073_v39, %v3558_v19  ;;  %v3950_v28 = vmul.f32 %v3716_v50, %v3716_v50 }
 0x27e   : > { %v3909_v35 = vadd.f32 %v3908_v13, %v3708_v44  ;;  %v3948_v54 = vmul.f32 %v3708_v44, %v3708_v44  ;;  %v3978_v4 = vadd.f32 %v3977_v55, %v3947_v31  ;;  %v3711_v26 = vadd.f32 %v3710_v17, %v6848_v27 }
 0x27f   : > { %v4522_v11 = vpack.c.bf16 %v3719_v0, %v3716_v50  ;;  %v3951_v37 = vmul.f32 %v3719_v0, %v3719_v0 }
 0x280   : > { %v3979_v45 = vadd.f32 %v3978_v4, %v3948_v54  ;;  %v4517_v29 = vpack.c.bf16 %v3711_v26, %v3708_v44  ;;  %v3910_v52 = vadd.f32 %v3909_v35, %v3711_v26  ;;  %v3949_v15 = vmul.f32 %v3711_v26, %v3711_v26 }
 0x281   : > { %4553 = vst [vmem:[%s6796_s19 + $0x78] sm:$0xff] %v4522_v11  }
 0x282   : > { %4552 = vst [vmem:[%s6796_s19 + $0x70] sm:$0xff] %v4517_v29   ;;  %v3980_v57 = vadd.f32 %v3979_v45, %v3949_v15  ;;  %v3911_v14 = vadd.f32 %v3910_v52, %v3716_v50 }
 0x284   : > { %v3981_v46 = vadd.f32 %v3980_v57, %v3950_v28  ;;  %v3912_v41 = vadd.f32 %v3911_v14, %v3719_v0 }
 0x286   : > { %v3913_v61 = vrot.slane %v3912_v41, 4  ;;  %v3982_v33 = vadd.f32 %v3981_v46, %v3951_v37 }
 0x288   : > { %v3914_v22 = vadd.f32 %v3913_v61, %v3912_v41  ;;  %v3983_v3 = vrot.slane %v3982_v33, 4 }
 0x28a   : > { %v3915_v27 = vrot.slane %v3914_v22, 2  ;;  %v3984_v53 = vadd.f32 %v3983_v3, %v3982_v33 }
 0x28c   : > { %v3916_v18 = vadd.f32 %v3915_v27, %v3914_v22  ;;  %v3985_v47 = vrot.slane %v3984_v53, 2 }
 0x28e   : > { %v3917_v38 = vrot.slane %v3916_v18, 1  ;;  %v3986_v19 = vadd.f32 %v3985_v47, %v3984_v53 }
 0x290   : > { %v3918_v40 = vadd.f32 %v3917_v38, %v3916_v18  ;;  %v3987_v24 = vrot.slane %v3986_v19, 1 }
 0x292   : > { %3919 = vst [vmem:[%s319_s20] sm:$0x1] %v3918_v40  ;;  %v3988_v7 = vadd.f32 %v3987_v24, %v3986_v19 }
 0x294   : > { %3989 = vst [vmem:[%s322_s23] sm:$0x1] %v3988_v7 }
 0x295 PF: > { %s19_s27 = sadd.s32 1, %s5210_s27  }
 0x296   : > { %p16_p4 = scmp.ge.s32.totalorder %s19_s27, 4  }
 0x298   :  { %18 = sbr.rel (!%p16_p4) target bundleno = 1 (0x1), region = 100 }

</bundles_post_ra>
